<compile_context>
chip_gen: v6e
topology: v6e:2x2x1
jax: 0.10.0
libtpu: 0.0.40
codegen_flags: <defaults>
</compile_context>

<pallas_src>
import functools

import jax
import jax.numpy as jnp
import numpy as np
from jax.experimental import pallas as pl
from jax.experimental.pallas import tpu as pltpu

_BN_EPS = 1e-5
_LANES = 128


def _round_up(x, m):
    return (x + m - 1) // m * m


# ----------------------------------------------------------------------------
# Kernel
# ----------------------------------------------------------------------------
def _conv3x3(buf, w_ref, h_rows, wpad):
    """9-tap shift-and-matmul 3x3 conv over a flat padded plane (value form).

    buf   : ((h_rows+4)*wpad, Cin) bf16 value; plane lives at row offset
            2*wpad, halo rows and columns >= valid width are zero.
    w_ref : (9, Cin, Cout) bf16 taps (row-major kh*3+kw).
    Returns (h_rows*wpad, Cout) f32; entries at columns >= valid width are
    wrap garbage the caller masks / drops.
    """
    n_rows = h_rows * wpad
    span = (h_rows + 2) * wpad
    acc = None
    for kw in range(3):
        sh = buf[wpad + kw - 1: wpad + kw - 1 + span, :]   # one shifted slab per kw
        for kh in range(3):
            lhs = sh[kh * wpad: kh * wpad + n_rows, :]     # 8-aligned sub-slices
            t = jnp.dot(lhs, w_ref[kh * 3 + kw],
                        preferred_element_type=jnp.float32)
            acc = t if acc is None else acc + t
    return acc


def _basic_block_kernel(x_ref, w1_ref, s1_ref, b1_ref, w2_ref, s2_ref, b2_ref,
                        *rest, stride, h_in, w_in, wpad_in, h_out, w_out,
                        wpad_out, has_proj):
    if has_proj:
        wsc_ref, ssc_ref, bsc_ref, out_ref, o1buf = rest
    else:
        out_ref, o1buf = rest

    pp = out_ref.shape[-1]
    n_in_rows = h_in * wpad_in
    n_out_rows = h_out * wpad_out

    xv = x_ref[0]                    # ((h_in+4)*wpad_in, Cin) bf16, halos zero

    # -- conv1 + BN1 + ReLU + wrap-column mask (one fused expression) ---------
    acc1 = _conv3x3(xv, w1_ref, h_in, wpad_in)
    out1 = jnp.maximum(acc1 * s1_ref[...] + b1_ref[...], 0.0)
    col = jax.lax.broadcasted_iota(jnp.int32, (n_in_rows, 1), 0) % wpad_in
    out1 = jnp.where(col < w_in, out1, 0.0)   # zero wrap cols for conv2's taps

    # -- stage conv1 output (halo rows only zeroed; interior overwritten) -----
    zero_halo = jnp.zeros((2 * wpad_out, pp), o1buf.dtype)
    o1buf[pl.ds(0, 2 * wpad_out), :] = zero_halo
    o1buf[pl.ds((h_out + 2) * wpad_out, 2 * wpad_out), :] = zero_halo
    if stride == 1:
        o1buf[pl.ds(2 * wpad_out, n_out_rows), :] = out1.astype(o1buf.dtype)
    else:
        # TODO(synk): stride>1 still computes conv1 densely and subsamples via
        # strided value slices (relayout-heavy, unexercised in __main__); a
        # strided-tap conv1 would cut its MXU work ~4x.
        o3 = out1.reshape(h_in, wpad_in, pp)[::stride, ::stride, :]
        o3 = o3[:h_out, :w_out, :]
        o3 = jnp.pad(o3, ((0, 0), (0, wpad_out - w_out), (0, 0)))
        o1buf[pl.ds(2 * wpad_out, n_out_rows), :] = (
            o3.reshape(n_out_rows, pp).astype(o1buf.dtype))

    # -- conv2 + BN2 -----------------------------------------------------------
    acc2 = _conv3x3(o1buf[...], w2_ref, h_out, wpad_out)
    out2 = acc2 * s2_ref[...] + b2_ref[...]

    # -- shortcut (reuses the already-resident input plane) --------------------
    if stride == 1:
        xsc = xv[2 * wpad_in: 2 * wpad_in + n_in_rows, :]
    else:
        # TODO(synk): see stride>1 note above.
        x3 = xv.reshape(h_in + 4, wpad_in, xv.shape[-1])[2:2 + h_in]
        x3 = x3[::stride, ::stride, :][:h_out, :w_out, :]
        x3 = jnp.pad(x3, ((0, 0), (0, wpad_out - w_out), (0, 0)))
        xsc = x3.reshape(n_out_rows, xv.shape[-1])
    if has_proj:
        sc = jnp.dot(xsc, wsc_ref[...], preferred_element_type=jnp.float32)
        sc = sc * ssc_ref[...] + bsc_ref[...]
    else:
        sc = xsc.astype(jnp.float32)   # identity (stride==1, cin==cout)

    # -- residual add + ReLU; single lane-dense bf16 store (padded flat layout)
    out_ref[0] = jnp.maximum(out2 + sc, 0.0).astype(out_ref.dtype)


# ----------------------------------------------------------------------------
# Parameter prep helpers
# ----------------------------------------------------------------------------
def _fold_bn(gamma, beta, mean, var):
    # BatchNorm folded with running statistics (eval semantics).
    scale = gamma * jax.lax.rsqrt(var + _BN_EPS)
    bias = beta - mean * scale
    return scale, bias


def _fold_bn_padded(bn, cout_p):
    scale, bias = _fold_bn(*bn)
    pad = (0, cout_p - scale.shape[0])
    return (jnp.pad(scale, pad).reshape(1, cout_p).astype(jnp.float32),
            jnp.pad(bias, pad).reshape(1, cout_p).astype(jnp.float32))


def _prep_conv3x3(w_hwio, cin_p, cout_p):
    _, _, cin, cout = w_hwio.shape
    w = jnp.pad(w_hwio, ((0, 0), (0, 0), (0, cin_p - cin), (0, cout_p - cout)))
    return w.reshape(9, cin_p, cout_p).astype(jnp.bfloat16)


def _vmem_limit_bytes():
    cap = 128 * 1024 * 1024
    try:
        cap = int(pltpu.get_tpu_info().vmem_capacity_bytes)
    except Exception:
        pass
    # ~96 MiB on v5e/v6e (128 MiB physical), ~48 MiB on v7x (64 MiB physical).
    return int(min(cap * 3 // 4, 96 * 1024 * 1024))


# ----------------------------------------------------------------------------
# Fused forward
# ----------------------------------------------------------------------------
def basic_block_fused(x_nchw, params, *, in_planes, planes, stride):
    N, C, H, W = x_nchw.shape
    assert C == in_planes
    cp = _round_up(in_planes, _LANES)
    pp = _round_up(planes, _LANES)
    wpad_in = _round_up(W + 1, 8)
    h_out = (H - 1) // stride + 1
    w_out = (W - 1) // stride + 1
    wpad_out = _round_up(w_out + 1, 8)
    has_proj = (stride != 1) or (in_planes != planes)

    # NHWC, 128-lane channel pad, >=1 zero wrap column, 2-row top/bottom halo,
    # bf16, pre-flattened to the flat-row layout the kernel consumes directly.
    x = jnp.transpose(x_nchw, (0, 2, 3, 1))
    x = jnp.pad(x, ((0, 0), (2, 2), (0, wpad_in - W), (0, cp - in_planes)))
    x = x.astype(jnp.bfloat16).reshape(N, (H + 4) * wpad_in, cp)

    w1 = _prep_conv3x3(params["w1"], cp, pp)
    w2 = _prep_conv3x3(params["w2"], pp, pp)
    s1, b1 = _fold_bn_padded(params["bn1"], pp)
    s2, b2 = _fold_bn_padded(params["bn2"], pp)

    args = [x, w1, s1, b1, w2, s2, b2]
    # TODO(synk): at 512-channel stages, set pipeline_mode=pl.Buffered(1) on the
    # grid-invariant weight specs and pack taps along K (K=3*C) for v6e/v7x.
    in_specs = [
        pl.BlockSpec((1, (H + 4) * wpad_in, cp), lambda n: (n, 0, 0)),
        pl.BlockSpec((9, cp, pp), lambda n: (0, 0, 0)),
        pl.BlockSpec((1, pp), lambda n: (0, 0)),
        pl.BlockSpec((1, pp), lambda n: (0, 0)),
        pl.BlockSpec((9, pp, pp), lambda n: (0, 0, 0)),
        pl.BlockSpec((1, pp), lambda n: (0, 0)),
        pl.BlockSpec((1, pp), lambda n: (0, 0)),
    ]
    if has_proj:
        wsc = jnp.pad(params["w_sc"],
                      ((0, cp - in_planes), (0, pp - planes))).astype(jnp.bfloat16)
        ssc, bsc = _fold_bn_padded(params["bn_sc"], pp)
        args += [wsc, ssc, bsc]
        in_specs += [
            pl.BlockSpec((cp, pp), lambda n: (0, 0)),
            pl.BlockSpec((1, pp), lambda n: (0, 0)),
            pl.BlockSpec((1, pp), lambda n: (0, 0)),
        ]

    kernel = functools.partial(
        _basic_block_kernel, stride=stride, h_in=H, w_in=W, wpad_in=wpad_in,
        h_out=h_out, w_out=w_out, wpad_out=wpad_out, has_proj=has_proj)

    flops = 2 * N * h_out * w_out * 9 * planes * (in_planes + planes)
    if has_proj:
        flops += 2 * N * h_out * w_out * in_planes * planes
    bytes_accessed = (x.size * 2 + N * h_out * wpad_out * pp * 2
                      + (w1.size + w2.size) * 2 + 8 * pp * 4)
    cost = pl.CostEstimate(flops=int(flops), transcendentals=0,
                           bytes_accessed=int(bytes_accessed))

    # TODO(synk): for N == 1 on v7x (2 TensorCores) add a second parallel grid
    # axis over row blocks so both cores are busy.
    out = pl.pallas_call(
        kernel,
        out_shape=jax.ShapeDtypeStruct((N, h_out * wpad_out, pp), jnp.bfloat16),
        grid=(N,),
        in_specs=in_specs,
        out_specs=pl.BlockSpec((1, h_out * wpad_out, pp), lambda n: (n, 0, 0)),
        scratch_shapes=[
            pltpu.VMEM(((h_out + 4) * wpad_out, pp), jnp.bfloat16),  # conv1 out
        ],
        compiler_params=pltpu.CompilerParams(
            dimension_semantics=("parallel",),
            vmem_limit_bytes=_vmem_limit_bytes()),
        cost_estimate=cost,
    )(*args)

    # drop wrap columns / channel pad, back to NCHW in the caller's dtype
    out = out.reshape(N, h_out, wpad_out, pp)[:, :, :w_out, :planes]
    return jnp.transpose(out, (0, 3, 1, 2)).astype(x_nchw.dtype)


# ----------------------------------------------------------------------------
# Pure-JAX reference (correctness check)
# ----------------------------------------------------------------------------
def _ref_conv3x3(x, w_hwio, stride):
    return jax.lax.conv_general_dilated(
        x, w_hwio, window_strides=(stride, stride), padding=((1, 1), (1, 1)),
        dimension_numbers=("NHWC", "HWIO", "NHWC"))


def basic_block_fused_ref(x_nchw, params, *, in_planes, planes, stride):
    x = jnp.transpose(x_nchw, (0, 2, 3, 1)).astype(jnp.float32)
    s1, b1 = _fold_bn(*params["bn1"])
    out1 = jnp.maximum(_ref_conv3x3(x, params["w1"], stride) * s1 + b1, 0.0)
    if stride != 1 or in_planes != planes:
        ssc, bsc = _fold_bn(*params["bn_sc"])
        sc = jax.lax.conv_general_dilated(
            x, params["w_sc"].reshape(1, 1, in_planes, planes),
            window_strides=(stride, stride), padding=((0, 0), (0, 0)),
            dimension_numbers=("NHWC", "HWIO", "NHWC")) * ssc + bsc
    else:
        sc = x
    s2, b2 = _fold_bn(*params["bn2"])
    out = jnp.maximum(_ref_conv3x3(out1, params["w2"], 1) * s2 + b2 + sc, 0.0)
    return jnp.transpose(out, (0, 3, 1, 2))


# ----------------------------------------------------------------------------
# Deterministic synthetic parameters (nn.Conv2d / BatchNorm2d shapes)
# ----------------------------------------------------------------------------
def init_params(key, in_planes, planes, stride):
    ks = jax.random.split(key, 16)

    def bn(k):
        k0, k1, k2, k3 = jax.random.split(k, 4)
        gamma = 1.0 + 0.1 * jax.random.normal(k0, (planes,), jnp.float32)
        beta = 0.1 * jax.random.normal(k1, (planes,), jnp.float32)
        mean = 0.1 * jax.random.normal(k2, (planes,), jnp.float32)
        var = jax.random.uniform(k3, (planes,), jnp.float32, 0.5, 1.5)
        return gamma, beta, mean, var

    params = {
        "w1": 0.1 * jax.random.normal(ks[0], (3, 3, in_planes, planes), jnp.float32),
        "w2": 0.1 * jax.random.normal(ks[1], (3, 3, planes, planes), jnp.float32),
        "bn1": bn(ks[2]),
        "bn2": bn(ks[3]),
    }
    if stride != 1 or in_planes != planes:
        params["w_sc"] = 0.1 * jax.random.normal(ks[4], (in_planes, planes), jnp.float32)
        params["bn_sc"] = bn(ks[5])
    return params


# ----------------------------------------------------------------------------
if __name__ == "__main__":
    key = jax.random.PRNGKey(0)
    kx, kp1, kp2 = jax.random.split(key, 3)

    N, C, H, W = 2, 4, 16, 16
    x = jax.random.normal(kx, (N, C, H, W), jnp.float32)

    fwd = jax.jit(basic_block_fused,
                  static_argnames=("in_planes", "planes", "stride"))

    # bf16 matmuls + bf16 output -> slightly loose tolerance.
    TOL = 4e-2

    # Case 1: projection shortcut (in_planes != planes), stride=1
    in_planes, planes, stride = 4, 8, 1
    p1 = init_params(kp1, in_planes, planes, stride)
    o1 = jax.block_until_ready(
        fwd(x, p1, in_planes=in_planes, planes=planes, stride=stride))
    r1 = basic_block_fused_ref(x, p1, in_planes=in_planes, planes=planes,
                               stride=stride)
    np.testing.assert_allclose(np.asarray(o1), np.asarray(r1), rtol=TOL, atol=TOL)
    assert o1.shape == (N, planes, H, W)

    # Case 2: identity shortcut (in_planes == planes), stride=1
    in_planes, planes, stride = 4, 4, 1
    p2 = init_params(kp2, in_planes, planes, stride)
    o2 = jax.block_until_ready(
        fwd(x, p2, in_planes=in_planes, planes=planes, stride=stride))
    r2 = basic_block_fused_ref(x, p2, in_planes=in_planes, planes=planes,
                               stride=stride)
    np.testing.assert_allclose(np.asarray(o2), np.asarray(r2), rtol=TOL, atol=TOL)
    assert o2.shape == (N, planes, H, W)

    print("KERNEL_OK")
</pallas_src>

<mosaic_0001>
module attributes {stable_mosaic.version = 11 : i64} {
  func.func @_basic_block_kernel(%arg0: i32, %arg1: memref<1x480x128xbf16, #tpu.memory_space<vmem>>, %arg2: memref<9x128x128xbf16, #tpu.memory_space<vmem>>, %arg3: memref<1x128xf32, #tpu.memory_space<vmem>>, %arg4: memref<1x128xf32, #tpu.memory_space<vmem>>, %arg5: memref<9x128x128xbf16, #tpu.memory_space<vmem>>, %arg6: memref<1x128xf32, #tpu.memory_space<vmem>>, %arg7: memref<1x128xf32, #tpu.memory_space<vmem>>, %arg8: memref<128x128xbf16, #tpu.memory_space<vmem>>, %arg9: memref<1x128xf32, #tpu.memory_space<vmem>>, %arg10: memref<1x128xf32, #tpu.memory_space<vmem>>, %arg11: memref<1x384x128xbf16, #tpu.memory_space<vmem>>, %arg12: memref<480x128xbf16, #tpu.memory_space<vmem>>) attributes {dimension_semantics = [#tpu.dimension_semantics<parallel>], iteration_bounds = array<i64: 2>, scalar_prefetch = 0 : i64, scratch_operands = 1 : i64, tpu.core_type = #tpu.core_type<tc>, window_params = [{transform_indices = @transform_0, window_bounds = array<i64: 1, 480, 128>}, {pipeline_mode = #tpu.pipeline_mode<synchronous>, transform_indices = @transform_1, window_bounds = array<i64: 9, 128, 128>}, {pipeline_mode = #tpu.pipeline_mode<synchronous>, transform_indices = @transform_2, window_bounds = array<i64: 1, 128>}, {pipeline_mode = #tpu.pipeline_mode<synchronous>, transform_indices = @transform_3, window_bounds = array<i64: 1, 128>}, {pipeline_mode = #tpu.pipeline_mode<synchronous>, transform_indices = @transform_4, window_bounds = array<i64: 9, 128, 128>}, {pipeline_mode = #tpu.pipeline_mode<synchronous>, transform_indices = @transform_5, window_bounds = array<i64: 1, 128>}, {pipeline_mode = #tpu.pipeline_mode<synchronous>, transform_indices = @transform_6, window_bounds = array<i64: 1, 128>}, {pipeline_mode = #tpu.pipeline_mode<synchronous>, transform_indices = @transform_7, window_bounds = array<i64: 128, 128>}, {pipeline_mode = #tpu.pipeline_mode<synchronous>, transform_indices = @transform_8, window_bounds = array<i64: 1, 128>}, {pipeline_mode = #tpu.pipeline_mode<synchronous>, transform_indices = @transform_9, window_bounds = array<i64: 1, 128>}, {transform_indices = @transform_10, window_bounds = array<i64: 1, 384, 128>}]} {
    %c0 = arith.constant 0 : index
    %c0_0 = arith.constant 0 : index
    %c0_1 = arith.constant 0 : index
    %0 = vector.load %arg1[%c0, %c0_0, %c0_1] : memref<1x480x128xbf16, #tpu.memory_space<vmem>>, vector<1x480x128xbf16>
    %1 = vector.shape_cast %0 : vector<1x480x128xbf16> to vector<480x128xbf16>
    %2 = vector.extract_strided_slice %1 {offsets = [23, 0], sizes = [432, 128], strides = [1, 1]} : vector<480x128xbf16> to vector<432x128xbf16>
    %3 = vector.extract_strided_slice %2 {offsets = [0, 0], sizes = [384, 128], strides = [1, 1]} : vector<432x128xbf16> to vector<384x128xbf16>
    %c0_2 = arith.constant 0 : index
    %c0_3 = arith.constant 0 : index
    %c0_4 = arith.constant 0 : index
    %4 = vector.load %arg2[%c0_2, %c0_3, %c0_4] : memref<9x128x128xbf16, #tpu.memory_space<vmem>>, vector<1x128x128xbf16>
    %5 = vector.shape_cast %4 : vector<1x128x128xbf16> to vector<128x128xbf16>
    %cst = arith.constant dense<0.000000e+00> : vector<384x128xf32>
    %6 = tpu.matmul %3, %5, %cst {dimension_numbers = #tpu.dot_dimension_numbers<[1], [0], [0], [1], [0, 0, 1, 1], [], []>} : vector<384x128xbf16>, vector<128x128xbf16>, vector<384x128xf32> -> vector<384x128xf32>
    %7 = vector.extract_strided_slice %2 {offsets = [24, 0], sizes = [384, 128], strides = [1, 1]} : vector<432x128xbf16> to vector<384x128xbf16>
    %c3 = arith.constant 3 : index
    %c0_5 = arith.constant 0 : index
    %c0_6 = arith.constant 0 : index
    %8 = vector.load %arg2[%c3, %c0_5, %c0_6] : memref<9x128x128xbf16, #tpu.memory_space<vmem>>, vector<1x128x128xbf16>
    %9 = vector.shape_cast %8 : vector<1x128x128xbf16> to vector<128x128xbf16>
    %cst_7 = arith.constant dense<0.000000e+00> : vector<384x128xf32>
    %10 = tpu.matmul %7, %9, %cst_7 {dimension_numbers = #tpu.dot_dimension_numbers<[1], [0], [0], [1], [0, 0, 1, 1], [], []>} : vector<384x128xbf16>, vector<128x128xbf16>, vector<384x128xf32> -> vector<384x128xf32>
    %11 = arith.addf %6, %10 : vector<384x128xf32>
    %12 = vector.extract_strided_slice %2 {offsets = [48, 0], sizes = [384, 128], strides = [1, 1]} : vector<432x128xbf16> to vector<384x128xbf16>
    %c6 = arith.constant 6 : index
    %c0_8 = arith.constant 0 : index
    %c0_9 = arith.constant 0 : index
    %13 = vector.load %arg2[%c6, %c0_8, %c0_9] : memref<9x128x128xbf16, #tpu.memory_space<vmem>>, vector<1x128x128xbf16>
    %14 = vector.shape_cast %13 : vector<1x128x128xbf16> to vector<128x128xbf16>
    %cst_10 = arith.constant dense<0.000000e+00> : vector<384x128xf32>
    %15 = tpu.matmul %12, %14, %cst_10 {dimension_numbers = #tpu.dot_dimension_numbers<[1], [0], [0], [1], [0, 0, 1, 1], [], []>} : vector<384x128xbf16>, vector<128x128xbf16>, vector<384x128xf32> -> vector<384x128xf32>
    %16 = arith.addf %11, %15 : vector<384x128xf32>
    %17 = vector.extract_strided_slice %1 {offsets = [24, 0], sizes = [432, 128], strides = [1, 1]} : vector<480x128xbf16> to vector<432x128xbf16>
    %18 = vector.extract_strided_slice %17 {offsets = [0, 0], sizes = [384, 128], strides = [1, 1]} : vector<432x128xbf16> to vector<384x128xbf16>
    %c1 = arith.constant 1 : index
    %c0_11 = arith.constant 0 : index
    %c0_12 = arith.constant 0 : index
    %19 = vector.load %arg2[%c1, %c0_11, %c0_12] : memref<9x128x128xbf16, #tpu.memory_space<vmem>>, vector<1x128x128xbf16>
    %20 = vector.shape_cast %19 : vector<1x128x128xbf16> to vector<128x128xbf16>
    %cst_13 = arith.constant dense<0.000000e+00> : vector<384x128xf32>
    %21 = tpu.matmul %18, %20, %cst_13 {dimension_numbers = #tpu.dot_dimension_numbers<[1], [0], [0], [1], [0, 0, 1, 1], [], []>} : vector<384x128xbf16>, vector<128x128xbf16>, vector<384x128xf32> -> vector<384x128xf32>
    %22 = arith.addf %16, %21 : vector<384x128xf32>
    %23 = vector.extract_strided_slice %17 {offsets = [24, 0], sizes = [384, 128], strides = [1, 1]} : vector<432x128xbf16> to vector<384x128xbf16>
    %c4 = arith.constant 4 : index
    %c0_14 = arith.constant 0 : index
    %c0_15 = arith.constant 0 : index
    %24 = vector.load %arg2[%c4, %c0_14, %c0_15] : memref<9x128x128xbf16, #tpu.memory_space<vmem>>, vector<1x128x128xbf16>
    %25 = vector.shape_cast %24 : vector<1x128x128xbf16> to vector<128x128xbf16>
    %cst_16 = arith.constant dense<0.000000e+00> : vector<384x128xf32>
    %26 = tpu.matmul %23, %25, %cst_16 {dimension_numbers = #tpu.dot_dimension_numbers<[1], [0], [0], [1], [0, 0, 1, 1], [], []>} : vector<384x128xbf16>, vector<128x128xbf16>, vector<384x128xf32> -> vector<384x128xf32>
    %27 = arith.addf %22, %26 : vector<384x128xf32>
    %28 = vector.extract_strided_slice %17 {offsets = [48, 0], sizes = [384, 128], strides = [1, 1]} : vector<432x128xbf16> to vector<384x128xbf16>
    %c7 = arith.constant 7 : index
    %c0_17 = arith.constant 0 : index
    %c0_18 = arith.constant 0 : index
    %29 = vector.load %arg2[%c7, %c0_17, %c0_18] : memref<9x128x128xbf16, #tpu.memory_space<vmem>>, vector<1x128x128xbf16>
    %30 = vector.shape_cast %29 : vector<1x128x128xbf16> to vector<128x128xbf16>
    %cst_19 = arith.constant dense<0.000000e+00> : vector<384x128xf32>
    %31 = tpu.matmul %28, %30, %cst_19 {dimension_numbers = #tpu.dot_dimension_numbers<[1], [0], [0], [1], [0, 0, 1, 1], [], []>} : vector<384x128xbf16>, vector<128x128xbf16>, vector<384x128xf32> -> vector<384x128xf32>
    %32 = arith.addf %27, %31 : vector<384x128xf32>
    %33 = vector.extract_strided_slice %1 {offsets = [25, 0], sizes = [432, 128], strides = [1, 1]} : vector<480x128xbf16> to vector<432x128xbf16>
    %34 = vector.extract_strided_slice %33 {offsets = [0, 0], sizes = [384, 128], strides = [1, 1]} : vector<432x128xbf16> to vector<384x128xbf16>
    %c2 = arith.constant 2 : index
    %c0_20 = arith.constant 0 : index
    %c0_21 = arith.constant 0 : index
    %35 = vector.load %arg2[%c2, %c0_20, %c0_21] : memref<9x128x128xbf16, #tpu.memory_space<vmem>>, vector<1x128x128xbf16>
    %36 = vector.shape_cast %35 : vector<1x128x128xbf16> to vector<128x128xbf16>
    %cst_22 = arith.constant dense<0.000000e+00> : vector<384x128xf32>
    %37 = tpu.matmul %34, %36, %cst_22 {dimension_numbers = #tpu.dot_dimension_numbers<[1], [0], [0], [1], [0, 0, 1, 1], [], []>} : vector<384x128xbf16>, vector<128x128xbf16>, vector<384x128xf32> -> vector<384x128xf32>
    %38 = arith.addf %32, %37 : vector<384x128xf32>
    %39 = vector.extract_strided_slice %33 {offsets = [24, 0], sizes = [384, 128], strides = [1, 1]} : vector<432x128xbf16> to vector<384x128xbf16>
    %c5 = arith.constant 5 : index
    %c0_23 = arith.constant 0 : index
    %c0_24 = arith.constant 0 : index
    %40 = vector.load %arg2[%c5, %c0_23, %c0_24] : memref<9x128x128xbf16, #tpu.memory_space<vmem>>, vector<1x128x128xbf16>
    %41 = vector.shape_cast %40 : vector<1x128x128xbf16> to vector<128x128xbf16>
    %cst_25 = arith.constant dense<0.000000e+00> : vector<384x128xf32>
    %42 = tpu.matmul %39, %41, %cst_25 {dimension_numbers = #tpu.dot_dimension_numbers<[1], [0], [0], [1], [0, 0, 1, 1], [], []>} : vector<384x128xbf16>, vector<128x128xbf16>, vector<384x128xf32> -> vector<384x128xf32>
    %43 = arith.addf %38, %42 : vector<384x128xf32>
    %44 = vector.extract_strided_slice %33 {offsets = [48, 0], sizes = [384, 128], strides = [1, 1]} : vector<432x128xbf16> to vector<384x128xbf16>
    %c8 = arith.constant 8 : index
    %c0_26 = arith.constant 0 : index
    %c0_27 = arith.constant 0 : index
    %45 = vector.load %arg2[%c8, %c0_26, %c0_27] : memref<9x128x128xbf16, #tpu.memory_space<vmem>>, vector<1x128x128xbf16>
    %46 = vector.shape_cast %45 : vector<1x128x128xbf16> to vector<128x128xbf16>
    %cst_28 = arith.constant dense<0.000000e+00> : vector<384x128xf32>
    %47 = tpu.matmul %44, %46, %cst_28 {dimension_numbers = #tpu.dot_dimension_numbers<[1], [0], [0], [1], [0, 0, 1, 1], [], []>} : vector<384x128xbf16>, vector<128x128xbf16>, vector<384x128xf32> -> vector<384x128xf32>
    %48 = arith.addf %43, %47 : vector<384x128xf32>
    %c0_29 = arith.constant 0 : index
    %c0_30 = arith.constant 0 : index
    %49 = vector.load %arg3[%c0_29, %c0_30] : memref<1x128xf32, #tpu.memory_space<vmem>>, vector<1x128xf32>
    %50 = vector.broadcast %49 : vector<1x128xf32> to vector<384x128xf32>
    %51 = arith.mulf %48, %50 : vector<384x128xf32>
    %c0_31 = arith.constant 0 : index
    %c0_32 = arith.constant 0 : index
    %52 = vector.load %arg4[%c0_31, %c0_32] : memref<1x128xf32, #tpu.memory_space<vmem>>, vector<1x128xf32>
    %53 = vector.broadcast %52 : vector<1x128xf32> to vector<384x128xf32>
    %54 = arith.addf %51, %53 : vector<384x128xf32>
    %cst_33 = arith.constant 0.000000e+00 : f32
    %55 = vector.broadcast %cst_33 : f32 to vector<384x128xf32>
    %56 = arith.maximumf %54, %55 : vector<384x128xf32>
    %57 = tpu.iota {dimensions = array<i32: 0>} : vector<384x1xi32>
    %c24_i32 = arith.constant 24 : i32
    %c0_i32 = arith.constant 0 : i32
    %58 = arith.cmpi eq, %c24_i32, %c0_i32 : i32
    %c1_i32 = arith.constant 1 : i32
    %59 = arith.select %58, %c1_i32, %c24_i32 : i32
    %60 = vector.broadcast %59 : i32 to vector<384x1xi32>
    %61 = arith.remsi %57, %60 : vector<384x1xi32>
    %c0_i32_34 = arith.constant 0 : i32
    %62 = vector.broadcast %c0_i32_34 : i32 to vector<384x1xi32>
    %63 = arith.cmpi ne, %61, %62 : vector<384x1xi32>
    %c0_i32_35 = arith.constant 0 : i32
    %64 = vector.broadcast %c0_i32_35 : i32 to vector<384x1xi32>
    %65 = arith.cmpi slt, %61, %64 : vector<384x1xi32>
    %c0_i32_36 = arith.constant 0 : i32
    %66 = arith.cmpi slt, %59, %c0_i32_36 : i32
    %67 = vector.broadcast %66 : i1 to vector<384x1xi1>
    %68 = vector.broadcast %67 : vector<384x1xi1> to vector<384x1xi1>
    %69 = arith.xori %65, %68 : vector<384x1xi1>
    %70 = arith.andi %69, %63 : vector<384x1xi1>
    %71 = vector.broadcast %59 : i32 to vector<384x1xi32>
    %72 = arith.addi %61, %71 : vector<384x1xi32>
    %73 = arith.select %70, %72, %61 : vector<384x1xi1>, vector<384x1xi32>
    %c16_i32 = arith.constant 16 : i32
    %74 = vector.broadcast %c16_i32 : i32 to vector<384x1xi32>
    %75 = arith.cmpi slt, %73, %74 : vector<384x1xi32>
    %cst_37 = arith.constant 0.000000e+00 : f32
    %76 = vector.shape_cast %75 : vector<384x1xi1> to vector<384x1xi1>
    %77 = vector.broadcast %76 : vector<384x1xi1> to vector<384x128xi1>
    %78 = vector.broadcast %cst_37 : f32 to vector<384x128xf32>
    %79 = arith.select %77, %56, %78 : vector<384x128xi1>, vector<384x128xf32>
    %cst_38 = arith.constant 0.000000e+00 : bf16
    %80 = vector.broadcast %cst_38 : bf16 to vector<48x128xbf16>
    %c0_39 = arith.constant 0 : index
    %c0_40 = arith.constant 0 : index
    %81 = vector.load %arg12[%c0_39, %c0_40] : memref<480x128xbf16, #tpu.memory_space<vmem>>, vector<48x128xbf16>
    tpu.vector_store %arg12[%c0_39, %c0_40], %80 {strides = array<i32>} : memref<480x128xbf16, #tpu.memory_space<vmem>>, vector<48x128xbf16>,
    %c432 = arith.constant 432 : index
    %c0_41 = arith.constant 0 : index
    %82 = vector.load %arg12[%c432, %c0_41] : memref<480x128xbf16, #tpu.memory_space<vmem>>, vector<48x128xbf16>
    tpu.vector_store %arg12[%c432, %c0_41], %80 {strides = array<i32>} : memref<480x128xbf16, #tpu.memory_space<vmem>>, vector<48x128xbf16>,
    %83 = arith.truncf %79 : vector<384x128xf32> to vector<384x128xbf16>
    %c48 = arith.constant 48 : index
    %c0_42 = arith.constant 0 : index
    %84 = vector.load %arg12[%c48, %c0_42] : memref<480x128xbf16, #tpu.memory_space<vmem>>, vector<384x128xbf16>
    tpu.vector_store %arg12[%c48, %c0_42], %83 {strides = array<i32>} : memref<480x128xbf16, #tpu.memory_space<vmem>>, vector<384x128xbf16>,
    %c0_43 = arith.constant 0 : index
    %c0_44 = arith.constant 0 : index
    %85 = vector.load %arg12[%c0_43, %c0_44] : memref<480x128xbf16, #tpu.memory_space<vmem>>, vector<480x128xbf16>
    %86 = vector.extract_strided_slice %85 {offsets = [23, 0], sizes = [432, 128], strides = [1, 1]} : vector<480x128xbf16> to vector<432x128xbf16>
    %87 = vector.extract_strided_slice %86 {offsets = [0, 0], sizes = [384, 128], strides = [1, 1]} : vector<432x128xbf16> to vector<384x128xbf16>
    %c0_45 = arith.constant 0 : index
    %c0_46 = arith.constant 0 : index
    %c0_47 = arith.constant 0 : index
    %88 = vector.load %arg5[%c0_45, %c0_46, %c0_47] : memref<9x128x128xbf16, #tpu.memory_space<vmem>>, vector<1x128x128xbf16>
    %89 = vector.shape_cast %88 : vector<1x128x128xbf16> to vector<128x128xbf16>
    %cst_48 = arith.constant dense<0.000000e+00> : vector<384x128xf32>
    %90 = tpu.matmul %87, %89, %cst_48 {dimension_numbers = #tpu.dot_dimension_numbers<[1], [0], [0], [1], [0, 0, 1, 1], [], []>} : vector<384x128xbf16>, vector<128x128xbf16>, vector<384x128xf32> -> vector<384x128xf32>
    %91 = vector.extract_strided_slice %86 {offsets = [24, 0], sizes = [384, 128], strides = [1, 1]} : vector<432x128xbf16> to vector<384x128xbf16>
    %c3_49 = arith.constant 3 : index
    %c0_50 = arith.constant 0 : index
    %c0_51 = arith.constant 0 : index
    %92 = vector.load %arg5[%c3_49, %c0_50, %c0_51] : memref<9x128x128xbf16, #tpu.memory_space<vmem>>, vector<1x128x128xbf16>
    %93 = vector.shape_cast %92 : vector<1x128x128xbf16> to vector<128x128xbf16>
    %cst_52 = arith.constant dense<0.000000e+00> : vector<384x128xf32>
    %94 = tpu.matmul %91, %93, %cst_52 {dimension_numbers = #tpu.dot_dimension_numbers<[1], [0], [0], [1], [0, 0, 1, 1], [], []>} : vector<384x128xbf16>, vector<128x128xbf16>, vector<384x128xf32> -> vector<384x128xf32>
    %95 = arith.addf %90, %94 : vector<384x128xf32>
    %96 = vector.extract_strided_slice %86 {offsets = [48, 0], sizes = [384, 128], strides = [1, 1]} : vector<432x128xbf16> to vector<384x128xbf16>
    %c6_53 = arith.constant 6 : index
    %c0_54 = arith.constant 0 : index
    %c0_55 = arith.constant 0 : index
    %97 = vector.load %arg5[%c6_53, %c0_54, %c0_55] : memref<9x128x128xbf16, #tpu.memory_space<vmem>>, vector<1x128x128xbf16>
    %98 = vector.shape_cast %97 : vector<1x128x128xbf16> to vector<128x128xbf16>
    %cst_56 = arith.constant dense<0.000000e+00> : vector<384x128xf32>
    %99 = tpu.matmul %96, %98, %cst_56 {dimension_numbers = #tpu.dot_dimension_numbers<[1], [0], [0], [1], [0, 0, 1, 1], [], []>} : vector<384x128xbf16>, vector<128x128xbf16>, vector<384x128xf32> -> vector<384x128xf32>
    %100 = arith.addf %95, %99 : vector<384x128xf32>
    %101 = vector.extract_strided_slice %85 {offsets = [24, 0], sizes = [432, 128], strides = [1, 1]} : vector<480x128xbf16> to vector<432x128xbf16>
    %102 = vector.extract_strided_slice %101 {offsets = [0, 0], sizes = [384, 128], strides = [1, 1]} : vector<432x128xbf16> to vector<384x128xbf16>
    %c1_57 = arith.constant 1 : index
    %c0_58 = arith.constant 0 : index
    %c0_59 = arith.constant 0 : index
    %103 = vector.load %arg5[%c1_57, %c0_58, %c0_59] : memref<9x128x128xbf16, #tpu.memory_space<vmem>>, vector<1x128x128xbf16>
    %104 = vector.shape_cast %103 : vector<1x128x128xbf16> to vector<128x128xbf16>
    %cst_60 = arith.constant dense<0.000000e+00> : vector<384x128xf32>
    %105 = tpu.matmul %102, %104, %cst_60 {dimension_numbers = #tpu.dot_dimension_numbers<[1], [0], [0], [1], [0, 0, 1, 1], [], []>} : vector<384x128xbf16>, vector<128x128xbf16>, vector<384x128xf32> -> vector<384x128xf32>
    %106 = arith.addf %100, %105 : vector<384x128xf32>
    %107 = vector.extract_strided_slice %101 {offsets = [24, 0], sizes = [384, 128], strides = [1, 1]} : vector<432x128xbf16> to vector<384x128xbf16>
    %c4_61 = arith.constant 4 : index
    %c0_62 = arith.constant 0 : index
    %c0_63 = arith.constant 0 : index
    %108 = vector.load %arg5[%c4_61, %c0_62, %c0_63] : memref<9x128x128xbf16, #tpu.memory_space<vmem>>, vector<1x128x128xbf16>
    %109 = vector.shape_cast %108 : vector<1x128x128xbf16> to vector<128x128xbf16>
    %cst_64 = arith.constant dense<0.000000e+00> : vector<384x128xf32>
    %110 = tpu.matmul %107, %109, %cst_64 {dimension_numbers = #tpu.dot_dimension_numbers<[1], [0], [0], [1], [0, 0, 1, 1], [], []>} : vector<384x128xbf16>, vector<128x128xbf16>, vector<384x128xf32> -> vector<384x128xf32>
    %111 = arith.addf %106, %110 : vector<384x128xf32>
    %112 = vector.extract_strided_slice %101 {offsets = [48, 0], sizes = [384, 128], strides = [1, 1]} : vector<432x128xbf16> to vector<384x128xbf16>
    %c7_65 = arith.constant 7 : index
    %c0_66 = arith.constant 0 : index
    %c0_67 = arith.constant 0 : index
    %113 = vector.load %arg5[%c7_65, %c0_66, %c0_67] : memref<9x128x128xbf16, #tpu.memory_space<vmem>>, vector<1x128x128xbf16>
    %114 = vector.shape_cast %113 : vector<1x128x128xbf16> to vector<128x128xbf16>
    %cst_68 = arith.constant dense<0.000000e+00> : vector<384x128xf32>
    %115 = tpu.matmul %112, %114, %cst_68 {dimension_numbers = #tpu.dot_dimension_numbers<[1], [0], [0], [1], [0, 0, 1, 1], [], []>} : vector<384x128xbf16>, vector<128x128xbf16>, vector<384x128xf32> -> vector<384x128xf32>
    %116 = arith.addf %111, %115 : vector<384x128xf32>
    %117 = vector.extract_strided_slice %85 {offsets = [25, 0], sizes = [432, 128], strides = [1, 1]} : vector<480x128xbf16> to vector<432x128xbf16>
    %118 = vector.extract_strided_slice %117 {offsets = [0, 0], sizes = [384, 128], strides = [1, 1]} : vector<432x128xbf16> to vector<384x128xbf16>
    %c2_69 = arith.constant 2 : index
    %c0_70 = arith.constant 0 : index
    %c0_71 = arith.constant 0 : index
    %119 = vector.load %arg5[%c2_69, %c0_70, %c0_71] : memref<9x128x128xbf16, #tpu.memory_space<vmem>>, vector<1x128x128xbf16>
    %120 = vector.shape_cast %119 : vector<1x128x128xbf16> to vector<128x128xbf16>
    %cst_72 = arith.constant dense<0.000000e+00> : vector<384x128xf32>
    %121 = tpu.matmul %118, %120, %cst_72 {dimension_numbers = #tpu.dot_dimension_numbers<[1], [0], [0], [1], [0, 0, 1, 1], [], []>} : vector<384x128xbf16>, vector<128x128xbf16>, vector<384x128xf32> -> vector<384x128xf32>
    %122 = arith.addf %116, %121 : vector<384x128xf32>
    %123 = vector.extract_strided_slice %117 {offsets = [24, 0], sizes = [384, 128], strides = [1, 1]} : vector<432x128xbf16> to vector<384x128xbf16>
    %c5_73 = arith.constant 5 : index
    %c0_74 = arith.constant 0 : index
    %c0_75 = arith.constant 0 : index
    %124 = vector.load %arg5[%c5_73, %c0_74, %c0_75] : memref<9x128x128xbf16, #tpu.memory_space<vmem>>, vector<1x128x128xbf16>
    %125 = vector.shape_cast %124 : vector<1x128x128xbf16> to vector<128x128xbf16>
    %cst_76 = arith.constant dense<0.000000e+00> : vector<384x128xf32>
    %126 = tpu.matmul %123, %125, %cst_76 {dimension_numbers = #tpu.dot_dimension_numbers<[1], [0], [0], [1], [0, 0, 1, 1], [], []>} : vector<384x128xbf16>, vector<128x128xbf16>, vector<384x128xf32> -> vector<384x128xf32>
    %127 = arith.addf %122, %126 : vector<384x128xf32>
    %128 = vector.extract_strided_slice %117 {offsets = [48, 0], sizes = [384, 128], strides = [1, 1]} : vector<432x128xbf16> to vector<384x128xbf16>
    %c8_77 = arith.constant 8 : index
    %c0_78 = arith.constant 0 : index
    %c0_79 = arith.constant 0 : index
    %129 = vector.load %arg5[%c8_77, %c0_78, %c0_79] : memref<9x128x128xbf16, #tpu.memory_space<vmem>>, vector<1x128x128xbf16>
    %130 = vector.shape_cast %129 : vector<1x128x128xbf16> to vector<128x128xbf16>
    %cst_80 = arith.constant dense<0.000000e+00> : vector<384x128xf32>
    %131 = tpu.matmul %128, %130, %cst_80 {dimension_numbers = #tpu.dot_dimension_numbers<[1], [0], [0], [1], [0, 0, 1, 1], [], []>} : vector<384x128xbf16>, vector<128x128xbf16>, vector<384x128xf32> -> vector<384x128xf32>
    %132 = arith.addf %127, %131 : vector<384x128xf32>
    %c0_81 = arith.constant 0 : index
    %c0_82 = arith.constant 0 : index
    %133 = vector.load %arg6[%c0_81, %c0_82] : memref<1x128xf32, #tpu.memory_space<vmem>>, vector<1x128xf32>
    %134 = vector.broadcast %133 : vector<1x128xf32> to vector<384x128xf32>
    %135 = arith.mulf %132, %134 : vector<384x128xf32>
    %c0_83 = arith.constant 0 : index
    %c0_84 = arith.constant 0 : index
    %136 = vector.load %arg7[%c0_83, %c0_84] : memref<1x128xf32, #tpu.memory_space<vmem>>, vector<1x128xf32>
    %137 = vector.broadcast %136 : vector<1x128xf32> to vector<384x128xf32>
    %138 = arith.addf %135, %137 : vector<384x128xf32>
    %139 = vector.extract_strided_slice %1 {offsets = [48, 0], sizes = [384, 128], strides = [1, 1]} : vector<480x128xbf16> to vector<384x128xbf16>
    %c0_85 = arith.constant 0 : index
    %c0_86 = arith.constant 0 : index
    %140 = vector.load %arg8[%c0_85, %c0_86] : memref<128x128xbf16, #tpu.memory_space<vmem>>, vector<128x128xbf16>
    %cst_87 = arith.constant dense<0.000000e+00> : vector<384x128xf32>
    %141 = tpu.matmul %139, %140, %cst_87 {dimension_numbers = #tpu.dot_dimension_numbers<[1], [0], [0], [1], [0, 0, 1, 1], [], []>} : vector<384x128xbf16>, vector<128x128xbf16>, vector<384x128xf32> -> vector<384x128xf32>
    %c0_88 = arith.constant 0 : index
    %c0_89 = arith.constant 0 : index
    %142 = vector.load %arg9[%c0_88, %c0_89] : memref<1x128xf32, #tpu.memory_space<vmem>>, vector<1x128xf32>
    %143 = vector.broadcast %142 : vector<1x128xf32> to vector<384x128xf32>
    %144 = arith.mulf %141, %143 : vector<384x128xf32>
    %c0_90 = arith.constant 0 : index
    %c0_91 = arith.constant 0 : index
    %145 = vector.load %arg10[%c0_90, %c0_91] : memref<1x128xf32, #tpu.memory_space<vmem>>, vector<1x128xf32>
    %146 = vector.broadcast %145 : vector<1x128xf32> to vector<384x128xf32>
    %147 = arith.addf %144, %146 : vector<384x128xf32>
    %148 = arith.addf %138, %147 : vector<384x128xf32>
    %cst_92 = arith.constant 0.000000e+00 : f32
    %149 = vector.broadcast %cst_92 : f32 to vector<384x128xf32>
    %150 = arith.maximumf %148, %149 : vector<384x128xf32>
    %151 = arith.truncf %150 : vector<384x128xf32> to vector<384x128xbf16>
    %c0_93 = arith.constant 0 : index
    %c0_94 = arith.constant 0 : index
    %c0_95 = arith.constant 0 : index
    %152 = vector.load %arg11[%c0_93, %c0_94, %c0_95] : memref<1x384x128xbf16, #tpu.memory_space<vmem>>, vector<1x384x128xbf16>
    %153 = vector.shape_cast %152 : vector<1x384x128xbf16> to vector<384x128xbf16>
    %154 = vector.shape_cast %151 : vector<384x128xbf16> to vector<1x384x128xbf16>
    tpu.vector_store %arg11[%c0_93, %c0_94, %c0_95], %154 {strides = array<i32>} : memref<1x384x128xbf16, #tpu.memory_space<vmem>>, vector<1x384x128xbf16>,
    return
  }
  func.func @transform_0(%arg0: i32) -> (i32, i32, i32) {
    %c0_i32 = arith.constant 0 : i32
    %c0_i32_0 = arith.constant 0 : i32
    %c0_i32_1 = arith.constant 0 : i32
    return %arg0, %c0_i32, %c0_i32_0 : i32, i32, i32
  }
  func.func @transform_1(%arg0: i32) -> (i32, i32, i32) {
    %c0_i32 = arith.constant 0 : i32
    %c0_i32_0 = arith.constant 0 : i32
    %c0_i32_1 = arith.constant 0 : i32
    %c0_i32_2 = arith.constant 0 : i32
    return %c0_i32, %c0_i32_0, %c0_i32_1 : i32, i32, i32
  }
  func.func @transform_2(%arg0: i32) -> (i32, i32) {
    %c0_i32 = arith.constant 0 : i32
    %c0_i32_0 = arith.constant 0 : i32
    %c0_i32_1 = arith.constant 0 : i32
    return %c0_i32, %c0_i32_0 : i32, i32
  }
  func.func @transform_3(%arg0: i32) -> (i32, i32) {
    %c0_i32 = arith.constant 0 : i32
    %c0_i32_0 = arith.constant 0 : i32
    %c0_i32_1 = arith.constant 0 : i32
    return %c0_i32, %c0_i32_0 : i32, i32
  }
  func.func @transform_4(%arg0: i32) -> (i32, i32, i32) {
    %c0_i32 = arith.constant 0 : i32
    %c0_i32_0 = arith.constant 0 : i32
    %c0_i32_1 = arith.constant 0 : i32
    %c0_i32_2 = arith.constant 0 : i32
    return %c0_i32, %c0_i32_0, %c0_i32_1 : i32, i32, i32
  }
  func.func @transform_5(%arg0: i32) -> (i32, i32) {
    %c0_i32 = arith.constant 0 : i32
    %c0_i32_0 = arith.constant 0 : i32
    %c0_i32_1 = arith.constant 0 : i32
    return %c0_i32, %c0_i32_0 : i32, i32
  }
  func.func @transform_6(%arg0: i32) -> (i32, i32) {
    %c0_i32 = arith.constant 0 : i32
    %c0_i32_0 = arith.constant 0 : i32
    %c0_i32_1 = arith.constant 0 : i32
    return %c0_i32, %c0_i32_0 : i32, i32
  }
  func.func @transform_7(%arg0: i32) -> (i32, i32) {
    %c0_i32 = arith.constant 0 : i32
    %c0_i32_0 = arith.constant 0 : i32
    %c0_i32_1 = arith.constant 0 : i32
    return %c0_i32, %c0_i32_0 : i32, i32
  }
  func.func @transform_8(%arg0: i32) -> (i32, i32) {
    %c0_i32 = arith.constant 0 : i32
    %c0_i32_0 = arith.constant 0 : i32
    %c0_i32_1 = arith.constant 0 : i32
    return %c0_i32, %c0_i32_0 : i32, i32
  }
  func.func @transform_9(%arg0: i32) -> (i32, i32) {
    %c0_i32 = arith.constant 0 : i32
    %c0_i32_0 = arith.constant 0 : i32
    %c0_i32_1 = arith.constant 0 : i32
    return %c0_i32, %c0_i32_0 : i32, i32
  }
  func.func @transform_10(%arg0: i32) -> (i32, i32, i32) {
    %c0_i32 = arith.constant 0 : i32
    %c0_i32_0 = arith.constant 0 : i32
    %c0_i32_1 = arith.constant 0 : i32
    return %arg0, %c0_i32, %c0_i32_0 : i32, i32, i32
  }
}

</mosaic_0001>

<bundles_post_ra>
// kernel: basic_block_fused.1
= control target key start
LH: loop header
LB: loop body
LE: loop exit
PB: predicated region body
PF: predicated region fallthrough
CT: control target
= control target key end

     0   :  { %s13984_s13 = smov 0   ;;  %s19940_s0 = inlined_call_operand.vmem [shape: bf16[2,480,128], index: 0, kind: input, shape index: {}]   ;;  %s19941_s1 = inlined_call_operand.vmem [shape: bf16[9,128,128], index: 1, kind: input, shape index: {}]   ;;  %s19942_s2 = inlined_call_operand.vmem [shape: f32[1,128], index: 2, kind: input, shape index: {}]   ;;  %s19943_s3 = inlined_call_operand.vmem [shape: f32[1,128], index: 3, kind: input, shape index: {}]   ;;  %s19944_s4 = inlined_call_operand.vmem [shape: bf16[9,128,128], index: 4, kind: input, shape index: {}]   ;;  %s19945_s5 = inlined_call_operand.vmem [shape: f32[1,128], index: 5, kind: input, shape index: {}]   ;;  %s19946_s6 = inlined_call_operand.vmem [shape: f32[1,128], index: 6, kind: input, shape index: {}]   ;;  %s19947_s7 = inlined_call_operand.vmem [shape: bf16[128,128], index: 7, kind: input, shape index: {}]   ;;  %s19948_s8 = inlined_call_operand.vmem [shape: f32[1,128], index: 8, kind: input, shape index: {}]   ;;  %s19949_s9 = inlined_call_operand.vmem [shape: f32[1,128], index: 9, kind: input, shape index: {}]   ;;  %s19950_s10 = inlined_call_operand.vmem [shape: bf16[2,384,128], index: 10, kind: output, shape index: {}]  }
   0x1 LB: > { %s10668_s14 = sadd.s32 4294967295, %s13926_s13   ;;  %p10672_p0 = scmp.ge.s32.totalorder %s13926_s13, 1  ;;  %s13926_s13 = sphi %s13984_s13, %s20_s13  }
   0x2   : > { %p312_p1 = scmp.lt.s32.totalorder %s13926_s13, 3 }
   0x4   : > { %p313_p2 = pnand %p10672_p0, %p312_p1 }
   0x6   : > { %316 = sbr.rel (%p313_p2) target bundleno = 1406 (0x57e), region = 60 }
   0xb   : > { %v13637_v0 = vld [vmem:[%s19941_s1 + $0xf8] sm:$0xff]   ;;  %p350_p3 = scmp.lt.s32.totalorder %s10668_s14, 1  ;;  %v13638_v1 = vld [vmem:[%s19941_s1 + $0xf0] sm:$0xff]   ;;  %v13639_v2 = vld [vmem:[%s19941_s1 + $0xe8] sm:$0xff]   ;;  %vm20182_vm0 = vsmask.f32 4352 }
   0xc   : > { %12298 = vmatprep.subr.bf16.mxu0 %v13637_v0  ;;  %13514 = vmatprep.subr.bf16.mxu1 %v13637_v0  ;;  %v13640_v3 = vld [vmem:[%s19941_s1 + $0xe0] sm:$0xff]   ;;  %v13641_v11 = vld [vmem:[%s19941_s1 + $0xd8] sm:$0xff]   ;;  %v13642_v38 = vld [vmem:[%s19941_s1 + $0xd0] sm:$0xff]   ;;  %vm20176_vm1 = vsmask.f32 7424 }
   0xd   : > { %s21751_s14 = smov (!%p350_p3, %s10668_s14), 1  ;;  %12299 = vmatpush3.bf16.msra.mxu0 %v13637_v0  ;;  %13522 = vmatpush3.bf16.msra.mxu1 %v13637_v0  ;;  %v13643_v46 = vld [vmem:[%s19941_s1 + $0xc8] sm:$0xff]  }
   0xe   : > { %12300 = vmatprep.subr.bf16.mxu0 %v13638_v1  ;;  %13515 = vmatprep.subr.bf16.mxu1 %v13638_v1  ;;  %s13530_s21 = smul.u32 240, %s21751_s14 }
   0xf   : > { %s13531_s11 = smul.u32 192, %s21751_s14 }
  0x10   : > { %s14007_s24 = scalar_lea.vmem %s19940_s0, %s13530_s21 }
  0x11   : > { %12301 = vmatpush3.bf16.msra.mxu0 %v13638_v1  ;;  %13523 = vmatpush3.bf16.msra.mxu1 %v13638_v1  ;;  %v14013_v4 = vld [vmem:[%s14007_s24 + $0x14] sm:$0xf]  ;;  %v14016_v5 = vld [vmem:[%s14007_s24 + $0x18] sm:$0xf]  ;;  %v14019_v6 = vld [vmem:[%s14007_s24 + $0x1c] sm:$0xf]  ;;  %s19699_s15 = scalar_lea.vmem %s19950_s10, %s13531_s11 }
  0x12   : > { %12302 = vmatprep.subr.bf16.mxu0 %v13639_v2  ;;  %13516 = vmatprep.subr.bf16.mxu1 %v13639_v2  ;;  %v14022_v7 = vld [vmem:[%s14007_s24 + $0x20] sm:$0xf]  ;;  %v14025_v8 = vld [vmem:[%s14007_s24 + $0x24] sm:$0xf]  ;;  %v14028_v9 = vld [vmem:[%s14007_s24 + $0x28] sm:$0xf]  ;;  %v14032_v10 = vcombine.low %v14013_v4, %v14016_v5 }
  0x13   : > { %v14039_v12 = vcombine.low %v14019_v6, %v14022_v7  ;;  %v14043_v13 = vcombine.low %v14025_v8, %v14028_v9  ;;  %v14046_v14 = vld [vmem:[%s14007_s24 + $0x74] sm:$0xf]  ;;  %v389_v15 = vld [vmem:[%s14007_s24 + $0x78] sm:$0xf]  ;;  %v390_v18 = vld [vmem:[%s14007_s24 + $0x7c] sm:$0xf] }
  0x14   : > { %20426 = vst [vmem:[#allocation3_spill] sm:$0xff] %v14032_v10  ;;  %v19969_v16 = vshrl.u32 %v14032_v10, 16  ;;  %v19971_v17 = vshll.u32 %v14032_v10, 16  ;;  %v391_v19 = vld [vmem:[%s14007_s24 + $0x80] sm:$0xf]  ;;  %v14054_v20 = vcombine.low %v14046_v14, %v389_v15  ;;  %v14093_v45 = vcombine.low %v389_v15, %v390_v18  ;;  %v13676_v10 = vld [vmem:[%s19941_s1 + $0x10] sm:$0xff]  }
  0x15   : > { %20427 = vst [vmem:[#allocation4_spill] sm:$0xff] %v14039_v12  ;;  %20428 = vst [vmem:[#allocation5_spill] sm:$0xff] %v14043_v13  ;;  %12303 = vmatpush3.bf16.msra.mxu0 %v13639_v2  ;;  %13524 = vmatpush3.bf16.msra.mxu1 %v13639_v2  ;;  %v19968_v21 = vshrl.u32 %v14039_v12, 16  ;;  %v19970_v22 = vshll.u32 %v14039_v12, 16  ;;  %v14058_v23 = vcombine.low %v390_v18, %v391_v19  ;;  %v392_v24 = vld [vmem:[%s14007_s24 + $0x84] sm:$0xf] }
  0x16   : > { %20429 = vst [vmem:[#allocation6_spill] sm:$0xff] %v14054_v20  ;;  %12304 = vmatprep.subr.bf16.mxu0 %v13640_v3  ;;  %13517 = vmatprep.subr.bf16.mxu1 %v13640_v3  ;;  %v577_v25 = vrot.slane %v19969_v16, 3  ;;  %v580_v26 = vrot.slane %v19971_v17, 4  ;;  %v19956_v27 = vshrl.u32 %v14054_v20, 16  ;;  %v19958_v28 = vshll.u32 %v14054_v20, 16  ;;  %20432 = vst [vmem:[#allocation9_spill] sm:$0xff] %v14093_v45 }
  0x17   : > { %20430 = vst [vmem:[#allocation7_spill] sm:$0xff] %v14058_v23  ;;  %v393_v29 = vld [vmem:[%s14007_s24 + $0x88] sm:$0xf]  ;;  %v585_v30 = vrot.slane %v19968_v21, 3  ;;  %v588_v31 = vrot.slane %v19970_v22, 4  ;;  %v19955_v32 = vshrl.u32 %v14058_v23, 16  ;;  %v14107_v51 = vcombine.low %v391_v19, %v392_v24 }
  0x18   : > { %v19962_v33 = vshrl.u32 %v14043_v13, 16  ;;  %v581_v34 = vor.u32 %v580_v26, %v577_v25  ;;  %v684_v35 = vrot.slane %v19956_v27, 3  ;;  %v687_v36 = vrot.slane %v19958_v28, 4  ;;  %v14105_v50 = vld [vmem:[%s14007_s24 + $0x2c] sm:$0xf] }
  0x19   : > { %12305 = vmatpush3.bf16.msra.mxu0 %v13640_v3  ;;  %13525 = vmatpush3.bf16.msra.mxu1 %v13640_v3  ;;  %v19957_v37 = vshll.u32 %v14058_v23, 16  ;;  %v14082_v39 = vor.u32 %v588_v31, %v585_v30  ;;  %v693_v40 = vrot.slane %v19955_v32, 3  ;;  %v19967_v41 = vshll.u32 %v14043_v13, 16  ;;  %20433 = vst [vmem:[#allocation10_spill] sm:$0xff] %v14107_v51  ;;  %v14114_v55 = vld [vmem:[%s14007_s24 + $0x30] sm:$0xf] }
  0x1a   : > { %12306 = vmatprep.subr.bf16.mxu0 %v13641_v11  ;;  %13518 = vmatprep.subr.bf16.mxu1 %v13641_v11  ;;  %v14087_v42 = vor.u32 %v687_v36, %v684_v35  ;;  %v14091_v44 = vcombine.low %v392_v24, %v393_v29  ;;  %v594_v48 = vrot.slane %v19962_v33, 3  ;;  %v394_v56 = vld [vmem:[%s14007_s24 + $0x8c] sm:$0xf]  ;;  %v14119_v57 = vcombine.low %v14105_v50, %v14114_v55  ;;  %v395_v58 = vld [vmem:[%s14007_s24 + $0x90] sm:$0xf] }
  0x1b   : > { %v696_v43 = vrot.slane %v19957_v37, 4  ;;  %v590_v47 = vsel %vm20182_vm0, %v581_v34, %v14082_v39  ;;  %v597_v49 = vrot.slane %v19967_v41, 4  ;;  %v14123_v59 = vld [vmem:[%s14007_s24 + $0x34] sm:$0xf]  ;;  %v14126_v60 = vld [vmem:[%s14007_s24 + $0x38] sm:$0xf]  ;;  %v14128_v61 = vcombine.low %v393_v29, %v394_v56 }
  0x1c   : > { %20431 = vst [vmem:[#allocation8_spill] sm:$0xff] %v14091_v44  ;;  %v19952_v53 = vshrl.u32 %v14091_v44, 16  ;;  %v19954_v54 = vshll.u32 %v14091_v44, 16  ;;  %20434 = vst [vmem:[#allocation11_spill] sm:$0xff] %v14119_v57  ;;  %12314 = vmatprep.mubr.bf16.mxu0 %v590_v47  ;;  %v14137_v1 = vcombine.low %v394_v56, %v395_v58  ;;  %v396_v2 = vld [vmem:[%s14007_s24 + $0x94] sm:$0xf]  ;;  %v14150_v19 = vcombine.low %v14123_v59, %v14126_v60 }
  0x1d   : > { %12307 = vmatpush3.bf16.msra.mxu0 %v13641_v11  ;;  %13526 = vmatpush3.bf16.msra.mxu1 %v13641_v11  ;;  %v14109_v52 = vor.u32 %v696_v43, %v693_v40  ;;  %20435 = vst [vmem:[#allocation12_spill] sm:$0xff] %v14128_v61  ;;  %v14141_v3 = vld [vmem:[%s14007_s24 + $0x98] sm:$0xf]  ;;  %v13644_v11 = vld [vmem:[%s19941_s1 + $0xc0] sm:$0xff]   ;;  %v19961_v15 = vshrl.u32 %v14119_v57, 16  ;;  %v19963_v18 = vshll.u32 %v14119_v57, 16  ;;  %v598_v34 = vor.u32 %v597_v49, %v594_v48 }
  0x1e   : > { %12308 = vmatprep.subr.bf16.mxu0 %v13642_v38  ;;  %13519 = vmatprep.subr.bf16.mxu1 %v13642_v38  ;;  %v702_v63 = vrot.slane %v19952_v53, 3  ;;  %v705_v0 = vrot.slane %v19954_v54, 4  ;;  %20436 = vst [vmem:[#allocation13_spill] sm:$0xff] %v14137_v1  ;;  %20437 = vst [vmem:[#allocation14_spill] sm:$0xff] %v14150_v19  ;;  %v19951_v24 = vshrl.u32 %v14137_v1, 16  ;;  %v19953_v25 = vshll.u32 %v14137_v1, 16 }
  0x1f   : > { %v698_v62 = vsel %vm20182_vm0, %v14087_v42, %v14109_v52  ;;  %v603_v26 = vrot.slane %v19961_v15, 3  ;;  %v606_v29 = vrot.slane %v19963_v18, 4  ;;  %v19959_v30 = vshrl.u32 %v14150_v19, 16  ;;  %v13653_v40 = vld [vmem:[%s19941_s1 + $0x38] sm:$0xff]   ;;  %v14181_v56 = vld [vmem:[%s14007_s24 + $0x40] sm:$0xf] }
  0x20   : > { %12338 = vmatprep.mubr.bf16.mxu1 %v698_v62  ;;  %v19960_v31 = vshll.u32 %v14150_v19, 16  ;;  %v711_v35 = vrot.slane %v19951_v24, 3  ;;  %v714_v36 = vrot.slane %v19953_v25, 4  ;;  %v13654_v43 = vld [vmem:[%s19941_s1 + $0x1b8] sm:$0xff]   ;;  %v14183_v62 = vcombine.low %v395_v58, %v396_v2  ;;  %v14195_v27 = vld [vmem:[%s14007_s24 + $0xa0] sm:$0xf] }
  0x21   : > { %12309 = vmatpush3.bf16.msra.mxu0 %v13642_v38  ;;  %13527 = vmatpush3.bf16.msra.mxu1 %v13642_v38  ;;  %v14165_v38 = vcombine.low %v396_v2, %v14141_v3  ;;  %v612_v47 = vrot.slane %v19959_v30, 3  ;;  %v14178_v49 = vld [vmem:[%s14007_s24 + $0x3c] sm:$0xf]  ;;  %v706_v24 = vor.u32 %v705_v0, %v702_v63  ;;  %v607_v58 = vor.u32 %v606_v29, %v603_v26  ;;  %v14202_v63 = vld [vmem:[%s14007_s24 + $0x44] sm:$0xf] }
  0x22   : > { %12310 = vmatprep.subr.bf16.mxu0 %v13643_v46  ;;  %13520 = vmatprep.subr.bf16.mxu1 %v13643_v46  ;;  %v615_v48 = vrot.slane %v19960_v31, 4  ;;  %20439 = vst [vmem:[#allocation16_spill] sm:$0xff] %v14183_v62  ;;  %v14189_v54 = vcombine.low %v14178_v49, %v14181_v56  ;;  %v14192_v32 = vld [vmem:[%s14007_s24 + $0x9c] sm:$0xf]  ;;  %v14205_v0 = vld [vmem:[%s14007_s24 + $0x48] sm:$0xf]  ;;  %v599_v37 = vsel %vm20182_vm0, %v14082_v39, %v598_v34 }
  0x23   : > { %20438 = vst [vmem:[#allocation15_spill] sm:$0xff] %v14165_v38  ;;  %v19964_v53 = vshrl.u32 %v14165_v38, 16  ;;  %v19965_v25 = vshll.u32 %v14165_v38, 16  ;;  %v14208_v2 = vld [vmem:[%s14007_s24 + $0xa4] sm:$0xf]  ;;  %v715_v28 = vor.u32 %v714_v36, %v711_v35  ;;  %v707_v39 = vsel %vm20182_vm0, %v14109_v52, %v706_v24 }
  0x24   : > { %20440 = vst [vmem:[#allocation17_spill] sm:$0xff] %v14189_v54  ;;  %v19966_v31 = vshrl.u32 %v14189_v54, 16  ;;  %v14216_v26 = vld [vmem:[%s14007_s24 + $0xa8] sm:$0xf]  ;;  %v19972_v15 = vshll.u32 %v14189_v54, 16  ;;  %v14229_v36 = vcombine.low %v14202_v63, %v14205_v0  ;;  %v608_v52 = vsel %vm20182_vm0, %v598_v34, %v607_v58 }
  0x25   : > { %12311 = vmatpush3.bf16.msra.mxu0 %v13643_v46  ;;  %13528 = vmatpush3.bf16.msra.mxu1 %v13643_v46  ;;  %v14199_v46 = vcombine.low %v14192_v32, %v14195_v27  ;;  %v720_v30 = vrot.slane %v19964_v53, 3  ;;  %v723_v29 = vrot.slane %v19965_v25, 4  ;;  %v14233_v53 = vcombine.low %v14208_v2, %v14216_v26  ;;  %v14292_v1 = vld [vmem:[%s14007_s24 + $0x58] sm:$0xf] }
  0x26   : > { %12312 = vmatprep.subr.bf16.mxu0 %v13644_v11  ;;  %13521 = vmatprep.subr.bf16.mxu1 %v13644_v11  ;;  %v621_v35 = vrot.slane %v19966_v31, 3  ;;  %20442 = vst [vmem:[#allocation19_spill] sm:$0xff] %v14229_v36  ;;  %v616_v25 = vor.u32 %v615_v48, %v612_v47  ;;  %v13661_v31 = vld [vmem:[%s19941_s1 + $0x1b0] sm:$0xff]   ;;  %v624_v41 = vrot.slane %v19972_v15, 4  ;;  %v19979_v22 = vshrl.u32 %v14229_v36, 16 }
  0x27   : > { %20441 = vst [vmem:[#allocation18_spill] sm:$0xff] %v14199_v46  ;;  %v19975_v33 = vshrl.u32 %v14199_v46, 16  ;;  %v19978_v18 = vshll.u32 %v14199_v46, 16  ;;  %20443 = vst [vmem:[#allocation20_spill] sm:$0xff] %v14233_v53  ;;  %v19980_v17 = vshll.u32 %v14229_v36, 16  ;;  %v19985_v34 = vshrl.u32 %v14233_v53, 16 }
  0x28   : > { %v14252_v47 = vld [vmem:[%s14007_s24 + $0x4c] sm:$0xf]  ;;  %v716_v48 = vsel %vm20182_vm0, %v706_v24, %v715_v28  ;;  %v724_v15 = vor.u32 %v723_v29, %v720_v30  ;;  %v19986_v38 = vshll.u32 %v14233_v53, 16  ;;  %v625_v24 = vor.u32 %v624_v41, %v621_v35  ;;  %v14304_v53 = vld [vmem:[%s14007_s24 + $0xb8] sm:$0xf] }
  0x29   : > { %12313 = vmatpush3.bf16.msra.mxu0 %v13644_v11  ;;  %13529 = vmatpush3.bf16.msra.mxu1 %v13644_v11  ;;  %v13655_v11 = vld [vmem:[%s19941_s1 + $0x30] sm:$0xff]   ;;  %v729_v21 = vrot.slane %v19975_v33, 3  ;;  %v732_v16 = vrot.slane %v19978_v18, 4  ;;  %v14260_v46 = vld [vmem:[%s14007_s24 + $0xac] sm:$0xf]  ;;  %v630_v30 = vrot.slane %v19979_v22, 3 }
  0x2a   : > { %12362 = vmatprep.subr.bf16.mxu1 %v13653_v40  ;;  %12426 = vmatprep.subr.bf16.mxu0 %v13654_v43  ;;  %v14257_v33 = vld [vmem:[%s14007_s24 + $0x50] sm:$0xf]  ;;  %v13662_v18 = vld [vmem:[%s19941_s1 + $0x28] sm:$0xff]   ;;  %v633_v29 = vrot.slane %v19980_v17, 4  ;;  %v738_v41 = vrot.slane %v19985_v34, 3  ;;  %v741_v35 = vrot.slane %v19986_v38, 4  ;;  %v725_v23 = vsel %vm20182_vm0, %v715_v28, %v724_v15 }
  0x2b   : > { %v14289_v17 = vld [vmem:[%s14007_s24 + $0x54] sm:$0xf]  ;;  %v733_v44 = vor.u32 %v732_v16, %v729_v21  ;;  %20447 = vst [vmem:[#allocation24_spill] sm:$0xff] %v14304_v53  ;;  %v626_v21 = vsel %vm20182_vm0, %v616_v25, %v625_v24 }
  0x2c   : > { %12315 = vmatmul.mubr.bf16.vlgmr.msra.gmra.mxu0 %v599_v37  ;;  %12339 = vmatmul.mubr.bf16.vlgmr.msra.gmra.mxu1 %v707_v39  ;;  %v13663_v37 = vld [vmem:[%s19941_s1 + $0x1a8] sm:$0xff]   ;;  %v617_v39 = vsel %vm20182_vm0, %v607_v58, %v616_v25  ;;  %v14298_v34 = vcombine.low %v14289_v17, %v14292_v1  ;;  %v14301_v38 = vld [vmem:[%s14007_s24 + $0xb4] sm:$0xf]  ;;  %v634_v20 = vor.u32 %v633_v29, %v630_v30  ;;  %v13669_v30 = vld [vmem:[%s19941_s1 + $0x1a0] sm:$0xff]  }
  0x2d   : > { %12363 = vmatpush3.bf16.msra.mxu1 %v13653_v40  ;;  %12427 = vmatpush3.bf16.msra.mxu0 %v13654_v43  ;;  %v14274_v40 = vcombine.low %v14252_v47, %v14257_v33  ;;  %v14277_v43 = vld [vmem:[%s14007_s24 + $0xb0] sm:$0xf]  ;;  %v14311_v16 = vcombine.low %v14301_v38, %v14304_v53  ;;  %v734_v57 = vsel %vm20182_vm0, %v724_v15, %v733_v44  ;;  %v14343_v29 = vld [vmem:[%s14007_s24 + $0x5c] sm:$0xf] }
  0x2e   : > { %12364 = vmatprep.subr.bf16.mxu1 %v13655_v11  ;;  %12318 = vmatprep.mubr.bf16.mxu0 %v608_v52  ;;  %v14286_v22 = vcombine.low %v14260_v46, %v14277_v43  ;;  %20446 = vst [vmem:[#allocation23_spill] sm:$0xff] %v14298_v34  ;;  %v20002_v28 = vshrl.u32 %v14298_v34, 16  ;;  %v20003_v25 = vshll.u32 %v14298_v34, 16 }
  0x2f   : > { %20444 = vst [vmem:[#allocation21_spill] sm:$0xff] %v14274_v40  ;;  %12342 = vmatprep.mubr.bf16.mxu1 %v716_v48  ;;  %12428 = vmatprep.subr.bf16.mxu0 %v13661_v31  ;;  %v20001_v52 = vshrl.u32 %v14274_v40, 16  ;;  %20448 = vst [vmem:[#allocation25_spill] sm:$0xff] %v14311_v16  ;;  %v20449_v36 = vshll.u32 %v14274_v40, 16 }
  0x30   : > { %20445 = vst [vmem:[#allocation22_spill] sm:$0xff] %v14286_v22  ;;  %v20450_v48 = vshrl.u32 %v14286_v22, 16  ;;  %v648_v15 = vrot.slane %v20002_v28, 3  ;;  %v13675_v28 = vld [vmem:[%s19941_s1 + $0x198] sm:$0xff]  }
  0x31   : > { %12365 = vmatpush3.bf16.msra.mxu1 %v13655_v11  ;;  %12429 = vmatpush3.bf16.msra.mxu0 %v13661_v31  ;;  %v639_v58 = vrot.slane %v20001_v52, 3  ;;  %v642_v54 = vrot.slane %v20449_v36, 4  ;;  %v20451_v11 = vshll.u32 %v14286_v22, 16  ;;  %v742_v52 = vor.u32 %v741_v35, %v738_v41  ;;  %v13668_v36 = vld [vmem:[%s19941_s1 + $0x20] sm:$0xff]   ;;  %v13674_v35 = vld [vmem:[%s19941_s1 + $0x18] sm:$0xff]  }
  0x32   : > { %12366 = vmatprep.subr.bf16.mxu1 %v13662_v18  ;;  %12430 = vmatprep.subr.bf16.mxu0 %v13663_v37  ;;  %v747_v19 = vrot.slane %v20450_v48, 3  ;;  %v20006_v48 = vshll.u32 %v14311_v16, 16  ;;  %v651_v41 = vrot.slane %v20003_v25, 4  ;;  %v14355_v25 = vld [vmem:[%s14007_s24 + $0x60] sm:$0xf] }
  0x33   : > { %v750_v31 = vrot.slane %v20451_v11, 4  ;;  %v14333_v11 = vor.u32 %v642_v54, %v639_v58  ;;  %v20452_v54 = vshrl.u32 %v14311_v16, 16  ;;  %v14358_v22 = vld [vmem:[%s14007_s24 + $0xbc] sm:$0xf]  ;;  %v14387_v16 = vld [vmem:[%s14007_s24 + $0xc8] sm:$0xf] }
  0x34   : > { %12319 = vmatmul.mubr.bf16.gmra.mxu0 %v617_v39  ;;  %12343 = vmatmul.mubr.bf16.gmra.mxu1 %v725_v23  ;;  %v759_v58 = vrot.slane %v20006_v48, 4  ;;  %v743_v48 = vsel %vm20182_vm0, %v733_v44, %v742_v52  ;;  %20458 = vst [vmem:[#allocation31_spill] sm:$0xff] %v14387_v16 }
  0x35   : > { %12367 = vmatpush3.bf16.msra.mxu1 %v13662_v18  ;;  %12322 = vmatprep.mubr.bf16.mxu0 %v626_v21  ;;  %v14345_v23 = vor.u32 %v750_v31, %v747_v19  ;;  %v756_v39 = vrot.slane %v20452_v54, 3  ;;  %v635_v18 = vsel %vm20182_vm0, %v625_v24, %v634_v20  ;;  %v14363_v19 = vcombine.low %v14343_v29, %v14355_v25  ;;  %v14366_v21 = vld [vmem:[%s14007_s24 + $0xc0] sm:$0xf]  ;;  %v14369_v31 = vld [vmem:[%s14007_s24 + $0x64] sm:$0xf] }
  0x36   : > { %12346 = vmatprep.mubr.bf16.mxu1 %v734_v57  ;;  %12431 = vmatpush3.bf16.msra.mxu0 %v13663_v37  ;;  %20454 = vst [vmem:[#allocation27_spill] sm:$0xff] %v14366_v21  ;;  %v14372_v54 = vld [vmem:[%s14007_s24 + $0x68] sm:$0xf]  ;;  %v14377_v57 = vcombine.low %v14358_v22, %v14366_v21  ;;  %v14384_v24 = vld [vmem:[%s14007_s24 + $0xc4] sm:$0xf]  ;;  %v644_v34 = vsel %vm20182_vm0, %v634_v20, %v14333_v11 }
  0x37   : > { %20453 = vst [vmem:[#allocation26_spill] sm:$0xff] %v14363_v19  ;;  %12368 = vmatprep.subr.bf16.mxu1 %v13668_v36  ;;  %12432 = vmatprep.subr.bf16.mxu0 %v13669_v30  ;;  %v14381_v37 = vcombine.low %v14369_v31, %v14372_v54  ;;  %20457 = vst [vmem:[#allocation30_spill] sm:$0xff] %v14384_v24  ;;  %v14395_v13 = vcombine.low %v14384_v24, %v14387_v16  ;;  %v20460_v44 = vshrl.u32 %v14363_v19, 16 }
  0x38   : > { %20455 = vst [vmem:[#allocation28_spill] sm:$0xff] %v14377_v57  ;;  %v752_v12 = vsel %vm20182_vm0, %v742_v52, %v14345_v23  ;;  %v20026_v62 = vshrl.u32 %v14377_v57, 16  ;;  %v20462_v40 = vshll.u32 %v14377_v57, 16  ;;  %v760_v61 = vor.u32 %v759_v58, %v756_v39  ;;  %v14424_v57 = vld [vmem:[%s14007_s24 + $0x6c] sm:$0xf] }
  0x39   : > { %20456 = vst [vmem:[#allocation29_spill] sm:$0xff] %v14381_v37  ;;  %20459 = vst [vmem:[#allocation32_spill] sm:$0xff] %v14395_v13  ;;  %12369 = vmatpush3.bf16.msra.mxu1 %v13668_v36  ;;  %v657_v16 = vrot.slane %v20460_v44, 3  ;;  %v20461_v36 = vshll.u32 %v14363_v19, 16  ;;  %v13681_v44 = vld [vmem:[%s19941_s1 + $0x190] sm:$0xff]   ;;  %v20463_v51 = vshrl.u32 %v14381_v37, 16 }
  0x3a   : > { %12433 = vmatpush3.bf16.msra.mxu0 %v13669_v30  ;;  %12370 = vmatprep.subr.bf16.mxu1 %v13674_v35  ;;  %v765_v20 = vrot.slane %v20026_v62, 3  ;;  %v768_v30 = vrot.slane %v20462_v40, 4  ;;  %v20464_v62 = vshll.u32 %v14381_v37, 16  ;;  %v14427_v40 = vld [vmem:[%s14007_s24 + $0x70] sm:$0xf] }
  0x3b   : > { %v660_v52 = vrot.slane %v20461_v36, 4  ;;  %12434 = vmatprep.subr.bf16.mxu0 %v13675_v28  ;;  %v652_v36 = vor.u32 %v651_v41, %v648_v15  ;;  %v666_v19 = vrot.slane %v20463_v51, 3  ;;  %v20466_v15 = vshll.u32 %v14395_v13, 16  ;;  %v13682_v51 = vld [vmem:[%s19941_s1 + $0x8] sm:$0xff]  }
  0x3c   : > { %12323 = vmatmul.mubr.bf16.gmra.mxu0 %v635_v18  ;;  %12347 = vmatmul.mubr.bf16.gmra.mxu1 %v743_v48  ;;  %v669_v21 = vrot.slane %v20464_v62, 4  ;;  %v20465_v48 = vshrl.u32 %v14395_v13, 16  ;;  %v13683_v62 = vld [vmem:[%s19941_s1 + $0x188] sm:$0xff]   ;;  %v769_v39 = vor.u32 %v768_v30, %v765_v20 }
  0x3d   : > { %12326 = vmatprep.mubr.bf16.mxu0 %v644_v34  ;;  %12350 = vmatprep.mubr.bf16.mxu1 %v752_v12  ;;  %v14429_v45 = vor.u32 %v660_v52, %v657_v16  ;;  %v777_v41 = vrot.slane %v20466_v15, 4  ;;  %v14443_v34 = vcombine.low %v14424_v57, %v14427_v40  ;;  %v14446_v12 = vld [vmem:[%s14007_s24 + $0xcc] sm:$0xf]  ;;  %v14449_v16 = vld [vmem:[%s14007_s24 + $0xd0] sm:$0xf]  ;;  %v653_v20 = vsel %vm20182_vm0, %v14333_v11, %v652_v36 }
  0x3e   : > { %v774_v18 = vrot.slane %v20465_v48, 3  ;;  %20468 = vst [vmem:[#allocation34_spill] sm:$0xff] %v14446_v12  ;;  %20469 = vst [vmem:[#allocation35_spill] sm:$0xff] %v14449_v16  ;;  %12371 = vmatpush3.bf16.msra.mxu1 %v13674_v35  ;;  %12435 = vmatpush3.bf16.msra.mxu0 %v13675_v28  ;;  %v14453_v58 = vcombine.low %v14446_v12, %v14449_v16  ;;  %v14456_v52 = vld [vmem:[%s14007_s24 + $0xd4] sm:$0xf]  ;;  %v14460_v48 = vcombine.low %v14022_v7, %v14025_v8 }
  0x3f   : > { %20467 = vst [vmem:[#allocation33_spill] sm:$0xff] %v14443_v34  ;;  %20471 = vst [vmem:[#allocation37_spill] sm:$0xff] %v14456_v52  ;;  %12372 = vmatprep.subr.bf16.mxu1 %v13676_v10  ;;  %12436 = vmatprep.subr.bf16.mxu0 %v13681_v44  ;;  %v20039_v15 = vshrl.u32 %v14443_v34, 16  ;;  %v14466_v28 = vcombine.low %v14028_v9, %v14105_v50  ;;  %v10715_v7 = vcombine.low %v14456_v52, %v14456_v52  ;;  %v361_v8 = vld [vmem:[%s14007_s24 + $0x8] sm:$0xf] }
  0x40   : > { %20470 = vst [vmem:[#allocation36_spill] sm:$0xff] %v14453_v58  ;;  %20472 = vst [vmem:[#allocation38_spill] sm:$0xff] %v14460_v48  ;;  %v14476_v37 = vld [vmem:[%s14007_s24 + $0xc] sm:$0xf]  ;;  %v761_v35 = vsel %vm20182_vm0, %v14345_v23, %v760_v61  ;;  %v662_v9 = vsel %vm20182_vm0, %v652_v36, %v14429_v45  ;;  %v20474_v11 = vshll.u32 %v14443_v34, 16  ;;  %v770_v13 = vsel %vm20182_vm0, %v760_v61, %v769_v39  ;;  %v13688_v36 = vld [vmem:[%s19941_s1] sm:$0xff]  }
  0x41   : > { %20473 = vst [vmem:[#allocation39_spill] sm:$0xff] %v14466_v28  ;;  %v675_v50 = vrot.slane %v20039_v15, 3  ;;  %v14487_v12 = vld [vmem:[%s14007_s24 + $0x10] sm:$0xf]  ;;  %v670_v16 = vor.u32 %v669_v21, %v666_v19  ;;  %v20475_v52 = vshrl.u32 %v14453_v58, 16  ;;  %v20476_v23 = vshll.u32 %v14453_v58, 16 }
  0x42   : > { %v678_v30 = vrot.slane %v20474_v11, 4  ;;  %12373 = vmatpush3.bf16.msra.mxu1 %v13676_v10  ;;  %12437 = vmatpush3.bf16.msra.mxu0 %v13681_v44  ;;  %v778_v15 = vor.u32 %v777_v41, %v774_v18  ;;  %v13689_v61 = vld [vmem:[%s19941_s1 + $0x180] sm:$0xff]   ;;  %v10724_v10 = vcombine.low %v361_v8, %v14476_v37  ;;  %v10725_v19 = vcombine.low %v14487_v12, %v14013_v4 }
  0x43   : > { %v783_v24 = vrot.slane %v20475_v52, 3  ;;  %v786_v53 = vrot.slane %v20476_v23, 4  ;;  %12374 = vmatprep.subr.bf16.mxu1 %v13682_v51  ;;  %12438 = vmatprep.subr.bf16.mxu0 %v13683_v62  ;;  %v20087_v21 = vshrl.u32 %v14460_v48, 16  ;;  %v790_v44 = vshrl.u32 %v10715_v7, 16 }
  0x44   : > { %12327 = vmatmul.mubr.bf16.gmra.mxu0 %v653_v20  ;;  %12351 = vmatmul.mubr.bf16.gmra.mxu1 %v761_v35  ;;  %v793_v52 = vshll.u32 %v10715_v7, 16  ;;  %v20089_v11 = vshll.u32 %v14460_v48, 16  ;;  %v20062_v18 = vshrl.u32 %v14466_v28, 16  ;;  %v679_v41 = vor.u32 %v678_v30, %v675_v50 }
  0x45   : > { %12330 = vmatprep.mubr.bf16.mxu0 %v662_v9  ;;  %12354 = vmatprep.mubr.bf16.mxu1 %v770_v13  ;;  %v787_v23 = vor.u32 %v786_v53, %v783_v24  ;;  %v1127_v58 = vshrl.u32 %v10724_v10, 16  ;;  %v1130_v34 = vshll.u32 %v10724_v10, 16  ;;  %v14508_v8 = vcombine.low %v14016_v5, %v14019_v6  ;;  %v14522_v5 = vld [vmem:[%s19941_s1 + $0x78] sm:$0xff]  }
  0x46   : > { %12375 = vmatpush3.bf16.msra.mxu1 %v13682_v51  ;;  %12439 = vmatpush3.bf16.msra.mxu0 %v13683_v62  ;;  %v1135_v4 = vshrl.u32 %v10725_v19, 16  ;;  %v1138_v35 = vshll.u32 %v10725_v19, 16  ;;  %v14512_v20 = vcombine.low %v14114_v55, %v14123_v59  ;;  %v671_v7 = vsel %vm20182_vm0, %v14429_v45, %v670_v16  ;;  %v14527_v6 = vld [vmem:[%s19941_s1 + $0x138] sm:$0xff]  }
  0x47   : > { %20477 = vst [vmem:[#allocation40_spill] sm:$0xff] %v14508_v8  ;;  %v779_v13 = vsel %vm20182_vm0, %v769_v39, %v778_v15  ;;  %12376 = vmatprep.subr.bf16.mxu1 %v13688_v36  ;;  %12440 = vmatprep.subr.bf16.mxu0 %v13689_v61  ;;  %v1155_v53 = vrot.slane %v20087_v21, 3  ;;  %v792_v55 = vrot.slane %v790_v44, 3  ;;  %v795_v59 = vrot.slane %v793_v52, 4 }
  0x48   : > { %20478 = vst [vmem:[#allocation41_spill] sm:$0xff] %v14512_v20  ;;  %v1129_v45 = vrot.slane %v1127_v58, 3  ;;  %v20088_v24 = vshll.u32 %v14466_v28, 16  ;;  %v680_v51 = vsel %vm20182_vm0, %v670_v16, %v679_v41  ;;  %v788_v62 = vsel %vm20182_vm0, %v778_v15, %v787_v23 }
  0x49   : > { %v1132_v39 = vrot.slane %v1130_v34, 4  ;;  %v1158_v30 = vrot.slane %v20089_v11, 4  ;;  %v1137_v9 = vrot.slane %v1135_v4, 3  ;;  %v1140_v50 = vrot.slane %v1138_v35, 4 }
  0x4a   : > { %12377 = vmatpush3.bf16.msra.mxu1 %v13688_v36  ;;  %12441 = vmatpush3.bf16.msra.mxu0 %v13689_v61  ;;  %v1164_v10 = vrot.slane %v20062_v18, 3  ;;  %v1167_v58 = vrot.slane %v20088_v24, 4  ;;  %v14542_v34 = vcombine.low %v14126_v60, %v14178_v49  ;;  %v796_v16 = vor.u32 %v795_v59, %v792_v55 }
  0x4b   : > { %12490 = vmatprep.subr.bf16.mxu1 %v14522_v5  ;;  %12554 = vmatprep.subr.bf16.mxu0 %v14527_v6  ;;  %v20090_v15 = vshrl.u32 %v14508_v8, 16  ;;  %v20091_v36 = vshll.u32 %v14508_v8, 16  ;;  %v20059_v61 = vshrl.u32 %v14512_v20, 16  ;;  %v20061_v19 = vshll.u32 %v14512_v20, 16 }
  0x4c   : > { %20479 = vst [vmem:[#allocation42_spill] sm:$0xff] %v14542_v34  ;;  %12331 = vmatmul.mubr.bf16.gmra.mxu0 %v671_v7  ;;  %12355 = vmatmul.mubr.bf16.gmra.mxu1 %v779_v13  ;;  %v1133_v44 = vor.u32 %v1132_v39, %v1129_v45  ;;  %v1141_v52 = vor.u32 %v1140_v50, %v1137_v9  ;;  %v20058_v60 = vshrl.u32 %v14542_v34, 16  ;;  %v20060_v49 = vshll.u32 %v14542_v34, 16 }
  0x4d   : > { %12334 = vmatprep.mubr.bf16.mxu0 %v680_v51  ;;  %12358 = vmatprep.mubr.bf16.mxu1 %v788_v62  ;;  %v1159_v4 = vor.u32 %v1158_v30, %v1155_v53  ;;  %v1168_v35 = vor.u32 %v1167_v58, %v1164_v10  ;;  %v689_v7 = vsel %vm20182_vm0, %v679_v41, %v14087_v42  ;;  %v1146_v59 = vrot.slane %v20090_v15, 3  ;;  %v20526_v15 = vld [vmem:[#allocation15_spill] sm:$0xff] }
  0x4e   : > { %v797_v13 = vsel %vm20182_vm0, %v787_v23, %v796_v16  ;;  %v14555_v55 = vcombine.low %v14181_v56, %v14202_v63  ;;  %v1149_v53 = vrot.slane %v20091_v36, 4  ;;  %v1173_v45 = vrot.slane %v20059_v61, 3  ;;  %v13724_v61 = vld [vmem:[%s19941_s1 + $0x108] sm:$0xff]  }
  0x4f   : > { %v1176_v51 = vrot.slane %v20061_v19, 4  ;;  %v1142_v42 = vsel %vm20182_vm0, %v1133_v44, %v1141_v52  ;;  %v14567_v41 = vsel %vm20182_vm0, %v1159_v4, %v1168_v35  ;;  %v14571_v56 = vcombine.low %v14205_v0, %v14252_v47  ;;  %v20527_v36 = vld [vmem:[#allocation18_spill] sm:$0xff] }
  0x50   : > { %20480 = vst [vmem:[#allocation43_spill] sm:$0xff] %v14555_v55  ;;  %v1182_v63 = vrot.slane %v20058_v60, 3  ;;  %v1185_v23 = vrot.slane %v20060_v49, 4  ;;  %v1150_v62 = vor.u32 %v1149_v53, %v1146_v59  ;;  %v20055_v30 = vshrl.u32 %v14555_v55, 16  ;;  %v13723_v60 = vld [vmem:[%s19941_s1 + $0x48] sm:$0xff]  }
  0x51   : > { %20481 = vst [vmem:[#allocation44_spill] sm:$0xff] %v14571_v56  ;;  %v1177_v39 = vor.u32 %v1176_v51, %v1173_v45  ;;  %v20057_v9 = vshll.u32 %v14555_v55, 16  ;;  %v20054_v0 = vshrl.u32 %v14571_v56, 16  ;;  %v20056_v47 = vshll.u32 %v14571_v56, 16 }
  0x52   : > { %v1186_v50 = vor.u32 %v1185_v23, %v1182_v63  ;;  %v14584_v10 = vcombine.low %v14257_v33, %v14289_v17  ;;  %v14588_v58 = vcombine.low %v14292_v1, %v14343_v29  ;;  %v1151_v16 = vsel %vm20182_vm0, %v1141_v52, %v1150_v62  ;;  %v13697_v29 = vld [vmem:[%s19941_s1 + $0x70] sm:$0xff]   ;;  %v13703_v63 = vld [vmem:[%s19941_s1 + $0x68] sm:$0xff]  }
  0x53   : > { %v1178_v44 = vsel %vm20182_vm0, %v1168_v35, %v1177_v39  ;;  %v1200_v59 = vrot.slane %v20054_v0, 3  ;;  %v1203_v17 = vrot.slane %v20056_v47, 4  ;;  %v1160_v33 = vsel %vm20182_vm0, %v1150_v62, %v1159_v4  ;;  %v13698_v52 = vld [vmem:[%s19941_s1 + $0x130] sm:$0xff]   ;;  %v13704_v62 = vld [vmem:[%s19941_s1 + $0x128] sm:$0xff]  }
  0x54   : > { %12335 = vmatmul.mubr.bf16.gmra.mxu0 %v689_v7  ;;  %12359 = vmatmul.mubr.bf16.gmra.mxu1 %v797_v13  ;;  %20482 = vst [vmem:[#allocation45_spill] sm:$0xff] %v14584_v10  ;;  %20483 = vst [vmem:[#allocation46_spill] sm:$0xff] %v14588_v58  ;;  %v1191_v7 = vrot.slane %v20055_v30, 3  ;;  %v1194_v13 = vrot.slane %v20057_v9, 4  ;;  %v14602_v1 = vsel %vm20182_vm0, %v1177_v39, %v1186_v50  ;;  %v20051_v35 = vshrl.u32 %v14584_v10, 16 }
  0x55   : > { %12378 = vmatprep.mubr.bf16.mxu1 %v1142_v42  ;;  %12442 = vmatprep.mubr.bf16.mxu0 %v14567_v41  ;;  %v20053_v53 = vshll.u32 %v14584_v10, 16  ;;  %v20050_v45 = vshrl.u32 %v14588_v58, 16  ;;  %v20052_v4 = vshll.u32 %v14588_v58, 16  ;;  %v14616_v51 = vcombine.low %v14355_v25, %v14369_v31 }
  0x56   : > { %v1195_v42 = vor.u32 %v1194_v13, %v1191_v7  ;;  %v1204_v23 = vor.u32 %v1203_v17, %v1200_v59  ;;  %v14629_v25 = vcombine.low %v14141_v3, %v14192_v32  ;;  %v1209_v31 = vrot.slane %v20051_v35, 3 }
  0x57   : > { %20484 = vst [vmem:[#allocation47_spill] sm:$0xff] %v14616_v51  ;;  %v14641_v39 = vcombine.low %v14195_v27, %v14208_v2  ;;  %v1218_v32 = vrot.slane %v20050_v45, 3  ;;  %v1221_v3 = vrot.slane %v20052_v4, 4  ;;  %v20049_v7 = vshll.u32 %v14616_v51, 16  ;;  %v20499_v45 = vld [vmem:[#allocation16_spill] sm:$0xff] }
  0x58   : > { %20485 = vst [vmem:[#allocation48_spill] sm:$0xff] %v14629_v25  ;;  %v1196_v13 = vsel %vm20182_vm0, %v1186_v50, %v1195_v42  ;;  %v14656_v27 = vcombine.low %v14216_v26, %v14260_v46  ;;  %v14659_v2 = vsel %vm20182_vm0, %v1195_v42, %v1204_v23  ;;  %v13708_v46 = vld [vmem:[%s19941_s1 + $0x120] sm:$0xff]   ;;  %v20494_v42 = vld [vmem:[#allocation27_spill] sm:$0xff]  ;;  %v20068_v35 = vshrl.u32 %v20499_v45, 16 }
  0x59   : > { %20487 = vst [vmem:[#allocation50_spill] sm:$0xff] %v14641_v39  ;;  %v1222_v26 = vor.u32 %v1221_v3, %v1218_v32  ;;  %v20069_v4 = vshll.u32 %v20499_v45, 16  ;;  %v20073_v0 = vshll.u32 %v14641_v39, 16 }
  0x5a   : > { %20489 = vst [vmem:[#allocation52_spill] sm:$0xff] %v14656_v27  ;;  %v20074_v9 = vshrl.u32 %v14656_v27, 16 }
  0x5c   : > { %12379 = vmatmul.mubr.bf16.vlgmr.msra.gmra.mxu1 %v1151_v16  ;;  %12443 = vmatmul.mubr.bf16.vlgmr.msra.gmra.mxu0 %v1178_v44  ;;  %v20046_v16 = vshrl.u32 %v14616_v51, 16 }
  0x5d   : > { %12491 = vmatpush3.bf16.msra.mxu1 %v14522_v5  ;;  %12555 = vmatpush3.bf16.msra.mxu0 %v14527_v6  ;;  %v1212_v5 = vrot.slane %v20053_v53, 4  ;;  %v14637_v6 = vcombine.low %v14372_v54, %v14424_v57  ;;  %v14652_v54 = vcombine.low %v14427_v40, %v14046_v14  ;;  %v14663_v57 = vcombine.low %v14277_v43, %v14301_v38  ;;  %v13707_v14 = vld [vmem:[%s19941_s1 + $0x60] sm:$0xff]  }
  0x5e   : > { %12382 = vmatprep.mubr.bf16.mxu1 %v1160_v33  ;;  %12446 = vmatprep.mubr.bf16.mxu0 %v14602_v1  ;;  %v1227_v38 = vrot.slane %v20046_v16, 3  ;;  %v1230_v43 = vrot.slane %v20049_v7, 4  ;;  %v20071_v53 = vshrl.u32 %v14641_v39, 16 }
  0x5f   : > { %12492 = vmatprep.subr.bf16.mxu1 %v13697_v29  ;;  %12556 = vmatprep.subr.bf16.mxu0 %v13698_v52  ;;  %20486 = vst [vmem:[#allocation49_spill] sm:$0xff] %v14637_v6  ;;  %20488 = vst [vmem:[#allocation51_spill] sm:$0xff] %v14652_v54  ;;  %v1213_v50 = vor.u32 %v1212_v5, %v1209_v31  ;;  %v20045_v59 = vshrl.u32 %v14637_v6, 16  ;;  %v20048_v17 = vshll.u32 %v14637_v6, 16  ;;  %v20044_v40 = vshrl.u32 %v14652_v54, 16 }
  0x60   : > { %20490 = vst [vmem:[#allocation53_spill] sm:$0xff] %v14663_v57  ;;  %v20047_v33 = vshll.u32 %v14652_v54, 16 }
  0x61   : > { %12493 = vmatpush3.bf16.msra.mxu1 %v13697_v29  ;;  %12557 = vmatpush3.bf16.msra.mxu0 %v13698_v52  ;;  %v20491_v29 = vld [vmem:[#allocation24_spill] sm:$0xff]  ;;  %v14690_v5 = vsel %vm20182_vm0, %v1204_v23, %v1213_v50  ;;  %v1236_v32 = vrot.slane %v20045_v59, 3  ;;  %v1239_v23 = vrot.slane %v20048_v17, 4  ;;  %v14707_v3 = vrot.slane %v20044_v40, 3  ;;  %v20497_v40 = vld [vmem:[#allocation10_spill] sm:$0xff] }
  0x62   : > { %12494 = vmatprep.subr.bf16.mxu1 %v13703_v63  ;;  %12558 = vmatprep.subr.bf16.mxu0 %v13704_v62  ;;  %v14683_v52 = vcombine.low %v20491_v29, %v14358_v22  ;;  %v13714_v22 = vld [vmem:[%s19941_s1 + $0x118] sm:$0xff]   ;;  %v14711_v29 = vrot.slane %v20047_v33, 4  ;;  %v20064_v59 = vshrl.u32 %v20497_v40, 16  ;;  %v20065_v16 = vshll.u32 %v20497_v40, 16 }
  0x63   : > { %v20498_v33 = vld [vmem:[#allocation12_spill] sm:$0xff]  ;;  %v1240_v47 = vor.u32 %v1239_v23, %v1236_v32  ;;  %v20077_v32 = vshll.u32 %v14663_v57, 16 }
  0x64   : > { %12383 = vmatmul.mubr.bf16.gmra.mxu1 %v14567_v41  ;;  %12447 = vmatmul.mubr.bf16.gmra.mxu0 %v1196_v13  ;;  %20492 = vst [vmem:[#allocation24_spill] sm:$0xff] %v14683_v52  ;;  %v20493_v41 = vld [vmem:[#allocation30_spill] sm:$0xff]  ;;  %v20066_v17 = vshrl.u32 %v20498_v33, 16  ;;  %v20067_v7 = vshll.u32 %v20498_v33, 16  ;;  %v1263_v23 = vrot.slane %v20064_v59, 3  ;;  %v1266_v19 = vrot.slane %v20065_v16, 4 }
  0x65   : > { %12386 = vmatprep.mubr.bf16.mxu1 %v1178_v44  ;;  %12450 = vmatprep.mubr.bf16.mxu0 %v14659_v2  ;;  %v14687_v31 = vcombine.low %v20494_v42, %v20493_v41  ;;  %v13713_v44 = vld [vmem:[%s19941_s1 + $0x58] sm:$0xff]   ;;  %v20496_v41 = vld [vmem:[#allocation9_spill] sm:$0xff] }
  0x66   : > { %12495 = vmatpush3.bf16.msra.mxu1 %v13703_v63  ;;  %12559 = vmatpush3.bf16.msra.mxu0 %v13704_v62  ;;  %v14699_v63 = vsel %vm20182_vm0, %v1213_v50, %v1222_v26  ;;  %v1231_v62 = vor.u32 %v1230_v43, %v1227_v38  ;;  %v20063_v42 = vshrl.u32 %v20496_v41, 16  ;;  %v20078_v50 = vshll.u32 %v20496_v41, 16  ;;  %v13717_v38 = vld [vmem:[%s19941_s1 + $0x50] sm:$0xff]  }
  0x67   : > { %20495 = vst [vmem:[#allocation30_spill] sm:$0xff] %v14687_v31  ;;  %12496 = vmatprep.subr.bf16.mxu1 %v13707_v14  ;;  %12560 = vmatprep.subr.bf16.mxu0 %v13708_v46  ;;  %v13718_v43 = vld [vmem:[%s19941_s1 + $0x110] sm:$0xff]   ;;  %v1272_v18 = vrot.slane %v20066_v17, 3  ;;  %v14767_v17 = vrot.slane %v20071_v53, 3  ;;  %v13727_v53 = vld [vmem:[%s19941_s1 + $0x100] sm:$0xff]  }
  0x68   : > { %v1232_v30 = vsel %vm20182_vm0, %v1222_v26, %v1231_v62  ;;  %v1257_v49 = vrot.slane %v20078_v50, 4  ;;  %v20076_v26 = vshrl.u32 %v14663_v57, 16 }
  0x6a   : > { %12497 = vmatpush3.bf16.msra.mxu1 %v13707_v14  ;;  %12561 = vmatpush3.bf16.msra.mxu0 %v13708_v46  ;;  %v20070_v14 = vshrl.u32 %v14629_v25, 16  ;;  %v20072_v46 = vshll.u32 %v14629_v25, 16 }
  0x6b   : > { %12498 = vmatprep.subr.bf16.mxu1 %v13713_v44  ;;  %12562 = vmatprep.subr.bf16.mxu0 %v13714_v22 }
  0x6c   : > { %12387 = vmatmul.mubr.bf16.gmra.mxu1 %v14602_v1  ;;  %12451 = vmatmul.mubr.bf16.gmra.mxu0 %v14690_v5  ;;  %v20075_v1 = vshll.u32 %v14656_v27, 16  ;;  %v1290_v59 = vrot.slane %v20070_v14, 3  ;;  %v1293_v16 = vrot.slane %v20072_v46, 4  ;;  %v13726_v14 = vld [vmem:[%s19941_s1 + $0x40] sm:$0xff]   ;;  %v1241_v46 = vsel %vm20182_vm0, %v1231_v62, %v1240_v47 }
  0x6d   : > { %12390 = vmatprep.mubr.bf16.mxu1 %v1196_v13  ;;  %12454 = vmatprep.mubr.bf16.mxu0 %v14699_v63  ;;  %v1254_v13 = vrot.slane %v20063_v42, 3  ;;  %v1275_v42 = vrot.slane %v20067_v7, 4  ;;  %v14771_v7 = vrot.slane %v20073_v0, 4  ;;  %v14788_v0 = vrot.slane %v20076_v26, 3 }
  0x6e   : > { %12499 = vmatpush3.bf16.msra.mxu1 %v13713_v44  ;;  %12563 = vmatpush3.bf16.msra.mxu0 %v13714_v22  ;;  %v1281_v44 = vrot.slane %v20068_v35, 3  ;;  %v1284_v22 = vrot.slane %v20069_v4, 4  ;;  %v14775_v35 = vrot.slane %v20074_v9, 3  ;;  %v1311_v4 = vrot.slane %v20075_v1, 4 }
  0x6f   : > { %12500 = vmatprep.subr.bf16.mxu1 %v13717_v38  ;;  %12564 = vmatprep.subr.bf16.mxu0 %v13718_v43  ;;  %v14792_v9 = vrot.slane %v20077_v32, 4  ;;  %v14796_v1 = vcombine.low %v14476_v37, %v14487_v12  ;;  %v20079_v62 = vshrl.u32 %v14683_v52, 16  ;;  %v14807_v37 = vld [vmem:[%s19941_s1 + $0x1f8] sm:$0xff]   ;;  %v20086_v26 = vshll.u32 %v14687_v31, 16 }
  0x70   : > { %v14812_v12 = vld [vmem:[%s19941_s1 + $0xb8] sm:$0xff]  }
  0x71   : > { %v1326_v32 = vrot.slane %v20079_v62, 3  ;;  %v20504_v62 = vld [vmem:[#allocation31_spill] sm:$0xff] }
  0x72   : > { %12501 = vmatpush3.bf16.msra.mxu1 %v13717_v38  ;;  %12565 = vmatpush3.bf16.msra.mxu0 %v13718_v43  ;;  %v20080_v38 = vshll.u32 %v14683_v52, 16  ;;  %v1249_v43 = vor.u32 %v14711_v29, %v14707_v3 }
  0x73   : > { %12502 = vmatprep.subr.bf16.mxu1 %v13723_v60  ;;  %12566 = vmatprep.subr.bf16.mxu0 %v13724_v61 }
  0x74   : > { %12391 = vmatmul.mubr.bf16.gmra.mxu1 %v14659_v2  ;;  %12455 = vmatmul.mubr.bf16.gmra.mxu0 %v1232_v30  ;;  %v1258_v2 = vor.u32 %v1257_v49, %v1254_v13  ;;  %v1250_v3 = vsel %vm20182_vm0, %v1240_v47, %v1249_v43  ;;  %v1329_v50 = vrot.slane %v20080_v38, 4  ;;  %v20500_v49 = vld [vmem:[#allocation37_spill] sm:$0xff]  ;;  %v20501_v47 = vld [vmem:[#allocation35_spill] sm:$0xff] }
  0x75   : > { %12394 = vmatprep.mubr.bf16.mxu1 %v14690_v5  ;;  %12458 = vmatprep.mubr.bf16.mxu0 %v1241_v46  ;;  %v20085_v5 = vshrl.u32 %v14687_v31, 16  ;;  %v14827_v13 = vcombine.low %v20501_v47, %v20500_v49 }
  0x76   : > { %12503 = vmatpush3.bf16.msra.mxu1 %v13723_v60  ;;  %12567 = vmatpush3.bf16.msra.mxu0 %v13724_v61  ;;  %v1259_v29 = vsel %vm20182_vm0, %v1249_v43, %v1258_v2  ;;  %v1267_v61 = vor.u32 %v1266_v19, %v1263_v23  ;;  %v1276_v60 = vor.u32 %v1275_v42, %v1272_v18  ;;  %v1338_v42 = vrot.slane %v20086_v26, 4 }
  0x77   : > { %12504 = vmatprep.subr.bf16.mxu1 %v13726_v14  ;;  %12568 = vmatprep.subr.bf16.mxu0 %v13727_v53  ;;  %20502 = vst [vmem:[#allocation27_spill] sm:$0xff] %v14827_v13  ;;  %v20081_v18 = vshrl.u32 %v14827_v13, 16  ;;  %v1285_v19 = vor.u32 %v1284_v22, %v1281_v44  ;;  %v1312_v44 = vor.u32 %v1311_v4, %v14775_v35  ;;  %v13909_v4 = vld [vmem:[%s14007_s24 + $0xc8] sm:$0xf] }
  0x78   : > { %v1268_v43 = vsel %vm20182_vm0, %v1258_v2, %v1267_v61  ;;  %v1303_v2 = vor.u32 %v14771_v7, %v14767_v17  ;;  %v20083_v7 = vshll.u32 %v14827_v13, 16  ;;  %v1321_v35 = vor.u32 %v14792_v9, %v14788_v0 }
  0x79   : > { %v10748_v49 = vcombine.low %v13909_v4, %v13909_v4  ;;  %v1330_v47 = vor.u32 %v1329_v50, %v1326_v32 }
  0x7a   : > { %12505 = vmatpush3.bf16.msra.mxu1 %v13726_v14  ;;  %12569 = vmatpush3.bf16.msra.mxu0 %v13727_v53  ;;  %v1277_v14 = vsel %vm20182_vm0, %v1267_v61, %v1276_v60  ;;  %v20503_v53 = vld [vmem:[#allocation34_spill] sm:$0xff] }
  0x7b   : > { %12618 = vmatprep.subr.bf16.mxu1 %v14807_v37  ;;  %12682 = vmatprep.subr.bf16.mxu0 %v14812_v12  ;;  %v14833_v38 = vcombine.low %v20504_v62, %v20503_v53  ;;  %v1286_v62 = vsel %vm20182_vm0, %v1276_v60, %v1285_v19  ;;  %v1689_v53 = vrot.slane %v20083_v7, 4 }
  0x7c   : > { %12395 = vmatmul.mubr.bf16.gmra.mxu1 %v14699_v63  ;;  %12459 = vmatmul.mubr.bf16.gmra.mxu0 %v1250_v3  ;;  %v1294_v63 = vor.u32 %v1293_v16, %v1290_v59  ;;  %v413_v16 = vld [vmem:[%s14007_s24 + $0xd8] sm:$0xf]  ;;  %v414_v59 = vld [vmem:[%s14007_s24 + $0xdc] sm:$0xf] }
  0x7d   : > { %12398 = vmatprep.mubr.bf16.mxu1 %v1232_v30  ;;  %12462 = vmatprep.mubr.bf16.mxu0 %v1259_v29  ;;  %20505 = vst [vmem:[#allocation37_spill] sm:$0xff] %v14833_v38  ;;  %v1335_v30 = vrot.slane %v20085_v5, 3  ;;  %v20082_v23 = vshrl.u32 %v14833_v38, 16  ;;  %v20084_v22 = vshll.u32 %v14833_v38, 16  ;;  %v10775_v17 = vcombine.low %v413_v16, %v414_v59 }
  0x7e   : > { %v1304_v61 = vsel %vm20182_vm0, %v1294_v63, %v1303_v2  ;;  %v1345_v16 = vshll.u32 %v10748_v49, 16  ;;  %v1331_v59 = vsel %vm20182_vm0, %v1321_v35, %v1330_v47 }
  0x7f   : > { %v1677_v60 = vrot.slane %v20082_v23, 3  ;;  %v1339_v0 = vor.u32 %v1338_v42, %v1335_v30 }
  0x80   : > { %v1347_v7 = vrot.slane %v1345_v16, 4  ;;  %v13740_v16 = vld [vmem:[%s19941_s1 + $0x1d8] sm:$0xff]  }
  0x84   : > { %12399 = vmatmul.mubr.bf16.gmra.mxu1 %v1241_v46  ;;  %12463 = vmatmul.mubr.bf16.gmra.mxu0 %v1268_v43  ;;  %v1295_v46 = vsel %vm20182_vm0, %v1285_v19, %v1294_v63  ;;  %v14864_v19 = vld [vmem:[%s14007_s24 + $0xe0] sm:$0xf]  ;;  %v1693_v63 = vshrl.u32 %v10775_v17, 16 }
  0x85   : > { %12402 = vmatprep.mubr.bf16.mxu1 %v1250_v3  ;;  %12466 = vmatprep.mubr.bf16.mxu0 %v1277_v14  ;;  %v1686_v3 = vrot.slane %v20081_v18, 3  ;;  %v10776_v9 = vcombine.low %v14864_v19, %v14864_v19  ;;  %v1340_v18 = vsel %vm20182_vm0, %v1330_v47, %v1339_v0 }
  0x86   : > { %v1695_v32 = vrot.slane %v1693_v63, 3 }
  0x87   : > { %v1702_v4 = vshrl.u32 %v10776_v9, 16  ;;  %v1705_v23 = vshll.u32 %v10776_v9, 16  ;;  %v13742_v9 = vld [vmem:[%s19941_s1 + $0x1d0] sm:$0xff]  }
  0x89   : > { %v1704_v30 = vrot.slane %v1702_v4, 3  ;;  %v1707_v42 = vrot.slane %v1705_v23, 4  ;;  %v13734_v23 = vld [vmem:[%s19941_s1 + $0x1f0] sm:$0xff]   ;;  %v13744_v4 = vld [vmem:[%s19941_s1 + $0x1c8] sm:$0xff]  }
  0x8c   : > { %12403 = vmatmul.mubr.bf16.gmra.mxu1 %v1259_v29  ;;  %12467 = vmatmul.mubr.bf16.gmra.mxu0 %v1286_v62  ;;  %v1313_v29 = vsel %vm20182_vm0, %v1303_v2, %v1312_v44  ;;  %v1696_v2 = vshll.u32 %v10775_v17, 16 }
  0x8d   : > { %12406 = vmatprep.mubr.bf16.mxu1 %v1268_v43  ;;  %12470 = vmatprep.mubr.bf16.mxu0 %v1295_v46  ;;  %v1680_v43 = vrot.slane %v20084_v22, 4 }
  0x8e   : > { %v1698_v17 = vrot.slane %v1696_v2, 4  ;;  %v13737_v2 = vld [vmem:[%s19941_s1 + $0xa8] sm:$0xff]  }
  0x8f   : > { %v1681_v50 = vor.u32 %v1680_v43, %v1677_v60  ;;  %v1708_v43 = vor.u32 %v1707_v42, %v1704_v30  ;;  %v14946_v30 = vld [vmem:[%s19941_s1 + $0x238] sm:$0xff]   ;;  %v20514_v42 = vld [vmem:[#allocation23_spill] sm:$0xff] }
  0x94   : > { %12407 = vmatmul.mubr.bf16.gmra.mxu1 %v1277_v14  ;;  %12471 = vmatmul.mubr.bf16.gmra.mxu0 %v1304_v61  ;;  %v1322_v14 = vsel %vm20182_vm0, %v1312_v44, %v1321_v35  ;;  %v1682_v44 = vsel %vm20182_vm0, %v1339_v0, %v1681_v50  ;;  %v1690_v35 = vor.u32 %v1689_v53, %v1686_v3  ;;  %v20506_v3 = vld [vmem:[#allocation3_spill] sm:$0xff]  ;;  %v13736_v53 = vld [vmem:[%s19941_s1 + $0x1e8] sm:$0xff]  }
  0x95   : > { %12410 = vmatprep.mubr.bf16.mxu1 %v1286_v62  ;;  %12474 = vmatprep.mubr.bf16.mxu0 %v1313_v29  ;;  %v1342_v62 = vshrl.u32 %v10748_v49, 16  ;;  %v1699_v49 = vor.u32 %v1698_v17, %v1695_v32  ;;  %v20511_v32 = vld [vmem:[#allocation17_spill] sm:$0xff]  ;;  %v13745_v17 = vld [vmem:[%s19941_s1 + $0x88] sm:$0xff]  }
  0x97   : > { %v1700_v60 = vsel %vm20182_vm0, %v1690_v35, %v1699_v49  ;;  %v1709_v63 = vsel %vm20182_vm0, %v1699_v49, %v1708_v43  ;;  %v20512_v49 = vld [vmem:[#allocation19_spill] sm:$0xff]  ;;  %v20517_v43 = vld [vmem:[#allocation33_spill] sm:$0xff] }
  0x9c   : > { %12411 = vmatmul.mubr.bf16.gmra.mxu1 %v1295_v46  ;;  %12475 = vmatmul.mubr.bf16.gmra.mxu0 %v1322_v14  ;;  %v1344_v46 = vrot.slane %v1342_v62, 3  ;;  %v20509_v62 = vld [vmem:[#allocation11_spill] sm:$0xff] }
  0x9d   : > { %12414 = vmatprep.mubr.bf16.mxu1 %v1304_v61  ;;  %12478 = vmatprep.mubr.bf16.mxu0 %v1331_v59  ;;  %v1691_v61 = vsel %vm20182_vm0, %v1681_v50, %v1690_v35  ;;  %v20510_v50 = vld [vmem:[#allocation14_spill] sm:$0xff]  ;;  %v13747_v35 = vld [vmem:[%s19941_s1 + $0x80] sm:$0xff]  }
  0x9e   : > { %v1348_v47 = vor.u32 %v1347_v7, %v1344_v46  ;;  %v20507_v7 = vld [vmem:[#allocation4_spill] sm:$0xff]  ;;  %v20513_v46 = vld [vmem:[#allocation21_spill] sm:$0xff] }
  0xa4   : > { %12415 = vmatmul.mubr.bf16.gmra.mxu1 %v1313_v29  ;;  %12479 = vmatmul.mubr.bf16.gmra.mxu0 %v1340_v18  ;;  %v1349_v29 = vsel %vm20182_vm0, %v1339_v0, %v1348_v47  ;;  %v13743_v0 = vld [vmem:[%s19941_s1 + $0x90] sm:$0xff]   ;;  %v20516_v47 = vld [vmem:[#allocation29_spill] sm:$0xff] }
  0xa5   : > { %12418 = vmatprep.mubr.bf16.mxu1 %v1322_v14  ;;  %12482 = vmatprep.mubr.bf16.mxu0 %v1682_v44  ;;  %v20508_v14 = vld [vmem:[#allocation5_spill] sm:$0xff] }
  0xa6   : > { %v13746_v44 = vld [vmem:[%s19941_s1 + $0x1c0] sm:$0xff]  }
  0xac   : > { %12419 = vmatmul.mubr.bf16.gmra.mxu1 %v1331_v59  ;;  %12483 = vmatmul.mubr.bf16.gmra.mxu0 %v1691_v61  ;;  %v13741_v59 = vld [vmem:[%s19941_s1 + $0x98] sm:$0xff]  }
  0xad   : > { %12422 = vmatprep.mubr.bf16.mxu1 %v1340_v18  ;;  %12486 = vmatprep.mubr.bf16.mxu0 %v1700_v60  ;;  %v13735_v18 = vld [vmem:[%s19941_s1 + $0xb0] sm:$0xff]   ;;  %v14941_v61 = vld [vmem:[%s19941_s1 + $0x178] sm:$0xff]   ;;  %v20515_v60 = vld [vmem:[#allocation26_spill] sm:$0xff] }
  0xb4   : > { %12423 = vmatmul.mubr.bf16.gmra.mxu1 %v1349_v29  ;;  %12487 = vmatmul.mubr.bf16.gmra.mxu0 %v1709_v63 }
  0xb5   : > { %12506 = vmatprep.mubr.bf16.mxu1 %v14796_v1  ;;  %12570 = vmatprep.mubr.bf16.mxu0 %v14508_v8 }
  0xbc   : > { %12507 = vmatmul.mubr.bf16.vlgmr.msra.gmra.mxu1 %v20506_v3  ;;  %12571 = vmatmul.mubr.bf16.vlgmr.msra.gmra.mxu0 %v14460_v48 }
  0xbd   : > { %12619 = vmatpush3.bf16.msra.mxu1 %v14807_v37  ;;  %12683 = vmatpush3.bf16.msra.mxu0 %v14812_v12  ;;  %v13738_v37 = vld [vmem:[%s19941_s1 + $0x1e0] sm:$0xff]  }
  0xbe   : > { %12510 = vmatprep.mubr.bf16.mxu1 %v20507_v7  ;;  %12574 = vmatprep.mubr.bf16.mxu0 %v14466_v28  ;;  %v13739_v12 = vld [vmem:[%s19941_s1 + $0xa0] sm:$0xff]  }
  0xbf   : > { %12620 = vmatprep.subr.bf16.mxu1 %v13734_v23  ;;  %12684 = vmatprep.subr.bf16.mxu0 %v13735_v18 }
  0xc1   : > { %12621 = vmatpush3.bf16.msra.mxu1 %v13734_v23  ;;  %12685 = vmatpush3.bf16.msra.mxu0 %v13735_v18  ;;  %v20518_v23 = vld [vmem:[#allocation6_spill] sm:$0xff]  ;;  %v20519_v18 = vld [vmem:[#allocation7_spill] sm:$0xff] }
  0xc2   : > { %12622 = vmatprep.subr.bf16.mxu1 %v13736_v53  ;;  %12686 = vmatprep.subr.bf16.mxu0 %v13737_v2 }
  0xc4   : > { %12511 = vmatmul.mubr.bf16.gmra.mxu1 %v20508_v14  ;;  %12575 = vmatmul.mubr.bf16.gmra.mxu0 %v14512_v20 }
  0xc5   : > { %12514 = vmatprep.mubr.bf16.mxu1 %v20509_v62  ;;  %12578 = vmatprep.mubr.bf16.mxu0 %v14542_v34 }
  0xc6   : > { %12623 = vmatpush3.bf16.msra.mxu1 %v13736_v53  ;;  %12687 = vmatpush3.bf16.msra.mxu0 %v13737_v2 }
  0xc7   : > { %12624 = vmatprep.subr.bf16.mxu1 %v13738_v37  ;;  %12688 = vmatprep.subr.bf16.mxu0 %v13739_v12 }
  0xca   : > { %12625 = vmatpush3.bf16.msra.mxu1 %v13738_v37  ;;  %12689 = vmatpush3.bf16.msra.mxu0 %v13739_v12 }
  0xcb   : > { %12626 = vmatprep.subr.bf16.mxu1 %v13740_v16  ;;  %12690 = vmatprep.subr.bf16.mxu0 %v13741_v59 }
  0xcc   : > { %12515 = vmatmul.mubr.bf16.gmra.mxu1 %v20510_v50  ;;  %12579 = vmatmul.mubr.bf16.gmra.mxu0 %v14555_v55 }
  0xcd   : > { %12518 = vmatprep.mubr.bf16.mxu1 %v20511_v32  ;;  %12582 = vmatprep.mubr.bf16.mxu0 %v14571_v56 }
  0xce   : > { %12627 = vmatpush3.bf16.msra.mxu1 %v13740_v16  ;;  %12691 = vmatpush3.bf16.msra.mxu0 %v13741_v59 }
  0xcf   : > { %12628 = vmatprep.subr.bf16.mxu1 %v13742_v9  ;;  %12692 = vmatprep.subr.bf16.mxu0 %v13743_v0 }
  0xd2   : > { %12629 = vmatpush3.bf16.msra.mxu1 %v13742_v9  ;;  %12693 = vmatpush3.bf16.msra.mxu0 %v13743_v0 }
  0xd3   : > { %12630 = vmatprep.subr.bf16.mxu1 %v13744_v4  ;;  %12694 = vmatprep.subr.bf16.mxu0 %v13745_v17 }
  0xd4   : > { %12519 = vmatmul.mubr.bf16.gmra.mxu1 %v20512_v49  ;;  %12583 = vmatmul.mubr.bf16.gmra.mxu0 %v14584_v10 }
  0xd5   : > { %12522 = vmatprep.mubr.bf16.mxu1 %v20513_v46  ;;  %12586 = vmatprep.mubr.bf16.mxu0 %v14588_v58  ;;  %v3125_v58 = vshll.u32 %v14796_v1, 16 }
  0xd6   : > { %12631 = vmatpush3.bf16.msra.mxu1 %v13744_v4  ;;  %12695 = vmatpush3.bf16.msra.mxu0 %v13745_v17  ;;  %v20520_v4 = vld [vmem:[#allocation8_spill] sm:$0xff]  ;;  %v20521_v17 = vld [vmem:[#allocation13_spill] sm:$0xff] }
  0xd7   : > { %12632 = vmatprep.subr.bf16.mxu1 %v13746_v44  ;;  %12696 = vmatprep.subr.bf16.mxu0 %v13747_v35  ;;  %v3127_v48 = vrot.slane %v3125_v58, 1 }
  0xda   : > { %12633 = vmatpush3.bf16.msra.mxu1 %v13746_v44  ;;  %12697 = vmatpush3.bf16.msra.mxu0 %v13747_v35 }
  0xdb   : > { %12746 = vmatprep.subr.bf16.mxu1 %v14941_v61  ;;  %12810 = vmatprep.subr.bf16.mxu0 %v14946_v30 }
  0xdc   : > { %12523 = vmatmul.mubr.bf16.gmra.mxu1 %v20514_v42  ;;  %12587 = vmatmul.mubr.bf16.gmra.mxu0 %v14616_v51 }
  0xdd   : > { %12526 = vmatprep.mubr.bf16.mxu1 %v20515_v60  ;;  %12590 = vmatprep.mubr.bf16.mxu0 %v14637_v6 }
  0xe4   : > { %12527 = vmatmul.mubr.bf16.gmra.mxu1 %v20516_v47  ;;  %12591 = vmatmul.mubr.bf16.gmra.mxu0 %v14652_v54 }
  0xe5   : > { %12530 = vmatprep.mubr.bf16.mxu1 %v20517_v43  ;;  %12594 = vmatprep.mubr.bf16.mxu0 %v20496_v41 }
  0xec   : > { %v14958_v29 = vpop.f32.mrf.mxu0  ;;  %v14960_v63 = vpop.f32.mrf.mxu1  ;;  %12531 = vmatmul.mubr.bf16.gmra.mxu1 %v20518_v23  ;;  %12595 = vmatmul.mubr.bf16.gmra.mxu0 %v20497_v40 }
  0xed   : > { %12534 = vmatprep.mubr.bf16.mxu1 %v20519_v18  ;;  %12598 = vmatprep.mubr.bf16.mxu0 %v20498_v33 }
  0xee   : > { %v14966_v53 = vpop.f32.mrf.mxu0  ;;  %v14968_v2 = vpop.f32.mrf.mxu1 }
  0xf0   : > { %v14970_v37 = vpop.f32.mrf.mxu0  ;;  %v14972_v12 = vpop.f32.mrf.mxu1 }
  0xf2   : > { %v14974_v16 = vpop.f32.mrf.mxu0  ;;  %v14976_v59 = vpop.f32.mrf.mxu1 }
  0xf4   : > { %v14978_v9 = vpop.f32.mrf.mxu0  ;;  %v14980_v0 = vpop.f32.mrf.mxu1  ;;  %12535 = vmatmul.mubr.bf16.gmra.mxu1 %v20520_v4  ;;  %12599 = vmatmul.mubr.bf16.gmra.mxu0 %v20499_v45 }
  0xf5   : > { %12538 = vmatprep.mubr.bf16.mxu1 %v20521_v17  ;;  %12602 = vmatprep.mubr.bf16.mxu0 %v14629_v25 }
  0xf6   : > { %v14986_v44 = vpop.f32.mrf.mxu0  ;;  %v14988_v35 = vpop.f32.mrf.mxu1 }
  0xf7   : > { %20522 = vst [vmem:[#allocation35_spill] sm:$0xff] %v14988_v35  ;;  %v20555_v35 = vshrl.u32 %v20509_v62, 16 }
  0xf8   : > { %v14990_v22 = vpop.f32.mrf.mxu0  ;;  %v14992_v5 = vpop.f32.mrf.mxu1 }
  0xf9   : > { %20523 = vst [vmem:[#allocation34_spill] sm:$0xff] %v14992_v5 }
  0xfa   : > { %v14994_v26 = vpop.f32.mrf.mxu0  ;;  %v14996_v21 = vpop.f32.mrf.mxu1 }
  0xfb   : > { %20524 = vst [vmem:[#allocation31_spill] sm:$0xff] %v14996_v21 }
  0xfc   : > { %v14998_v24 = vpop.f32.mrf.mxu0  ;;  %v15000_v11 = vpop.f32.mrf.mxu1  ;;  %12539 = vmatmul.mubr.bf16.gmra.mxu1 %v20526_v15  ;;  %12603 = vmatmul.mubr.bf16.gmra.mxu0 %v14641_v39  ;;  %v20532_v39 = vld [vmem:[#allocation20_spill] sm:$0xff] }
  0xfd   : > { %20525 = vst [vmem:[#allocation3_spill] sm:$0xff] %v15000_v11  ;;  %12542 = vmatprep.mubr.bf16.mxu1 %v20527_v36  ;;  %12606 = vmatprep.mubr.bf16.mxu0 %v14656_v27  ;;  %v20533_v27 = vld [vmem:[#allocation22_spill] sm:$0xff]  ;;  %v20549_v11 = vshrl.u32 %v20507_v7, 16 }
  0xfe   : > { %v15006_v25 = vpop.f32.mrf.mxu0  ;;  %v15008_v45 = vpop.f32.mrf.mxu1 }
  0xff   : > { %20528 = vst [vmem:[#allocation4_spill] sm:$0xff] %v15008_v45 }
 0x100   : > { %v15010_v33 = vpop.f32.mrf.mxu0  ;;  %v15012_v40 = vpop.f32.mrf.mxu1 }
 0x101   : > { %20529 = vst [vmem:[#allocation5_spill] sm:$0xff] %v15012_v40 }
 0x102   : > { %v15014_v41 = vpop.f32.mrf.mxu0  ;;  %v15016_v54 = vpop.f32.mrf.mxu1 }
 0x103   : > { %20530 = vst [vmem:[#allocation11_spill] sm:$0xff] %v15016_v54 }
 0x104   : > { %v15018_v6 = vpop.f32.mrf.mxu0  ;;  %v15020_v51 = vpop.f32.mrf.mxu1  ;;  %12543 = vmatmul.mubr.bf16.gmra.mxu1 %v20532_v39  ;;  %12607 = vmatmul.mubr.bf16.gmra.mxu0 %v14663_v57  ;;  %v3123_v57 = vshrl.u32 %v14796_v1, 16  ;;  %v20541_v1 = vshll.u32 %v20506_v3, 16  ;;  %v20556_v39 = vshll.u32 %v20510_v50, 16 }
 0x105   : > { %20531 = vst [vmem:[#allocation14_spill] sm:$0xff] %v15020_v51  ;;  %12546 = vmatprep.mubr.bf16.mxu1 %v20533_v27  ;;  %12610 = vmatprep.mubr.bf16.mxu0 %v14683_v52  ;;  %v20538_v51 = vld [vmem:[#allocation25_spill] sm:$0xff] }
 0x106   : > { %v15027_v10 = vpop.f32.mrf.mxu0  ;;  %v15029_v56 = vpop.f32.mrf.mxu1  ;;  %v3129_v58 = vrot.slane %v20541_v1, 1  ;;  %v20547_v1 = vshrl.u32 %v20506_v3, 16 }
 0x107   : > { %20534 = vst [vmem:[#allocation17_spill] sm:$0xff] %v15029_v56  ;;  %v20539_v56 = vld [vmem:[#allocation28_spill] sm:$0xff] }
 0x108   : > { %v15031_v55 = vpop.f32.mrf.mxu0  ;;  %v15033_v34 = vpop.f32.mrf.mxu1 }
 0x109   : > { %20535 = vst [vmem:[#allocation19_spill] sm:$0xff] %v15033_v34 }
 0x10a   : > { %v15035_v20 = vpop.f32.mrf.mxu0  ;;  %v15037_v28 = vpop.f32.mrf.mxu1 }
 0x10b   : > { %20536 = vst [vmem:[#allocation21_spill] sm:$0xff] %v15037_v28  ;;  %v3128_v28 = vor.u32 %v3127_v48, %v3123_v57  ;;  %v20546_v48 = vshll.u32 %v20507_v7, 16  ;;  %v13750_v7 = vld [vmem:[%s19941_s1 + $0x170] sm:$0xff]  }
 0x10c   : > { %v15040_v8 = vpop.f32.mrf.mxu0  ;;  %v15042_v52 = vpop.f32.mrf.mxu1  ;;  %12547 = vmatmul.mubr.bf16.gmra.mxu1 %v20538_v51  ;;  %12611 = vmatmul.mubr.bf16.gmra.mxu0 %v14687_v31 }
 0x10d   : > { %20537 = vst [vmem:[#allocation23_spill] sm:$0xff] %v15042_v52  ;;  %12550 = vmatprep.mubr.bf16.mxu1 %v20539_v56  ;;  %12614 = vmatprep.mubr.bf16.mxu0 %v14833_v38  ;;  %v3130_v56 = vsel %vm20176_vm1, %v3128_v28, %v3129_v58  ;;  %v3132_v57 = vrot.slane %v20546_v48, 1 }
 0x10e   : > { %v15048_v34 = vpop.f32.mrf.mxu0  ;;  %v15050_v54 = vpop.f32.mrf.mxu1 }
 0x10f   : > { %20540 = vst [vmem:[#allocation26_spill] sm:$0xff] %v15050_v54  ;;  %v20545_v54 = vld [vmem:[#allocation32_spill] sm:$0xff] }
 0x110   : > { %v15054_v40 = vpop.f32.mrf.mxu0  ;;  %v15056_v52 = vpop.f32.mrf.mxu1 }
 0x111   : > { %20542 = vst [vmem:[#allocation29_spill] sm:$0xff] %v15056_v52  ;;  %v3131_v52 = vor.u32 %v3129_v58, %v20547_v1 }
 0x112   : > { %v15058_v45 = vpop.f32.mrf.mxu0  ;;  %v15060_v31 = vpop.f32.mrf.mxu1 }
 0x113   : > { %20543 = vst [vmem:[#allocation33_spill] sm:$0xff] %v15060_v31  ;;  %v3133_v48 = vsel %vm20176_vm1, %v3131_v52, %v3132_v57  ;;  %v20553_v52 = vshll.u32 %v20509_v62, 16 }
 0x114   : > { %v15063_v38 = vpop.f32.mrf.mxu0  ;;  %v15065_v51 = vpop.f32.mrf.mxu1  ;;  %12551 = vmatmul.mubr.bf16.gmra.mxu1 %v20545_v54  ;;  %12615 = vmatmul.mubr.bf16.gmra.mxu0 %v14827_v13  ;;  %v20550_v54 = vshll.u32 %v20508_v14, 16 }
 0x115   : > { %20544 = vst [vmem:[#allocation6_spill] sm:$0xff] %v15065_v51  ;;  %12634 = vmatprep.mubr.bf16.mxu1 %v20508_v14  ;;  %12698 = vmatprep.mubr.bf16.mxu0 %v3130_v56  ;;  %v3134_v51 = vor.u32 %v3132_v57, %v20549_v11  ;;  %v13751_v11 = vld [vmem:[%s19941_s1 + $0x230] sm:$0xff]   ;;  %v3138_v57 = vrot.slane %v20553_v52, 1  ;;  %v3141_v52 = vrot.slane %v20556_v39, 1 }
 0x116   : > { %v15074_v31 = vpop.f32.mrf.mxu0  ;;  %v15076_v28 = vpop.f32.mrf.mxu1  ;;  %v3135_v27 = vrot.slane %v20550_v54, 1 }
 0x117   : > { %20548 = vst [vmem:[#allocation7_spill] sm:$0xff] %v15076_v28 }
 0x118   : > { %v15082_v13 = vpop.f32.mrf.mxu0  ;;  %v15084_v21 = vpop.f32.mrf.mxu1  ;;  %v3136_v56 = vsel %vm20176_vm1, %v3134_v51, %v3135_v27  ;;  %v20554_v51 = vshrl.u32 %v20508_v14, 16  ;;  %v13753_v14 = vld [vmem:[%s19941_s1 + $0x228] sm:$0xff]  }
 0x119   : > { %20551 = vst [vmem:[#allocation8_spill] sm:$0xff] %v15084_v21 }
 0x11a   : > { %v15087_v5 = vpop.f32.mrf.mxu0  ;;  %v15089_v3 = vpop.f32.mrf.mxu1 }
 0x11b   : > { %20552 = vst [vmem:[#allocation13_spill] sm:$0xff] %v15089_v3  ;;  %v3137_v3 = vor.u32 %v3135_v27, %v20554_v51 }
 0x11c   : > { %v12380_v54 = vpop.f32.mrf.mxu1  ;;  %v12444_v58 = vpop.f32.mrf.mxu0  ;;  %12635 = vmatmul.mubr.bf16.vlgmr.msra.gmra.mxu1 %v20509_v62  ;;  %12699 = vmatmul.mubr.bf16.vlgmr.msra.gmra.mxu0 %v3133_v48  ;;  %v3140_v48 = vor.u32 %v3138_v57, %v20555_v35 }
 0x11d   : > { %v1465_v1 = vadd.f32 %v12380_v54, %v14958_v29  ;;  %12747 = vmatpush3.bf16.msra.mxu1 %v14941_v61  ;;  %12811 = vmatpush3.bf16.msra.mxu0 %v14946_v30  ;;  %v13752_v61 = vld [vmem:[%s19941_s1 + $0x168] sm:$0xff]  }
 0x11e   : > { %v1456_v21 = vpop.f32.mrf.mxu1  ;;  %v1796_v28 = vpop.f32.mrf.mxu0  ;;  %12638 = vmatprep.mubr.bf16.mxu1 %v20510_v50  ;;  %12702 = vmatprep.mubr.bf16.mxu0 %v3136_v56  ;;  %v15124_v56 = vsel %vm20176_vm1, %v3137_v3, %v3138_v57 }
 0x11f   : > { %v15117_v27 = vadd.f32 %v12444_v58, %v1465_v1  ;;  %v1457_v30 = vadd.f32 %v1456_v21, %v14966_v53  ;;  %12748 = vmatprep.subr.bf16.mxu1 %v13750_v7  ;;  %12812 = vmatprep.subr.bf16.mxu0 %v13751_v11  ;;  %v15127_v58 = vsel %vm20176_vm1, %v3140_v48, %v3141_v52  ;;  %v20560_v48 = vshrl.u32 %v20510_v50, 16  ;;  %v13756_v50 = vld [vmem:[%s19941_s1 + $0x158] sm:$0xff]  }
 0x120   : > { %v12381_v29 = vpop.f32.mrf.mxu1  ;;  %v12445_v62 = vpop.f32.mrf.mxu0 }
 0x121   : > { %v15120_v35 = vadd.f32 %v1796_v28, %v1457_v30  ;;  %v1468_v39 = vadd.f32 %v12381_v29, %v14970_v37  ;;  %12749 = vmatpush3.bf16.msra.mxu1 %v13750_v7  ;;  %12813 = vmatpush3.bf16.msra.mxu0 %v13751_v11  ;;  %v13754_v37 = vld [vmem:[%s19941_s1 + $0x160] sm:$0xff]   ;;  %v20559_v11 = vshll.u32 %v20511_v32, 16  ;;  %v3143_v30 = vor.u32 %v3141_v52, %v20560_v48 }
 0x122   : > { %v1459_v54 = vpop.f32.mrf.mxu1  ;;  %v1799_v51 = vpop.f32.mrf.mxu0  ;;  %12750 = vmatprep.subr.bf16.mxu1 %v13752_v61  ;;  %12814 = vmatprep.subr.bf16.mxu0 %v13753_v14  ;;  %v13755_v28 = vld [vmem:[%s19941_s1 + $0x220] sm:$0xff]  }
 0x123   : > { %20557 = vst [vmem:[#allocation15_spill] sm:$0xff] %v15120_v35  ;;  %v15129_v21 = vadd.f32 %v12445_v62, %v1468_v39  ;;  %v1460_v53 = vadd.f32 %v1459_v54, %v14974_v16  ;;  %v3144_v57 = vrot.slane %v20559_v11, 1  ;;  %v20561_v39 = vshrl.u32 %v20511_v32, 16 }
 0x124   : > { %v12384_v3 = vpop.f32.mrf.mxu1  ;;  %v12448_v7 = vpop.f32.mrf.mxu0  ;;  %12639 = vmatmul.mubr.bf16.gmra.mxu1 %v20511_v32  ;;  %12703 = vmatmul.mubr.bf16.gmra.mxu0 %v15124_v56  ;;  %v13757_v32 = vld [vmem:[%s19941_s1 + $0x218] sm:$0xff]  }
 0x125   : > { %20558 = vst [vmem:[#allocation18_spill] sm:$0xff] %v15129_v21  ;;  %v15142_v1 = vadd.f32 %v1799_v51, %v1460_v53  ;;  %v1481_v16 = vadd.f32 %v12384_v3, %v14978_v9  ;;  %12642 = vmatprep.mubr.bf16.mxu1 %v20512_v49  ;;  %12706 = vmatprep.mubr.bf16.mxu0 %v15127_v58  ;;  %v20562_v21 = vshll.u32 %v20512_v49, 16 }
 0x126   : > { %v1472_v29 = vpop.f32.mrf.mxu1  ;;  %v1812_v62 = vpop.f32.mrf.mxu0  ;;  %v3146_v54 = vor.u32 %v3144_v57, %v20561_v39  ;;  %12751 = vmatpush3.bf16.msra.mxu1 %v13752_v61  ;;  %12815 = vmatpush3.bf16.msra.mxu0 %v13753_v14  ;;  %v15166_v14 = vsel %vm20176_vm1, %v3143_v30, %v3144_v57  ;;  %v13759_v57 = vld [vmem:[%s19941_s1 + $0x210] sm:$0xff]  }
 0x127   : > { %v3147_v35 = vrot.slane %v20562_v21, 1  ;;  %v15153_v51 = vadd.f32 %v12448_v7, %v1481_v16  ;;  %v1473_v9 = vadd.f32 %v1472_v29, %v14986_v44  ;;  %12752 = vmatprep.subr.bf16.mxu1 %v13754_v37  ;;  %12816 = vmatprep.subr.bf16.mxu0 %v13755_v28 }
 0x128   : > { %v12385_v52 = vpop.f32.mrf.mxu1  ;;  %v12449_v53 = vpop.f32.mrf.mxu0 }
 0x129   : > { %v15162_v3 = vadd.f32 %v1812_v62, %v1473_v9  ;;  %v1484_v61 = vadd.f32 %v12385_v52, %v14990_v22  ;;  %v15169_v7 = vsel %vm20176_vm1, %v3146_v54, %v3147_v35  ;;  %v13758_v22 = vld [vmem:[%s19941_s1 + $0x150] sm:$0xff]   ;;  %v20564_v62 = vshrl.u32 %v20512_v49, 16  ;;  %v13760_v49 = vld [vmem:[%s19941_s1 + $0x148] sm:$0xff]  }
 0x12a   : > { %v1475_v44 = vpop.f32.mrf.mxu1  ;;  %v1815_v21 = vpop.f32.mrf.mxu0  ;;  %12753 = vmatpush3.bf16.msra.mxu1 %v13754_v37  ;;  %12817 = vmatpush3.bf16.msra.mxu0 %v13755_v28  ;;  %v20563_v37 = vshll.u32 %v20513_v46, 16  ;;  %v20565_v52 = vshrl.u32 %v20513_v46, 16 }
 0x12b   : > { %v15171_v11 = vadd.f32 %v12449_v53, %v1484_v61  ;;  %v1476_v16 = vadd.f32 %v1475_v44, %v14994_v26  ;;  %12754 = vmatprep.subr.bf16.mxu1 %v13756_v50  ;;  %12818 = vmatprep.subr.bf16.mxu0 %v13757_v32  ;;  %v3149_v39 = vor.u32 %v3147_v35, %v20564_v62  ;;  %v20566_v61 = vshll.u32 %v20514_v42, 16 }
 0x12c   : > { %v12388_v48 = vpop.f32.mrf.mxu1  ;;  %v12452_v30 = vpop.f32.mrf.mxu0  ;;  %12643 = vmatmul.mubr.bf16.gmra.mxu1 %v20513_v46  ;;  %12707 = vmatmul.mubr.bf16.gmra.mxu0 %v15166_v14  ;;  %v3150_v28 = vrot.slane %v20563_v37, 1  ;;  %v13761_v46 = vld [vmem:[%s19941_s1 + $0x208] sm:$0xff]  }
 0x12d   : > { %v15184_v26 = vadd.f32 %v1815_v21, %v1476_v16  ;;  %v1497_v29 = vadd.f32 %v12388_v48, %v14998_v24  ;;  %12646 = vmatprep.mubr.bf16.mxu1 %v20514_v42  ;;  %12710 = vmatprep.mubr.bf16.mxu0 %v15169_v7  ;;  %v3153_v44 = vrot.slane %v20566_v61, 1 }
 0x12e   : > { %v1488_v54 = vpop.f32.mrf.mxu1  ;;  %v1828_v9 = vpop.f32.mrf.mxu0  ;;  %v3152_v53 = vor.u32 %v3150_v28, %v20565_v52  ;;  %12755 = vmatpush3.bf16.msra.mxu1 %v13756_v50  ;;  %12819 = vmatpush3.bf16.msra.mxu0 %v13757_v32  ;;  %v15208_v32 = vsel %vm20176_vm1, %v3149_v39, %v3150_v28  ;;  %v13763_v28 = vld [vmem:[%s19941_s1 + $0x200] sm:$0xff]   ;;  %v20568_v52 = vshrl.u32 %v20514_v42, 16 }
 0x12f   : > { %v15195_v21 = vadd.f32 %v12452_v30, %v1497_v29  ;;  %v1489_v24 = vadd.f32 %v1488_v54, %v15006_v25  ;;  %12756 = vmatprep.subr.bf16.mxu1 %v13758_v22  ;;  %12820 = vmatprep.subr.bf16.mxu0 %v13759_v57 }
 0x130   : > { %v12389_v35 = vpop.f32.mrf.mxu1  ;;  %v12453_v16 = vpop.f32.mrf.mxu0  ;;  %v15211_v37 = vsel %vm20176_vm1, %v3152_v53, %v3153_v44  ;;  %v3155_v53 = vor.u32 %v3153_v44, %v20568_v52 }
 0x131   : > { %v15204_v48 = vadd.f32 %v1828_v9, %v1489_v24  ;;  %v1500_v50 = vadd.f32 %v12389_v35, %v15010_v33  ;;  %v13762_v33 = vld [vmem:[%s19941_s1 + $0x140] sm:$0xff]   ;;  %v20569_v35 = vshrl.u32 %v20515_v60, 16 }
 0x132   : > { %v1491_v25 = vpop.f32.mrf.mxu1  ;;  %v1831_v30 = vpop.f32.mrf.mxu0  ;;  %12757 = vmatpush3.bf16.msra.mxu1 %v13758_v22  ;;  %12821 = vmatpush3.bf16.msra.mxu0 %v13759_v57  ;;  %v20567_v22 = vshll.u32 %v20515_v60, 16 }
 0x133   : > { %v15213_v29 = vadd.f32 %v12453_v16, %v1500_v50  ;;  %v1492_v62 = vadd.f32 %v1491_v25, %v15014_v41  ;;  %12758 = vmatprep.subr.bf16.mxu1 %v13760_v49  ;;  %12822 = vmatprep.subr.bf16.mxu0 %v13761_v46  ;;  %v20570_v50 = vshll.u32 %v20516_v47, 16 }
 0x134   : > { %v12392_v39 = vpop.f32.mrf.mxu1  ;;  %v12456_v54 = vpop.f32.mrf.mxu0  ;;  %12647 = vmatmul.mubr.bf16.gmra.mxu1 %v20515_v60  ;;  %12711 = vmatmul.mubr.bf16.gmra.mxu0 %v15208_v32  ;;  %v3156_v57 = vrot.slane %v20567_v22, 1 }
 0x135   : > { %v15226_v41 = vadd.f32 %v1831_v30, %v1492_v62  ;;  %v1513_v9 = vadd.f32 %v12392_v39, %v15018_v6  ;;  %12650 = vmatprep.mubr.bf16.mxu1 %v20516_v47  ;;  %12714 = vmatprep.mubr.bf16.mxu0 %v15211_v37  ;;  %v3159_v25 = vrot.slane %v20570_v50, 1  ;;  %v20574_v50 = vshll.u32 %v20518_v23, 16 }
 0x136   : > { %v1504_v61 = vpop.f32.mrf.mxu1  ;;  %v1844_v24 = vpop.f32.mrf.mxu0  ;;  %v3158_v16 = vor.u32 %v3156_v57, %v20569_v35  ;;  %12759 = vmatpush3.bf16.msra.mxu1 %v13760_v49  ;;  %12823 = vmatpush3.bf16.msra.mxu0 %v13761_v46  ;;  %v15244_v60 = vsel %vm20176_vm1, %v3155_v53, %v3156_v57  ;;  %v20573_v35 = vshrl.u32 %v20517_v43, 16 }
 0x137   : > { %v15237_v30 = vadd.f32 %v12456_v54, %v1513_v9  ;;  %v1505_v6 = vadd.f32 %v1504_v61, %v15027_v10  ;;  %12760 = vmatprep.subr.bf16.mxu1 %v13762_v33  ;;  %12824 = vmatprep.subr.bf16.mxu0 %v13763_v28 }
 0x138   : > { %v12393_v62 = vpop.f32.mrf.mxu1  ;;  %v12457_v39 = vpop.f32.mrf.mxu0  ;;  %v15247_v49 = vsel %vm20176_vm1, %v3158_v16, %v3159_v25 }
 0x139   : > { %v15240_v42 = vadd.f32 %v1844_v24, %v1505_v6  ;;  %v1516_v44 = vadd.f32 %v12393_v62, %v15031_v55  ;;  %v20571_v55 = vshll.u32 %v20517_v43, 16  ;;  %v3165_v6 = vrot.slane %v20574_v50, 1 }
 0x13a   : > { %v1507_v22 = vpop.f32.mrf.mxu1  ;;  %v1847_v52 = vpop.f32.mrf.mxu0  ;;  %12761 = vmatpush3.bf16.msra.mxu1 %v13762_v33  ;;  %12825 = vmatpush3.bf16.msra.mxu0 %v13763_v28  ;;  %v20572_v33 = vshrl.u32 %v20516_v47, 16  ;;  %v20578_v50 = vshll.u32 %v20520_v4, 16 }
 0x13b   : > { %v15249_v46 = vadd.f32 %v12457_v39, %v1516_v44  ;;  %v1508_v10 = vadd.f32 %v1507_v22, %v15035_v20  ;;  %v3162_v57 = vrot.slane %v20571_v55, 1 }
 0x13c   : > { %v12396_v54 = vpop.f32.mrf.mxu1  ;;  %v12460_v9 = vpop.f32.mrf.mxu0  ;;  %12651 = vmatmul.mubr.bf16.gmra.mxu1 %v20517_v43  ;;  %12715 = vmatmul.mubr.bf16.gmra.mxu0 %v15244_v60  ;;  %v3161_v20 = vor.u32 %v3159_v25, %v20572_v33 }
 0x13d   : > { %v15256_v53 = vadd.f32 %v1847_v52, %v1508_v10  ;;  %v1529_v61 = vadd.f32 %v12396_v54, %v15040_v8  ;;  %12654 = vmatprep.mubr.bf16.mxu1 %v20518_v23  ;;  %12718 = vmatprep.mubr.bf16.mxu0 %v15247_v49  ;;  %v3164_v16 = vor.u32 %v3162_v57, %v20573_v35  ;;  %v20577_v35 = vshrl.u32 %v20519_v18, 16 }
 0x13e   : > { %v1520_v28 = vpop.f32.mrf.mxu1  ;;  %v1860_v24 = vpop.f32.mrf.mxu0  ;;  %v15274_v47 = vsel %vm20176_vm1, %v3161_v20, %v3162_v57 }
 0x13f   : > { %v15267_v62 = vadd.f32 %v12460_v9, %v1529_v61  ;;  %v1521_v39 = vadd.f32 %v1520_v28, %v15048_v34  ;;  %v15277_v43 = vsel %vm20176_vm1, %v3164_v16, %v3165_v6 }
 0x140   : > { %v12397_v8 = vpop.f32.mrf.mxu1  ;;  %v12461_v44 = vpop.f32.mrf.mxu0 }
 0x141   : > { %v15270_v22 = vadd.f32 %v1860_v24, %v1521_v39  ;;  %v1532_v52 = vadd.f32 %v12397_v8, %v15054_v40  ;;  %v20575_v40 = vshll.u32 %v20519_v18, 16  ;;  %v3171_v39 = vrot.slane %v20578_v50, 1 }
 0x142   : > { %v1523_v25 = vpop.f32.mrf.mxu1  ;;  %v1863_v10 = vpop.f32.mrf.mxu0 }
 0x143   : > { %v15279_v54 = vadd.f32 %v12461_v44, %v1532_v52  ;;  %v1524_v9 = vadd.f32 %v1523_v25, %v15058_v45  ;;  %v3168_v57 = vrot.slane %v20575_v40, 1  ;;  %v20576_v45 = vshrl.u32 %v20518_v23, 16  ;;  %v13910_v25 = vld [vmem:[%s14007_s24 + $0xd4] sm:$0xf] }
 0x144   : > { %v12400_v55 = vpop.f32.mrf.mxu1  ;;  %v12464_v34 = vpop.f32.mrf.mxu0  ;;  %12655 = vmatmul.mubr.bf16.gmra.mxu1 %v20519_v18  ;;  %12719 = vmatmul.mubr.bf16.gmra.mxu0 %v15274_v47 }
 0x145   : > { %v15286_v61 = vadd.f32 %v1863_v10, %v1524_v9  ;;  %v1545_v33 = vadd.f32 %v12400_v55, %v15063_v38  ;;  %12658 = vmatprep.mubr.bf16.mxu1 %v20520_v4  ;;  %12722 = vmatprep.mubr.bf16.mxu0 %v15277_v43  ;;  %v3167_v20 = vor.u32 %v3165_v6, %v20576_v45  ;;  %v15302_v10 = vld [vmem:[%s14007_s24 + $0xd8] sm:$0xf] }
 0x146   : > { %v1536_v28 = vpop.f32.mrf.mxu1  ;;  %v1876_v24 = vpop.f32.mrf.mxu0  ;;  %v3170_v16 = vor.u32 %v3168_v57, %v20577_v35  ;;  %20579 = vst [vmem:[#allocation54_spill] sm:$0xff] %v15302_v10  ;;  %v15305_v23 = vcombine.low %v13910_v25, %v15302_v10  ;;  %v20582_v25 = vshrl.u32 %v20521_v17, 16 }
 0x147   : > { %v15297_v8 = vadd.f32 %v12464_v34, %v1545_v33  ;;  %v1537_v38 = vadd.f32 %v1536_v28, %v15074_v31  ;;  %v15311_v9 = vsel %vm20176_vm1, %v3167_v20, %v3168_v57  ;;  %v13912_v28 = vld [vmem:[%s14007_s24 + $0xdc] sm:$0xf]  ;;  %v20580_v57 = vshll.u32 %v20521_v17, 16 }
 0x148   : > { %v12401_v44 = vpop.f32.mrf.mxu1  ;;  %v12465_v52 = vpop.f32.mrf.mxu0  ;;  %v15314_v40 = vsel %vm20176_vm1, %v3170_v16, %v3171_v39  ;;  %v4011_v31 = vshll.u32 %v15305_v23, 16 }
 0x149   : > { %v15307_v6 = vadd.f32 %v1876_v24, %v1537_v38  ;;  %v1548_v18 = vadd.f32 %v12401_v44, %v15082_v13  ;;  %v15322_v24 = vcombine.low %v13912_v28, %v14864_v19  ;;  %v3174_v20 = vrot.slane %v20580_v57, 1 }
 0x14a   : > { %v1539_v55 = vpop.f32.mrf.mxu1  ;;  %v1879_v34 = vpop.f32.mrf.mxu0 }
 0x14b   : > { %v15317_v33 = vadd.f32 %v12465_v52, %v1548_v18  ;;  %v1540_v45 = vadd.f32 %v1539_v55, %v15087_v5  ;;  %v20581_v5 = vshrl.u32 %v20520_v4, 16  ;;  %v4019_v38 = vshll.u32 %v15322_v24, 16 }
 0x14c   : > { %v12404_v35 = vpop.f32.mrf.mxu1  ;;  %v12468_v13 = vpop.f32.mrf.mxu0  ;;  %12659 = vmatmul.mubr.bf16.gmra.mxu1 %v20521_v17  ;;  %12723 = vmatmul.mubr.bf16.gmra.mxu0 %v15311_v9  ;;  %v3176_v18 = vor.u32 %v3174_v20, %v20582_v25  ;;  %v20583_v55 = vshll.u32 %v20526_v15, 16 }
 0x14d   : > { %v15328_v16 = vadd.f32 %v1879_v34, %v1540_v45  ;;  %v1561_v50 = vadd.f32 %v12404_v35, %v14960_v63  ;;  %12662 = vmatprep.mubr.bf16.mxu1 %v20526_v15  ;;  %12726 = vmatprep.mubr.bf16.mxu0 %v15314_v40  ;;  %v3173_v19 = vor.u32 %v3171_v39, %v20581_v5  ;;  %v15340_v45 = vrot.slane %v4011_v31, 1 }
 0x14e   : > { %v1552_v44 = vpop.f32.mrf.mxu1  ;;  %v1892_v52 = vpop.f32.mrf.mxu0  ;;  %v3177_v34 = vrot.slane %v20583_v55, 1  ;;  %v4015_v63 = vshrl.u32 %v15305_v23, 16  ;;  %v15346_v4 = vrot.slane %v4019_v38, 1 }
 0x14f   : > { %20584 = vst [vmem:[#allocation55_spill] sm:$0xff] %v15340_v45  ;;  %v15343_v28 = vadd.f32 %v12468_v13, %v1561_v50  ;;  %v1553_v35 = vadd.f32 %v1552_v44, %v14968_v2  ;;  %v15353_v25 = vsel %vm20176_vm1, %v3173_v19, %v3174_v20 }
 0x150   : > { %20585 = vst [vmem:[#allocation56_spill] sm:$0xff] %v15346_v4  ;;  %v12405_v39 = vpop.f32.mrf.mxu1  ;;  %v12469_v57 = vpop.f32.mrf.mxu0  ;;  %v4017_v5 = vor.u32 %v4015_v63, %v15340_v45  ;;  %v15356_v13 = vsel %vm20176_vm1, %v3176_v18, %v3177_v34  ;;  %v20591_v63 = vld [vmem:[#allocation20_spill] sm:$0xff]  ;;  %v20598_v45 = vld [vmem:[#allocation34_spill] sm:$0xff] }
 0x151   : > { %v15349_v10 = vadd.f32 %v1892_v52, %v1553_v35  ;;  %v1564_v17 = vadd.f32 %v12405_v39, %v14972_v12  ;;  %v20589_v12 = vshll.u32 %v20527_v36, 16  ;;  %v20592_v35 = vshrl.u32 %v20526_v15, 16 }
 0x152   : > { %v1555_v31 = vpop.f32.mrf.mxu1  ;;  %v1895_v55 = vpop.f32.mrf.mxu0  ;;  %v15360_v2 = vsel %vm20176_vm1, %v4017_v5, %v15346_v4  ;;  %v20593_v5 = vshrl.u32 %v20527_v36, 16 }
 0x153   : > { %20586 = vst [vmem:[#allocation57_spill] sm:$0xff] %v15349_v10  ;;  %20587 = vst [vmem:[#allocation58_spill] sm:$0xff] %v15360_v2  ;;  %v15362_v50 = vadd.f32 %v12469_v57, %v1564_v17  ;;  %v1556_v38 = vadd.f32 %v1555_v31, %v14976_v59  ;;  %v3180_v20 = vrot.slane %v20589_v12, 1  ;;  %v3179_v59 = vor.u32 %v3177_v34, %v20592_v35 }
 0x154   : > { %v12408_v44 = vpop.f32.mrf.mxu1  ;;  %v12472_v52 = vpop.f32.mrf.mxu0  ;;  %12663 = vmatmul.mubr.bf16.gmra.mxu1 %v20527_v36  ;;  %12727 = vmatmul.mubr.bf16.gmra.mxu0 %v15353_v25  ;;  %v20594_v31 = vshll.u32 %v20591_v63, 16 }
 0x155   : > { %20588 = vst [vmem:[#allocation59_spill] sm:$0xff] %v15362_v50  ;;  %v15369_v19 = vadd.f32 %v1895_v55, %v1556_v38  ;;  %v1577_v18 = vadd.f32 %v12408_v44, %v14980_v0  ;;  %12666 = vmatprep.mubr.bf16.mxu1 %v20591_v63  ;;  %12730 = vmatprep.mubr.bf16.mxu0 %v15356_v13  ;;  %v20596_v55 = vld [vmem:[#allocation35_spill] sm:$0xff] }
 0x156   : > { %v1568_v39 = vpop.f32.mrf.mxu1  ;;  %v1908_v57 = vpop.f32.mrf.mxu0  ;;  %v3182_v17 = vor.u32 %v3180_v20, %v20593_v5  ;;  %v3183_v2 = vrot.slane %v20594_v31, 1  ;;  %v15387_v15 = vsel %vm20176_vm1, %v3179_v59, %v3180_v20  ;;  %v20605_v59 = vld [vmem:[#allocation3_spill] sm:$0xff] }
 0x157   : > { %20590 = vst [vmem:[#allocation60_spill] sm:$0xff] %v15369_v19  ;;  %v15380_v12 = vadd.f32 %v12472_v52, %v1577_v18  ;;  %v1569_v38 = vadd.f32 %v1568_v39, %v20596_v55  ;;  %v20601_v52 = vld [vmem:[#allocation31_spill] sm:$0xff]  ;;  %v20602_v55 = vld [vmem:[#allocation22_spill] sm:$0xff] }
 0x158   : > { %v12409_v0 = vpop.f32.mrf.mxu1  ;;  %v12473_v44 = vpop.f32.mrf.mxu0  ;;  %v15390_v36 = vsel %vm20176_vm1, %v3182_v17, %v3183_v2 }
 0x159   : > { %20595 = vst [vmem:[#allocation20_spill] sm:$0xff] %v15380_v12  ;;  %v15383_v4 = vadd.f32 %v1908_v57, %v1569_v38  ;;  %v1580_v19 = vadd.f32 %v12409_v0, %v20598_v45  ;;  %20599 = vst [vmem:[#allocation34_spill] sm:$0xff] %v15390_v36  ;;  %v20603_v45 = vshll.u32 %v20602_v55, 16  ;;  %v20606_v0 = vld [vmem:[#allocation25_spill] sm:$0xff] }
 0x15a   : > { %v1571_v34 = vpop.f32.mrf.mxu1  ;;  %v1911_v35 = vpop.f32.mrf.mxu0 }
 0x15b   : > { %20597 = vst [vmem:[#allocation35_spill] sm:$0xff] %v15383_v4  ;;  %v15392_v5 = vadd.f32 %v12473_v44, %v1580_v19  ;;  %v1572_v18 = vadd.f32 %v1571_v34, %v20601_v52  ;;  %v3186_v57 = vrot.slane %v20603_v45, 1  ;;  %v20607_v19 = vshrl.u32 %v20591_v63, 16 }
 0x15c   : > { %v12412_v31 = vpop.f32.mrf.mxu1  ;;  %v12476_v39 = vpop.f32.mrf.mxu0  ;;  %12667 = vmatmul.mubr.bf16.gmra.mxu1 %v20602_v55  ;;  %12731 = vmatmul.mubr.bf16.gmra.mxu0 %v15387_v15  ;;  %v20608_v52 = vshrl.u32 %v20602_v55, 16  ;;  %v20609_v4 = vshll.u32 %v20606_v0, 16 }
 0x15d   : > { %20600 = vst [vmem:[#allocation61_spill] sm:$0xff] %v15392_v5  ;;  %v15399_v20 = vadd.f32 %v1911_v35, %v1572_v18  ;;  %v1593_v38 = vadd.f32 %v12412_v31, %v20605_v59  ;;  %12670 = vmatprep.mubr.bf16.mxu1 %v20606_v0  ;;  %12734 = vmatprep.mubr.bf16.mxu0 %v15390_v36  ;;  %v20611_v35 = vld [vmem:[#allocation4_spill] sm:$0xff]  ;;  %v20613_v36 = vld [vmem:[#allocation5_spill] sm:$0xff] }
 0x15e   : > { %v3185_v17 = vor.u32 %v3183_v2, %v20607_v19  ;;  %v1584_v44 = vpop.f32.mrf.mxu1  ;;  %v1924_v34 = vpop.f32.mrf.mxu0  ;;  %v3188_v5 = vor.u32 %v3186_v57, %v20608_v52  ;;  %v3189_v12 = vrot.slane %v20609_v4, 1 }
 0x15f   : > { %20604 = vst [vmem:[#allocation31_spill] sm:$0xff] %v15399_v20  ;;  %v15410_v45 = vadd.f32 %v12476_v39, %v1593_v38  ;;  %v1585_v18 = vadd.f32 %v1584_v44, %v20611_v35  ;;  %v20617_v39 = vld [vmem:[#allocation11_spill] sm:$0xff]  ;;  %v20618_v35 = vld [vmem:[#allocation28_spill] sm:$0xff] }
 0x160   : > { %v12413_v31 = vpop.f32.mrf.mxu1  ;;  %v12477_v59 = vpop.f32.mrf.mxu0  ;;  %v15417_v2 = vsel %vm20176_vm1, %v3185_v17, %v3186_v57  ;;  %v15420_v19 = vsel %vm20176_vm1, %v3188_v5, %v3189_v12  ;;  %v20620_v17 = vshll.u32 %v20618_v35, 16  ;;  %v20622_v5 = vld [vmem:[#allocation14_spill] sm:$0xff] }
 0x161   : > { %20610 = vst [vmem:[#allocation22_spill] sm:$0xff] %v15410_v45  ;;  %v15413_v20 = vadd.f32 %v1924_v34, %v1585_v18  ;;  %v1596_v50 = vadd.f32 %v12413_v31, %v20613_v36  ;;  %20614 = vst [vmem:[#allocation25_spill] sm:$0xff] %v15417_v2  ;;  %v20619_v36 = vshrl.u32 %v20606_v0, 16 }
 0x162   : > { %v1587_v63 = vpop.f32.mrf.mxu1  ;;  %v1927_v55 = vpop.f32.mrf.mxu0  ;;  %20615 = vst [vmem:[#allocation4_spill] sm:$0xff] %v15420_v19  ;;  %v3192_v34 = vrot.slane %v20620_v17, 1 }
 0x163   : > { %20612 = vst [vmem:[#allocation3_spill] sm:$0xff] %v15413_v20  ;;  %v15422_v4 = vadd.f32 %v12477_v59, %v1596_v50  ;;  %v1588_v38 = vadd.f32 %v1587_v63, %v20617_v39  ;;  %v3191_v57 = vor.u32 %v3189_v12, %v20619_v36  ;;  %v20623_v50 = vld [vmem:[#allocation32_spill] sm:$0xff]  ;;  %v13913_v59 = vld [vmem:[%s14007_s24 + $0xcc] sm:$0xf]  ;;  %v20624_v20 = vshrl.u32 %v20618_v35, 16 }
 0x164   : > { %v12416_v44 = vpop.f32.mrf.mxu1  ;;  %v12480_v52 = vpop.f32.mrf.mxu0  ;;  %12671 = vmatmul.mubr.bf16.gmra.mxu1 %v20618_v35  ;;  %12735 = vmatmul.mubr.bf16.gmra.mxu0 %v15417_v2  ;;  %v10876_v63 = vcombine.low %v13913_v59, %v13913_v59  ;;  %v20625_v12 = vshll.u32 %v20623_v50, 16 }
 0x165   : > { %20616 = vst [vmem:[#allocation5_spill] sm:$0xff] %v15422_v4  ;;  %v15431_v18 = vadd.f32 %v1927_v55, %v1588_v38  ;;  %v1609_v31 = vadd.f32 %v12416_v44, %v20622_v5  ;;  %12674 = vmatprep.mubr.bf16.mxu1 %v20623_v50  ;;  %12738 = vmatprep.mubr.bf16.mxu0 %v15420_v19  ;;  %v20627_v55 = vld [vmem:[#allocation17_spill] sm:$0xff] }
 0x166   : > { %v1600_v39 = vpop.f32.mrf.mxu1  ;;  %v1940_v4 = vpop.f32.mrf.mxu0  ;;  %v3194_v45 = vor.u32 %v3192_v34, %v20624_v20  ;;  %v3195_v0 = vrot.slane %v20625_v12, 1  ;;  %v15448_v59 = vsel %vm20176_vm1, %v3191_v57, %v3192_v34  ;;  %v3199_v2 = vshll.u32 %v10876_v63, 16  ;;  %v20631_v12 = vld [vmem:[#allocation40_spill] sm:$0xff]  ;;  %v20637_v34 = vld [vmem:[#allocation23_spill] sm:$0xff] }
 0x167   : > { %20621 = vst [vmem:[#allocation11_spill] sm:$0xff] %v15431_v18  ;;  %v15441_v36 = vadd.f32 %v12480_v52, %v1609_v31  ;;  %v1601_v38 = vadd.f32 %v1600_v39, %v20627_v55  ;;  %v20629_v18 = vld [vmem:[#allocation19_spill] sm:$0xff]  ;;  %v20632_v52 = vshll.u32 %v20631_v12, 16  ;;  %v20634_v39 = vld [vmem:[#allocation21_spill] sm:$0xff] }
 0x168   : > { %v12417_v17 = vpop.f32.mrf.mxu1  ;;  %v12481_v44 = vpop.f32.mrf.mxu0  ;;  %v15451_v20 = vsel %vm20176_vm1, %v3194_v45, %v3195_v0  ;;  %v20638_v45 = vshrl.u32 %v20623_v50, 16  ;;  %v3201_v63 = vrot.slane %v3199_v2, 1  ;;  %v20645_v50 = vld [vmem:[#allocation29_spill] sm:$0xff] }
 0x169   : > { %20626 = vst [vmem:[#allocation28_spill] sm:$0xff] %v15441_v36  ;;  %v15444_v5 = vadd.f32 %v1940_v4, %v1601_v38  ;;  %v1612_v19 = vadd.f32 %v12417_v17, %v20629_v18  ;;  %20630 = vst [vmem:[#allocation32_spill] sm:$0xff] %v15451_v20  ;;  %v3566_v31 = vrot.slane %v20632_v52, 1 }
 0x16a   : > { %v1603_v10 = vpop.f32.mrf.mxu1  ;;  %v1943_v35 = vpop.f32.mrf.mxu0 }
 0x16b   : > { %20628 = vst [vmem:[#allocation14_spill] sm:$0xff] %v15444_v5  ;;  %v15455_v36 = vadd.f32 %v12481_v44, %v1612_v19  ;;  %v1604_v55 = vadd.f32 %v1603_v10, %v20634_v39  ;;  %v20635_v5 = vld [vmem:[#allocation36_spill] sm:$0xff]  ;;  %v15467_v19 = vor.u32 %v3195_v0, %v20638_v45  ;;  %v20639_v44 = vshrl.u32 %v20631_v12, 16  ;;  %v20640_v39 = vld [vmem:[#allocation38_spill] sm:$0xff] }
 0x16c   : > { %v12420_v4 = vpop.f32.mrf.mxu1  ;;  %v12484_v38 = vpop.f32.mrf.mxu0  ;;  %12675 = vmatmul.mubr.bf16.gmra.mxu1 %v20635_v5  ;;  %12739 = vmatmul.mubr.bf16.gmra.mxu0 %v15448_v59 }
 0x16d   : > { %20633 = vst [vmem:[#allocation17_spill] sm:$0xff] %v15455_v36  ;;  %v15460_v57 = vadd.f32 %v1943_v35, %v1604_v55  ;;  %v1625_v18 = vadd.f32 %v12420_v4, %v20637_v34  ;;  %12678 = vmatprep.mubr.bf16.mxu1 %v15305_v23  ;;  %12742 = vmatprep.mubr.bf16.mxu0 %v15451_v20  ;;  %v20641_v36 = vshll.u32 %v20640_v39, 16  ;;  %v20643_v4 = vld [vmem:[#allocation26_spill] sm:$0xff] }
 0x16e   : > { %v1616_v10 = vpop.f32.mrf.mxu1  ;;  %v1956_v17 = vpop.f32.mrf.mxu0  ;;  %v3567_v52 = vor.u32 %v3566_v31, %v20639_v44  ;;  %v3202_v2 = vsel %vm20176_vm1, %v15467_v19, %v3201_v63 }
 0x16f   : > { %20636 = vst [vmem:[#allocation19_spill] sm:$0xff] %v15460_v57  ;;  %v3568_v35 = vrot.slane %v20641_v36, 1  ;;  %v15473_v55 = vadd.f32 %v12484_v38, %v1625_v18  ;;  %v1617_v34 = vadd.f32 %v1616_v10, %v20643_v4  ;;  %v20647_v36 = vld [vmem:[#allocation33_spill] sm:$0xff]  ;;  %v20648_v18 = vld [vmem:[#allocation39_spill] sm:$0xff] }
 0x170   : > { %v12421_v23 = vpop.f32.mrf.mxu1  ;;  %v12485_v57 = vpop.f32.mrf.mxu0  ;;  %v20649_v12 = vshll.u32 %v20648_v18, 16 }
 0x171   : > { %20642 = vst [vmem:[#allocation21_spill] sm:$0xff] %v15473_v55  ;;  %v15476_v20 = vadd.f32 %v1956_v17, %v1617_v34  ;;  %v1628_v0 = vadd.f32 %v12421_v23, %v20645_v50  ;;  %v3569_v31 = vsel %vm20176_vm1, %v3567_v52, %v3568_v35  ;;  %v20651_v34 = vld [vmem:[#allocation6_spill] sm:$0xff]  ;;  %v20652_v23 = vshrl.u32 %v20640_v39, 16 }
 0x172   : > { %v1619_v45 = vpop.f32.mrf.mxu1  ;;  %v1959_v5 = vpop.f32.mrf.mxu0  ;;  %v3571_v10 = vrot.slane %v20649_v12, 1 }
 0x173   : > { %20644 = vst [vmem:[#allocation23_spill] sm:$0xff] %v15476_v20  ;;  %v15482_v44 = vadd.f32 %v12485_v57, %v1628_v0  ;;  %v1620_v38 = vadd.f32 %v1619_v45, %v20647_v36  ;;  %v3570_v50 = vor.u32 %v3568_v35, %v20652_v23  ;;  %v20653_v0 = vshrl.u32 %v20648_v18, 16  ;;  %v20654_v45 = vld [vmem:[#allocation41_spill] sm:$0xff]  ;;  %v20657_v35 = vld [vmem:[#allocation8_spill] sm:$0xff] }
 0x174   : > { %v12424_v4 = vpop.f32.mrf.mxu1  ;;  %v12488_v55 = vpop.f32.mrf.mxu0  ;;  %12679 = vmatmul.mubr.bf16.gmra.mxu1 %v15322_v24  ;;  %12743 = vmatmul.mubr.bf16.gmra.mxu0 %v3202_v2  ;;  %v20655_v36 = vshll.u32 %v20654_v45, 16 }
 0x175   : > { %20646 = vst [vmem:[#allocation26_spill] sm:$0xff] %v15482_v44  ;;  %v15488_v17 = vadd.f32 %v1959_v5, %v1620_v38  ;;  %v1641_v63 = vadd.f32 %v12424_v4, %v20651_v34  ;;  %12762 = vmatprep.mubr.bf16.mxu1 %v3569_v31  ;;  %12826 = vmatprep.mubr.bf16.mxu0 %v15124_v56  ;;  %v20656_v5 = vld [vmem:[#allocation7_spill] sm:$0xff] }
 0x176   : > { %v1632_v57 = vpop.f32.mrf.mxu1  ;;  %v1972_v52 = vpop.f32.mrf.mxu0  ;;  %v3573_v12 = vor.u32 %v3571_v10, %v20653_v0  ;;  %v3574_v44 = vrot.slane %v20655_v36, 1  ;;  %v3572_v56 = vsel %vm20176_vm1, %v3570_v50, %v3571_v10  ;;  %v20661_v50 = vshrl.u32 %v20654_v45, 16 }
 0x177   : > { %20650 = vst [vmem:[#allocation29_spill] sm:$0xff] %v15488_v17  ;;  %v15498_v20 = vadd.f32 %v12488_v55, %v1641_v63  ;;  %v1633_v2 = vadd.f32 %v1632_v57, %v20656_v5  ;;  %v20658_v17 = vld [vmem:[#allocation13_spill] sm:$0xff]  ;;  %v20659_v57 = vld [vmem:[#allocation42_spill] sm:$0xff] }
 0x178   : > { %v12425_v38 = vpop.f32.mrf.mxu1  ;;  %v12489_v4 = vpop.f32.mrf.mxu0  ;;  %v3575_v18 = vsel %vm20176_vm1, %v3573_v12, %v3574_v44  ;;  %v3576_v12 = vor.u32 %v3574_v44, %v20661_v50 }
 0x179   : > { %v15501_v34 = vadd.f32 %v1972_v52, %v1633_v2  ;;  %v1644_v31 = vadd.f32 %v12425_v38, %v20657_v35  ;;  %v20660_v52 = vshll.u32 %v20659_v57, 16 }
 0x17a   : > { %v1635_v23 = vpop.f32.mrf.mxu1  ;;  %v1975_v39 = vpop.f32.mrf.mxu0 }
 0x17b   : > { %v15506_v0 = vadd.f32 %v12489_v4, %v1644_v31  ;;  %v1636_v36 = vadd.f32 %v1635_v23, %v20658_v17  ;;  %v3577_v5 = vrot.slane %v20660_v52, 1  ;;  %v20662_v4 = vshrl.u32 %v20659_v57, 16  ;;  %v20663_v31 = vld [vmem:[#allocation43_spill] sm:$0xff] }
 0x17c   : > { %v12508_v55 = vpop.f32.mrf.mxu1  ;;  %v12572_v63 = vpop.f32.mrf.mxu0  ;;  %12763 = vmatmul.mubr.bf16.vlgmr.msra.gmra.mxu1 %v3572_v56  ;;  %12827 = vmatmul.mubr.bf16.vlgmr.msra.gmra.mxu0 %v15127_v58  ;;  %v20664_v58 = vshll.u32 %v20663_v31, 16 }
 0x17d   : > { %v15512_v2 = vadd.f32 %v1975_v39, %v1636_v36  ;;  %v2352_v10 = vadd.f32 %v12508_v55, %v15117_v27  ;;  %12766 = vmatprep.mubr.bf16.mxu1 %v3575_v18  ;;  %12830 = vmatprep.mubr.bf16.mxu0 %v15166_v14  ;;  %v3579_v35 = vor.u32 %v3577_v5, %v20662_v4  ;;  %v20665_v39 = vld [vmem:[#allocation15_spill] sm:$0xff]  ;;  %v20666_v14 = vld [vmem:[#allocation18_spill] sm:$0xff] }
 0x17e   : > { %v2159_v38 = vpop.f32.mrf.mxu1  ;;  %v2521_v17 = vpop.f32.mrf.mxu0  ;;  %v3580_v56 = vrot.slane %v20664_v58, 1  ;;  %v3578_v44 = vsel %vm20176_vm1, %v3576_v12, %v3577_v5  ;;  %v20669_v12 = vshrl.u32 %v20663_v31, 16 }
 0x17f   : > { %v15522_v23 = vadd.f32 %v12572_v63, %v2352_v10  ;;  %v2350_v36 = vadd.f32 %v2159_v38, %v20665_v39  ;;  %v20667_v38 = vld [vmem:[#allocation44_spill] sm:$0xff] }
 0x180   : > { %v12509_v52 = vpop.f32.mrf.mxu1  ;;  %v12573_v27 = vpop.f32.mrf.mxu0  ;;  %v3581_v57 = vsel %vm20176_vm1, %v3579_v35, %v3580_v56  ;;  %v3582_v35 = vor.u32 %v3580_v56, %v20669_v12 }
 0x181   : > { %v15525_v18 = vadd.f32 %v2521_v17, %v2350_v36  ;;  %v2353_v55 = vadd.f32 %v12509_v52, %v20666_v14  ;;  %v20668_v17 = vshll.u32 %v20667_v38, 16 }
 0x182   : > { %v2162_v50 = vpop.f32.mrf.mxu1  ;;  %v2524_v45 = vpop.f32.mrf.mxu0 }
 0x183   : > { %v15530_v4 = vadd.f32 %v12573_v27, %v2353_v55  ;;  %v2351_v58 = vadd.f32 %v2162_v50, %v15142_v1  ;;  %v3583_v39 = vrot.slane %v20668_v17, 1  ;;  %v20670_v27 = vshrl.u32 %v20667_v38, 16  ;;  %v20671_v55 = vld [vmem:[#allocation45_spill] sm:$0xff]  ;;  %v13778_v38 = vld [vmem:[%s19944_s4 + $0x18] sm:$0xff]  }
 0x184   : > { %v12512_v63 = vpop.f32.mrf.mxu1  ;;  %v12576_v10 = vpop.f32.mrf.mxu0  ;;  %12767 = vmatmul.mubr.bf16.gmra.mxu1 %v3578_v44  ;;  %12831 = vmatmul.mubr.bf16.gmra.mxu0 %v15169_v7  ;;  %v20672_v7 = vshll.u32 %v20671_v55, 16 }
 0x185   : > { %v15536_v36 = vadd.f32 %v2524_v45, %v2351_v58  ;;  %v2356_v5 = vadd.f32 %v12512_v63, %v15153_v51  ;;  %12770 = vmatprep.mubr.bf16.mxu1 %v3581_v57  ;;  %12834 = vmatprep.mubr.bf16.mxu0 %v15208_v32  ;;  %v3585_v14 = vor.u32 %v3583_v39, %v20670_v27 }
 0x186   : > { %v2175_v52 = vpop.f32.mrf.mxu1  ;;  %v2537_v1 = vpop.f32.mrf.mxu0  ;;  %v3586_v44 = vrot.slane %v20672_v7, 1  ;;  %v3584_v56 = vsel %vm20176_vm1, %v3582_v35, %v3583_v39 }
 0x187   : > { %v15546_v50 = vadd.f32 %v12576_v10, %v2356_v5  ;;  %v2354_v45 = vadd.f32 %v2175_v52, %v15162_v3  ;;  %v13769_v3 = vld [vmem:[%s19944_s4 + $0xf8] sm:$0xff]  }
 0x188   : > { %v12513_v58 = vpop.f32.mrf.mxu1  ;;  %v12577_v51 = vpop.f32.mrf.mxu0  ;;  %v3587_v12 = vsel %vm20176_vm1, %v3585_v14, %v3586_v44  ;;  %12874 = vmatprep.subr.bf16.mxu1 %v13769_v3 }
 0x189   : > { %v15549_v57 = vadd.f32 %v2537_v1, %v2354_v45  ;;  %v2357_v32 = vadd.f32 %v12513_v58, %v15171_v11  ;;  %v20673_v11 = vld [vmem:[#allocation46_spill] sm:$0xff]  ;;  %v13770_v45 = vld [vmem:[%s19944_s4 + $0x38] sm:$0xff]   ;;  %12875 = vmatpush3.bf16.msra.mxu1 %v13769_v3 }
 0x18a   : > { %v2178_v63 = vpop.f32.mrf.mxu1  ;;  %v2540_v17 = vpop.f32.mrf.mxu0  ;;  %v20674_v52 = vshll.u32 %v20673_v11, 16  ;;  %12938 = vmatprep.subr.bf16.mxu0 %v13770_v45 }
 0x18b   : > { %v15554_v27 = vadd.f32 %v12577_v51, %v2357_v32  ;;  %v2355_v7 = vadd.f32 %v2178_v63, %v15184_v26  ;;  %v20675_v26 = vshrl.u32 %v20671_v55, 16  ;;  %12939 = vmatpush3.bf16.msra.mxu0 %v13770_v45  ;;  %v20735_v55 = vld [vmem:[#allocation22_spill] sm:$0xff] }
 0x18c   : > { %v12516_v10 = vpop.f32.mrf.mxu1  ;;  %v12580_v5 = vpop.f32.mrf.mxu0  ;;  %12771 = vmatmul.mubr.bf16.gmra.mxu1 %v3584_v56  ;;  %12835 = vmatmul.mubr.bf16.gmra.mxu0 %v15211_v37  ;;  %v3589_v39 = vrot.slane %v20674_v52, 1  ;;  %v20676_v37 = vshrl.u32 %v20673_v11, 16  ;;  %v20677_v56 = vld [vmem:[#allocation47_spill] sm:$0xff] }
 0x18d   : > { %v15563_v35 = vadd.f32 %v2540_v17, %v2355_v7  ;;  %v2360_v1 = vadd.f32 %v12516_v10, %v15195_v21  ;;  %12774 = vmatprep.mubr.bf16.mxu1 %v3587_v12  ;;  %12838 = vmatprep.mubr.bf16.mxu0 %v15244_v60  ;;  %v3588_v14 = vor.u32 %v3586_v44, %v20675_v26  ;;  %v20678_v63 = vshll.u32 %v20677_v56, 16 }
 0x18e   : > { %v2191_v58 = vpop.f32.mrf.mxu1  ;;  %v2553_v51 = vpop.f32.mrf.mxu0  ;;  %v3591_v32 = vor.u32 %v3589_v39, %v20676_v37 }
 0x18f   : > { %v3592_v17 = vrot.slane %v20678_v63, 1  ;;  %v15576_v21 = vadd.f32 %v12580_v5, %v2360_v1  ;;  %v2358_v60 = vadd.f32 %v2191_v58, %v15204_v48  ;;  %v3590_v52 = vsel %vm20176_vm1, %v3588_v14, %v3589_v39  ;;  %v20679_v1 = vld [vmem:[#allocation49_spill] sm:$0xff] }
 0x190   : > { %v12517_v44 = vpop.f32.mrf.mxu1  ;;  %v12581_v12 = vpop.f32.mrf.mxu0  ;;  %v20680_v45 = vshll.u32 %v20679_v1, 16  ;;  %v20681_v39 = vshrl.u32 %v20677_v56, 16 }
 0x191   : > { %v15579_v7 = vadd.f32 %v2553_v51, %v2358_v60  ;;  %v2361_v10 = vadd.f32 %v12517_v44, %v15213_v29  ;;  %v3593_v63 = vsel %vm20176_vm1, %v3591_v32, %v3592_v17  ;;  %v20682_v60 = vshrl.u32 %v20679_v1, 16 }
 0x192   : > { %v2194_v26 = vpop.f32.mrf.mxu1  ;;  %v2556_v37 = vpop.f32.mrf.mxu0  ;;  %v3595_v58 = vrot.slane %v20680_v45, 1  ;;  %v3594_v14 = vor.u32 %v3592_v17, %v20681_v39 }
 0x193   : > { %v15584_v11 = vadd.f32 %v12581_v12, %v2361_v10  ;;  %v2359_v5 = vadd.f32 %v2194_v26, %v15226_v41  ;;  %v20683_v12 = vld [vmem:[#allocation51_spill] sm:$0xff] }
 0x194   : > { %v12520_v48 = vpop.f32.mrf.mxu1  ;;  %v12584_v3 = vpop.f32.mrf.mxu0  ;;  %12775 = vmatmul.mubr.bf16.gmra.mxu1 %v3590_v52  ;;  %12839 = vmatmul.mubr.bf16.gmra.mxu0 %v15247_v49  ;;  %v3597_v44 = vor.u32 %v3595_v58, %v20682_v60  ;;  %v20684_v49 = vshll.u32 %v20683_v12, 16 }
 0x195   : > { %v15590_v51 = vadd.f32 %v2556_v37, %v2359_v5  ;;  %v2364_v29 = vadd.f32 %v12520_v48, %v15237_v30  ;;  %12778 = vmatprep.mubr.bf16.mxu1 %v3593_v63  ;;  %12842 = vmatprep.mubr.bf16.mxu0 %v15274_v47  ;;  %v13771_v30 = vld [vmem:[%s19944_s4 + $0xf0] sm:$0xff]   ;;  %v3596_v5 = vsel %vm20176_vm1, %v3594_v14, %v3595_v58 }
 0x196   : > { %v2207_v32 = vpop.f32.mrf.mxu1  ;;  %v2569_v41 = vpop.f32.mrf.mxu0  ;;  %v3598_v10 = vrot.slane %v20684_v49, 1  ;;  %12876 = vmatprep.subr.bf16.mxu1 %v13771_v30  ;;  %v13772_v48 = vld [vmem:[%s19944_s4 + $0x30] sm:$0xff]  }
 0x197   : > { %v15600_v52 = vadd.f32 %v12584_v3, %v2364_v29  ;;  %v2362_v26 = vadd.f32 %v2207_v32, %v15240_v42  ;;  %12877 = vmatpush3.bf16.msra.mxu1 %v13771_v30  ;;  %12940 = vmatprep.subr.bf16.mxu0 %v13772_v48 }
 0x198   : > { %v12521_v47 = vpop.f32.mrf.mxu1  ;;  %v12585_v37 = vpop.f32.mrf.mxu0  ;;  %v3599_v42 = vsel %vm20176_vm1, %v3597_v44, %v3598_v10  ;;  %v20687_v44 = vshrl.u32 %v20683_v12, 16  ;;  %12941 = vmatpush3.bf16.msra.mxu0 %v13772_v48 }
 0x199   : > { %v15606_v63 = vadd.f32 %v2569_v41, %v2362_v26  ;;  %v2365_v17 = vadd.f32 %v12521_v47, %v15249_v46  ;;  %v20685_v46 = vld [vmem:[#allocation9_spill] sm:$0xff] }
 0x19a   : > { %v2210_v3 = vpop.f32.mrf.mxu1  ;;  %v2572_v45 = vpop.f32.mrf.mxu0  ;;  %v20686_v58 = vshll.u32 %v20685_v46, 16  ;;  %v3600_v26 = vor.u32 %v3598_v10, %v20687_v44  ;;  %v20688_v47 = vshrl.u32 %v20685_v46, 16 }
 0x19b   : > { %v15614_v29 = vadd.f32 %v12585_v37, %v2365_v17  ;;  %v2363_v39 = vadd.f32 %v2210_v3, %v15256_v53  ;;  %v20689_v17 = vld [vmem:[#allocation10_spill] sm:$0xff] }
 0x19c   : > { %v12524_v32 = vpop.f32.mrf.mxu1  ;;  %v12588_v41 = vpop.f32.mrf.mxu0  ;;  %12779 = vmatmul.mubr.bf16.gmra.mxu1 %v3596_v5  ;;  %12843 = vmatmul.mubr.bf16.gmra.mxu0 %v15277_v43  ;;  %v3601_v14 = vrot.slane %v20686_v58, 1  ;;  %v20690_v43 = vshll.u32 %v20689_v17, 16 }
 0x19d   : > { %v15620_v60 = vadd.f32 %v2572_v45, %v2363_v39  ;;  %v2368_v49 = vadd.f32 %v12524_v32, %v15267_v62  ;;  %12782 = vmatprep.mubr.bf16.mxu1 %v3599_v42  ;;  %12846 = vmatprep.mubr.bf16.mxu0 %v15311_v9 }
 0x19e   : > { %v2223_v53 = vpop.f32.mrf.mxu1  ;;  %v2585_v30 = vpop.f32.mrf.mxu0  ;;  %v3603_v37 = vor.u32 %v3601_v14, %v20688_v47  ;;  %v3604_v5 = vrot.slane %v20690_v43, 1  ;;  %v3602_v10 = vsel %vm20176_vm1, %v3600_v26, %v3601_v14  ;;  %v13774_v43 = vld [vmem:[%s19944_s4 + $0x28] sm:$0xff]  }
 0x19f   : > { %v15630_v3 = vadd.f32 %v12588_v41, %v2368_v49  ;;  %v2366_v45 = vadd.f32 %v2223_v53, %v15270_v22  ;;  %v13773_v22 = vld [vmem:[%s19944_s4 + $0xe8] sm:$0xff]   ;;  %12942 = vmatprep.subr.bf16.mxu0 %v13774_v43 }
 0x1a0   : > { %v12525_v62 = vpop.f32.mrf.mxu1  ;;  %v12589_v42 = vpop.f32.mrf.mxu0  ;;  %v3605_v44 = vsel %vm20176_vm1, %v3603_v37, %v3604_v5  ;;  %12878 = vmatprep.subr.bf16.mxu1 %v13773_v22  ;;  %12943 = vmatpush3.bf16.msra.mxu0 %v13774_v43 }
 0x1a1   : > { %v15633_v39 = vadd.f32 %v2585_v30, %v2366_v45  ;;  %v2369_v9 = vadd.f32 %v12525_v62, %v15279_v54  ;;  %v20691_v54 = vld [vmem:[#allocation12_spill] sm:$0xff]  ;;  %12879 = vmatpush3.bf16.msra.mxu1 %v13773_v22 }
 0x1a2   : > { %v2226_v32 = vpop.f32.mrf.mxu1  ;;  %v2588_v58 = vpop.f32.mrf.mxu0  ;;  %v20692_v53 = vshll.u32 %v20691_v54, 16 }
 0x1a3   : > { %v15638_v47 = vadd.f32 %v12589_v42, %v2369_v9  ;;  %v2367_v48 = vadd.f32 %v2226_v32, %v15286_v61  ;;  %v20694_v61 = vshrl.u32 %v20689_v17, 16  ;;  %v20696_v9 = vld [vmem:[#allocation16_spill] sm:$0xff] }
 0x1a4   : > { %v12528_v41 = vpop.f32.mrf.mxu1  ;;  %v12592_v49 = vpop.f32.mrf.mxu0  ;;  %12783 = vmatmul.mubr.bf16.gmra.mxu1 %v3602_v10  ;;  %12847 = vmatmul.mubr.bf16.gmra.mxu0 %v15314_v40  ;;  %v3607_v14 = vrot.slane %v20692_v53, 1  ;;  %v20695_v40 = vshrl.u32 %v20691_v54, 16  ;;  %v20697_v10 = vshll.u32 %v20696_v9, 16 }
 0x1a5   : > { %v15647_v26 = vadd.f32 %v2588_v58, %v2367_v48  ;;  %v2372_v30 = vadd.f32 %v12528_v41, %v15297_v8  ;;  %12786 = vmatprep.mubr.bf16.mxu1 %v3605_v44  ;;  %12850 = vmatprep.mubr.bf16.mxu0 %v15353_v25  ;;  %v3606_v37 = vor.u32 %v3604_v5, %v20694_v61 }
 0x1a6   : > { %v2239_v45 = vpop.f32.mrf.mxu1  ;;  %v2601_v62 = vpop.f32.mrf.mxu0  ;;  %v3609_v42 = vor.u32 %v3607_v14, %v20695_v40  ;;  %v3610_v32 = vrot.slane %v20697_v10, 1 }
 0x1a7   : > { %20693 = vst [vmem:[#allocation33_spill] sm:$0xff] %v15647_v26  ;;  %v15660_v8 = vadd.f32 %v12592_v49, %v2372_v30  ;;  %v2370_v25 = vadd.f32 %v2239_v45, %v15307_v6  ;;  %v3608_v41 = vsel %vm20176_vm1, %v3606_v37, %v3607_v14  ;;  %v20698_v30 = vld [vmem:[#allocation48_spill] sm:$0xff]  ;;  %v20701_v14 = vshrl.u32 %v20696_v9, 16 }
 0x1a8   : > { %v12529_v5 = vpop.f32.mrf.mxu1  ;;  %v12593_v58 = vpop.f32.mrf.mxu0  ;;  %v3611_v40 = vsel %vm20176_vm1, %v3609_v42, %v3610_v32  ;;  %v20699_v43 = vshll.u32 %v20698_v30, 16 }
 0x1a9   : > { %v15663_v44 = vadd.f32 %v2601_v62, %v2370_v25  ;;  %v2373_v48 = vadd.f32 %v12529_v5, %v15317_v33  ;;  %v3612_v37 = vor.u32 %v3610_v32, %v20701_v14  ;;  %v20702_v25 = vshrl.u32 %v20698_v30, 16  ;;  %v20708_v32 = vld [vmem:[#allocation59_spill] sm:$0xff]  ;;  %v20713_v30 = vld [vmem:[#allocation52_spill] sm:$0xff] }
 0x1aa   : > { %v2242_v53 = vpop.f32.mrf.mxu1  ;;  %v2604_v61 = vpop.f32.mrf.mxu0  ;;  %v3613_v45 = vrot.slane %v20699_v43, 1  ;;  %v20714_v9 = vshll.u32 %v20713_v30, 16 }
 0x1ab   : > { %v15668_v10 = vadd.f32 %v12593_v58, %v2373_v48  ;;  %v2371_v49 = vadd.f32 %v2242_v53, %v15328_v16  ;;  %v20703_v58 = vld [vmem:[#allocation50_spill] sm:$0xff]  ;;  %v20706_v53 = vld [vmem:[#allocation57_spill] sm:$0xff] }
 0x1ac   : > { %v12532_v6 = vpop.f32.mrf.mxu1  ;;  %v12596_v22 = vpop.f32.mrf.mxu0  ;;  %12787 = vmatmul.mubr.bf16.gmra.mxu1 %v3608_v41  ;;  %12851 = vmatmul.mubr.bf16.gmra.mxu0 %v15356_v13  ;;  %v3615_v5 = vor.u32 %v3613_v45, %v20702_v25  ;;  %v20704_v13 = vshll.u32 %v20703_v58, 16  ;;  %v3614_v43 = vsel %vm20176_vm1, %v3612_v37, %v3613_v45  ;;  %v20711_v45 = vld [vmem:[#allocation34_spill] sm:$0xff]  ;;  %v20712_v37 = vshrl.u32 %v20703_v58, 16 }
 0x1ad   : > { %v15674_v62 = vadd.f32 %v2604_v61, %v2371_v49  ;;  %v2376_v33 = vadd.f32 %v12532_v6, %v15343_v28  ;;  %12790 = vmatprep.mubr.bf16.mxu1 %v3611_v40  ;;  %12854 = vmatprep.mubr.bf16.mxu0 %v15387_v15  ;;  %v13775_v28 = vld [vmem:[%s19944_s4 + $0xe0] sm:$0xff]   ;;  %v3619_v54 = vrot.slane %v20714_v9, 1  ;;  %v20721_v58 = vshrl.u32 %v20713_v30, 16  ;;  %v20723_v9 = vld [vmem:[#allocation35_spill] sm:$0xff] }
 0x1ae   : > { %v2255_v42 = vpop.f32.mrf.mxu1  ;;  %v2617_v16 = vpop.f32.mrf.mxu0  ;;  %v3616_v48 = vrot.slane %v20704_v13, 1  ;;  %12880 = vmatprep.subr.bf16.mxu1 %v13775_v28  ;;  %v20710_v13 = vld [vmem:[#allocation60_spill] sm:$0xff] }
 0x1af   : > { %20700 = vst [vmem:[#allocation6_spill] sm:$0xff] %v15674_v62  ;;  %v15684_v41 = vadd.f32 %v12596_v22, %v2376_v33  ;;  %v2374_v61 = vadd.f32 %v2255_v42, %v20706_v53  ;;  %v13776_v22 = vld [vmem:[%s19944_s4 + $0x20] sm:$0xff]   ;;  %12881 = vmatpush3.bf16.msra.mxu1 %v13775_v28  ;;  %v20752_v62 = vld [vmem:[#allocation28_spill] sm:$0xff] }
 0x1b0   : > { %v12533_v15 = vpop.f32.mrf.mxu1  ;;  %v12597_v40 = vpop.f32.mrf.mxu0  ;;  %v3617_v42 = vsel %vm20176_vm1, %v3615_v5, %v3616_v48  ;;  %12944 = vmatprep.subr.bf16.mxu0 %v13776_v22  ;;  %v20716_v5 = vld [vmem:[#allocation20_spill] sm:$0xff] }
 0x1b1   : > { %20705 = vst [vmem:[#allocation7_spill] sm:$0xff] %v15684_v41  ;;  %v15690_v49 = vadd.f32 %v2617_v16, %v2374_v61  ;;  %v2377_v6 = vadd.f32 %v12533_v15, %v20708_v32  ;;  %v4514_v16 = vlaneseq  ;;  %v3618_v32 = vor.u32 %v3616_v48, %v20712_v37  ;;  %12945 = vmatpush3.bf16.msra.mxu0 %v13776_v22 }
 0x1b2   : > { %v2258_v33 = vpop.f32.mrf.mxu1  ;;  %v2620_v14 = vpop.f32.mrf.mxu0  ;;  %v3621_v48 = vor.u32 %v3619_v54, %v20721_v58  ;;  %12946 = vmatprep.subr.bf16.mxu0 %v13778_v38 }
 0x1b3   : > { %20707 = vst [vmem:[#allocation8_spill] sm:$0xff] %v15690_v49  ;;  %v15698_v25 = vadd.f32 %v12597_v40, %v2377_v6  ;;  %v2375_v53 = vadd.f32 %v2258_v33, %v20710_v13  ;;  %v20717_v40 = vld [vmem:[#allocation25_spill] sm:$0xff]  ;;  %v15712_v46 = vshrl.u32 %v4514_v16, 7 }
 0x1b4   : > { %v12536_v61 = vpop.f32.mrf.mxu1  ;;  %v12600_v15 = vpop.f32.mrf.mxu0  ;;  %12791 = vmatmul.mubr.bf16.gmra.mxu1 %v3614_v43  ;;  %12855 = vmatmul.mubr.bf16.gmra.mxu0 %v20711_v45  ;;  %v20718_v6 = vld [vmem:[#allocation53_spill] sm:$0xff] }
 0x1b5   : > { %20709 = vst [vmem:[#allocation13_spill] sm:$0xff] %v15698_v25  ;;  %v15706_v17 = vadd.f32 %v2620_v14, %v2375_v53  ;;  %v2380_v28 = vadd.f32 %v12536_v61, %v20716_v5  ;;  %12794 = vmatprep.mubr.bf16.mxu1 %v3617_v42  ;;  %12858 = vmatprep.mubr.bf16.mxu0 %v20717_v40  ;;  %v20719_v33 = vshll.u32 %v20718_v6, 16  ;;  %20720 = vst [vmem:[#allocation18_spill] sm:$0xff] %v15712_v46  ;;  %v20725_v40 = vld [vmem:[#allocation61_spill] sm:$0xff] }
 0x1b6   : > { %v2271_v43 = vpop.f32.mrf.mxu1  ;;  %v2633_v45 = vpop.f32.mrf.mxu0  ;;  %v15720_v53 = vadd.s32 16, %v15712_v46  ;;  %v20726_v12 = vshrl.u32 %v20718_v6, 16  ;;  %12947 = vmatpush3.bf16.msra.mxu0 %v13778_v38 }
 0x1b7   : > { %20715 = vst [vmem:[#allocation15_spill] sm:$0xff] %v15706_v17  ;;  %v3622_v13 = vrot.slane %v20719_v33, 1  ;;  %v15716_v37 = vadd.f32 %v12600_v15, %v2380_v28  ;;  %v2378_v14 = vadd.f32 %v2271_v43, %v20723_v9  ;;  %v3620_v33 = vsel %vm20176_vm1, %v3618_v32, %v3619_v54  ;;  %v20727_v28 = vld [vmem:[#allocation24_spill] sm:$0xff] }
 0x1b8   : > { %v12537_v42 = vpop.f32.mrf.mxu1  ;;  %v12601_v61 = vpop.f32.mrf.mxu0  ;;  %v20728_v43 = vshll.u32 %v20727_v28, 16  ;;  %v15732_v1 = vmul.u32.u64.low 2863311531, %v15720_v53  ;;  %v15733_v56 = vmul.u32.u64.high 2863311531, %v15720_v53, %v15732_v1 }
 0x1b9   : > { %20722 = vst [vmem:[#allocation57_spill] sm:$0xff] %v15716_v37  ;;  %v15722_v5 = vadd.f32 %v2633_v45, %v2378_v14  ;;  %v2381_v16 = vadd.f32 %v12537_v42, %v20725_v40  ;;  %v3624_v30 = vor.u32 %v3622_v13, %v20726_v12  ;;  %v3623_v15 = vsel %vm20176_vm1, %v3621_v48, %v3622_v13  ;;  %v20730_v14 = vld [vmem:[#allocation31_spill] sm:$0xff]  ;;  %v20731_v40 = vld [vmem:[#allocation30_spill] sm:$0xff]  ;;  %v13777_v12 = vld [vmem:[%s19944_s4 + $0xd8] sm:$0xff]  }
 0x1ba   : > { %v2274_v58 = vpop.f32.mrf.mxu1  ;;  %v2636_v22 = vpop.f32.mrf.mxu0  ;;  %v3625_v9 = vrot.slane %v20728_v43, 1  ;;  %v20732_v54 = vshll.u32 %v20731_v40, 16  ;;  %v20733_v48 = vld [vmem:[#allocation4_spill] sm:$0xff]  ;;  %12882 = vmatprep.subr.bf16.mxu1 %v13777_v12  ;;  %v4591_v38 = vshrl.u32 %v15733_v56, 4  ;;  %v13768_v37 = vld [vmem:[%s14007_s24 + $0xe4] ss:$0 sps:$4 sm:$0xff]  }
 0x1bb   : > { %20724 = vst [vmem:[#allocation59_spill] sm:$0xff] %v15722_v5  ;;  %v15735_v45 = vadd.f32 %v12601_v61, %v2381_v16  ;;  %v2379_v42 = vadd.f32 %v2274_v58, %v20730_v14  ;;  %v20736_v61 = vshrl.u32 %v20727_v28, 16  ;;  %v20737_v58 = vld [vmem:[#allocation36_spill] sm:$0xff]  ;;  %12883 = vmatpush3.bf16.msra.mxu1 %v13777_v12  ;;  %v20742_v28 = vld [vmem:[#allocation37_spill] sm:$0xff] }
 0x1bc   : > { %v3628_v32 = vrot.slane %v20732_v54, 1  ;;  %v12540_v6 = vpop.f32.mrf.mxu1  ;;  %v12604_v13 = vpop.f32.mrf.mxu0  ;;  %12795 = vmatmul.mubr.bf16.gmra.mxu1 %v3620_v33  ;;  %12859 = vmatmul.mubr.bf16.gmra.mxu0 %v20733_v48  ;;  %v20738_v14 = vshll.u32 %v20737_v58, 16 }
 0x1bd   : > { %20729 = vst [vmem:[#allocation60_spill] sm:$0xff] %v15735_v45  ;;  %v15744_v43 = vadd.f32 %v2636_v22, %v2379_v42  ;;  %v2384_v1 = vadd.f32 %v12540_v6, %v20735_v55  ;;  %12798 = vmatprep.mubr.bf16.mxu1 %v3623_v15  ;;  %12862 = vmatprep.mubr.bf16.mxu0 %v15448_v59  ;;  %v15757_v55 = vadd.s32 24, %v15712_v46  ;;  %v20740_v59 = vld [vmem:[#allocation3_spill] sm:$0xff]  ;;  %v20741_v42 = vshrl.u32 %v20731_v40, 16  ;;  %v20744_v45 = vld [vmem:[#allocation54_spill] sm:$0xff] }
 0x1be   : > { %v3627_v16 = vor.u32 %v3625_v9, %v20736_v61  ;;  %v4007_v54 = vrot.slane %v20738_v14, 1  ;;  %v2287_v33 = vpop.f32.mrf.mxu1  ;;  %v2649_v31 = vpop.f32.mrf.mxu0  ;;  %v3626_v22 = vsel %vm20176_vm1, %v3624_v30, %v3625_v9  ;;  %v10901_v30 = vcombine.low %v20744_v45, %v20744_v45 }
 0x1bf   : > { %20734 = vst [vmem:[#allocation34_spill] sm:$0xff] %v15744_v43  ;;  %v15759_v6 = vadd.f32 %v12604_v13, %v2384_v1  ;;  %v2382_v15 = vadd.f32 %v2287_v33, %v20740_v59  ;;  %v3630_v48 = vor.u32 %v3628_v32, %v20741_v42  ;;  %v20743_v43 = vshll.u32 %v20742_v28, 16  ;;  %v20746_v33 = vld [vmem:[#allocation5_spill] sm:$0xff] }
 0x1c0   : > { %v12541_v61 = vpop.f32.mrf.mxu1  ;;  %v12605_v14 = vpop.f32.mrf.mxu0  ;;  %v15769_v9 = vmul.u32.u64.low 2863311531, %v15712_v46  ;;  %v15770_v13 = vmul.u32.u64.high 2863311531, %v15712_v46, %v15769_v9  ;;  %v3629_v12 = vsel %vm20176_vm1, %v3627_v16, %v3628_v32  ;;  %v4008_v42 = vsel %vm20176_vm1, %v15467_v19, %v4007_v54 }
 0x1c1   : > { %20739 = vst [vmem:[#allocation20_spill] sm:$0xff] %v15759_v6  ;;  %v3631_v17 = vrot.slane %v20743_v43, 1  ;;  %v15772_v1 = vadd.f32 %v2649_v31, %v2382_v15  ;;  %v2385_v59 = vadd.f32 %v12541_v61, %v20746_v33  ;;  %v15788_v31 = vadd.s32 8, %v15712_v46  ;;  %v20748_v61 = vld [vmem:[#allocation32_spill] sm:$0xff]  ;;  %v20750_v33 = vld [vmem:[#allocation27_spill] sm:$0xff] }
 0x1c2   : > { %v15778_v40 = vpop.f32.mrf.mxu1  ;;  %v15780_v43 = vpop.f32.mrf.mxu0  ;;  %v15784_v45 = vmul.u32.u64.low 2863311531, %v15757_v55  ;;  %v15785_v6 = vmul.u32.u64.high 2863311531, %v15757_v55, %v15784_v45  ;;  %v15793_v32 = vadd.s32 48, %v15712_v46  ;;  %v20749_v9 = vshrl.u32 %v20737_v58, 16 }
 0x1c3   : > { %20745 = vst [vmem:[#allocation25_spill] sm:$0xff] %v15772_v1  ;;  %v15790_v15 = vadd.f32 %v12605_v14, %v2385_v59  ;;  %v20751_v1 = vshll.u32 %v20750_v33, 16  ;;  %v3638_v45 = vshll.u32 %v10901_v30, 16  ;;  %v3632_v14 = vsel %vm20176_vm1, %v3630_v48, %v3631_v17 }
 0x1c4   : > { %v12544_v16 = vpop.f32.mrf.mxu1  ;;  %v12608_v19 = vpop.f32.mrf.mxu0  ;;  %12799 = vmatmul.mubr.bf16.gmra.mxu1 %v3626_v22  ;;  %12863 = vmatmul.mubr.bf16.gmra.mxu0 %v20748_v61  ;;  %v4009_v56 = vor.u32 %v4007_v54, %v20749_v9  ;;  %v20753_v59 = vshrl.u32 %v20742_v28, 16  ;;  %v4023_v61 = vshrl.u32 %v15322_v24, 16  ;;  %v4592_v58 = vmul.u32 24, %v4591_v38 }
 0x1c5   : > { %20747 = vst [vmem:[#allocation35_spill] sm:$0xff] %v15790_v15  ;;  %v3634_v5 = vrot.slane %v20751_v1, 1  ;;  %v2388_v25 = vadd.f32 %v12544_v16, %v20752_v62  ;;  %12802 = vmatprep.mubr.bf16.mxu1 %v3629_v12  ;;  %12866 = vmatprep.mubr.bf16.mxu0 %v4008_v42  ;;  %v15807_v54 = vmul.u32.u64.low 2863311531, %v15788_v31  ;;  %v15808_v9 = vmul.u32.u64.high 2863311531, %v15788_v31, %v15807_v54  ;;  %v20755_v1 = vld [vmem:[#allocation14_spill] sm:$0xff] }
 0x1c6   : > { %v3633_v15 = vor.u32 %v3631_v17, %v20753_v59  ;;  %v2303_v22 = vpop.f32.mrf.mxu1  ;;  %v2665_v26 = vpop.f32.mrf.mxu0  ;;  %v15814_v12 = vmul.u32.u64.low 2863311531, %v15793_v32  ;;  %v15815_v42 = vmul.u32.u64.high 2863311531, %v15793_v32, %v15814_v12  ;;  %v20756_v17 = vshrl.u32 %v20750_v33, 16  ;;  %v20758_v54 = vld [vmem:[#allocation17_spill] sm:$0xff] }
 0x1c7   : > { %v15810_v30 = vadd.f32 %v12608_v19, %v2388_v25  ;;  %v2386_v62 = vadd.f32 %v2303_v22, %v20755_v1  ;;  %v3640_v28 = vrot.slane %v3638_v45, 1  ;;  %v4027_v24 = vshll.u32 %v13768_v37, 16  ;;  %v20759_v19 = vld [vmem:[#allocation55_spill] sm:$0xff] }
 0x1c8   : > { %v12545_v48 = vpop.f32.mrf.mxu1  ;;  %v12609_v16 = vpop.f32.mrf.mxu0  ;;  %v3636_v59 = vor.u32 %v3634_v5, %v20756_v17  ;;  %v4569_v38 = vshrl.u32 %v15770_v13, 4  ;;  %v4014_v22 = vsel %vm20176_vm1, %v4009_v56, %v20759_v19  ;;  %v15826_v1 = vadd.s32 32, %v15712_v46 }
 0x1c9   : > { %20754 = vst [vmem:[#allocation61_spill] sm:$0xff] %v15810_v30  ;;  %v15820_v49 = vadd.f32 %v2665_v26, %v2386_v62  ;;  %v2389_v25 = vadd.f32 %v12545_v48, %v20758_v54  ;;  %v3635_v17 = vsel %vm20176_vm1, %v3633_v15, %v3634_v5  ;;  %v15834_v37 = vsub.s32 %v15720_v53, %v4592_v58  ;;  %v20762_v48 = vld [vmem:[#allocation56_spill] sm:$0xff]  ;;  %v20764_v5 = vld [vmem:[#allocation58_spill] sm:$0xff] }
 0x1ca   : > { %v15828_v12 = vpop.f32.mrf.mxu1  ;;  %v15830_v30 = vpop.f32.mrf.mxu0  ;;  %v4602_v26 = vshrl.u32 %v15785_v6, 4  ;;  %v3641_v56 = vsel %vm20176_vm1, %v3636_v59, %v3640_v28  ;;  %v4025_v54 = vor.u32 %v4023_v61, %v20762_v48  ;;  %v4029_v19 = vrot.slane %v4027_v24, 1 }
 0x1cb   : > { %20757 = vst [vmem:[#allocation31_spill] sm:$0xff] %v15820_v49  ;;  %20760 = vst [vmem:[#allocation4_spill] sm:$0xff] %v15834_v37  ;;  %v15837_v13 = vadd.f32 %v12609_v16, %v2389_v25  ;;  %v4570_v33 = vmul.u32 24, %v4569_v38  ;;  %v20763_v49 = vld [vmem:[#allocation21_spill] sm:$0xff]  ;;  %v15844_v53 = vmul.u32.u64.low 2863311531, %v15826_v1  ;;  %v15845_v6 = vmul.u32.u64.high 2863311531, %v15826_v1, %v15844_v53 }
 0x1cc   : > { %v12548_v45 = vpop.f32.mrf.mxu1  ;;  %v12612_v62 = vpop.f32.mrf.mxu0  ;;  %12803 = vmatmul.mubr.bf16.gmra.mxu1 %v3632_v14  ;;  %12867 = vmatmul.mubr.bf16.gmra.mxu0 %v4014_v22  ;;  %v15848_v15 = vadd.s32 56, %v15712_v46  ;;  %vm5093_vm2 = vcmp.ne.s32.totalorder %v15834_v37, 0  ;;  %vm5141_vm3 = vcmp.lt.s32.totalorder %v15834_v37, 0  ;;  %v4603_v28 = vmul.u32 24, %v4602_v26  ;;  %v20766_v16 = vld [vmem:[#allocation23_spill] sm:$0xff] }
 0x1cd   : > { %20761 = vst [vmem:[#allocation22_spill] sm:$0xff] %v15837_v13  ;;  %v2392_v41 = vadd.f32 %v12548_v45, %v20763_v49  ;;  %12806 = vmatprep.mubr.bf16.mxu1 %v3635_v17  ;;  %12870 = vmatprep.mubr.bf16.mxu0 %v20764_v5  ;;  %v4580_v61 = vshrl.u32 %v15808_v9, 4  ;;  %v4635_v24 = vshrl.u32 %v15815_v42, 4  ;;  %v15858_v38 = vadd.s32 40, %v15712_v46  ;;  %v20767_v25 = vld [vmem:[#allocation11_spill] sm:$0xff]  ;;  %vm15887_vm4 = vmand %vm5141_vm3, %vm5093_vm2 }
 0x1ce   : > { %v2319_v14 = vpop.f32.mrf.mxu1  ;;  %v2681_v58 = vpop.f32.mrf.mxu0  ;;  %v2383_v22 = vadd.f32 %v15778_v40, %v20767_v25  ;;  %v4030_v48 = vsel %vm20176_vm1, %v4025_v54, %v4029_v19  ;;  %v15864_v26 = vadd.s32 24, %v15834_v37  ;;  %v15870_v9 = vadd.s32 80, %v15712_v46  ;;  %v13780_v25 = vld [vmem:[%s19944_s4 + $0x10] sm:$0xff]  }
 0x1cf   : > { %v15853_v49 = vadd.f32 %v12612_v62, %v2392_v41  ;;  %v2390_v59 = vadd.f32 %v2319_v14, %v20766_v16  ;;  %v13779_v41 = vld [vmem:[%s19944_s4 + $0xd0] sm:$0xff]   ;;  %v20770_v62 = vld [vmem:[#allocation26_spill] sm:$0xff]  ;;  %v15876_v40 = vmul.u32.u64.low 2863311531, %v15848_v15  ;;  %v15877_v53 = vmul.u32.u64.high 2863311531, %v15848_v15, %v15876_v40  ;;  %12948 = vmatprep.subr.bf16.mxu0 %v13780_v25 }
 0x1d0   : > { %v12549_v17 = vpop.f32.mrf.mxu1  ;;  %v12613_v45 = vpop.f32.mrf.mxu0  ;;  %20768 = vst [vmem:[#allocation3_spill] sm:$0xff] %v15864_v26  ;;  %v20771_v19 = vmov 0  ;;  %v15895_v16 = vsub.s32 %v15757_v55, %v4603_v28  ;;  %12884 = vmatprep.subr.bf16.mxu1 %v13779_v41  ;;  %v15907_v55 = vmul.u32.u64.low 2863311531, %v15870_v9  ;;  %v15908_v28 = vmul.u32.u64.high 2863311531, %v15870_v9, %v15907_v55  ;;  %12949 = vmatpush3.bf16.msra.mxu0 %v13780_v25 }
 0x1d1   : > { %20765 = vst [vmem:[#allocation36_spill] sm:$0xff] %v15853_v49  ;;  %v15872_v42 = vadd.f32 %v2681_v58, %v2390_v59  ;;  %v2393_v5 = vadd.f32 %v12549_v17, %v20770_v62  ;;  %v20772_v19 = vsel %vm15887_vm4, 4294967295, %v20771_v19  ;;  %v15892_v58 = vsub.s32 %v15712_v46, %v4570_v33  ;;  %12885 = vmatpush3.bf16.msra.mxu1 %v13779_v41 }
 0x1d2   : > { %v15879_v14 = vpop.f32.mrf.mxu1  ;;  %v15881_v54 = vpop.f32.mrf.mxu0  ;;  %20773 = vst [vmem:[#allocation5_spill] sm:$0xff] %v20772_v19  ;;  %20775 = vst [vmem:[#allocation28_spill] sm:$0xff] %v15895_v16  ;;  %v4581_v59 = vmul.u32 24, %v4580_v61  ;;  %v4636_v62 = vmul.u32 24, %v4635_v24  ;;  %v15911_v61 = vadd.f32 %v15780_v43, %v2383_v22  ;;  %v4613_v41 = vshrl.u32 %v15845_v6, 4  ;;  %v20782_v22 = vld [vmem:[#allocation19_spill] sm:$0xff] }
 0x1d3   : > { %20769 = vst [vmem:[#allocation54_spill] sm:$0xff] %v15872_v42  ;;  %20774 = vst [vmem:[#allocation32_spill] sm:$0xff] %v15892_v58  ;;  %v15900_v17 = vadd.f32 %v12613_v45, %v2393_v5  ;;  %v15903_v40 = vmul.u32.u64.low 2863311531, %v15858_v38  ;;  %v15904_v42 = vmul.u32.u64.high 2863311531, %v15858_v38, %v15903_v40  ;;  %vm5091_vm5 = vcmp.ne.s32.totalorder %v15892_v58, 0 }
 0x1d4   : > { %v12552_v49 = vpop.f32.mrf.mxu1  ;;  %v12616_v33 = vpop.f32.mrf.mxu0  ;;  %12807 = vmatmul.mubr.bf16.gmra.mxu1 %v3641_v56  ;;  %12871 = vmatmul.mubr.bf16.gmra.mxu0 %v4030_v48  ;;  %20777 = vst [vmem:[#allocation17_spill] sm:$0xff] %v15911_v61  ;;  %vm5139_vm6 = vcmp.lt.s32.totalorder %v15892_v58, 0  ;;  %v15922_v48 = vadd.s32 24, %v15892_v58  ;;  %v15925_v43 = vsub.s32 %v15788_v31, %v4581_v59  ;;  %vm5094_vm7 = vcmp.ne.s32.totalorder %v15895_v16, 0 }
 0x1d5   : > { %20776 = vst [vmem:[#allocation14_spill] sm:$0xff] %v15900_v17  ;;  %v2396_v45 = vadd.f32 %v12552_v49, %v15498_v20  ;;  %v15932_v6 = vsub.s32 %v15793_v32, %v4636_v62  ;;  %v2387_v40 = vadd.f32 %v15828_v12, %v20782_v22  ;;  %vm5142_vm8 = vcmp.lt.s32.totalorder %v15895_v16, 0  ;;  %vm15973_vm12 = vmand %vm5139_vm6, %vm5091_vm5 }
 0x1d6   : > { %v2335_v5 = vpop.f32.mrf.mxu1  ;;  %v2697_v56 = vpop.f32.mrf.mxu0  ;;  %20778 = vst [vmem:[#allocation55_spill] sm:$0xff] %v15922_v48  ;;  %20779 = vst [vmem:[#allocation56_spill] sm:$0xff] %v15925_v43  ;;  %v15938_v31 = vadd.s32 24, %v15895_v16  ;;  %v15941_v59 = vadd.s32 64, %v15712_v46  ;;  %v4614_v62 = vmul.u32 24, %v4613_v41  ;;  %v4646_v12 = vshrl.u32 %v15877_v53, 4 }
 0x1d7   : > { %v15927_v20 = vadd.f32 %v12616_v33, %v2396_v45  ;;  %v2394_v49 = vadd.f32 %v2335_v5, %v15501_v34  ;;  %20781 = vst [vmem:[#allocation58_spill] sm:$0xff] %v15932_v6  ;;  %v13782_v34 = vld [vmem:[%s19944_s4 + $0x8] sm:$0xff]   ;;  %vm5092_vm9 = vcmp.ne.s32.totalorder %v15925_v43, 0  ;;  %vm5140_vm10 = vcmp.lt.s32.totalorder %v15925_v43, 0  ;;  %vm15991_vm14 = vmand %vm5142_vm8, %vm5094_vm7 }
 0x1d8   : > { %v12553_v55 = vpop.f32.mrf.mxu1  ;;  %v12617_v24 = vpop.f32.mrf.mxu0  ;;  %20783 = vst [vmem:[#allocation23_spill] sm:$0xff] %v15938_v31  ;;  %v15957_v5 = vadd.s32 88, %v15712_v46  ;;  %v15960_v22 = vadd.s32 72, %v15712_v46  ;;  %12950 = vmatprep.subr.bf16.mxu0 %v13782_v34  ;;  %vm5097_vm11 = vcmp.ne.s32.totalorder %v15932_v6, 0  ;;  %v4624_v53 = vshrl.u32 %v15904_v42, 4  ;;  %v13784_v42 = vld [vmem:[%s19944_s4] sm:$0xff]   ;;  %vm16005_vm15 = vmand %vm5140_vm10, %vm5092_vm9 }
 0x1d9   : > { %20780 = vst [vmem:[#allocation21_spill] sm:$0xff] %v15927_v20  ;;  %v15946_v25 = vadd.f32 %v2697_v56, %v2394_v49  ;;  %v2397_v32 = vadd.f32 %v12553_v55, %v15506_v0  ;;  %v15965_v0 = vadd.s32 24, %v15925_v43  ;;  %12951 = vmatpush3.bf16.msra.mxu0 %v13782_v34  ;;  %vm5145_vm13 = vcmp.lt.s32.totalorder %v15932_v6, 0 }
 0x1da   : > { %v15950_v33 = vpop.f32.mrf.mxu1  ;;  %v15952_v45 = vpop.f32.mrf.mxu0  ;;  %v20789_v26 = vmov 0  ;;  %v15999_v19 = vsub.s32 %v15826_v1, %v4614_v62  ;;  %v16014_v17 = vmul.u32.u64.low 2863311531, %v15960_v22  ;;  %v16015_v13 = vmul.u32.u64.high 2863311531, %v15960_v22, %v16014_v17  ;;  %12952 = vmatprep.subr.bf16.mxu0 %v13784_v42  ;;  %vm16028_vm2 = vmand %vm5145_vm13, %vm5097_vm11 }
 0x1db   : > { %20784 = vst [vmem:[#allocation11_spill] sm:$0xff] %v15946_v25  ;;  %v15962_v56 = vadd.f32 %v12617_v24, %v2397_v32  ;;  %20786 = vst [vmem:[#allocation19_spill] sm:$0xff] %v15965_v0  ;;  %v4679_v24 = vshrl.u32 %v15908_v28, 4  ;;  %v15980_v32 = vmul.u32.u64.low 2863311531, %v15941_v59  ;;  %v15981_v37 = vmul.u32.u64.high 2863311531, %v15941_v59, %v15980_v32  ;;  %v13781_v17 = vld [vmem:[%s19944_s4 + $0xc8] sm:$0xff]  }
 0x1dc   : > { %v12636_v41 = vpop.f32.mrf.mxu1  ;;  %v12700_v49 = vpop.f32.mrf.mxu0  ;;  %v20790_v26 = vsel %vm15991_vm14, 4294967295, %v20789_v26  ;;  %v15996_v28 = vadd.s32 24, %v15932_v6  ;;  %v4647_v32 = vmul.u32 24, %v4646_v12  ;;  %v4625_v61 = vmul.u32 24, %v4624_v53  ;;  %12886 = vmatprep.subr.bf16.mxu1 %v13781_v17 }
 0x1dd   : > { %20785 = vst [vmem:[#allocation26_spill] sm:$0xff] %v15962_v56  ;;  %v3057_v34 = vadd.f32 %v12636_v41, %v15522_v23  ;;  %20791 = vst [vmem:[#allocation62_spill] sm:$0xff] %v20790_v26  ;;  %v20793_v23 = vmov 0  ;;  %v16010_v41 = vmul.u32.u64.low 2863311531, %v15957_v5  ;;  %v16011_v20 = vmul.u32.u64.high 2863311531, %v15957_v5, %v16010_v41  ;;  %12953 = vmatpush3.bf16.msra.mxu0 %v13784_v42  ;;  %12887 = vmatpush3.bf16.msra.mxu1 %v13781_v17 }
 0x1de   : > { %20792 = vst [vmem:[#allocation63_spill] sm:$0xff] %v15996_v28  ;;  %v2864_v56 = vpop.f32.mrf.mxu1  ;;  %v3309_v25 = vpop.f32.mrf.mxu0  ;;  %v20794_v23 = vsel %vm16005_vm15, 4294967295, %v20793_v23  ;;  %v20796_v41 = vmov 0  ;;  %v4680_v12 = vmul.u32 24, %v4679_v24  ;;  %v16043_v58 = vadd.s32 112, %v15712_v46 }
 0x1df   : > { %20795 = vst [vmem:[#allocation64_spill] sm:$0xff] %v20794_v23  ;;  %v16017_v1 = vadd.f32 %v12700_v49, %v3057_v34  ;;  %v3055_v62 = vadd.f32 %v2864_v56, %v15525_v18  ;;  %v20797_v41 = vsel %vm16028_vm2, 4294967295, %v20796_v41  ;;  %v16036_v18 = vadd.f32 %v15830_v30, %v2387_v40  ;;  %v21016_v55 = vld [vmem:[#allocation23_spill] sm:$0xff] }
 0x1e0   : > { %20798 = vst [vmem:[#allocation65_spill] sm:$0xff] %v20797_v41  ;;  %v12637_v56 = vpop.f32.mrf.mxu1  ;;  %v12701_v49 = vpop.f32.mrf.mxu0  ;;  %v16053_v40 = vsub.s32 %v15848_v15, %v4647_v32  ;;  %vm5095_vm3 = vcmp.ne.s32.totalorder %v15999_v19, 0  ;;  %vm5143_vm5 = vcmp.lt.s32.totalorder %v15999_v19, 0  ;;  %v20799_v15 = vld [vmem:[#allocation29_spill] sm:$0xff]  ;;  %v16079_v6 = vsub.s32 %v15870_v9, %v4680_v12 }
 0x1e1   : > { %v16045_v53 = vadd.f32 %v3309_v25, %v3055_v62  ;;  %v3058_v48 = vadd.f32 %v12637_v56, %v15530_v4  ;;  %v16066_v4 = vadd.s32 24, %v15999_v19  ;;  %v2391_v24 = vadd.f32 %v15879_v14, %v20799_v15  ;;  %v13783_v14 = vld [vmem:[%s19944_s4 + $0xc0] sm:$0xff]   ;;  %vm16119_vm11 = vmand %vm5143_vm5, %vm5095_vm3 }
 0x1e2   : > { %v16055_v42 = vpop.f32.mrf.mxu1  ;;  %v16057_v34 = vpop.f32.mrf.mxu0  ;;  %v16073_v62 = vsub.s32 %v15858_v38, %v4625_v61  ;;  %v16076_v56 = vadd.s32 96, %v15712_v46  ;;  %20801 = vst [vmem:[#allocation66_spill] sm:$0xff] %v16079_v6  ;;  %v4657_v28 = vshrl.u32 %v15981_v37, 4  ;;  %vm5098_vm6 = vcmp.ne.s32.totalorder %v16053_v40, 0  ;;  %12888 = vmatprep.subr.bf16.mxu1 %v13783_v14 }
 0x1e3   : > { %v16070_v32 = vadd.f32 %v12701_v49, %v3058_v48  ;;  %v16083_v17 = vmul.u32.u64.low 2863311531, %v16043_v58  ;;  %v16084_v41 = vmul.u32.u64.high 2863311531, %v16043_v58, %v16083_v17  ;;  %vm5146_vm7 = vcmp.lt.s32.totalorder %v16053_v40, 0  ;;  %12889 = vmatpush3.bf16.msra.mxu1 %v13783_v14 }
 0x1e4   : > { %v12640_v25 = vpop.f32.mrf.mxu1  ;;  %v12704_v30 = vpop.f32.mrf.mxu0  ;;  %v16093_v61 = vadd.s32 24, %v16053_v40  ;;  %v2395_v37 = vadd.f32 %v15950_v33, %v15512_v2  ;;  %v4690_v12 = vshrl.u32 %v16011_v20, 4  ;;  %v4668_v49 = vshrl.u32 %v16015_v13, 4  ;;  %vm16133_vm1 = vmand %vm5146_vm7, %vm5098_vm6 }
 0x1e5   : > { %20800 = vst [vmem:[#allocation29_spill] sm:$0xff] %v16070_v32  ;;  %v3061_v38 = vadd.f32 %v12640_v25, %v15546_v50  ;;  %v16100_v15 = vadd.s32 120, %v15712_v46  ;;  %v16106_v17 = vmul.u32.u64.low 2863311531, %v16076_v56  ;;  %v16107_v43 = vmul.u32.u64.high 2863311531, %v16076_v56, %v16106_v17 }
 0x1e6   : > { %v2880_v9 = vpop.f32.mrf.mxu1  ;;  %v3325_v48 = vpop.f32.mrf.mxu0  ;;  %vm5096_vm8 = vcmp.ne.s32.totalorder %v16073_v62, 0  ;;  %vm5144_vm9 = vcmp.lt.s32.totalorder %v16073_v62, 0  ;;  %vm5101_vm10 = vcmp.ne.s32.totalorder %v16079_v6, 0  ;;  %v4658_v13 = vmul.u32 24, %v4657_v28 }
 0x1e7   : > { %v16102_v50 = vadd.f32 %v12704_v30, %v3061_v38  ;;  %v3059_v25 = vadd.f32 %v2880_v9, %v15549_v57  ;;  %vm5149_vm13 = vcmp.lt.s32.totalorder %v16079_v6, 0  ;;  %v4723_v14 = vshrl.u32 %v16084_v41, 4  ;;  %vm16153_vm3 = vmand %vm5144_vm9, %vm5096_vm8 }
 0x1e8   : > { %v12641_v2 = vpop.f32.mrf.mxu1  ;;  %v12705_v33 = vpop.f32.mrf.mxu0  ;;  %v16138_v28 = vadd.s32 24, %v16073_v62  ;;  %v16145_v41 = vadd.s32 104, %v15712_v46  ;;  %v4669_v0 = vmul.u32 24, %v4668_v49  ;;  %vm16164_vm5 = vmand %vm5149_vm13, %vm5101_vm10  ;;  %v4701_v26 = vshrl.u32 %v16107_v43, 4 }
 0x1e9   : > { %20802 = vst [vmem:[#allocation67_spill] sm:$0xff] %v16102_v50  ;;  %v16112_v20 = vadd.f32 %v3325_v48, %v3059_v25  ;;  %v3062_v30 = vadd.f32 %v12641_v2, %v15554_v27  ;;  %v16141_v48 = vmul.u32.u64.low 2863311531, %v16100_v15  ;;  %v16142_v25 = vmul.u32.u64.high 2863311531, %v16100_v15, %v16141_v48 }
 0x1ea   : > { %v16125_v38 = vpop.f32.mrf.mxu1  ;;  %v16127_v9 = vpop.f32.mrf.mxu0  ;;  %v4691_v50 = vmul.u32 24, %v4690_v12  ;;  %v16172_v32 = vmul.u32.u64.low 2863311531, %v16145_v41  ;;  %v16173_v16 = vmul.u32.u64.high 2863311531, %v16145_v41, %v16172_v32  ;;  %v16176_v12 = vadd.f32 %v15881_v54, %v2391_v24 }
 0x1eb   : > { %20803 = vst [vmem:[#allocation68_spill] sm:$0xff] %v16112_v20  ;;  %v16147_v17 = vadd.f32 %v12705_v33, %v3062_v30  ;;  %v16158_v20 = vadd.s32 24, %v16079_v6  ;;  %v20812_v33 = vmov 0  ;;  %v16169_v30 = vsub.s32 %v15941_v59, %v4658_v13 }
 0x1ec   : > { %v12644_v23 = vpop.f32.mrf.mxu1  ;;  %v12708_v48 = vpop.f32.mrf.mxu0  ;;  %v20813_v33 = vsel %vm16164_vm5, 4294967295, %v20812_v33  ;;  %v16185_v59 = vadd.f32 %v15952_v45, %v2395_v37  ;;  %v16206_v32 = vsub.s32 %v15957_v5, %v4691_v50  ;;  %v4734_v5 = vshrl.u32 %v16142_v25, 4 }
 0x1ed   : > { %20808 = vst [vmem:[#allocation69_spill] sm:$0xff] %v16147_v17  ;;  %20811 = vst [vmem:[#allocation70_spill] sm:$0xff] %v16158_v20  ;;  %v4724_v17 = vmul.u32 24, %v4723_v14  ;;  %v3065_v49 = vadd.f32 %v12644_v23, %v15576_v21  ;;  %v16196_v23 = vadd.s32 144, %v15712_v46  ;;  %vm5099_vm6 = vcmp.ne.s32.totalorder %v16169_v30, 0 }
 0x1ee   : > { %20814 = vst [vmem:[#allocation71_spill] sm:$0xff] %v16169_v30  ;;  %v2896_v13 = vpop.f32.mrf.mxu1  ;;  %v3341_v14 = vpop.f32.mrf.mxu0  ;;  %20815 = vst [vmem:[#allocation72_spill] sm:$0xff] %v16206_v32  ;;  %vm5147_vm7 = vcmp.lt.s32.totalorder %v16169_v30, 0  ;;  %v16211_v21 = vsub.s32 %v15960_v22, %v4669_v0  ;;  %v16225_v54 = vadd.s32 24, %v16169_v30  ;;  %v4712_v25 = vshrl.u32 %v16173_v16, 4 }
 0x1ef   : > { %v16198_v24 = vadd.f32 %v12708_v48, %v3065_v49  ;;  %v3063_v43 = vadd.f32 %v2896_v13, %v15579_v7  ;;  %v16214_v48 = vsub.s32 %v16043_v58, %v4724_v17  ;;  %v4702_v13 = vmul.u32 24, %v4701_v26  ;;  %vm16251_vm0 = vmand %vm5147_vm7, %vm5099_vm6 }
 0x1f0   : > { %v12645_v37 = vpop.f32.mrf.mxu1  ;;  %v12709_v31 = vpop.f32.mrf.mxu0  ;;  %20816 = vst [vmem:[#allocation73_spill] sm:$0xff] %v16211_v21  ;;  %20819 = vst [vmem:[#allocation76_spill] sm:$0xff] %v16225_v54  ;;  %v16228_v22 = vmul.u32.u64.low 2863311531, %v16196_v23  ;;  %v16229_v0 = vmul.u32.u64.high 2863311531, %v16196_v23, %v16228_v22  ;;  %v16232_v58 = vadd.s32 128, %v15712_v46  ;;  %vm5150_vm9 = vcmp.lt.s32.totalorder %v16206_v32, 0 }
 0x1f1   : > { %20817 = vst [vmem:[#allocation74_spill] sm:$0xff] %v16214_v48  ;;  %v16216_v7 = vadd.f32 %v3341_v14, %v3063_v43  ;;  %v3066_v49 = vadd.f32 %v12645_v37, %v15584_v11  ;;  %v3056_v11 = vadd.f32 %v16055_v42, %v15536_v36  ;;  %v16242_v43 = vadd.s32 24, %v16206_v32 }
 0x1f2   : > { %v16220_v50 = vpop.f32.mrf.mxu1  ;;  %v16222_v45 = vpop.f32.mrf.mxu0  ;;  %vm5100_vm10 = vcmp.ne.s32.totalorder %v16211_v21, 0  ;;  %v20821_v36 = vmov 0  ;;  %vm5105_vm8 = vcmp.ne.s32.totalorder %v16214_v48, 0  ;;  %v16257_v16 = vsub.s32 %v16076_v56, %v4702_v13 }
 0x1f3   : > { %20818 = vst [vmem:[#allocation75_spill] sm:$0xff] %v16216_v7  ;;  %v16236_v26 = vadd.f32 %v12709_v31, %v3066_v49  ;;  %v20822_v36 = vsel %vm16251_vm0, 4294967295, %v20821_v36  ;;  %v4735_v31 = vmul.u32 24, %v4734_v5  ;;  %v4713_v6 = vmul.u32 24, %v4712_v25 }
 0x1f4   : > { %v12648_v17 = vpop.f32.mrf.mxu1  ;;  %v12712_v14 = vpop.f32.mrf.mxu0  ;;  %20823 = vst [vmem:[#allocation78_spill] sm:$0xff] %v16257_v16  ;;  %v3060_v56 = vadd.f32 %v16125_v38, %v15563_v35  ;;  %vm20825_vm6 = vcmp.ne.s32.totalorder %v16206_v32, 0  ;;  %v16288_v35 = vadd.s32 24, %v16214_v48  ;;  %v13928_v38 = vmov 0  }
 0x1f5   : > { %20820 = vst [vmem:[#allocation77_spill] sm:$0xff] %v16236_v26  ;;  %v3069_v37 = vadd.f32 %v12648_v17, %v15600_v52  ;;  %v16261_v52 = vmul.u32.u64.low 2863311531, %v16232_v58  ;;  %v16262_v22 = vmul.u32.u64.high 2863311531, %v16232_v58, %v16261_v52  ;;  %v16265_v17 = vadd.s32 152, %v15712_v46  ;;  %vm16280_vm7 = vmand %vm5150_vm9, %vm20825_vm6 }
 0x1f6   : > { %v2912_v42 = vpop.f32.mrf.mxu1  ;;  %v3357_v49 = vpop.f32.mrf.mxu0  ;;  %20829 = vst [vmem:[#allocation81_spill] sm:$0xff] %v16288_v35  ;;  %5525 = vst [vmem:[#allocation2 + $0x8] sm:$0xf] %v13928_v38  ;;  %vm20831_vm9 = vcmp.lt.s32.totalorder %v16211_v21, 0  ;;  %vm5103_vm13 = vcmp.ne.s32.totalorder %v16257_v16, 0  ;;  %v16303_v52 = vsub.s32 %v16100_v15, %v4735_v31  ;;  %vm20836_vm0 = vcmp.lt.s32.totalorder %v16214_v48, 0 }
 0x1f7   : > { %v16267_v26 = vadd.f32 %v12712_v14, %v3069_v37  ;;  %v3067_v7 = vadd.f32 %v2912_v42, %v15606_v63  ;;  %v16285_v63 = vadd.s32 24, %v16211_v21  ;;  %5526 = vst [vmem:[#allocation2 + $0xc] sm:$0xf] %v13928_v38  ;;  %5527 = vst [vmem:[#allocation2 + $0x10] sm:$0xf] %v13928_v38  ;;  %v20832_v42 = vmov 0 }
 0x1f8   : > { %v12649_v13 = vpop.f32.mrf.mxu1  ;;  %v12713_v5 = vpop.f32.mrf.mxu0  ;;  %5528 = vst [vmem:[#allocation2 + $0x14] sm:$0xf] %v13928_v38  ;;  %5529 = vst [vmem:[#allocation2 + $0xd8] sm:$0xf] %v13928_v38  ;;  %v13793_v31 = vld [vmem:[%s19944_s4 + $0x1b8] sm:$0xff]   ;;  %v16339_v30 = vadd.f32 %v16127_v9, %v3060_v56  ;;  %v4745_v9 = vshrl.u32 %v16262_v22, 4  ;;  %v21052_v27 = vsel %vm16119_vm11, %v16066_v4, %v15999_v19  ;;  %v21056_v19 = vsel %vm16153_vm3, %v16138_v28, %v16073_v62 }
 0x1f9   : > { %20824 = vst [vmem:[#allocation79_spill] sm:$0xff] %v16267_v26  ;;  %20828 = vst [vmem:[#allocation80_spill] sm:$0xff] %v16285_v63  ;;  %v16290_v25 = vadd.f32 %v3357_v49, %v3067_v7  ;;  %v3070_v37 = vadd.f32 %v12649_v13, %v15614_v29  ;;  %v20837_v29 = vmov 0  ;;  %v4767_v7 = vshrl.u32 %v16229_v0, 4  ;;  %13002 = vmatprep.subr.bf16.mxu1 %v13793_v31  ;;  %v13797_v35 = vld [vmem:[%s19944_s4 + $0x78] sm:$0xff]  }
 0x1fa   : > { %5530 = vst [vmem:[#allocation2 + $0xdc] sm:$0xf] %v13928_v38  ;;  %5531 = vst [vmem:[#allocation2 + $0xe0] sm:$0xf] %v13928_v38  ;;  %v16305_v20 = vpop.f32.mrf.mxu1  ;;  %v16320_v49 = vmul.u32.u64.low 2863311531, %v16265_v17  ;;  %v16321_v15 = vmul.u32.u64.high 2863311531, %v16265_v17, %v16320_v49  ;;  %v16327_v13 = vadd.f32 %v16057_v34, %v3056_v11  ;;  %v16336_v0 = vsub.s32 %v16145_v41, %v4713_v6  ;;  %13066 = vmatprep.subr.bf16.mxu0 %v13797_v35 }
 0x1fb   : > { %5532 = vst [vmem:[#allocation2 + $0xe4] sm:$0xf] %v13928_v38  ;;  %20830 = vst [vmem:[#allocation82_spill] sm:$0xff] %v16290_v25  ;;  %v16307_v38 = vpop.f32.mrf.mxu0  ;;  %v16329_v25 = vadd.f32 %v12713_v5, %v3070_v37  ;;  %v16346_v11 = vadd.s32 24, %v16257_v16  ;;  %v16349_v5 = vadd.s32 136, %v15712_v46  ;;  %v20843_v41 = vmov 0 }
 0x1fc   : > { %vm16297_vm6 = vmand %vm20831_vm9, %vm5100_vm10  ;;  %20835 = vst [vmem:[#allocation84_spill] sm:$0xff] %v16303_v52  ;;  %vm5151_vm10 = vcmp.lt.s32.totalorder %v16257_v16, 0  ;;  %v12652_v49 = vpop.f32.mrf.mxu1  ;;  %vm5154_vm9 = vcmp.lt.s32.totalorder %v16303_v52, 0  ;;  %v16369_v31 = vadd.s32 24, %v16303_v52  ;;  %v16404_v16 = vadd.s32 24, %v16336_v0 }
 0x1fd   : > { %v20833_v42 = vsel %vm16297_vm6, 4294967295, %v20832_v42  ;;  %vm16313_vm5 = vmand %vm20836_vm0, %vm5105_vm8  ;;  %20840 = vst [vmem:[#allocation86_spill] sm:$0xff] %v16329_v25  ;;  %v12716_v54 = vpop.f32.mrf.mxu0  ;;  %v3073_v6 = vadd.f32 %v12652_v49, %v15630_v3  ;;  %vm5106_vm8 = vcmp.ne.s32.totalorder %v16303_v52, 0  ;;  %v3064_v3 = vadd.f32 %v16220_v50, %v15590_v51  ;;  %v5775_v25 = vld [vmem:[#allocation2 + $0x8] sm:$0xf] }
 0x1fe   : > { %20834 = vst [vmem:[#allocation83_spill] sm:$0xff] %v20833_v42  ;;  %v20838_v29 = vsel %vm16313_vm5, 4294967295, %v20837_v29  ;;  %20841 = vst [vmem:[#allocation87_spill] sm:$0xff] %v16336_v0  ;;  %v2928_v56 = vpop.f32.mrf.mxu1  ;;  %v4768_v49 = vmul.u32 24, %v4767_v7  ;;  %v16377_v48 = vld [vmem:[#allocation2 + $0xc] sm:$0xf]  ;;  %vm21059_vm3 = vnez %v20813_v33 }
 0x1ff   : > { %20839 = vst [vmem:[#allocation85_spill] sm:$0xff] %v20838_v29  ;;  %20842 = vst [vmem:[#allocation88_spill] sm:$0xff] %v16346_v11  ;;  %v3373_v37 = vpop.f32.mrf.mxu0  ;;  %v16372_v34 = vadd.f32 %v12716_v54, %v3073_v6  ;;  %v3071_v26 = vadd.f32 %v2928_v56, %v15633_v39  ;;  %v20848_v39 = vmov 0  ;;  %v16391_v54 = vld [vmem:[#allocation2 + $0x10] sm:$0xf]  ;;  %v11034_v6 = vcombine.low %v5775_v25, %v16377_v48 }
 0x200   : > { %vm16360_vm0 = vmand %vm5151_vm10, %vm5103_vm13  ;;  %20846 = vst [vmem:[#allocation90_spill] sm:$0xff] %v16369_v31  ;;  %vm5104_vm13 = vcmp.ne.s32.totalorder %v16336_v0, 0  ;;  %vm5152_vm10 = vcmp.lt.s32.totalorder %v16336_v0, 0  ;;  %v12653_v51 = vpop.f32.mrf.mxu1  ;;  %v16393_v22 = vld [vmem:[#allocation2 + $0x14] sm:$0xf]  ;;  %v4778_v11 = vshrl.u32 %v16321_v15, 4  ;;  %v16411_v29 = vadd.f32 %v16222_v45, %v3064_v3 }
 0x201   : > { %v20844_v41 = vsel %vm16360_vm0, 4294967295, %v20843_v41  ;;  %20847 = vst [vmem:[#allocation91_spill] sm:$0xff] %v16372_v34  ;;  %v12717_v50 = vpop.f32.mrf.mxu0  ;;  %vm16387_vm5 = vmand %vm5154_vm9, %vm5106_vm8  ;;  %v16397_v56 = vmul.u32.u64.low 2863311531, %v16349_v5  ;;  %v16398_v34 = vmul.u32.u64.high 2863311531, %v16349_v5, %v16397_v56  ;;  %v3074_v7 = vadd.f32 %v12653_v51, %v15638_v47 }
 0x202   : > { %20845 = vst [vmem:[#allocation89_spill] sm:$0xff] %v20844_v41  ;;  %v20849_v39 = vsel %vm16387_vm5, 4294967295, %v20848_v39  ;;  %20850 = vst [vmem:[#allocation92_spill] sm:$0xff] %v16393_v22  ;;  %v16400_v41 = vadd.f32 %v3373_v37, %v3071_v26  ;;  %v16413_v25 = vpop.f32.mrf.mxu1  ;;  %v20854_v47 = vmov 0  ;;  %v11035_v26 = vcombine.low %v16391_v54, %v16393_v22 }
 0x203   : > { %20852 = vst [vmem:[#allocation94_spill] sm:$0xff] %v16404_v16  ;;  %20853 = vst [vmem:[#allocation95_spill] sm:$0xff] %v16411_v29  ;;  %v16415_v21 = vpop.f32.mrf.mxu0  ;;  %v6540_v15 = vshrl.u32 %v11034_v6, 16  ;;  %v6543_v37 = vshll.u32 %v11034_v6, 16  ;;  %v16427_v51 = vadd.f32 %v12717_v50, %v3074_v7  ;;  %v4746_v3 = vmul.u32 24, %v4745_v9 }
 0x204   : > { %20851 = vst [vmem:[#allocation93_spill] sm:$0xff] %v16400_v41  ;;  %vm16421_vm8 = vmand %vm5152_vm10, %vm5104_vm13  ;;  %v16434_v56 = vadd.s32 176, %v15712_v46  ;;  %v12656_v41 = vpop.f32.mrf.mxu1  ;;  %v6548_v32 = vshrl.u32 %v11035_v26, 16  ;;  %v6551_v22 = vshll.u32 %v11035_v26, 16  ;;  %v16442_v7 = vsub.s32 %v16196_v23, %v4768_v49 }
 0x205   : > { %v20855_v47 = vsel %vm16421_vm8, 4294967295, %v20854_v47  ;;  %20857 = vst [vmem:[#allocation97_spill] sm:$0xff] %v16427_v51  ;;  %v12720_v29 = vpop.f32.mrf.mxu0  ;;  %v6542_v63 = vrot.slane %v6540_v15, 3  ;;  %v6545_v42 = vrot.slane %v6543_v37, 4  ;;  %v3077_v6 = vadd.f32 %v12656_v41, %v15660_v8 }
 0x206   : > { %20856 = vst [vmem:[#allocation96_spill] sm:$0xff] %v20855_v47  ;;  %20858 = vst [vmem:[#allocation98_spill] sm:$0xff] %v16442_v7  ;;  %v4779_v9 = vmul.u32 24, %v4778_v11  ;;  %v2944_v45 = vpop.f32.mrf.mxu1  ;;  %v6550_v52 = vrot.slane %v6548_v32, 3  ;;  %v6553_v31 = vrot.slane %v6551_v22, 4  ;;  %v16445_v15 = vadd.s32 160, %v15712_v46 }
 0x207   : > { %v3389_v51 = vpop.f32.mrf.mxu0  ;;  %v6546_v35 = vor.u32 %v6545_v42, %v6542_v63  ;;  %v16447_v26 = vadd.f32 %v12720_v29, %v3077_v6  ;;  %v3075_v8 = vadd.f32 %v2944_v45, %v15663_v44  ;;  %v16451_v41 = vsub.s32 %v16232_v58, %v4746_v3 }
 0x208   : > { %v4756_v37 = vshrl.u32 %v16398_v34, 4  ;;  %v12657_v23 = vpop.f32.mrf.mxu1  ;;  %v16454_v11 = vor.u32 %v6553_v31, %v6550_v52  ;;  %v16457_v63 = vmul.u32.u64.low 2863311531, %v16434_v56  ;;  %v16458_v32 = vmul.u32.u64.high 2863311531, %v16434_v56, %v16457_v63 }
 0x209   : > { %20859 = vst [vmem:[#allocation99_spill] sm:$0xff] %v16447_v26  ;;  %20860 = vst [vmem:[#allocation100_spill] sm:$0xff] %v16451_v41  ;;  %v12721_v49 = vpop.f32.mrf.mxu0  ;;  %v16461_v42 = vadd.s32 184, %v15712_v46  ;;  %v3068_v29 = vadd.f32 %v16305_v20, %v15620_v60  ;;  %v16465_v44 = vadd.f32 %v3389_v51, %v3075_v8  ;;  %v3078_v58 = vadd.f32 %v12657_v23, %v15668_v10  ;;  %v20877_v26 = vld [vmem:[#allocation33_spill] sm:$0xff] }
 0x20a   : > { %20861 = vst [vmem:[#allocation101_spill] sm:$0xff] %v16454_v11  ;;  %v16469_v34 = vsub.s32 %v16265_v17, %v4779_v9  ;;  %v2947_v22 = vpop.f32.mrf.mxu1  ;;  %vm20864_vm9 = vsmask.f32 4352  ;;  %v4757_v45 = vmul.u32 24, %v4756_v37  ;;  %v16484_v60 = vadd.s32 168, %v15712_v46 }
 0x20b   : > { %20862 = vst [vmem:[#allocation102_spill] sm:$0xff] %v16465_v44  ;;  %v16471_v52 = vpop.f32.mrf.mxu0  ;;  %v6555_v31 = vsel %vm20864_vm9, %v6546_v35, %v16454_v11  ;;  %v16476_v3 = vmul.u32.u64.low 2863311531, %v16445_v15  ;;  %v16477_v6 = vmul.u32.u64.high 2863311531, %v16445_v15, %v16476_v3  ;;  %v16479_v63 = vadd.f32 %v12721_v49, %v3078_v58  ;;  %v20867_v35 = vld [vmem:[#allocation7_spill] sm:$0xff] }
 0x20c   : > { %20863 = vst [vmem:[#allocation103_spill] sm:$0xff] %v16469_v34  ;;  %12954 = vmatprep.mubr.bf16.mxu0 %v6555_v31  ;;  %v12660_v10 = vpop.f32.mrf.mxu1  ;;  %v16487_v17 = vadd.s32 24, %v16442_v7  ;;  %v16491_v51 = vmul.u32.u64.low 2863311531, %v16461_v42  ;;  %v16492_v9 = vmul.u32.u64.high 2863311531, %v16461_v42, %v16491_v51  ;;  %vm5155_vm13 = vcmp.lt.s32.totalorder %v16451_v41, 0 }
 0x20d   : > { %20865 = vst [vmem:[#allocation104_spill] sm:$0xff] %v16479_v63  ;;  %v12724_v20 = vpop.f32.mrf.mxu0  ;;  %v3081_v8 = vadd.f32 %v12660_v10, %v20867_v35  ;;  %v16497_v37 = vadd.s32 24, %v16451_v41  ;;  %vm5110_vm10 = vcmp.ne.s32.totalorder %v16469_v34, 0  ;;  %vm20869_vm8 = vcmp.ne.s32.totalorder %v16442_v7, 0  ;;  %v20876_v35 = vld [vmem:[#allocation8_spill] sm:$0xff] }
 0x20e   : > { %20866 = vst [vmem:[#allocation105_spill] sm:$0xff] %v16487_v17  ;;  %v2960_v23 = vpop.f32.mrf.mxu1  ;;  %vm20870_vm0 = vcmp.lt.s32.totalorder %v16442_v7, 0  ;;  %v20871_v58 = vmov 0  ;;  %vm5158_vm5 = vcmp.lt.s32.totalorder %v16469_v34, 0  ;;  %v16510_v31 = vsub.s32 %v16349_v5, %v4757_v45 }
 0x20f   : > { %20868 = vst [vmem:[#allocation7_spill] sm:$0xff] %v16497_v37  ;;  %v3405_v49 = vpop.f32.mrf.mxu0  ;;  %vm16504_vm9 = vmand %vm20870_vm0, %vm20869_vm8  ;;  %v4811_v3 = vshrl.u32 %v16458_v32, 4  ;;  %v4789_v10 = vshrl.u32 %v16477_v6, 4  ;;  %v16514_v51 = vadd.f32 %v12724_v20, %v3081_v8  ;;  %v3079_v50 = vadd.f32 %v2960_v23, %v20876_v35 }
 0x210   : > { %v20872_v58 = vsel %vm16504_vm9, 4294967295, %v20871_v58  ;;  %20874 = vst [vmem:[#allocation107_spill] sm:$0xff] %v16510_v31  ;;  %v16518_v63 = vmul.u32.u64.low 2863311531, %v16484_v60  ;;  %v16519_v11 = vmul.u32.u64.high 2863311531, %v16484_v60, %v16518_v63  ;;  %v16522_v44 = vadd.f32 %v16307_v38, %v3068_v29  ;;  %v12661_v5 = vpop.f32.mrf.mxu1  ;;  %v20884_v29 = vld [vmem:[#allocation13_spill] sm:$0xff] }
 0x211   : > { %20873 = vst [vmem:[#allocation106_spill] sm:$0xff] %v20872_v58  ;;  %20875 = vst [vmem:[#allocation108_spill] sm:$0xff] %v16514_v51  ;;  %v3072_v0 = vadd.f32 %v16413_v25, %v20877_v26  ;;  %v12725_v45 = vpop.f32.mrf.mxu0  ;;  %vm20878_vm0 = vcmp.ne.s32.totalorder %v16451_v41, 0  ;;  %v20879_v32 = vmov 0  ;;  %v16535_v6 = vadd.s32 24, %v16469_v34 }
 0x212   : > { %vm16530_vm8 = vmand %vm5155_vm13, %vm20878_vm0  ;;  %v4822_v63 = vshrl.u32 %v16492_v9, 4  ;;  %v16538_v38 = vadd.f32 %v3405_v49, %v3079_v50  ;;  %v3082_v20 = vadd.f32 %v12661_v5, %v20884_v29  ;;  %v20885_v26 = vmov 0  ;;  %v20888_v50 = vld [vmem:[#allocation6_spill] sm:$0xff]  ;;  %v2963_v23 = vpop.f32.mrf.mxu1 }
 0x213   : > { %v20880_v32 = vsel %vm16530_vm8, 4294967295, %v20879_v32  ;;  %20882 = vst [vmem:[#allocation33_spill] sm:$0xff] %v16535_v6  ;;  %vm16549_vm13 = vmand %vm5158_vm5, %vm5110_vm10  ;;  %v16554_v8 = vadd.s32 208, %v15712_v46  ;;  %v3076_v9 = vadd.f32 %v2947_v22, %v20888_v50  ;;  %v16557_v49 = vpop.f32.mrf.mxu0  ;;  %vm5108_vm0 = vcmp.ne.s32.totalorder %v16510_v31, 0  ;;  %v20899_v6 = vld [vmem:[#allocation59_spill] sm:$0xff] }
 0x214   : > { %20881 = vst [vmem:[#allocation8_spill] sm:$0xff] %v20880_v32  ;;  %20883 = vst [vmem:[#allocation109_spill] sm:$0xff] %v16538_v38  ;;  %v20886_v26 = vsel %vm16549_vm13, 4294967295, %v20885_v26  ;;  %vm5156_vm9 = vcmp.lt.s32.totalorder %v16510_v31, 0  ;;  %v4812_v35 = vmul.u32 24, %v4811_v3  ;;  %v16561_v5 = vadd.f32 %v12725_v45, %v3082_v20  ;;  %v12664_v50 = vpop.f32.mrf.mxu1 }
 0x215   : > { %20887 = vst [vmem:[#allocation13_spill] sm:$0xff] %v20886_v26  ;;  %v4790_v25 = vmul.u32 24, %v4789_v10  ;;  %v4800_v38 = vshrl.u32 %v16519_v11, 4  ;;  %v16569_v22 = vadd.f32 %v16415_v21, %v3072_v0  ;;  %v12728_v51 = vpop.f32.mrf.mxu0  ;;  %v16576_v45 = vadd.s32 24, %v16510_v31  ;;  %vm16579_vm5 = vmand %vm5156_vm9, %vm5108_vm0  ;;  %v20914_v31 = vld [vmem:[#allocation25_spill] sm:$0xff] }
 0x216   : > { %20889 = vst [vmem:[#allocation6_spill] sm:$0xff] %v16561_v5  ;;  %v4823_v20 = vmul.u32 24, %v4822_v63  ;;  %v20892_v5 = vld [vmem:[#allocation57_spill] sm:$0xff]  ;;  %v20893_v10 = vmov 0  ;;  %v16584_v21 = vadd.s32 192, %v15712_v46  ;;  %v16587_v0 = vadd.s32 216, %v15712_v46  ;;  %v2976_v29 = vpop.f32.mrf.mxu1 }
 0x217   : > { %20890 = vst [vmem:[#allocation110_spill] sm:$0xff] %v16569_v22  ;;  %20891 = vst [vmem:[#allocation111_spill] sm:$0xff] %v16576_v45  ;;  %v3085_v32 = vadd.f32 %v12664_v50, %v20892_v5  ;;  %v20894_v10 = vsel %vm16579_vm5, 4294967295, %v20893_v10  ;;  %v16590_v11 = vadd.s32 200, %v15712_v46  ;;  %v16593_v3 = vadd.f32 %v16471_v52, %v3076_v9  ;;  %v3421_v63 = vpop.f32.mrf.mxu0 }
 0x218   : > { %20895 = vst [vmem:[#allocation57_spill] sm:$0xff] %v20894_v10  ;;  %v16596_v5 = vsub.s32 %v16434_v56, %v4812_v35  ;;  %v16599_v50 = vmul.u32.u64.low 2863311531, %v16554_v8  ;;  %v16600_v22 = vmul.u32.u64.high 2863311531, %v16554_v8, %v16599_v50  ;;  %v3083_v26 = vadd.f32 %v2976_v29, %v20899_v6  ;;  %v12665_v7 = vpop.f32.mrf.mxu1  ;;  %v20903_v29 = vld [vmem:[#allocation15_spill] sm:$0xff] }
 0x219   : > { %20896 = vst [vmem:[#allocation112_spill] sm:$0xff] %v16593_v3  ;;  %v16602_v34 = vadd.f32 %v12728_v51, %v3085_v32  ;;  %v16606_v41 = vsub.s32 %v16445_v15, %v4790_v25  ;;  %v4801_v37 = vmul.u32 24, %v4800_v38  ;;  %v12729_v52 = vpop.f32.mrf.mxu0  ;;  %v16613_v9 = vsub.s32 %v16461_v42, %v4823_v20  ;;  %v20902_v15 = vld [vmem:[#allocation60_spill] sm:$0xff] }
 0x21a   : > { %20897 = vst [vmem:[#allocation113_spill] sm:$0xff] %v16596_v5  ;;  %v16616_v35 = vadd.s32 240, %v15712_v46  ;;  %v16619_v51 = vadd.s32 224, %v15712_v46  ;;  %v16621_v32 = vadd.f32 %v3421_v63, %v3083_v26  ;;  %v3086_v6 = vadd.f32 %v12665_v7, %v20902_v15  ;;  %v2979_v56 = vpop.f32.mrf.mxu1 }
 0x21b   : > { %20898 = vst [vmem:[#allocation114_spill] sm:$0xff] %v16602_v34  ;;  %20900 = vst [vmem:[#allocation59_spill] sm:$0xff] %v16613_v9  ;;  %v16625_v38 = vmul.u32.u64.low 2863311531, %v16584_v21  ;;  %v16626_v25 = vmul.u32.u64.high 2863311531, %v16584_v21, %v16625_v38  ;;  %v3080_v50 = vadd.f32 %v2963_v23, %v20903_v29  ;;  %v16629_v34 = vpop.f32.mrf.mxu0  ;;  %vm5113_vm10 = vcmp.ne.s32.totalorder %v16596_v5, 0 }
 0x21c   : > { %20901 = vst [vmem:[#allocation115_spill] sm:$0xff] %v16621_v32  ;;  %v16634_v42 = vadd.s32 24, %v16596_v5  ;;  %v16636_v26 = vadd.f32 %v12729_v52, %v3086_v6  ;;  %v16640_v7 = vsub.s32 %v16484_v60, %v4801_v37  ;;  %v4855_v20 = vshrl.u32 %v16600_v22, 4  ;;  %v12668_v23 = vpop.f32.mrf.mxu1  ;;  %v20907_v52 = vld [vmem:[#allocation20_spill] sm:$0xff] }
 0x21d   : > { %v12732_v63 = vpop.f32.mrf.mxu0  ;;  %v16645_v15 = vadd.s32 24, %v16606_v41  ;;  %v16648_v38 = vmul.u32.u64.low 2863311531, %v16587_v0  ;;  %v16649_v29 = vmul.u32.u64.high 2863311531, %v16587_v0, %v16648_v38  ;;  %v3089_v6 = vadd.f32 %v12668_v23, %v20907_v52 }
 0x21e   : > { %20904 = vst [vmem:[#allocation60_spill] sm:$0xff] %v16634_v42  ;;  %20905 = vst [vmem:[#allocation15_spill] sm:$0xff] %v16636_v26  ;;  %v16655_v60 = vadd.s32 24, %v16613_v9  ;;  %v2992_v37 = vpop.f32.mrf.mxu1  ;;  %vm20909_vm5 = vcmp.lt.s32.totalorder %v16596_v5, 0  ;;  %v20910_v26 = vmov 0  ;;  %v4856_v38 = vmul.u32 24, %v4855_v20 }
 0x21f   : > { %20906 = vst [vmem:[#allocation116_spill] sm:$0xff] %v16640_v7  ;;  %v3437_v22 = vpop.f32.mrf.mxu0  ;;  %vm16661_vm13 = vmand %vm20909_vm5, %vm5113_vm10  ;;  %v4833_v23 = vshrl.u32 %v16626_v25, 4  ;;  %v16667_v52 = vmul.u32.u64.low 2863311531, %v16590_v11  ;;  %v16668_v32 = vmul.u32.u64.high 2863311531, %v16590_v11, %v16667_v52  ;;  %v16670_v3 = vadd.f32 %v12732_v63, %v3089_v6  ;;  %v20933_v42 = vld [vmem:[#allocation34_spill] sm:$0xff] }
 0x220   : > { %20908 = vst [vmem:[#allocation20_spill] sm:$0xff] %v16655_v60  ;;  %v20911_v26 = vsel %vm16661_vm13, 4294967295, %v20910_v26  ;;  %v3087_v45 = vadd.f32 %v2992_v37, %v20914_v31  ;;  %vm5112_vm9 = vcmp.ne.s32.totalorder %v16640_v7, 0  ;;  %v12669_v10 = vpop.f32.mrf.mxu1  ;;  %vm20915_vm5 = vcmp.ne.s32.totalorder %v16606_v41, 0  ;;  %v20920_v52 = vld [vmem:[#allocation35_spill] sm:$0xff] }
 0x221   : > { %20912 = vst [vmem:[#allocation117_spill] sm:$0xff] %v20911_v26  ;;  %20913 = vst [vmem:[#allocation118_spill] sm:$0xff] %v16670_v3  ;;  %v12733_v17 = vpop.f32.mrf.mxu0  ;;  %vm20916_vm10 = vcmp.lt.s32.totalorder %v16606_v41, 0  ;;  %v20917_v25 = vmov 0  ;;  %v4834_v20 = vmul.u32 24, %v4833_v23  ;;  %v4866_v63 = vshrl.u32 %v16649_v29, 4 }
 0x222   : > { %vm16679_vm8 = vmand %vm20916_vm10, %vm20915_vm5  ;;  %v16685_v6 = vmul.u32.u64.low 2863311531, %v16616_v35  ;;  %v16686_v31 = vmul.u32.u64.high 2863311531, %v16616_v35, %v16685_v6  ;;  %v16688_v37 = vadd.f32 %v3437_v22, %v3087_v45  ;;  %v3090_v3 = vadd.f32 %v12669_v10, %v20920_v52  ;;  %v2995_v10 = vpop.f32.mrf.mxu1 }
 0x223   : > { %v20918_v25 = vsel %vm16679_vm8, 4294967295, %v20917_v25  ;;  %vm20921_vm5 = vcmp.ne.s32.totalorder %v16613_v9, 0  ;;  %vm20922_vm10 = vcmp.lt.s32.totalorder %v16613_v9, 0  ;;  %v20923_v23 = vmov 0  ;;  %v16709_v22 = vpop.f32.mrf.mxu0 }
 0x224   : > { %20919 = vst [vmem:[#allocation25_spill] sm:$0xff] %v16688_v37  ;;  %vm16699_vm0 = vmand %vm20922_vm10, %vm20921_vm5  ;;  %v16704_v29 = vadd.s32 24, %v16640_v7  ;;  %v16707_v45 = vadd.f32 %v16557_v49, %v3080_v50  ;;  %vm20927_vm13 = vcmp.lt.s32.totalorder %v16640_v7, 0  ;;  %v20928_v6 = vmov 0  ;;  %v12672_v16 = vpop.f32.mrf.mxu1 }
 0x225   : > { %v20924_v23 = vsel %vm16699_vm0, 4294967295, %v20923_v23  ;;  %vm16715_vm6 = vmand %vm20927_vm13, %vm5112_vm9  ;;  %v16720_v52 = vsub.s32 %v16554_v8, %v4856_v38  ;;  %v4867_v58 = vmul.u32 24, %v4866_v63  ;;  %v4844_v37 = vshrl.u32 %v16668_v32, 4  ;;  %v12736_v47 = vpop.f32.mrf.mxu0  ;;  %v20935_v32 = vld [vmem:[#allocation61_spill] sm:$0xff] }
 0x226   : > { %20925 = vst [vmem:[#allocation35_spill] sm:$0xff] %v16704_v29  ;;  %20926 = vst [vmem:[#allocation119_spill] sm:$0xff] %v16707_v45  ;;  %v20929_v6 = vsel %vm16715_vm6, 4294967295, %v20928_v6  ;;  %v16723_v5 = vadd.f32 %v12733_v17, %v3090_v3  ;;  %v16730_v50 = vmul.u32.u64.low 2863311531, %v16619_v51  ;;  %v16731_v45 = vmul.u32.u64.high 2863311531, %v16619_v51, %v16730_v50 }
 0x227   : > { %20930 = vst [vmem:[#allocation120_spill] sm:$0xff] %v20929_v6  ;;  %20931 = vst [vmem:[#allocation121_spill] sm:$0xff] %v16720_v52  ;;  %v3084_v26 = vadd.f32 %v2979_v56, %v20933_v42  ;;  %v16739_v17 = vsub.s32 %v16584_v21, %v4834_v20  ;;  %v16742_v3 = vadd.s32 248, %v15712_v46  ;;  %v3093_v38 = vadd.f32 %v12672_v16, %v20935_v32  ;;  %v3008_v50 = vpop.f32.mrf.mxu1  ;;  %v3453_v8 = vpop.f32.mrf.mxu0  ;;  %v20937_v20 = vld [vmem:[#allocation17_spill] sm:$0xff]  ;;  %v20939_v56 = vld [vmem:[#allocation31_spill] sm:$0xff] }
 0x228   : > { %20932 = vst [vmem:[#allocation122_spill] sm:$0xff] %v16723_v5  ;;  %v16750_v42 = vsub.s32 %v16587_v0, %v4867_v58  ;;  %v16753_v63 = vadd.s32 232, %v15712_v46  ;;  %v4845_v21 = vmul.u32 24, %v4844_v37  ;;  %v4899_v16 = vshrl.u32 %v16686_v31, 4 }
 0x229   : > { %20934 = vst [vmem:[#allocation34_spill] sm:$0xff] %v16739_v17  ;;  %v3088_v32 = vadd.f32 %v2995_v10, %v20937_v20  ;;  %v16759_v49 = vadd.f32 %v12736_v47, %v3093_v38  ;;  %v3091_v5 = vadd.f32 %v3008_v50, %v20939_v56  ;;  %v16763_v58 = vadd.s32 24, %v16720_v52  ;;  %v12673_v0 = vpop.f32.mrf.mxu1  ;;  %v12737_v7 = vpop.f32.mrf.mxu0  ;;  %v20943_v47 = vld [vmem:[#allocation22_spill] sm:$0xff] }
 0x22a   : > { %20936 = vst [vmem:[#allocation61_spill] sm:$0xff] %v16750_v42  ;;  %v16769_v37 = vsub.s32 %v16590_v11, %v4845_v21  ;;  %v3094_v10 = vadd.f32 %v12673_v0, %v20943_v47  ;;  %v4877_v38 = vshrl.u32 %v16731_v45, 4  ;;  %vm20944_vm6 = vcmp.ne.s32.totalorder %v16720_v52, 0 }
 0x22b   : > { %20938 = vst [vmem:[#allocation17_spill] sm:$0xff] %v16759_v49  ;;  %20940 = vst [vmem:[#allocation31_spill] sm:$0xff] %v16763_v58  ;;  %v16771_v31 = vadd.f32 %v3453_v8, %v3091_v5  ;;  %v3011_v56 = vpop.f32.mrf.mxu1  ;;  %v3456_v50 = vpop.f32.mrf.mxu0  ;;  %vm20945_vm5 = vcmp.lt.s32.totalorder %v16720_v52, 0  ;;  %v20946_v20 = vmov 0  ;;  %v16785_v11 = vadd.s32 24, %v16739_v17  ;;  %v20972_v58 = vld [vmem:[#allocation54_spill] sm:$0xff] }
 0x22c   : > { %20941 = vst [vmem:[#allocation123_spill] sm:$0xff] %v16769_v37  ;;  %vm16780_vm10 = vmand %vm20945_vm5, %vm20944_vm6  ;;  %v4900_v5 = vmul.u32 24, %v4899_v16  ;;  %v16790_v45 = vadd.f32 %v16629_v34, %v3084_v26  ;;  %v16792_v8 = vadd.f32 %v12737_v7, %v3094_v10  ;;  %vm20952_vm13 = vcmp.ne.s32.totalorder %v16739_v17, 0 }
 0x22d   : > { %20942 = vst [vmem:[#allocation124_spill] sm:$0xff] %v16771_v31  ;;  %v20947_v20 = vsel %vm16780_vm10, 4294967295, %v20946_v20  ;;  %20949 = vst [vmem:[#allocation125_spill] sm:$0xff] %v16785_v11  ;;  %vm20953_vm6 = vcmp.lt.s32.totalorder %v16739_v17, 0  ;;  %v20954_v21 = vmov 0  ;;  %v16803_v0 = vadd.s32 24, %v16750_v42  ;;  %v12676_v16 = vpop.f32.mrf.mxu1  ;;  %v12740_v31 = vpop.f32.mrf.mxu0 }
 0x22e   : > { %20948 = vst [vmem:[#allocation22_spill] sm:$0xff] %v20947_v20  ;;  %20950 = vst [vmem:[#allocation126_spill] sm:$0xff] %v16790_v45  ;;  %v16806_v47 = vadd.s32 272, %v15712_v46  ;;  %vm20957_vm0 = vcmp.ne.s32.totalorder %v16750_v42, 0  ;;  %vm20958_vm9 = vcmp.lt.s32.totalorder %v16750_v42, 0  ;;  %v20959_v34 = vmov 0 }
 0x22f   : > { %20951 = vst [vmem:[#allocation127_spill] sm:$0xff] %v16792_v8  ;;  %vm16798_vm5 = vmand %vm20953_vm6, %vm20952_vm13  ;;  %v16817_v26 = vadd.s32 24, %v16769_v37  ;;  %v4878_v7 = vmul.u32 24, %v4877_v38  ;;  %v16820_v10 = vmul.u32.u64.low 2863311531, %v16742_v3  ;;  %v16821_v8 = vmul.u32.u64.high 2863311531, %v16742_v3, %v16820_v10  ;;  %v20963_v45 = vld [vmem:[#allocation36_spill] sm:$0xff] }
 0x230   : > { %v20955_v21 = vsel %vm16798_vm5, 4294967295, %v20954_v21  ;;  %20956 = vst [vmem:[#allocation128_spill] sm:$0xff] %v16803_v0  ;;  %vm16812_vm8 = vmand %vm20958_vm9, %vm20957_vm0  ;;  %v3092_v49 = vadd.f32 %v3011_v56, %v16036_v18  ;;  %v3097_v29 = vadd.f32 %v12676_v16, %v20963_v45  ;;  %vm20964_vm0 = vcmp.ne.s32.totalorder %v16769_v37, 0  ;;  %v3024_v56 = vpop.f32.mrf.mxu1  ;;  %v3469_v45 = vpop.f32.mrf.mxu0 }
 0x231   : > { %v20960_v34 = vsel %vm16812_vm8, 4294967295, %v20959_v34  ;;  %20962 = vst [vmem:[#allocation130_spill] sm:$0xff] %v16817_v26  ;;  %vm20965_vm13 = vcmp.lt.s32.totalorder %v16769_v37, 0  ;;  %v20966_v9 = vmov 0  ;;  %v16838_v38 = vadd.s32 256, %v15712_v46 }
 0x232   : > { %20961 = vst [vmem:[#allocation129_spill] sm:$0xff] %v20960_v34  ;;  %vm16833_vm9 = vmand %vm20965_vm13, %vm20964_vm0  ;;  %v16841_v18 = vadd.f32 %v16709_v22, %v3088_v32  ;;  %v16848_v10 = vsub.s32 %v16616_v35, %v4900_v5  ;;  %v16851_v6 = vsub.s32 %v16619_v51, %v4878_v7  ;;  %v16853_v52 = vadd.f32 %v12740_v31, %v3097_v29  ;;  %v12741_v60 = vpop.f32.mrf.mxu0  ;;  %v20975_v5 = vld [vmem:[#allocation14_spill] sm:$0xff] }
 0x233   : > { %v20967_v9 = vsel %vm16833_vm9, 4294967295, %v20966_v9  ;;  %v3095_v20 = vadd.f32 %v3024_v56, %v20972_v58  ;;  %v16857_v22 = vmul.u32.u64.low 2863311531, %v16753_v63  ;;  %v16858_v32 = vmul.u32.u64.high 2863311531, %v16753_v63, %v16857_v22 }
 0x234   : > { %20968 = vst [vmem:[#allocation36_spill] sm:$0xff] %v20967_v9  ;;  %20969 = vst [vmem:[#allocation131_spill] sm:$0xff] %v16841_v18  ;;  %v12677_v18 = vpop.f32.mrf.mxu1  ;;  %v16869_v51 = vadd.s32 280, %v15712_v46  ;;  %v16872_v29 = vadd.s32 264, %v15712_v46  ;;  %v16874_v58 = vadd.f32 %v3456_v50, %v3092_v49  ;;  %v4910_v56 = vshrl.u32 %v16821_v8, 4  ;;  %v3472_v16 = vpop.f32.mrf.mxu0  ;;  %v20983_v9 = vld [vmem:[#allocation11_spill] sm:$0xff] }
 0x235   : > { %20970 = vst [vmem:[#allocation132_spill] sm:$0xff] %v16851_v6  ;;  %20971 = vst [vmem:[#allocation133_spill] sm:$0xff] %v16853_v52  ;;  %v16876_v31 = vadd.f32 %v3469_v45, %v3095_v20  ;;  %v3098_v7 = vadd.f32 %v12677_v18, %v20975_v5  ;;  %vm5121_vm6 = vcmp.ne.s32.totalorder %v16848_v10, 0  ;;  %vm5169_vm0 = vcmp.lt.s32.totalorder %v16848_v10, 0 }
 0x236   : > { %20973 = vst [vmem:[#allocation54_spill] sm:$0xff] %v16874_v58  ;;  %v3027_v22 = vpop.f32.mrf.mxu1  ;;  %v16883_v35 = vmul.u32.u64.low 2863311531, %v16806_v47  ;;  %v16884_v52 = vmul.u32.u64.high 2863311531, %v16806_v47, %v16883_v35  ;;  %v16889_v49 = vadd.s32 24, %v16848_v10  ;;  %vm5119_vm13 = vcmp.ne.s32.totalorder %v16851_v6, 0  ;;  %v12744_v8 = vpop.f32.mrf.mxu0  ;;  %vm16912_vm9 = vmand %vm5169_vm0, %vm5121_vm6 }
 0x237   : > { %20974 = vst [vmem:[#allocation134_spill] sm:$0xff] %v16876_v31  ;;  %v16886_v37 = vadd.f32 %v12741_v60, %v3098_v7  ;;  %v4911_v50 = vmul.u32 24, %v4910_v56  ;;  %v4888_v18 = vshrl.u32 %v16858_v32, 4  ;;  %v20977_v31 = vld [vmem:[#allocation21_spill] sm:$0xff]  ;;  %v16900_v60 = vadd.s32 24, %v16851_v6 }
 0x238   : > { %v12680_v20 = vpop.f32.mrf.mxu1  ;;  %v16895_v45 = vmul.u32.u64.low 2863311531, %v16838_v38  ;;  %v16896_v5 = vmul.u32.u64.high 2863311531, %v16838_v38, %v16895_v45  ;;  %v16906_v56 = vadd.s32 304, %v15712_v46  ;;  %v3485_v58 = vpop.f32.mrf.mxu0  ;;  %v20980_v32 = vmov 0 }
 0x239   : > { %20976 = vst [vmem:[#allocation14_spill] sm:$0xff] %v16886_v37  ;;  %v3101_v35 = vadd.f32 %v12680_v20, %v20977_v31  ;;  %20978 = vst [vmem:[#allocation21_spill] sm:$0xff] %v16900_v60  ;;  %v16903_v7 = vsub.s32 %v16742_v3, %v4911_v50  ;;  %v20981_v32 = vsel %vm16912_vm9, 4294967295, %v20980_v32  ;;  %v4889_v31 = vmul.u32 24, %v4888_v18 }
 0x23a   : > { %v3040_v37 = vpop.f32.mrf.mxu1  ;;  %v4943_v20 = vshrl.u32 %v16884_v52, 4  ;;  %v16918_v45 = vmul.u32.u64.low 2863311531, %v16869_v51  ;;  %v16919_v3 = vmul.u32.u64.high 2863311531, %v16869_v51, %v16918_v45  ;;  %v3096_v50 = vadd.f32 %v3027_v22, %v16176_v12  ;;  %v12745_v18 = vpop.f32.mrf.mxu0 }
 0x23b   : > { %20979 = vst [vmem:[#allocation135_spill] sm:$0xff] %v16903_v7  ;;  %v16922_v26 = vadd.f32 %v12744_v8, %v3101_v35  ;;  %v3099_v42 = vadd.f32 %v3040_v37, %v20983_v9  ;;  %vm20984_vm6 = vcmp.lt.s32.totalorder %v16851_v6, 0  ;;  %v20985_v0 = vmov 0  ;;  %v20990_v8 = vld [vmem:[#allocation26_spill] sm:$0xff]  ;;  %v21000_v6 = vld [vmem:[#allocation4_spill] sm:$0xff] }
 0x23c   : > { %vm16929_vm0 = vmand %vm20984_vm6, %vm5119_vm13  ;;  %vm5122_vm8 = vcmp.ne.s32.totalorder %v16903_v7, 0  ;;  %v12681_v52 = vpop.f32.mrf.mxu1  ;;  %vm5170_vm5 = vcmp.lt.s32.totalorder %v16903_v7, 0  ;;  %v16936_v12 = vsub.s32 %v16753_v63, %v4889_v31  ;;  %v4944_v22 = vmul.u32 24, %v4943_v20  ;;  %v3488_v17 = vpop.f32.mrf.mxu0 }
 0x23d   : > { %20982 = vst [vmem:[#allocation136_spill] sm:$0xff] %v16922_v26  ;;  %v20986_v0 = vsel %vm16929_vm0, 4294967295, %v20985_v0  ;;  %v4921_v9 = vshrl.u32 %v16896_v5, 4  ;;  %v16939_v37 = vadd.f32 %v3485_v58, %v3099_v42  ;;  %v3102_v35 = vadd.f32 %v12681_v52, %v20990_v8  ;;  %vm16971_vm13 = vmand %vm5170_vm5, %vm5122_vm8 }
 0x23e   : > { %20987 = vst [vmem:[#allocation11_spill] sm:$0xff] %v20986_v0  ;;  %20988 = vst [vmem:[#allocation137_spill] sm:$0xff] %v16936_v12  ;;  %v16943_v45 = vmul.u32.u64.low 2863311531, %v16872_v29  ;;  %v16944_v26 = vmul.u32.u64.high 2863311531, %v16872_v29, %v16943_v45  ;;  %v3043_v34 = vpop.f32.mrf.mxu1  ;;  %vm5168_vm6 = vcmp.lt.s32.totalorder %v16936_v12, 0  ;;  %v16959_v58 = vadd.s32 24, %v16903_v7  ;;  %v12828_v52 = vpop.f32.mrf.mxu0 }
 0x23f   : > { %20989 = vst [vmem:[#allocation138_spill] sm:$0xff] %v16939_v37  ;;  %v16956_v42 = vadd.f32 %v12745_v18, %v3102_v35  ;;  %v16962_v5 = vsub.s32 %v16806_v47, %v4944_v22  ;;  %v16965_v31 = vadd.s32 288, %v15712_v46  ;;  %v20993_v8 = vmov 0  ;;  %v20999_v37 = vld [vmem:[#allocation3_spill] sm:$0xff] }
 0x240   : > { %20992 = vst [vmem:[#allocation139_spill] sm:$0xff] %v16959_v58  ;;  %v12764_v20 = vpop.f32.mrf.mxu1  ;;  %v20994_v8 = vsel %vm16971_vm13, 4294967295, %v20993_v8  ;;  %v16976_v18 = vadd.s32 24, %v16936_v12  ;;  %v4922_v35 = vmul.u32 24, %v4921_v9  ;;  %v4954_v47 = vshrl.u32 %v16919_v3, 4  ;;  %v21010_v9 = vld [vmem:[#allocation55_spill] sm:$0xff] }
 0x241   : > { %20991 = vst [vmem:[#allocation26_spill] sm:$0xff] %v16956_v42  ;;  %v16981_v22 = vcombine.low %v16377_v48, %v16391_v54  ;;  %v16983_v45 = vadd.f32 %v3472_v16, %v3096_v50  ;;  %v3100_v63 = vadd.f32 %v3043_v34, %v16185_v59  ;;  %v3941_v11 = vadd.f32 %v12764_v20, %v16017_v1  ;;  %v17010_v1 = vld [vmem:[%s19942_s2] ss:$0 sm:$0xff] }
 0x242   : > { %20995 = vst [vmem:[#allocation140_spill] sm:$0xff] %v16976_v18  ;;  %v21001_v60 = vsel %vm15887_vm4, %v20999_v37, %v21000_v6  ;;  %vm21004_vm5 = vcmp.ne.s32.totalorder %v16936_v12, 0  ;;  %v21005_v48 = vmov 0  ;;  %v17005_v59 = vadd.s32 312, %v15712_v46  ;;  %v3748_v54 = vpop.f32.mrf.mxu1  ;;  %v4117_v6 = vpop.f32.mrf.mxu0  ;;  %v21011_v37 = vld [vmem:[#allocation32_spill] sm:$0xff] }
 0x243   : > { %20996 = vst [vmem:[#allocation141_spill] sm:$0xff] %v16981_v22  ;;  %20997 = vst [vmem:[#allocation142_spill] sm:$0xff] %v16983_v45  ;;  %vm16992_vm8 = vcmp.lt.s32.totalorder %v21001_v60, 16  ;;  %v17014_v34 = vsub.s32 %v16838_v38, %v4922_v35  ;;  %v4955_v16 = vmul.u32 24, %v4954_v47  ;;  %v17017_v60 = vadd.s32 296, %v15712_v46  ;;  %v21017_v47 = vld [vmem:[#allocation28_spill] sm:$0xff] }
 0x244   : > { %vm17000_vm0 = vmand %vm5168_vm6, %vm21004_vm5  ;;  %21008 = vst [vmem:[#allocation3_spill] sm:$0xff] %v17005_v59  ;;  %v4310_v3 = vadd.f32 %v12828_v52, %v3941_v11  ;;  %v3939_v50 = vadd.f32 %v3748_v54, %v16045_v53  ;;  %v21012_v42 = vsel %vm15973_vm12, %v21010_v9, %v21011_v37  ;;  %v4932_v38 = vshrl.u32 %v16944_v26, 4  ;;  %v17034_v35 = vld [vmem:[%s19943_s3] ss:$0 sm:$0xff]  ;;  %v12765_v11 = vpop.f32.mrf.mxu1  ;;  %v12829_v53 = vpop.f32.mrf.mxu0  ;;  %v21024_v26 = vld [vmem:[#allocation19_spill] sm:$0xff] }
 0x245   : > { %v21006_v48 = vsel %vm17000_vm0, 4294967295, %v21005_v48  ;;  %21009 = vst [vmem:[#allocation4_spill] sm:$0xff] %v17017_v60  ;;  %vm17025_vm6 = vcmp.lt.s32.totalorder %v21012_v42, 16  ;;  %v21018_v54 = vsel %vm15991_vm14, %v21016_v55, %v21017_v47  ;;  %v17055_v42 = vadd.f32 %v3488_v17, %v3100_v63  ;;  %v21022_v47 = vld [vmem:[#allocation29_spill] sm:$0xff]  ;;  %v21025_v59 = vld [vmem:[#allocation56_spill] sm:$0xff] }
 0x246   : > { %21007 = vst [vmem:[#allocation5_spill] sm:$0xff] %v21006_v48  ;;  %vm17041_vm12 = vcmp.lt.s32.totalorder %v21018_v54, 16  ;;  %v4365_v52 = vmul.f32 %v17010_v1, %v4310_v3  ;;  %v4308_v55 = vadd.f32 %v4117_v6, %v3939_v50  ;;  %v3942_v54 = vadd.f32 %v12765_v11, %v21022_v47  ;;  %v3751_v22 = vpop.f32.mrf.mxu1  ;;  %v4120_v45 = vpop.f32.mrf.mxu0  ;;  %v21081_v48 = vld [vmem:[#allocation80_spill] sm:$0xff] }
 0x247   : > { %21021 = vst [vmem:[#allocation55_spill] sm:$0xff] %v17055_v42  ;;  %v21026_v7 = vsel %vm16005_vm15, %v21024_v26, %v21025_v59  ;;  %vm21029_vm4 = vcmp.ne.s32.totalorder %v16962_v5, 0  ;;  %vm21030_vm5 = vcmp.lt.s32.totalorder %v16962_v5, 0  ;;  %v17077_v63 = vadd.s32 24, %v16962_v5  ;;  %v13852_v37 = vld [vmem:[%s19944_s4 + $0x138] sm:$0xff]  }
 0x248   : > { %vm17064_vm14 = vcmp.lt.s32.totalorder %v21026_v7, 16  ;;  %vm17072_vm0 = vmand %vm21030_vm5, %vm21029_vm4  ;;  %v17080_v6 = vadd.s32 24, %v17014_v34  ;;  %v17083_v59 = vsub.s32 %v16869_v51, %v4955_v16  ;;  %v4933_v7 = vmul.u32 24, %v4932_v38  ;;  %v12768_v47 = vpop.f32.mrf.mxu1  ;;  %v12832_v42 = vpop.f32.mrf.mxu0 }
 0x249   : > { %v4420_v60 = vadd.f32 %v17034_v35, %v4365_v52  ;;  %v4363_v3 = vmul.f32 %v17010_v1, %v4308_v55  ;;  %v4311_v50 = vadd.f32 %v12829_v53, %v3942_v54  ;;  %v3940_v11 = vadd.f32 %v3751_v22, %v16327_v13  ;;  %v21041_v55 = vld [vmem:[#allocation67_spill] sm:$0xff] }
 0x24a   : > { %vm21033_vm15 = vcmp.ne.s32.totalorder %v17014_v34, 0  ;;  %vm21034_vm4 = vcmp.lt.s32.totalorder %v17014_v34, 0  ;;  %v21035_v26 = vmov 0  ;;  %vm5126_vm13 = vcmp.ne.s32.totalorder %v17083_v59, 0  ;;  %v3764_v12 = vpop.f32.mrf.mxu1  ;;  %v4133_v18 = vpop.f32.mrf.mxu0 }
 0x24b   : > { %vm17092_vm5 = vmand %vm21034_vm4, %vm21033_vm15  ;;  %vm5174_vm9 = vcmp.lt.s32.totalorder %v17083_v59, 0  ;;  %v17099_v51 = vadd.s32 24, %v17083_v59  ;;  %v17102_v16 = vadd.s32 336, %v15712_v46  ;;  %v4468_v13 = vmax.f32 %v4420_v60, 0.0 }
 0x24c   : > { %v21036_v26 = vsel %vm17092_vm5, 4294967295, %v21035_v26  ;;  %v4418_v22 = vadd.f32 %v17034_v35, %v4363_v3  ;;  %v4366_v38 = vmul.f32 %v17010_v1, %v4311_v50  ;;  %v4309_v53 = vadd.f32 %v4120_v45, %v3940_v11  ;;  %vm17106_vm15 = vmand %vm5174_vm9, %vm5126_vm13  ;;  %v12769_v60 = vpop.f32.mrf.mxu1 }
 0x24d   : > { %21037 = vst [vmem:[#allocation32_spill] sm:$0xff] %v21036_v26  ;;  %21038 = vst [vmem:[#allocation62_spill] sm:$0xff] %v17102_v16  ;;  %v3945_v54 = vadd.f32 %v12768_v47, %v21041_v55  ;;  %v17120_v45 = vsub.s32 %v16872_v29, %v4933_v7  ;;  %v21043_v55 = vld [vmem:[#allocation63_spill] sm:$0xff]  ;;  %v21044_v16 = vld [vmem:[#allocation58_spill] sm:$0xff]  ;;  %v17134_v26 = vadd.s32 320, %v15712_v46  ;;  %v5477_v29 = vsel %vm16992_vm8, %v4468_v13, 0.0 }
 0x24e   : > { %v4466_v3 = vmax.f32 %v4418_v22, 0.0  ;;  %v4421_v50 = vadd.f32 %v17034_v35, %v4366_v38  ;;  %v4364_v11 = vmul.f32 %v17010_v1, %v4309_v53  ;;  %v21045_v58 = vsel %vm16028_vm2, %v21043_v55, %v21044_v16  ;;  %v21048_v22 = vld [vmem:[#allocation68_spill] sm:$0xff]  ;;  %v12833_v53 = vpop.f32.mrf.mxu0 }
 0x24f   : > { %vm17129_vm9 = vcmp.lt.s32.totalorder %v21045_v58, 16  ;;  %v4314_v7 = vadd.f32 %v12832_v42, %v3945_v54  ;;  %v3943_v38 = vadd.f32 %v3764_v12, %v21048_v22  ;;  %v21049_v16 = vsel %vm16133_vm1, %v16093_v61, %v16053_v40  ;;  %v21055_v40 = vld [vmem:[#allocation69_spill] sm:$0xff] }
 0x250   : > { %vm17144_vm2 = vcmp.lt.s32.totalorder %v21049_v16, 16  ;;  %v4469_v13 = vmax.f32 %v4421_v50, 0.0  ;;  %v4419_v42 = vadd.f32 %v17034_v35, %v4364_v11  ;;  %vm17158_vm13 = vcmp.lt.s32.totalorder %v21052_v27, 16  ;;  %v3767_v11 = vpop.f32.mrf.mxu1  ;;  %v4136_v55 = vpop.f32.mrf.mxu0 }
 0x251   : > { %v3946_v61 = vadd.f32 %v12769_v60, %v21055_v40  ;;  %vm5124_vm1 = vcmp.ne.s32.totalorder %v17120_v45, 0  ;;  %v5475_v54 = vsel %vm17025_vm6, %v4466_v3, 0.0  ;;  %v4369_v50 = vmul.f32 %v17010_v1, %v4314_v7 }
 0x252   : > { %v4312_v47 = vadd.f32 %v4133_v18, %v3943_v38  ;;  %vm17172_vm11 = vcmp.lt.s32.totalorder %v21056_v19, 16  ;;  %vm5172_vm8 = vcmp.lt.s32.totalorder %v17120_v45, 0  ;;  %v5478_v57 = vsel %vm17041_vm12, %v4469_v13, 0.0  ;;  %v12772_v22 = vpop.f32.mrf.mxu1  ;;  %v12836_v62 = vpop.f32.mrf.mxu0 }
 0x253   : > { %v4467_v20 = vmax.f32 %v4419_v42, 0.0  ;;  %v4315_v60 = vadd.f32 %v12833_v53, %v3946_v61  ;;  %v3944_v18 = vadd.f32 %v3767_v11, %v16339_v30  ;;  %v11411_v3 = vpack.c.bf16 %v5478_v57, %v5477_v29  ;;  %v21060_v30 = vld [vmem:[#allocation70_spill] sm:$0xff]  ;;  %vm17202_vm12 = vmand %vm5172_vm8, %vm5124_vm1 }
 0x254   : > { %v4424_v7 = vadd.f32 %v17034_v35, %v4369_v50  ;;  %v4367_v2 = vmul.f32 %v17010_v1, %v4312_v47  ;;  %v17183_v28 = vadd.s32 24, %v17120_v45  ;;  %v3949_v53 = vadd.f32 %v12772_v22, %v16198_v24  ;;  %v21061_v29 = vld [vmem:[#allocation66_spill] sm:$0xff]  ;;  %v3780_v40 = vpop.f32.mrf.mxu1  ;;  %v4149_v61 = vpop.f32.mrf.mxu0  ;;  %v21068_v50 = vld [vmem:[#allocation76_spill] sm:$0xff]  ;;  %v21069_v47 = vld [vmem:[#allocation71_spill] sm:$0xff] }
 0x255   : > { %v5476_v38 = vsel %vm17064_vm14, %v4467_v20, 0.0  ;;  %v4370_v9 = vmul.f32 %v17010_v1, %v4315_v60  ;;  %v4313_v16 = vadd.f32 %v4136_v55, %v3944_v18  ;;  %v21062_v13 = vsel %vm21059_vm3, %v21060_v30, %v21061_v29  ;;  %11644 = vst [vmem:[#allocation2 + $0x20] sm:$0xff] %v11411_v3   ;;  %v21073_v60 = vld [vmem:[#allocation75_spill] sm:$0xff] }
 0x256   : > { %vm17194_vm6 = vcmp.lt.s32.totalorder %v21062_v13, 16  ;;  %v11406_v27 = vpack.c.bf16 %v5476_v38, %v5475_v54  ;;  %v4472_v24 = vmax.f32 %v4424_v7, 0.0  ;;  %v4422_v33 = vadd.f32 %v17034_v35, %v4367_v2  ;;  %v12837_v7 = vpop.f32.mrf.mxu0  ;;  %v21124_v13 = vld [vmem:[#allocation98_spill] sm:$0xff]  ;;  %v21147_v2 = vld [vmem:[#allocation57_spill] sm:$0xff] }
 0x257   : > { %vm21067_vm14 = vnez %v20822_v36  ;;  %v17217_v19 = vadd.s32 344, %v15712_v46  ;;  %v4425_v57 = vadd.f32 %v17034_v35, %v4370_v9  ;;  %v4368_v54 = vmul.f32 %v17010_v1, %v4313_v16  ;;  %v12773_v36 = vpop.f32.mrf.mxu1  ;;  %v21132_v46 = vld [vmem:[#allocation7_spill] sm:$0xff] }
 0x258   : > { %v21070_v11 = vsel %vm21067_vm14, %v21068_v50, %v21069_v47  ;;  %v4318_v20 = vadd.f32 %v12836_v62, %v3949_v53  ;;  %v3947_v18 = vadd.f32 %v3780_v40, %v21073_v60  ;;  %11643 = vst [vmem:[#allocation2 + $0x18] sm:$0xff] %v11406_v27   ;;  %v4470_v3 = vmax.f32 %v4422_v33, 0.0  ;;  %v21074_v53 = vld [vmem:[#allocation72_spill] sm:$0xff]  ;;  %v21078_v33 = vld [vmem:[#allocation77_spill] sm:$0xff]  ;;  %v4152_v47 = vpop.f32.mrf.mxu0 }
 0x259   : > { %vm17212_vm4 = vcmp.lt.s32.totalorder %v21070_v11, 16  ;;  %v17227_v22 = vmul.u32.u64.low 2863311531, %v16906_v56  ;;  %v17228_v38 = vmul.u32.u64.high 2863311531, %v16906_v56, %v17227_v22  ;;  %v4473_v30 = vmax.f32 %v4425_v57, 0.0  ;;  %v3783_v50 = vpop.f32.mrf.mxu1 }
 0x25a   : > { %v4423_v9 = vadd.f32 %v17034_v35, %v4368_v54  ;;  %v4373_v62 = vmul.f32 %v17010_v1, %v4318_v20  ;;  %v4316_v16 = vadd.f32 %v4149_v61, %v3947_v18  ;;  %v21075_v29 = vsel %vm16280_vm7, %v16242_v43, %v21074_v53  ;;  %v21079_v20 = vld [vmem:[#allocation83_spill] sm:$0xff]  ;;  %v21133_v18 = vld [vmem:[#allocation100_spill] sm:$0xff] }
 0x25b   : > { %vm17237_vm1 = vcmp.lt.s32.totalorder %v21075_v29, 16  ;;  %v5481_v27 = vsel %vm17129_vm9, %v4472_v24, 0.0  ;;  %v3950_v40 = vadd.f32 %v12773_v36, %v21078_v33  ;;  %v5482_v14 = vsel %vm17144_vm2, %v4473_v30, 0.0  ;;  %v21082_v24 = vld [vmem:[#allocation73_spill] sm:$0xff]  ;;  %v21086_v30 = vld [vmem:[#allocation95_spill] sm:$0xff]  ;;  %v12776_v53 = vpop.f32.mrf.mxu1  ;;  %v21090_v33 = vld [vmem:[#allocation74_spill] sm:$0xff] }
 0x25c   : > { %v17245_v11 = vmul.u32.u64.low 2863311531, %v16965_v31  ;;  %v17246_v57 = vmul.u32.u64.high 2863311531, %v16965_v31, %v17245_v11  ;;  %v4471_v43 = vmax.f32 %v4423_v9, 0.0  ;;  %v4428_v61 = vadd.f32 %v17034_v35, %v4373_v62  ;;  %v12840_v62 = vpop.f32.mrf.mxu0  ;;  %v21087_v29 = vld [vmem:[#allocation85_spill] sm:$0xff] }
 0x25d   : > { %v4371_v54 = vmul.f32 %v17010_v1, %v4316_v16  ;;  %vm21080_vm7 = vnez %v21079_v20  ;;  %v5479_v36 = vsel %vm17158_vm13, %v4470_v3, 0.0  ;;  %v11421_v22 = vpack.c.bf16 %v5482_v14, %v5481_v27  ;;  %v21089_v16 = vld [vmem:[#allocation81_spill] sm:$0xff] }
 0x25e   : > { %v21083_v60 = vsel %vm21080_vm7, %v21081_v48, %v21082_v24  ;;  %v4319_v58 = vadd.f32 %v12837_v7, %v3950_v40  ;;  %v3948_v9 = vadd.f32 %v3783_v50, %v21086_v30  ;;  %vm21088_vm2 = vnez %v21087_v29  ;;  %v21094_v7 = vld [vmem:[#allocation79_spill] sm:$0xff]  ;;  %v5781_v40 = vld [vmem:[#allocation2 + $0x20] sm:$0xf]  ;;  %v17278_v50 = vld [vmem:[#allocation2 + $0x24] sm:$0xf]  ;;  %v3796_v30 = vpop.f32.mrf.mxu1  ;;  %v4165_v29 = vpop.f32.mrf.mxu0 }
 0x25f   : > { %vm17258_vm9 = vcmp.lt.s32.totalorder %v21083_v60, 16  ;;  %v21091_v11 = vsel %vm21088_vm2, %v21089_v16, %v21090_v33  ;;  %v5480_v48 = vsel %vm17172_vm11, %v4471_v43, 0.0  ;;  %v4476_v12 = vmax.f32 %v4428_v61, 0.0  ;;  %11646 = vst [vmem:[#allocation2 + $0x30] sm:$0xff] %v11421_v22   ;;  %v21095_v43 = vld [vmem:[#allocation82_spill] sm:$0xff]  ;;  %v21106_v16 = vld [vmem:[#allocation89_spill] sm:$0xff] }
 0x260   : > { %vm17270_vm8 = vcmp.lt.s32.totalorder %v21091_v11, 16  ;;  %v4426_v3 = vadd.f32 %v17034_v35, %v4371_v54  ;;  %v3953_v27 = vadd.f32 %v12776_v53, %v21094_v7  ;;  %v11416_v14 = vpack.c.bf16 %v5480_v48, %v5479_v36  ;;  %v5779_v11 = vld [vmem:[#allocation2 + $0x18] sm:$0xf]  ;;  %v5780_v54 = vld [vmem:[#allocation2 + $0x1c] sm:$0xf] }
 0x261   : > { %v4374_v24 = vmul.f32 %v17010_v1, %v4319_v58  ;;  %v4317_v60 = vadd.f32 %v4152_v47, %v3948_v9  ;;  %v3951_v61 = vadd.f32 %v3796_v30, %v21095_v43  ;;  %v17284_v53 = vcombine.low %v5781_v40, %v17278_v50  ;;  %v12777_v58 = vpop.f32.mrf.mxu1  ;;  %v12841_v9 = vpop.f32.mrf.mxu0  ;;  %v21099_v48 = vld [vmem:[#allocation84_spill] sm:$0xff] }
 0x262   : > { %v4474_v33 = vmax.f32 %v4426_v3, 0.0  ;;  %v4322_v4 = vadd.f32 %v12840_v62, %v3953_v27  ;;  %11645 = vst [vmem:[#allocation2 + $0x28] sm:$0xff] %v11416_v14   ;;  %v5485_v36 = vsel %vm17194_vm6, %v4476_v12, 0.0  ;;  %vm21097_vm13 = vnez %v20849_v39  ;;  %v21098_v62 = vld [vmem:[#allocation90_spill] sm:$0xff]  ;;  %v21103_v27 = vld [vmem:[#allocation92_spill] sm:$0xff] }
 0x263   : > { %21096 = vst [vmem:[#allocation23_spill] sm:$0xff] %v17284_v53  ;;  %v4429_v22 = vadd.f32 %v17034_v35, %v4374_v24  ;;  %v4372_v47 = vmul.f32 %v17010_v1, %v4317_v60  ;;  %v21100_v3 = vsel %vm21097_vm13, %v21098_v62, %v21099_v48  ;;  %v17300_v14 = vcombine.low %v21103_v27, %v5779_v11  ;;  %v21105_v60 = vld [vmem:[#allocation86_spill] sm:$0xff]  ;;  %v21108_v62 = vld [vmem:[#allocation88_spill] sm:$0xff]  ;;  %v3799_v27 = vpop.f32.mrf.mxu1  ;;  %v4168_v55 = vpop.f32.mrf.mxu0 }
 0x264   : > { %vm17295_vm11 = vcmp.lt.s32.totalorder %v21100_v3, 16  ;;  %v5483_v42 = vsel %vm17212_vm4, %v4474_v33, 0.0  ;;  %v4377_v12 = vmul.f32 %v17010_v1, %v4322_v4  ;;  %v4320_v24 = vadd.f32 %v4165_v29, %v3951_v61  ;;  %v21109_v48 = vld [vmem:[#allocation78_spill] sm:$0xff] }
 0x265   : > { %21104 = vst [vmem:[#allocation28_spill] sm:$0xff] %v17300_v14  ;;  %v3954_v30 = vadd.f32 %v12777_v58, %v21105_v60  ;;  %v4477_v43 = vmax.f32 %v4429_v22, 0.0  ;;  %v4427_v39 = vadd.f32 %v17034_v35, %v4372_v47  ;;  %vm21107_vm3 = vnez %v21106_v16  ;;  %v21114_v47 = vld [vmem:[#allocation96_spill] sm:$0xff]  ;;  %v21116_v58 = vld [vmem:[#allocation94_spill] sm:$0xff]  ;;  %v21117_v60 = vld [vmem:[#allocation87_spill] sm:$0xff]  ;;  %v12780_v0 = vpop.f32.mrf.mxu1 }
 0x266   : > { %v21110_v3 = vsel %vm21107_vm3, %v21108_v62, %v21109_v48  ;;  %v17316_v33 = vcombine.low %v5780_v54, %v5781_v40  ;;  %v20270_v29 = vshrl.u32 %v17300_v14, 16  ;;  %v4432_v4 = vadd.f32 %v17034_v35, %v4377_v12  ;;  %v12844_v12 = vpop.f32.mrf.mxu0 }
 0x267   : > { %vm17312_vm6 = vcmp.lt.s32.totalorder %v21110_v3, 16  ;;  %v4375_v61 = vmul.f32 %v17010_v1, %v4320_v24  ;;  %v4323_v22 = vadd.f32 %v12841_v9, %v3954_v30  ;;  %v3952_v16 = vadd.f32 %v3799_v27, %v16522_v44  ;;  %v21128_v44 = vld [vmem:[#allocation91_spill] sm:$0xff] }
 0x268   : > { %21113 = vst [vmem:[#allocation29_spill] sm:$0xff] %v17316_v33  ;;  %vm21115_vm14 = vnez %v21114_v47  ;;  %v5486_v40 = vsel %vm17237_vm1, %v4477_v43, 0.0  ;;  %v4475_v3 = vmax.f32 %v4427_v39, 0.0  ;;  %v17335_v9 = vrot.slane %v20270_v29, 3  ;;  %v21158_v39 = vld [vmem:[#allocation60_spill] sm:$0xff] }
 0x269   : > { %v21118_v62 = vsel %vm21115_vm14, %v21116_v58, %v21117_v60  ;;  %v11431_v24 = vpack.c.bf16 %v5486_v40, %v5485_v36  ;;  %v4480_v30 = vmax.f32 %v4432_v4, 0.0  ;;  %v4430_v27 = vadd.f32 %v17034_v35, %v4375_v61  ;;  %v21121_v58 = vld [vmem:[#allocation106_spill] sm:$0xff]  ;;  %v21123_v60 = vld [vmem:[#allocation105_spill] sm:$0xff]  ;;  %v3812_v4 = vpop.f32.mrf.mxu1  ;;  %v4181_v40 = vpop.f32.mrf.mxu0 }
 0x26a   : > { %vm17327_vm4 = vcmp.lt.s32.totalorder %v21118_v62, 16  ;;  %v4378_v47 = vmul.f32 %v17010_v1, %v4323_v22  ;;  %vm21122_vm7 = vnez %v21121_v58  ;;  %v5484_v62 = vsel %vm17258_vm9, %v4475_v3, 0.0 }
 0x26b   : > { %v21125_v43 = vsel %vm21122_vm7, %v21123_v60, %v21124_v13  ;;  %v4321_v29 = vadd.f32 %v4168_v55, %v3952_v16  ;;  %v3957_v36 = vadd.f32 %v12780_v0, %v21128_v44  ;;  %v21129_v61 = vshll.u32 %v17300_v14, 16  ;;  %11648 = vst [vmem:[#allocation2 + $0x40] sm:$0xff] %v11431_v24   ;;  %v21138_v24 = vld [vmem:[#allocation93_spill] sm:$0xff] }
 0x26c   : > { %vm17345_vm1 = vcmp.lt.s32.totalorder %v21125_v43, 16  ;;  %v11426_v58 = vpack.c.bf16 %v5484_v62, %v5483_v42  ;;  %v5489_v60 = vsel %vm17270_vm8, %v4480_v30, 0.0  ;;  %v4433_v13 = vadd.f32 %v17034_v35, %v4378_v47  ;;  %v21130_v43 = vld [vmem:[#allocation8_spill] sm:$0xff]  ;;  %v12781_v30 = vpop.f32.mrf.mxu1  ;;  %v12845_v62 = vpop.f32.mrf.mxu0  ;;  %v21139_v47 = vld [vmem:[#allocation13_spill] sm:$0xff] }
 0x26d   : > { %v5993_v22 = vrot.slane %v21129_v61, 4  ;;  %vm21131_vm2 = vnez %v21130_v43  ;;  %v17366_v0 = vcombine.low %v5779_v11, %v5780_v54  ;;  %v4478_v16 = vmax.f32 %v4430_v27, 0.0  ;;  %v21141_v61 = vld [vmem:[#allocation33_spill] sm:$0xff]  ;;  %v21142_v43 = vld [vmem:[#allocation103_spill] sm:$0xff] }
 0x26e   : > { %v21134_v3 = vsel %vm21131_vm2, %v21132_v46, %v21133_v18  ;;  %v4376_v44 = vmul.f32 %v17010_v1, %v4321_v29  ;;  %v4326_v42 = vadd.f32 %v12844_v12, %v3957_v36  ;;  %v3955_v20 = vadd.f32 %v3812_v4, %v21138_v24  ;;  %11647 = vst [vmem:[#allocation2 + $0x38] sm:$0xff] %v11426_v58   ;;  %v21146_v54 = vld [vmem:[#allocation97_spill] sm:$0xff]  ;;  %v3815_v24 = vpop.f32.mrf.mxu1 }
 0x26f   : > { %vm17362_vm9 = vcmp.lt.s32.totalorder %v21134_v3, 16  ;;  %21137 = vst [vmem:[#allocation64_spill] sm:$0xff] %v17366_v0  ;;  %vm21140_vm8 = vnez %v21139_v47  ;;  %v4481_v11 = vmax.f32 %v4433_v13, 0.0  ;;  %v3958_v27 = vadd.f32 %v12781_v30, %v21146_v54 }
 0x270   : > { %v21143_v14 = vsel %vm21140_vm8, %v21141_v61, %v21142_v43  ;;  %v5994_v29 = vor.u32 %v5993_v22, %v17335_v9  ;;  %v20275_v12 = vshrl.u32 %v17316_v33, 16  ;;  %v4431_v36 = vadd.f32 %v17034_v35, %v4376_v44 }
 0x271   : > { %vm17375_vm13 = vcmp.lt.s32.totalorder %v21143_v14, 16  ;;  %v4381_v4 = vmul.f32 %v17010_v1, %v4326_v42  ;;  %v4324_v18 = vadd.f32 %v4181_v40, %v3955_v20  ;;  %v20276_v3 = vshll.u32 %v17316_v33, 16  ;;  %v4184_v14 = vpop.f32.mrf.mxu0  ;;  %v12784_v40 = vpop.f32.mrf.mxu1 }
 0x272   : > { %v5490_v47 = vsel %vm17295_vm11, %v4481_v11, 0.0  ;;  %v4327_v58 = vadd.f32 %v12845_v62, %v3958_v27  ;;  %v5998_v13 = vrot.slane %v20275_v12, 3  ;;  %v20277_v9 = vshrl.u32 %v17366_v0, 16  ;;  %v5783_v11 = vld [vmem:[#allocation2 + $0x28] sm:$0xf] }
 0x273   : > { %v11441_v22 = vpack.c.bf16 %v5490_v47, %v5489_v60  ;;  %v4479_v30 = vmax.f32 %v4431_v36, 0.0  ;;  %v4436_v44 = vadd.f32 %v17034_v35, %v4381_v4  ;;  %v4379_v42 = vmul.f32 %v17010_v1, %v4324_v18  ;;  %v12848_v20 = vpop.f32.mrf.mxu0  ;;  %v21150_v4 = vld [vmem:[#allocation107_spill] sm:$0xff]  ;;  %v21180_v47 = vld [vmem:[#allocation120_spill] sm:$0xff] }
 0x274   : > { %v5487_v61 = vsel %vm17312_vm6, %v4478_v16, 0.0  ;;  %v4382_v7 = vmul.f32 %v17010_v1, %v4327_v58  ;;  %v6001_v62 = vrot.slane %v20276_v3, 4  ;;  %v6559_v43 = vrot.slane %v20277_v9, 3  ;;  %v21149_v16 = vld [vmem:[#allocation111_spill] sm:$0xff]  ;;  %v3828_v58 = vpop.f32.mrf.mxu1 }
 0x275   : > { %11650 = vst [vmem:[#allocation2 + $0x50] sm:$0xff] %v11441_v22   ;;  %v5488_v60 = vsel %vm17327_vm4, %v4479_v30, 0.0  ;;  %v4484_v54 = vmax.f32 %v4436_v44, 0.0  ;;  %v4434_v27 = vadd.f32 %v17034_v35, %v4379_v42  ;;  %v20282_v36 = vshll.u32 %v17366_v0, 16  ;;  %v4197_v12 = vpop.f32.mrf.mxu0  ;;  %v21154_v44 = vld [vmem:[#allocation110_spill] sm:$0xff] }
 0x276   : > { %vm21148_vm11 = vnez %v21147_v2  ;;  %v11436_v22 = vpack.c.bf16 %v5488_v60, %v5487_v61  ;;  %v4437_v48 = vadd.f32 %v17034_v35, %v4382_v7  ;;  %v17413_v30 = vor.u32 %v6001_v62, %v5998_v13  ;;  %v21156_v62 = vld [vmem:[#allocation117_spill] sm:$0xff] }
 0x277   : > { %v21151_v18 = vsel %vm21148_vm11, %v21149_v16, %v21150_v4  ;;  %v3956_v42 = vadd.f32 %v3815_v24, %v21154_v44  ;;  %v5493_v3 = vsel %vm17345_vm1, %v4484_v54, 0.0  ;;  %v4482_v2 = vmax.f32 %v4434_v27, 0.0  ;;  %v12849_v9 = vpop.f32.mrf.mxu0  ;;  %v21159_v60 = vld [vmem:[#allocation113_spill] sm:$0xff] }
 0x278   : > { %vm17408_vm3 = vcmp.lt.s32.totalorder %v21151_v18, 16  ;;  %v6562_v16 = vrot.slane %v20282_v36, 4  ;;  %v17421_v4 = vcombine.low %v17278_v50, %v5783_v11  ;;  %v12785_v18 = vpop.f32.mrf.mxu1  ;;  %11649 = vst [vmem:[#allocation2 + $0x48] sm:$0xff] %v11436_v22   ;;  %v4485_v61 = vmax.f32 %v4437_v48, 0.0  ;;  %v13802_v36 = vld [vmem:[%s19944_s4 + $0x1b0] sm:$0xff]  }
 0x279   : > { %vm21155_vm6 = vsmask.f32 4352  ;;  %v4325_v7 = vadd.f32 %v4184_v14, %v3956_v42  ;;  %v20278_v24 = vshrl.u32 %v17284_v53, 16  ;;  %vm21157_vm14 = vnez %v21156_v62  ;;  %v21163_v14 = vld [vmem:[#allocation99_spill] sm:$0xff]  ;;  %v21191_v42 = vld [vmem:[#allocation108_spill] sm:$0xff] }
 0x27a   : > { %v6003_v13 = vsel %vm21155_vm6, %v5994_v29, %v17413_v30  ;;  %v21160_v54 = vsel %vm21157_vm14, %v21158_v39, %v21159_v60  ;;  %v17437_v50 = vsel %vm17362_vm9, %v4482_v2, 0.0  ;;  %v6563_v22 = vor.u32 %v6562_v16, %v6559_v43  ;;  %v3831_v62 = vpop.f32.mrf.mxu1  ;;  %v17450_v39 = vpop.f32.mrf.mxu0  ;;  %v21168_v2 = vld [vmem:[#allocation102_spill] sm:$0xff]  ;;  %vm21170_vm2 = vmmov %vm21155_vm6 }
 0x27b   : > { %vm17431_vm4 = vcmp.lt.s32.totalorder %v21160_v54, 16  ;;  %12890 = vmatprep.mubr.bf16.mxu1 %v6003_v13  ;;  %v20281_v29 = vshll.u32 %v17284_v53, 16  ;;  %v3961_v48 = vadd.f32 %v12784_v40, %v21163_v14  ;;  %vm21164_vm7 = vnez %v20918_v25  ;;  %v5784_v16 = vld [vmem:[#allocation2 + $0x2c] sm:$0xf]  ;;  %v21169_v13 = vld [vmem:[#allocation101_spill] sm:$0xff]  ;;  %v21173_v54 = vld [vmem:[#allocation59_spill] sm:$0xff] }
 0x27c   : > { %v21165_v44 = vsel %vm21164_vm7, %v16645_v15, %v16606_v41  ;;  %v5494_v55 = vsel %vm17375_vm13, %v4485_v61, 0.0  ;;  %v4380_v43 = vmul.f32 %v17010_v1, %v4325_v7  ;;  %v6568_v40 = vrot.slane %v20278_v24, 3  ;;  %v13803_v41 = vld [vmem:[%s19944_s4 + $0x70] sm:$0xff]   ;;  %v21172_v7 = vld [vmem:[#allocation20_spill] sm:$0xff]  ;;  %vm21179_vm13 = vmmov %vm21170_vm2 }
 0x27d   : > { %vm17446_vm1 = vcmp.lt.s32.totalorder %v21165_v44, 16  ;;  %v3959_v25 = vadd.f32 %v3828_v58, %v21168_v2  ;;  %v11451_v15 = vpack.c.bf16 %v5494_v55, %v5493_v3  ;;  %v6564_v60 = vsel %vm21170_vm2, %v21169_v13, %v6563_v22  ;;  %v17474_v44 = vpop.f32.mrf.mxu1  ;;  %v21177_v2 = vld [vmem:[#allocation104_spill] sm:$0xff]  ;;  %vm21188_vm6 = vmmov %vm21170_vm2 }
 0x27e   : > { %v6571_v46 = vrot.slane %v20281_v29, 4  ;;  %v4330_v61 = vadd.f32 %v12848_v20, %v3961_v48  ;;  %vm21171_vm9 = vnez %v20924_v23  ;;  %12955 = vmatmul.mubr.bf16.vlgmr.msra.gmra.mxu0 %v6564_v60  ;;  %v4435_v3 = vadd.f32 %v17034_v35, %v4380_v43  ;;  %v17479_v20 = vpop.f32.mrf.mxu0  ;;  %v13914_v43 = vld [vmem:[%s19944_s4 + $0x78] sm:$0xff]  }
 0x27f   : > { %v21174_v14 = vsel %vm21171_vm9, %v21172_v7, %v21173_v54  ;;  %v4328_v55 = vadd.f32 %v4197_v12, %v3959_v25  ;;  %v3962_v13 = vadd.f32 %v12785_v18, %v21177_v2  ;;  %v20279_v24 = vshrl.u32 %v17421_v4, 16  ;;  %11652 = vst [vmem:[#allocation2 + $0x60] sm:$0xff] %v11451_v15   ;;  %13067 = vmatpush3.bf16.msra.mxu0 %v13914_v43  ;;  %v3844_v12 = vpop.f32.mrf.mxu1  ;;  %v13813_v15 = vld [vmem:[%s19944_s4 + $0x68] sm:$0xff]   ;;  %v13829_v58 = vld [vmem:[%s19944_s4 + $0x58] sm:$0xff]   ;;  %vm21217_vm9 = vmmov %vm21188_vm6 }
 0x280   : > { %vm17470_vm8 = vcmp.lt.s32.totalorder %v21174_v14, 16  ;;  %v17481_v23 = vor.u32 %v6571_v46, %v6568_v40  ;;  %v4385_v48 = vmul.f32 %v17010_v1, %v4330_v61  ;;  %v20280_v7 = vshll.u32 %v17421_v4, 16  ;;  %13068 = vmatprep.subr.bf16.mxu0 %v13803_v41 }
 0x281   : > { %v17485_v54 = vcombine.low %v5783_v11, %v5784_v16  ;;  %v4483_v18 = vmax.f32 %v4435_v3, 0.0  ;;  %v4383_v25 = vmul.f32 %v17010_v1, %v4328_v55  ;;  %v4331_v60 = vadd.f32 %v12849_v9, %v3962_v13  ;;  %v17502_v3 = vpop.f32.mrf.mxu1 }
 0x282   : > { %v6007_v40 = vrot.slane %v20279_v24, 3  ;;  %v6573_v11 = vsel %vm21179_vm13, %v6563_v22, %v17481_v23  ;;  %v4440_v46 = vadd.f32 %v17034_v35, %v4385_v48  ;;  %v6010_v61 = vrot.slane %v20280_v7, 4  ;;  %v17509_v22 = vld [vmem:[#allocation2 + $0x38] sm:$0xf]  ;;  %v4213_v48 = vpop.f32.mrf.mxu0 }
 0x283   : > { %21178 = vst [vmem:[#allocation19_spill] sm:$0xff] %v17485_v54  ;;  %v20283_v14 = vshrl.u32 %v17485_v54, 16  ;;  %v5492_v9 = vsel %vm17408_vm3, %v4483_v18, 0.0  ;;  %12958 = vmatprep.mubr.bf16.mxu0 %v6573_v11  ;;  %v4438_v55 = vadd.f32 %v17034_v35, %v4383_v25  ;;  %v4386_v2 = vmul.f32 %v17010_v1, %v4331_v60  ;;  %v21182_v18 = vld [vmem:[#allocation35_spill] sm:$0xff]  ;;  %v21183_v11 = vld [vmem:[#allocation116_spill] sm:$0xff]  ;;  %13069 = vmatpush3.bf16.msra.mxu0 %v13803_v41  ;;  %v21221_v60 = vld [vmem:[#allocation130_spill] sm:$0xff] }
 0x284   : > { %v20284_v13 = vshll.u32 %v17485_v54, 16  ;;  %v11446_v43 = vpack.c.bf16 %v5492_v9, %v17437_v50  ;;  %v4488_v24 = vmax.f32 %v4440_v46, 0.0  ;;  %v17512_v7 = vor.u32 %v6010_v61, %v6007_v40  ;;  %v13819_v50 = vld [vmem:[%s19944_s4 + $0x60] sm:$0xff]   ;;  %v21187_v9 = vld [vmem:[#allocation112_spill] sm:$0xff]  ;;  %13070 = vmatprep.subr.bf16.mxu0 %v13813_v15  ;;  %v12853_v27 = vpop.f32.mrf.mxu0 }
 0x285   : > { %v6577_v29 = vrot.slane %v20283_v14, 3  ;;  %vm21181_vm11 = vnez %v21180_v47  ;;  %v4486_v40 = vmax.f32 %v4438_v55, 0.0  ;;  %v4441_v46 = vadd.f32 %v17034_v35, %v4386_v2  ;;  %v17545_v2 = vpop.f32.mrf.mxu1  ;;  %v13915_v54 = vld [vmem:[%s19944_s4 + $0x1b8] sm:$0xff]  }
 0x286   : > { %v21184_v25 = vsel %vm21181_vm11, %v21182_v18, %v21183_v11  ;;  %v6580_v61 = vrot.slane %v20284_v13, 4  ;;  %v3960_v47 = vadd.f32 %v3831_v62, %v21187_v9  ;;  %v5785_v18 = vld [vmem:[#allocation2 + $0x30] sm:$0xf]  ;;  %v5786_v11 = vld [vmem:[#allocation2 + $0x34] sm:$0xf]  ;;  %11651 = vst [vmem:[#allocation2 + $0x58] sm:$0xff] %v11446_v43   ;;  %v6012_v41 = vsel %vm21188_vm6, %v17413_v30, %v17512_v7  ;;  %vm21226_vm11 = vmmov %vm21188_vm6 }
 0x287   : > { %vm17521_vm3 = vcmp.lt.s32.totalorder %v21184_v25, 16  ;;  %v5497_v25 = vsel %vm17431_vm4, %v4488_v24, 0.0  ;;  %v17540_v14 = vcombine.low %v5784_v16, %v5785_v18  ;;  %v17543_v55 = vcombine.low %v5786_v11, %v17509_v22  ;;  %12891 = vmatmul.mubr.bf16.vlgmr.msra.gmra.mxu1 %v6012_v41  ;;  %13071 = vmatpush3.bf16.msra.mxu0 %v13813_v15 }
 0x288   : > { %v17549_v62 = vsel %vm17446_vm1, %v4486_v40, 0.0  ;;  %v4489_v9 = vmax.f32 %v4441_v46, 0.0  ;;  %v17551_v43 = vor.u32 %v6580_v61, %v6577_v29  ;;  %v4329_v24 = vadd.f32 %v17450_v39, %v3960_v47  ;;  %13003 = vmatpush3.bf16.msra.mxu1 %v13915_v54  ;;  %v21193_v29 = vld [vmem:[#allocation31_spill] sm:$0xff]  ;;  %v21194_v61 = vld [vmem:[#allocation121_spill] sm:$0xff]  ;;  %13072 = vmatprep.subr.bf16.mxu0 %v13819_v50 }
 0x289   : > { %21189 = vst [vmem:[#allocation56_spill] sm:$0xff] %v17540_v14  ;;  %v20289_v30 = vshrl.u32 %v17540_v14, 16  ;;  %v17556_v13 = vcombine.low %v5785_v18, %v5786_v11  ;;  %v3965_v40 = vadd.f32 %v17474_v44, %v21191_v42  ;;  %v21195_v39 = vsel %vm16780_vm10, %v21193_v29, %v21194_v61  ;;  %v21199_v18 = vld [vmem:[#allocation125_spill] sm:$0xff]  ;;  %v21200_v11 = vld [vmem:[#allocation34_spill] sm:$0xff]  ;;  %vm21204_vm10 = vmmov %vm21170_vm2  ;;  %13004 = vmatprep.subr.bf16.mxu1 %v13802_v36  ;;  %v17602_v61 = vpop.f32.mrf.mxu1 }
 0x28a   : > { %vm17568_vm14 = vcmp.lt.s32.totalorder %v21195_v39, 16  ;;  %vm21198_vm4 = vnez %v20955_v21  ;;  %v5498_v44 = vsel %vm17470_vm8, %v4489_v9, 0.0  ;;  %v17586_v54 = vsel %vm21204_vm10, %v17481_v23, %v17551_v43  ;;  %v21205_v46 = vld [vmem:[#allocation109_spill] sm:$0xff]  ;;  %v13809_v29 = vld [vmem:[%s19944_s4 + $0x1a8] sm:$0xff]  }
 0x28b   : > { %21190 = vst [vmem:[#allocation67_spill] sm:$0xff] %v17556_v13  ;;  %v21201_v41 = vsel %vm21198_vm4, %v21199_v18, %v21200_v11  ;;  %v4384_v42 = vmul.f32 %v17010_v1, %v4329_v24  ;;  %v3963_v21 = vadd.f32 %v3844_v12, %v21205_v46  ;;  %v11461_v15 = vpack.c.bf16 %v5498_v44, %v5497_v25  ;;  %v21207_v25 = vld [vmem:[#allocation129_spill] sm:$0xff]  ;;  %v21209_v44 = vld [vmem:[#allocation128_spill] sm:$0xff] }
 0x28c   : > { %vm17577_vm7 = vcmp.lt.s32.totalorder %v21201_v41, 16  ;;  %12959 = vmatmul.mubr.bf16.gmra.mxu0 %v17586_v54  ;;  %v6016_v23 = vrot.slane %v20289_v30, 3  ;;  %v21206_v9 = vshll.u32 %v17540_v14, 16  ;;  %v4334_v11 = vadd.f32 %v17479_v20, %v3965_v40  ;;  %v21210_v46 = vld [vmem:[#allocation61_spill] sm:$0xff]  ;;  %v21215_v14 = vld [vmem:[#allocation6_spill] sm:$0xff]  ;;  %13005 = vmatpush3.bf16.msra.mxu1 %v13802_v36  ;;  %v13835_v36 = vld [vmem:[%s19944_s4 + $0x50] sm:$0xff]  }
 0x28d   : > { %v4439_v39 = vadd.f32 %v17034_v35, %v4384_v42  ;;  %v4332_v41 = vadd.f32 %v4213_v48, %v3963_v21  ;;  %vm21208_vm1 = vnez %v21207_v25  ;;  %11654 = vst [vmem:[#allocation2 + $0x70] sm:$0xff] %v11461_v15   ;;  %v21214_v0 = vshrl.u32 %v17556_v13, 16  ;;  %13073 = vmatpush3.bf16.msra.mxu0 %v13819_v50  ;;  %v5788_v15 = vld [vmem:[#allocation2 + $0x3c] sm:$0xf]  ;;  %13006 = vmatprep.subr.bf16.mxu1 %v13809_v29 }
 0x28e   : > { %v6019_v24 = vrot.slane %v21206_v9, 4  ;;  %v21211_v53 = vsel %vm21208_vm1, %v21209_v44, %v21210_v46  ;;  %v4216_v9 = vpop.f32.mrf.mxu0  ;;  %v3966_v18 = vadd.f32 %v17502_v3, %v21215_v14  ;;  %v20294_v20 = vshrl.u32 %v17543_v55, 16  ;;  %13074 = vmatprep.subr.bf16.mxu0 %v13829_v58 }
 0x28f   : > { %vm17612_vm2 = vcmp.lt.s32.totalorder %v21211_v53, 16  ;;  %v6586_v42 = vrot.slane %v21214_v0, 3  ;;  %v4487_v48 = vmax.f32 %v4439_v39, 0.0  ;;  %v21216_v40 = vshll.u32 %v17556_v13, 16  ;;  %v13818_v0 = vld [vmem:[%s19944_s4 + $0x1a0] sm:$0xff]  }
 0x290   : > { %v6020_v12 = vor.u32 %v6019_v24, %v6016_v23  ;;  %v4389_v21 = vmul.f32 %v17010_v1, %v4334_v11  ;;  %v4387_v25 = vmul.f32 %v17010_v1, %v4332_v41  ;;  %v4335_v3 = vadd.f32 %v12853_v27, %v3966_v18  ;;  %v17636_v24 = vpop.f32.mrf.mxu1  ;;  %v12856_v46 = vpop.f32.mrf.mxu0  ;;  %13007 = vmatpush3.bf16.msra.mxu1 %v13809_v29 }
 0x291   : > { %v6589_v53 = vrot.slane %v21216_v40, 4  ;;  %v6025_v50 = vrot.slane %v20294_v20, 3  ;;  %v20295_v23 = vshll.u32 %v17543_v55, 16  ;;  %v5496_v39 = vsel %vm17521_vm3, %v4487_v48, 0.0  ;;  %v21219_v20 = vld [vmem:[#allocation36_spill] sm:$0xff]  ;;  %v21222_v48 = vld [vmem:[#allocation123_spill] sm:$0xff]  ;;  %13075 = vmatpush3.bf16.msra.mxu0 %v13829_v58  ;;  %13008 = vmatprep.subr.bf16.mxu1 %v13818_v0  ;;  %vm21228_vm3 = vmmov %vm21188_vm6 }
 0x292   : > { %v6021_v14 = vsel %vm21217_vm9, %v17512_v7, %v6020_v12  ;;  %v4444_v41 = vadd.f32 %v17034_v35, %v4389_v21  ;;  %v4442_v44 = vadd.f32 %v17034_v35, %v4387_v25  ;;  %v11456_v7 = vpack.c.bf16 %v5496_v39, %v17549_v62  ;;  %13076 = vmatprep.subr.bf16.mxu0 %v13835_v36  ;;  %v5789_v39 = vld [vmem:[#allocation2 + $0x40] sm:$0xf]  ;;  %vm21235_vm4 = vmmov %vm21228_vm3 }
 0x293   : > { %12894 = vmatprep.mubr.bf16.mxu1 %v6021_v14  ;;  %v6590_v11 = vor.u32 %v6589_v53, %v6586_v42  ;;  %v4390_v27 = vmul.f32 %v17010_v1, %v4335_v3  ;;  %v6028_v18 = vrot.slane %v20295_v23, 4  ;;  %v17647_v40 = vcombine.low %v17509_v22, %v5788_v15  ;;  %v21227_v14 = vld [vmem:[#allocation119_spill] sm:$0xff]  ;;  %vm21251_vm9 = vmmov %vm21228_vm3 }
 0x294   : > { %vm21220_vm8 = vnez %v21219_v20  ;;  %v4492_v21 = vmax.f32 %v4444_v41, 0.0  ;;  %v4490_v25 = vmax.f32 %v4442_v44, 0.0  ;;  %v3964_v22 = vadd.f32 %v17545_v2, %v21227_v14  ;;  %v13825_v20 = vld [vmem:[%s19944_s4 + $0x198] sm:$0xff]   ;;  %11653 = vst [vmem:[#allocation2 + $0x68] sm:$0xff] %v11456_v7   ;;  %v17671_v41 = vld [vmem:[#allocation2 + $0x48] sm:$0xf]  ;;  %v12793_v2 = vpop.f32.mrf.mxu1  ;;  %13009 = vmatpush3.bf16.msra.mxu1 %v13818_v0 }
 0x295   : > { %21218 = vst [vmem:[#allocation65_spill] sm:$0xff] %v17647_v40  ;;  %v21223_v42 = vsel %vm21220_vm8, %v21221_v60, %v21222_v48  ;;  %v17660_v62 = vsel %vm21226_vm11, %v17551_v43, %v6590_v11  ;;  %v4445_v29 = vadd.f32 %v17034_v35, %v4390_v27  ;;  %v6029_v58 = vor.u32 %v6028_v18, %v6025_v50  ;;  %v5790_v27 = vld [vmem:[#allocation2 + $0x44] sm:$0xf]  ;;  %v4229_v50 = vpop.f32.mrf.mxu0  ;;  %v13834_v0 = vld [vmem:[%s19944_s4 + $0x190] sm:$0xff]   ;;  %vm21260_vm11 = vmmov %vm21228_vm3 }
 0x296   : > { %vm17654_vm13 = vcmp.lt.s32.totalorder %v21223_v42, 16  ;;  %12962 = vmatprep.mubr.bf16.mxu0 %v17660_v62  ;;  %v20298_v43 = vshrl.u32 %v17647_v40, 16  ;;  %v20329_v3 = vshll.u32 %v17647_v40, 16  ;;  %v5501_v44 = vsel %vm17568_vm14, %v4492_v21, 0.0  ;;  %13077 = vmatpush3.bf16.msra.mxu0 %v13835_v36  ;;  %v17813_v21 = vld [vmem:[%s19942_s2] ss:$0 sm:$0xff] }
 0x297   : > { %v17677_v60 = vsel %vm17577_vm7, %v4490_v25, 0.0  ;;  %v4333_v7 = vadd.f32 %v4216_v9, %v3964_v22  ;;  %v17679_v48 = vcombine.low %v5788_v15, %v5789_v39  ;;  %v4493_v18 = vmax.f32 %v4445_v29, 0.0  ;;  %13010 = vmatprep.subr.bf16.mxu1 %v13825_v20  ;;  %v21234_v29 = vld [vmem:[#allocation114_spill] sm:$0xff] }
 0x298   : > { %v6030_v42 = vsel %vm21228_vm3, %v6020_v12, %v6029_v58  ;;  %v6595_v14 = vrot.slane %v20298_v43, 3  ;;  %v6598_v23 = vrot.slane %v20329_v3, 4  ;;  %v17690_v15 = vcombine.low %v5790_v27, %v17671_v41  ;;  %13011 = vmatpush3.bf16.msra.mxu1 %v13825_v20 }
 0x299   : > { %12895 = vmatmul.mubr.bf16.gmra.mxu1 %v6030_v42  ;;  %v4388_v16 = vmul.f32 %v17010_v1, %v4333_v7  ;;  %v20296_v47 = vshrl.u32 %v17679_v48, 16  ;;  %v20297_v9 = vshll.u32 %v17679_v48, 16  ;;  %vm21229_vm6 = vnez %v20981_v32  ;;  %v3863_v7 = vpop.f32.mrf.mxu1  ;;  %13012 = vmatprep.subr.bf16.mxu1 %v13834_v0 }
 0x29a   : > { %v21230_v12 = vsel %vm21229_vm6, %v16889_v49, %v16848_v10  ;;  %v5502_v36 = vsel %vm17612_vm2, %v4493_v18, 0.0  ;;  %v6599_v25 = vor.u32 %v6598_v23, %v6595_v14  ;;  %v17706_v22 = vcombine.low %v5789_v39, %v5790_v27  ;;  %v13845_v10 = vld [vmem:[%s19944_s4 + $0x48] sm:$0xff]   ;;  %v12857_v23 = vpop.f32.mrf.mxu0  ;;  %v21236_v14 = vld [vmem:[#allocation11_spill] sm:$0xff] }
 0x29b   : > { %vm17697_vm14 = vcmp.lt.s32.totalorder %v21230_v12, 16  ;;  %v3969_v32 = vadd.f32 %v17602_v61, %v21234_v29  ;;  %v11471_v49 = vpack.c.bf16 %v5502_v36, %v5501_v44  ;;  %v4443_v42 = vadd.f32 %v17034_v35, %v4388_v16  ;;  %v21238_v44 = vld [vmem:[#allocation21_spill] sm:$0xff]  ;;  %v21239_v36 = vld [vmem:[#allocation132_spill] sm:$0xff]  ;;  %13078 = vmatprep.subr.bf16.mxu0 %v13845_v10 }
 0x29c   : > { %21233 = vst [vmem:[#allocation63_spill] sm:$0xff] %v17706_v22  ;;  %v6034_v12 = vrot.slane %v20296_v47, 3  ;;  %v6037_v30 = vrot.slane %v20297_v9, 4  ;;  %v17719_v39 = vsel %vm21235_vm4, %v6590_v11, %v6599_v25  ;;  %v20299_v61 = vshrl.u32 %v17706_v22, 16  ;;  %v21244_v47 = vld [vmem:[#allocation139_spill] sm:$0xff]  ;;  %13079 = vmatpush3.bf16.msra.mxu0 %v13845_v10  ;;  %13013 = vmatpush3.bf16.msra.mxu1 %v13834_v0  ;;  %vm21276_vm4 = vmmov %vm21228_vm3 }
 0x29d   : > { %v20328_v27 = vshll.u32 %v17706_v22, 16  ;;  %v4338_v18 = vadd.f32 %v12856_v46, %v3969_v32  ;;  %vm21237_vm7 = vnez %v21236_v14  ;;  %vm21243_vm1 = vnez %v20994_v8  ;;  %v21245_v9 = vld [vmem:[#allocation135_spill] sm:$0xff]  ;;  %11656 = vst [vmem:[#allocation2 + $0x80] sm:$0xff] %v11471_v49   ;;  %12963 = vmatmul.mubr.bf16.gmra.mxu0 %v17719_v39 }
 0x29e   : > { %v21240_v16 = vsel %vm21237_vm7, %v21238_v44, %v21239_v36  ;;  %v21246_v11 = vsel %vm21243_vm1, %v21244_v47, %v21245_v9  ;;  %v4491_v46 = vmax.f32 %v4443_v42, 0.0  ;;  %v17742_v32 = vor.u32 %v6037_v30, %v6034_v12  ;;  %v21249_v14 = vld [vmem:[#allocation115_spill] sm:$0xff]  ;;  %v13841_v47 = vld [vmem:[%s19944_s4 + $0x188] sm:$0xff]   ;;  %v17756_v30 = vpop.f32.mrf.mxu1  ;;  %vm21285_vm7 = vmmov %vm21228_vm3 }
 0x29f   : > { %vm17728_vm10 = vcmp.lt.s32.totalorder %v21240_v16, 16  ;;  %vm17737_vm2 = vcmp.lt.s32.totalorder %v21246_v11, 16  ;;  %v3967_v44 = vadd.f32 %v17636_v24, %v21249_v14  ;;  %v21250_v36 = vld [vmem:[#allocation15_spill] sm:$0xff]  ;;  %v6604_v20 = vrot.slane %v20299_v61, 3  ;;  %v5792_v12 = vld [vmem:[#allocation2 + $0x4c] sm:$0xf]  ;;  %v4232_v14 = vpop.f32.mrf.mxu0  ;;  %13014 = vmatprep.subr.bf16.mxu1 %v13841_v47  ;;  %vm21292_vm1 = vmmov %vm21228_vm3 }
 0x2a0   : > { %v3970_v8 = vadd.f32 %v12793_v2, %v21250_v36  ;;  %v6607_v9 = vrot.slane %v20328_v27, 4  ;;  %v4393_v49 = vmul.f32 %v17010_v1, %v4338_v18  ;;  %v20300_v42 = vshrl.u32 %v17690_v15, 16  ;;  %v13849_v36 = vld [vmem:[%s19944_s4 + $0x40] sm:$0xff]   ;;  %13015 = vmatpush3.bf16.msra.mxu1 %v13841_v47 }
 0x2a1   : > { %v5500_v24 = vsel %vm17654_vm13, %v4491_v46, 0.0  ;;  %v6039_v2 = vsel %vm21251_vm9, %v6029_v58, %v17742_v32  ;;  %v4336_v16 = vadd.f32 %v4229_v50, %v3967_v44  ;;  %v17775_v46 = vcombine.low %v17671_v41, %v5792_v12  ;;  %v21253_v44 = vld [vmem:[#allocation5_spill] sm:$0xff]  ;;  %13080 = vmatprep.subr.bf16.mxu0 %v13849_v36 }
 0x2a2   : > { %v4339_v11 = vadd.f32 %v12857_v23, %v3970_v8  ;;  %v11466_v18 = vpack.c.bf16 %v5500_v24, %v17677_v60  ;;  %12898 = vmatprep.mubr.bf16.mxu1 %v6039_v2  ;;  %v17766_v61 = vor.u32 %v6607_v9, %v6604_v20  ;;  %v4448_v10 = vadd.f32 %v17034_v35, %v4393_v49  ;;  %v21255_v60 = vld [vmem:[#allocation140_spill] sm:$0xff]  ;;  %v21256_v8 = vld [vmem:[#allocation137_spill] sm:$0xff]  ;;  %v5793_v49 = vld [vmem:[#allocation2 + $0x50] sm:$0xf] }
 0x2a3   : > { %v6043_v53 = vrot.slane %v20300_v42, 3  ;;  %v4391_v58 = vmul.f32 %v17010_v1, %v4336_v16  ;;  %v20301_v23 = vshll.u32 %v17690_v15, 16  ;;  %21252 = vst [vmem:[#allocation58_spill] sm:$0xff] %v17775_v46  ;;  %vm21254_vm8 = vnez %v21253_v44  ;;  %v21261_v24 = vld [vmem:[#allocation126_spill] sm:$0xff]  ;;  %13081 = vmatpush3.bf16.msra.mxu0 %v13849_v36 }
 0x2a4   : > { %v4394_v50 = vmul.f32 %v17010_v1, %v4339_v11  ;;  %v21257_v20 = vsel %vm21254_vm8, %v21255_v60, %v21256_v8  ;;  %v13848_v1 = vld [vmem:[%s19944_s4 + $0x180] sm:$0xff]   ;;  %11655 = vst [vmem:[#allocation2 + $0x78] sm:$0xff] %v11466_v18   ;;  %v17791_v41 = vsel %vm21260_vm11, %v6599_v25, %v17766_v61  ;;  %v4496_v0 = vmax.f32 %v4448_v10, 0.0  ;;  %v3876_v11 = vpop.f32.mrf.mxu1  ;;  %v12860_v25 = vpop.f32.mrf.mxu0 }
 0x2a5   : > { %vm17782_vm13 = vcmp.lt.s32.totalorder %v21257_v20, 16  ;;  %v3968_v2 = vadd.f32 %v3863_v7, %v21261_v24  ;;  %v17794_v16 = vcombine.low %v5792_v12, %v5793_v49  ;;  %12966 = vmatprep.mubr.bf16.mxu0 %v17791_v41  ;;  %v4446_v44 = vadd.f32 %v17034_v35, %v4391_v58  ;;  %v5795_v20 = vld [vmem:[#allocation2 + $0x58] sm:$0xf]  ;;  %13016 = vmatprep.subr.bf16.mxu1 %v13848_v1 }
 0x2a6   : > { %v4449_v60 = vadd.f32 %v17034_v35, %v4394_v50  ;;  %v6046_v18 = vrot.slane %v20301_v23, 4  ;;  %v20302_v8 = vshrl.u32 %v17775_v46, 16  ;;  %v5505_v10 = vsel %vm17697_vm14, %v4496_v0, 0.0  ;;  %13017 = vmatpush3.bf16.msra.mxu1 %v13848_v1 }
 0x2a7   : > { %v20303_v7 = vshll.u32 %v17775_v46, 16  ;;  %v4337_v12 = vadd.f32 %v4232_v14, %v3968_v2  ;;  %v20304_v36 = vshrl.u32 %v17794_v16, 16  ;;  %v4494_v24 = vmax.f32 %v4446_v44, 0.0  ;;  %v12797_v2 = vpop.f32.mrf.mxu1  ;;  %13130 = vmatprep.subr.bf16.mxu1 %v13852_v37 }
 0x2a8   : > { %v4497_v58 = vmax.f32 %v4449_v60, 0.0  ;;  %v6047_v42 = vor.u32 %v6046_v18, %v6043_v53  ;;  %v6613_v35 = vrot.slane %v20302_v8, 3  ;;  %v20314_v0 = vshll.u32 %v17794_v16, 16  ;;  %v5794_v53 = vld [vmem:[#allocation2 + $0x54] sm:$0xf]  ;;  %v4245_v8 = vpop.f32.mrf.mxu0 }
 0x2a9   : > { %v6616_v50 = vrot.slane %v20303_v7, 4  ;;  %v4392_v14 = vmul.f32 %v17813_v21, %v4337_v12  ;;  %v6052_v47 = vrot.slane %v20304_v36, 3  ;;  %v5503_v44 = vsel %vm17728_vm10, %v4494_v24, 0.0  ;;  %v17830_v36 = vld [vmem:[%s19943_s3] ss:$0 sm:$0xff]  ;;  %vm21289_vm10 = vmmov %vm21228_vm3 }
 0x2aa   : > { %v5506_v60 = vsel %vm17737_vm2, %v4497_v58, 0.0  ;;  %v6048_v18 = vsel %vm21228_vm3, %v17742_v32, %v6047_v42  ;;  %v17825_v23 = vcombine.low %v5794_v53, %v5795_v20  ;;  %v6055_v43 = vrot.slane %v20314_v0, 4  ;;  %v21266_v58 = vld [vmem:[#allocation118_spill] sm:$0xff] }
 0x2ab   : > { %v11481_v12 = vpack.c.bf16 %v5506_v60, %v5505_v10  ;;  %12899 = vmatmul.mubr.bf16.gmra.mxu1 %v6048_v18  ;;  %v6617_v7 = vor.u32 %v6616_v50, %v6613_v35  ;;  %v4447_v29 = vadd.f32 %v17830_v36, %v4392_v14  ;;  %v21262_v32 = vsel %vm17072_vm0, %v17077_v63, %v16962_v5  ;;  %v21267_v50 = vld [vmem:[#allocation25_spill] sm:$0xff]  ;;  %v21272_v5 = vld [vmem:[#allocation122_spill] sm:$0xff] }
 0x2ac   : > { %vm17840_vm6 = vcmp.lt.s32.totalorder %v21262_v32, 16  ;;  %v17844_v10 = vcombine.low %v5793_v49, %v5794_v53  ;;  %v3973_v35 = vadd.f32 %v17756_v30, %v21266_v58  ;;  %v3971_v60 = vadd.f32 %v3876_v11, %v21267_v50  ;;  %v12861_v32 = vpop.f32.mrf.mxu0  ;;  %v5796_v58 = vld [vmem:[#allocation2 + $0x5c] sm:$0xf] }
 0x2ad   : > { %v21269_v18 = vsel %vm17092_vm5, %v17080_v6, %v17014_v34  ;;  %v3974_v63 = vadd.f32 %v12797_v2, %v21272_v5  ;;  %v21273_v49 = vsel %vm17106_vm15, %v17099_v51, %v17083_v59  ;;  %11658 = vst [vmem:[#allocation2 + $0x90] sm:$0xff] %v11481_v12   ;;  %v17870_v34 = vsel %vm21276_vm4, %v17766_v61, %v6617_v7  ;;  %vm21277_vm5 = vmmov %vm21228_vm3 }
 0x2ae   : > { %21265 = vst [vmem:[#allocation68_spill] sm:$0xff] %v17844_v10  ;;  %vm17854_vm14 = vcmp.lt.s32.totalorder %v21269_v18, 16  ;;  %vm17864_vm0 = vcmp.lt.s32.totalorder %v21273_v49, 16  ;;  %v4495_v6 = vmax.f32 %v4447_v29, 0.0  ;;  %v6056_v11 = vor.u32 %v6055_v43, %v6052_v47  ;;  %12967 = vmatmul.mubr.bf16.gmra.mxu0 %v17870_v34  ;;  %v3879_v29 = vpop.f32.mrf.mxu1  ;;  %v5797_v18 = vld [vmem:[#allocation2 + $0x60] sm:$0xf]  ;;  %vm21301_vm4 = vmmov %vm21292_vm1 }
 0x2af   : > { %v20307_v53 = vshrl.u32 %v17825_v23, 16  ;;  %v20318_v52 = vshrl.u32 %v17844_v10, 16  ;;  %v20327_v59 = vshll.u32 %v17844_v10, 16  ;;  %v4342_v51 = vadd.f32 %v12860_v25, %v3973_v35  ;;  %v21282_v49 = vld [vmem:[#allocation131_spill] sm:$0xff] }
 0x2b0   : > { %v4340_v2 = vadd.f32 %v4245_v8, %v3971_v60  ;;  %v5504_v1 = vsel %vm17782_vm13, %v4495_v6, 0.0  ;;  %v6057_v61 = vsel %vm21277_vm5, %v6047_v42, %v6056_v11  ;;  %v4343_v12 = vadd.f32 %v12861_v32, %v3974_v63  ;;  %v4248_v32 = vpop.f32.mrf.mxu0  ;;  %vm21295_vm13 = vmmov %vm21292_vm1 }
 0x2b1   : > { %v6061_v47 = vrot.slane %v20307_v53, 3  ;;  %v11476_v43 = vpack.c.bf16 %v5504_v1, %v5503_v44  ;;  %12902 = vmatprep.mubr.bf16.mxu1 %v6057_v61  ;;  %v6622_v50 = vrot.slane %v20318_v52, 3  ;;  %v6625_v8 = vrot.slane %v20327_v59, 4  ;;  %v12800_v1 = vpop.f32.mrf.mxu1 }
 0x2b2   : > { %v4397_v25 = vmul.f32 %v17813_v21, %v4342_v51  ;;  %v4395_v9 = vmul.f32 %v17813_v21, %v4340_v2  ;;  %v4398_v35 = vmul.f32 %v17813_v21, %v4343_v12  ;;  %v20312_v42 = vshll.u32 %v17825_v23, 16 }
 0x2b3   : > { %v17889_v60 = vcombine.low %v5795_v20, %v5796_v58  ;;  %v21279_v44 = vsel %vm17202_vm12, %v17183_v28, %v17120_v45  ;;  %11657 = vst [vmem:[#allocation2 + $0x88] sm:$0xff] %v11476_v43   ;;  %v6626_v5 = vor.u32 %v6625_v8, %v6622_v50  ;;  %v3972_v6 = vadd.f32 %v3879_v29, %v21282_v49  ;;  %vm21284_vm12 = vmmov %vm21228_vm3 }
 0x2b4   : > { %vm17896_vm15 = vcmp.lt.s32.totalorder %v21279_v44, 16  ;;  %v4452_v63 = vadd.f32 %v17830_v36, %v4397_v25  ;;  %v17902_v51 = vcombine.low %v5796_v58, %v5797_v18  ;;  %v4450_v20 = vadd.f32 %v17830_v36, %v4395_v9  ;;  %v13853_v58 = vld [vmem:[%s19944_s4 + $0x1f8] sm:$0xff]  }
 0x2b5   : > { %21278 = vst [vmem:[#allocation69_spill] sm:$0xff] %v17889_v60  ;;  %v4453_v45 = vadd.f32 %v17830_v36, %v4398_v35  ;;  %v6064_v28 = vrot.slane %v20312_v42, 4  ;;  %v20319_v2 = vshrl.u32 %v17889_v60, 16  ;;  %v17916_v61 = vsel %vm21284_vm12, %v6617_v7, %v6626_v5  ;;  %v5798_v35 = vld [vmem:[#allocation2 + $0x64] sm:$0xf]  ;;  %13194 = vmatprep.subr.bf16.mxu0 %v13853_v58 }
 0x2b6   : > { %21283 = vst [vmem:[#allocation70_spill] sm:$0xff] %v17902_v51  ;;  %v4500_v12 = vmax.f32 %v4452_v63, 0.0  ;;  %v20322_v29 = vshll.u32 %v17889_v60, 16  ;;  %v4341_v43 = vadd.f32 %v4248_v32, %v3972_v6  ;;  %12970 = vmatprep.mubr.bf16.mxu0 %v17916_v61  ;;  %v4498_v50 = vmax.f32 %v4450_v20, 0.0  ;;  %v17928_v6 = vld [vmem:[#allocation2 + $0x68] sm:$0xf] }
 0x2b7   : > { %v4501_v8 = vmax.f32 %v4453_v45, 0.0  ;;  %v6065_v25 = vor.u32 %v6064_v28, %v6061_v47  ;;  %v6631_v9 = vrot.slane %v20319_v2, 3  ;;  %v20305_v49 = vshrl.u32 %v17902_v51, 16  ;;  %v12864_v45 = vpop.f32.mrf.mxu0  ;;  %v3892_v28 = vpop.f32.mrf.mxu1 }
 0x2b8   : > { %v5509_v44 = vsel %vm17840_vm6, %v4500_v12, 0.0  ;;  %v6634_v7 = vrot.slane %v20322_v29, 4  ;;  %v4396_v63 = vmul.f32 %v17813_v21, %v4341_v43  ;;  %v5507_v47 = vsel %vm17854_vm14, %v4498_v50, 0.0 }
 0x2b9   : > { %v5510_v37 = vsel %vm17864_vm0, %v4501_v8, 0.0  ;;  %v6066_v20 = vsel %vm21285_vm7, %v6056_v11, %v6065_v25  ;;  %v20306_v24 = vshll.u32 %v17902_v51, 16  ;;  %v6070_v43 = vrot.slane %v20305_v49, 3  ;;  %v21288_v11 = vld [vmem:[#allocation17_spill] sm:$0xff] }
 0x2ba   : > { %v11491_v32 = vpack.c.bf16 %v5510_v37, %v5509_v44  ;;  %12903 = vmatmul.mubr.bf16.gmra.mxu1 %v6066_v20  ;;  %v6635_v58 = vor.u32 %v6634_v7, %v6631_v9  ;;  %v4451_v12 = vadd.f32 %v17830_v36, %v4396_v63  ;;  %v17942_v30 = vcombine.low %v5798_v35, %v17928_v6  ;;  %v21291_v37 = vld [vmem:[#allocation124_spill] sm:$0xff] }
 0x2bb   : > { %v6073_v17 = vrot.slane %v20306_v24, 4  ;;  %v17944_v50 = vcombine.low %v5797_v18, %v5798_v35  ;;  %v3977_v8 = vadd.f32 %v12800_v1, %v21288_v11  ;;  %v21290_v7 = vshrl.u32 %v17228_v38, 4  ;;  %v4261_v1 = vpop.f32.mrf.mxu0  ;;  %v12801_v11 = vpop.f32.mrf.mxu1 }
 0x2bc   : > { %21286 = vst [vmem:[#allocation66_spill] sm:$0xff] %v17942_v30  ;;  %11660 = vst [vmem:[#allocation2 + $0xa0] sm:$0xff] %v11491_v32   ;;  %v17948_v44 = vsel %vm21289_vm10, %v6626_v5, %v6635_v58  ;;  %v4499_v9 = vmax.f32 %v4451_v12, 0.0  ;;  %v3975_v20 = vadd.f32 %v3892_v28, %v21291_v37  ;;  %v4965_v38 = vshrl.u32 %v17246_v57, 4  ;;  %v21294_v37 = vld [vmem:[#allocation3_spill] sm:$0xff] }
 0x2bd   : > { %21287 = vst [vmem:[#allocation76_spill] sm:$0xff] %v17944_v50  ;;  %v4988_v63 = vmul.u32 24, %v21290_v7  ;;  %12971 = vmatmul.mubr.bf16.gmra.mxu0 %v17948_v44  ;;  %v17954_v49 = vor.u32 %v6073_v17, %v6070_v43  ;;  %v20310_v24 = vshrl.u32 %v17944_v50, 16  ;;  %v20316_v18 = vshll.u32 %v17944_v50, 16  ;;  %vm21304_vm10 = vmmov %vm21292_vm1 }
 0x2be   : > { %v4346_v35 = vadd.f32 %v12864_v45, %v3977_v8  ;;  %v5508_v5 = vsel %vm17896_vm15, %v4499_v9, 0.0  ;;  %v4344_v12 = vadd.f32 %v4261_v1, %v3975_v20 }
 0x2bf   : > { %v4989_v32 = vsub.s32 %v16906_v56, %v4988_v63  ;;  %v11486_v28 = vpack.c.bf16 %v5508_v5, %v5507_v47  ;;  %v6075_v43 = vsel %vm21292_vm1, %v6065_v25, %v17954_v49  ;;  %v6640_v17 = vrot.slane %v20310_v24, 3  ;;  %v21293_v25 = vld [vmem:[#allocation127_spill] sm:$0xff] }
 0x2c0   : > { %v6643_v45 = vrot.slane %v20316_v18, 4  ;;  %12906 = vmatprep.mubr.bf16.mxu1 %v6075_v43  ;;  %v4401_v14 = vmul.f32 %v17813_v21, %v4346_v35  ;;  %v4399_v57 = vmul.f32 %v17813_v21, %v4344_v12  ;;  %v4966_v47 = vmul.u32 24, %v4965_v38  ;;  %v5801_v5 = vld [vmem:[#allocation2 + $0x70] sm:$0xf] }
 0x2c1   : > { %vm5129_vm2 = vcmp.ne.s32.totalorder %v4989_v32, 0  ;;  %vm5177_vm9 = vcmp.lt.s32.totalorder %v4989_v32, 0  ;;  %v5273_v56 = vadd.s32 24, %v4989_v32  ;;  %11659 = vst [vmem:[#allocation2 + $0x98] sm:$0xff] %v11486_v28   ;;  %v3978_v9 = vadd.f32 %v12801_v11, %v21293_v25  ;;  %v12865_v11 = vpop.f32.mrf.mxu0 }
 0x2c2   : > { %v17969_v8 = vor.u32 %v6643_v45, %v6640_v17  ;;  %vm5225_vm8 = vmand %vm5177_vm9, %vm5129_vm2  ;;  %v4456_v7 = vadd.f32 %v17830_v36, %v4401_v14  ;;  %v17975_v20 = vmul.u32.u64.low 2863311531, %v21294_v37  ;;  %v17976_v1 = vmul.u32.u64.high 2863311531, %v21294_v37, %v17975_v20  ;;  %v5800_v45 = vld [vmem:[#allocation2 + $0x6c] sm:$0xf] }
 0x2c3   : > { %v5321_v63 = vsel %vm5225_vm8, %v5273_v56, %v4989_v32  ;;  %v4454_v12 = vadd.f32 %v17830_v36, %v4399_v57  ;;  %v4967_v38 = vsub.s32 %v16965_v31, %v4966_v47  ;;  %v4347_v28 = vadd.f32 %v12865_v11, %v3978_v9  ;;  %v21299_v20 = vld [vmem:[#allocation54_spill] sm:$0xff]  ;;  %vm21310_vm8 = vmmov %vm21292_vm1 }
 0x2c4   : > { %v17980_v35 = vsel %vm21295_vm13, %v6635_v58, %v17969_v8  ;;  %vm17982_vm11 = vcmp.lt.s32.totalorder %v5321_v63, 16  ;;  %v4504_v32 = vmax.f32 %v4456_v7, 0.0  ;;  %v20308_v43 = vshrl.u32 %v17942_v30, 16  ;;  %v3895_v58 = vpop.f32.mrf.mxu1 }
 0x2c5   : > { %12974 = vmatprep.mubr.bf16.mxu0 %v17980_v35  ;;  %v20309_v17 = vshll.u32 %v17942_v30, 16  ;;  %v4502_v14 = vmax.f32 %v4454_v12, 0.0  ;;  %vm5127_vm3 = vcmp.ne.s32.totalorder %v4967_v38, 0  ;;  %vm5175_vm6 = vcmp.lt.s32.totalorder %v4967_v38, 0 }
 0x2c6   : > { %v5271_v56 = vadd.s32 24, %v4967_v38  ;;  %v17993_v57 = vsel %vm17982_vm11, %v4504_v32, 0.0  ;;  %vm5223_vm14 = vmand %vm5175_vm6, %vm5127_vm3  ;;  %v4402_v31 = vmul.f32 %v17813_v21, %v4347_v28  ;;  %v4998_v47 = vshrl.u32 %v17976_v1, 4 }
 0x2c7   : > { %v6079_v25 = vrot.slane %v20308_v43, 3  ;;  %v6082_v7 = vrot.slane %v20309_v17, 4  ;;  %v18002_v63 = vcombine.low %v17928_v6, %v5800_v45  ;;  %v3976_v12 = vadd.f32 %v3895_v58, %v21299_v20  ;;  %v4264_v43 = vpop.f32.mrf.mxu0  ;;  %v12804_v17 = vpop.f32.mrf.mxu1 }
 0x2c8   : > { %v5319_v9 = vsel %vm5223_vm14, %v5271_v56, %v4967_v38  ;;  %v4457_v11 = vadd.f32 %v17830_v36, %v4402_v31  ;;  %v4999_v32 = vmul.u32 24, %v4998_v47  ;;  %v18006_v28 = vcombine.low %v5800_v45, %v5801_v5 }
 0x2c9   : > { %21298 = vst [vmem:[#allocation71_spill] sm:$0xff] %v18002_v63  ;;  %vm5367_vm0 = vcmp.lt.s32.totalorder %v5319_v9, 16  ;;  %v6083_v53 = vor.u32 %v6082_v7, %v6079_v25  ;;  %v20311_v38 = vshrl.u32 %v18002_v63, 16  ;;  %v20313_v56 = vshll.u32 %v18002_v63, 16  ;;  %v18021_v25 = vld [vmem:[#allocation2 + $0x78] sm:$0xf]  ;;  %v3908_v42 = vpop.f32.mrf.mxu1 }
 0x2ca   : > { %21300 = vst [vmem:[#allocation75_spill] sm:$0xff] %v18006_v28  ;;  %v18008_v1 = vsel %vm5367_vm0, %v4502_v14, 0.0  ;;  %v4505_v6 = vmax.f32 %v4457_v11, 0.0  ;;  %v5000_v24 = vsub.s32 %v21294_v37, %v4999_v32  ;;  %v4345_v58 = vadd.f32 %v4264_v43, %v3976_v12  ;;  %v5802_v43 = vld [vmem:[#allocation2 + $0x74] sm:$0xf] }
 0x2cb   : > { %v20315_v9 = vshrl.u32 %v18006_v28, 16  ;;  %v6084_v31 = vsel %vm21301_vm4, %v17954_v49, %v6083_v53  ;;  %v6649_v45 = vrot.slane %v20311_v38, 3  ;;  %v6652_v14 = vrot.slane %v20313_v56, 4  ;;  %v21302_v49 = vld [vmem:[#allocation4_spill] sm:$0xff]  ;;  %v12868_v38 = vpop.f32.mrf.mxu0 }
 0x2cc   : > { %v20317_v47 = vshll.u32 %v18006_v28, 16  ;;  %vm5130_vm5 = vcmp.ne.s32.totalorder %v5000_v24, 0  ;;  %vm5178_vm15 = vcmp.lt.s32.totalorder %v5000_v24, 0  ;;  %v5274_v7 = vadd.s32 24, %v5000_v24  ;;  %12907 = vmatmul.mubr.bf16.gmra.mxu1 %v6084_v31 }
 0x2cd   : > { %v4400_v37 = vmul.f32 %v17813_v21, %v4345_v58  ;;  %vm5226_vm12 = vmand %vm5178_vm15, %vm5130_vm5  ;;  %v6653_v20 = vor.u32 %v6652_v14, %v6649_v45  ;;  %v18025_v12 = vmul.u32.u64.low 2863311531, %v21302_v49  ;;  %v18026_v11 = vmul.u32.u64.high 2863311531, %v21302_v49, %v18025_v12 }
 0x2ce   : > { %v6088_v32 = vrot.slane %v20315_v9, 3  ;;  %v5322_v56 = vsel %vm5226_vm12, %v5274_v7, %v5000_v24  ;;  %v6091_v31 = vrot.slane %v20317_v47, 4  ;;  %v18034_v58 = vcombine.low %v5802_v43, %v18021_v25  ;;  %v21306_v12 = vld [vmem:[#allocation133_spill] sm:$0xff]  ;;  %vm21314_vm12 = vmmov %vm21292_vm1 }
 0x2cf   : > { %v4455_v0 = vadd.f32 %v17830_v36, %v4400_v37  ;;  %vm5370_vm7 = vcmp.lt.s32.totalorder %v5322_v56, 16  ;;  %v18038_v45 = vsel %vm21304_vm10, %v17969_v8, %v6653_v20  ;;  %v18040_v14 = vcombine.low %v5801_v5, %v5802_v43  ;;  %v21307_v37 = vld [vmem:[#allocation134_spill] sm:$0xff]  ;;  %v4277_v5 = vpop.f32.mrf.mxu0  ;;  %v12805_v43 = vpop.f32.mrf.mxu1 }
 0x2d0   : > { %21303 = vst [vmem:[#allocation72_spill] sm:$0xff] %v18034_v58  ;;  %v3981_v9 = vadd.f32 %v12804_v17, %v21306_v12  ;;  %v5514_v18 = vsel %vm5370_vm7, %v4505_v6, 0.0  ;;  %12975 = vmatmul.mubr.bf16.gmra.mxu0 %v18038_v45  ;;  %v18044_v7 = vor.u32 %v6091_v31, %v6088_v32  ;;  %v3979_v47 = vadd.f32 %v3908_v42, %v21307_v37  ;;  %v21308_v12 = vld [vmem:[#allocation62_spill] sm:$0xff] }
 0x2d1   : > { %21305 = vst [vmem:[#allocation77_spill] sm:$0xff] %v18040_v14  ;;  %v4503_v24 = vmax.f32 %v4455_v0, 0.0  ;;  %v11501_v52 = vpack.c.bf16 %v5514_v18, %v17993_v57  ;;  %v4976_v56 = vshrl.u32 %v18026_v11, 4  ;;  %v20320_v2 = vshrl.u32 %v18040_v14, 16 }
 0x2d2   : > { %v20321_v8 = vshll.u32 %v18040_v14, 16  ;;  %v6093_v17 = vsel %vm21292_vm1, %v6083_v53, %v18044_v7  ;;  %v4350_v6 = vadd.f32 %v12868_v38, %v3981_v9  ;;  %v4348_v11 = vadd.f32 %v4277_v5, %v3979_v47  ;;  %v21309_v38 = vld [vmem:[#allocation14_spill] sm:$0xff] }
 0x2d3   : > { %v18054_v0 = vmul.u32.u64.low 2863311531, %v21308_v12  ;;  %v18055_v32 = vmul.u32.u64.high 2863311531, %v21308_v12, %v18054_v0  ;;  %11662 = vst [vmem:[#allocation2 + $0xb0] sm:$0xff] %v11501_v52   ;;  %v4977_v42 = vmul.u32 24, %v4976_v56  ;;  %12910 = vmatprep.mubr.bf16.mxu1 %v6093_v17  ;;  %v6658_v18 = vrot.slane %v20320_v2, 3  ;;  %v12869_v17 = vpop.f32.mrf.mxu0 }
 0x2d4   : > { %v6661_v57 = vrot.slane %v20321_v8, 4  ;;  %v4405_v31 = vmul.f32 %v17813_v21, %v4350_v6  ;;  %v18063_v37 = vmul.u32.u64.low 2863311531, %v17134_v26  ;;  %v18064_v53 = vmul.u32.u64.high 2863311531, %v17134_v26, %v18063_v37 }
 0x2d5   : > { %v3982_v9 = vadd.f32 %v12805_v43, %v21309_v38  ;;  %v4978_v0 = vsub.s32 %v21302_v49, %v4977_v42  ;;  %v4403_v56 = vmul.f32 %v17813_v21, %v4348_v11  ;;  %v20323_v2 = vshrl.u32 %v18034_v58, 16 }
 0x2d6   : > { %v18068_v52 = vor.u32 %v6661_v57, %v6658_v18  ;;  %v4460_v8 = vadd.f32 %v17830_v36, %v4405_v31  ;;  %v5031_v47 = vshrl.u32 %v18055_v32, 4  ;;  %v20324_v6 = vshll.u32 %v18034_v58, 16 }
 0x2d7   : > { %v4351_v5 = vadd.f32 %v12869_v17, %v3982_v9  ;;  %vm5128_vm2 = vcmp.ne.s32.totalorder %v4978_v0, 0  ;;  %vm5176_vm9 = vcmp.lt.s32.totalorder %v4978_v0, 0  ;;  %v5272_v37 = vadd.s32 24, %v4978_v0 }
 0x2d8   : > { %v18077_v49 = vsel %vm21310_vm8, %v6653_v20, %v18068_v52  ;;  %vm5224_vm13 = vmand %vm5176_vm9, %vm5128_vm2  ;;  %v4508_v43 = vmax.f32 %v4460_v8, 0.0  ;;  %v5032_v42 = vmul.u32 24, %v5031_v47  ;;  %v4458_v18 = vadd.f32 %v17830_v36, %v4403_v56  ;;  %v3911_v47 = vpop.f32.mrf.mxu1 }
 0x2d9   : > { %12978 = vmatprep.mubr.bf16.mxu0 %v18077_v49  ;;  %v5009_v57 = vshrl.u32 %v18064_v53, 4  ;;  %v5320_v32 = vsel %vm5224_vm13, %v5272_v37, %v4978_v0  ;;  %v4406_v11 = vmul.f32 %v17813_v21, %v4351_v5  ;;  %v6097_v56 = vrot.slane %v20323_v2, 3  ;;  %v5804_v0 = vld [vmem:[#allocation2 + $0x7c] sm:$0xf]  ;;  %vm21319_vm13 = vmmov %vm21310_vm8 }
 0x2da   : > { %v18084_v31 = vmul.u32.u64.low 2863311531, %v17217_v19  ;;  %v18085_v38 = vmul.u32.u64.high 2863311531, %v17217_v19, %v18084_v31  ;;  %vm5368_vm11 = vcmp.lt.s32.totalorder %v5320_v32, 16  ;;  %v5033_v20 = vsub.s32 %v21308_v12, %v5032_v42  ;;  %v12808_v2 = vpop.f32.mrf.mxu1 }
 0x2db   : > { %v4506_v9 = vmax.f32 %v4458_v18, 0.0  ;;  %v5010_v17 = vmul.u32 24, %v5009_v57  ;;  %v5512_v29 = vsel %vm5368_vm11, %v4503_v24, 0.0  ;;  %v18089_v8 = vadd.f32 %v17830_v36, %v4406_v11  ;;  %v21312_v11 = vld [vmem:[#allocation142_spill] sm:$0xff]  ;;  %vm21322_vm11 = vmmov %vm21310_vm8 }
 0x2dc   : > { %v6100_v53 = vrot.slane %v20324_v6, 4  ;;  %v11496_v5 = vpack.c.bf16 %v5512_v29, %v18008_v1  ;;  %vm5133_vm3 = vcmp.ne.s32.totalorder %v5033_v20, 0  ;;  %vm5181_vm6 = vcmp.lt.s32.totalorder %v5033_v20, 0  ;;  %v21313_v29 = vld [vmem:[#allocation18_spill] sm:$0xff] }
 0x2dd   : > { %v5277_v37 = vadd.s32 24, %v5033_v20  ;;  %vm5229_vm14 = vmand %vm5181_vm6, %vm5133_vm3  ;;  %v5011_v12 = vsub.s32 %v17134_v26, %v5010_v17  ;;  %v4509_v24 = vmax.f32 %v18089_v8, 0.0  ;;  %v5042_v42 = vshrl.u32 %v18085_v38, 4  ;;  %v18108_v17 = vld [vmem:[#allocation2 + $0x88] sm:$0xf] }
 0x2de   : > { %v18099_v18 = vor.u32 %v6100_v53, %v6097_v56  ;;  %11661 = vst [vmem:[#allocation2 + $0xa8] sm:$0xff] %v11496_v5   ;;  %v18102_v32 = vcombine.low %v18021_v25, %v5804_v0  ;;  %v3980_v31 = vadd.f32 %v3911_v47, %v21312_v11  ;;  %v18106_v1 = vadd.s32 328, %v21313_v29  ;;  %v4280_v56 = vpop.f32.mrf.mxu0  ;;  %v5805_v53 = vld [vmem:[#allocation2 + $0x80] sm:$0xf]  ;;  %v5806_v11 = vld [vmem:[#allocation2 + $0x84] sm:$0xf] }
 0x2df   : > { %v5325_v57 = vsel %vm5229_vm14, %v5277_v37, %v5033_v20  ;;  %vm5131_vm4 = vcmp.ne.s32.totalorder %v5011_v12, 0  ;;  %vm5179_vm5 = vcmp.lt.s32.totalorder %v5011_v12, 0  ;;  %v5275_v26 = vadd.s32 24, %v5011_v12 }
 0x2e0   : > { %21311 = vst [vmem:[#allocation83_spill] sm:$0xff] %v18102_v32  ;;  %vm5373_vm0 = vcmp.lt.s32.totalorder %v5325_v57, 16  ;;  %vm5227_vm15 = vmand %vm5179_vm5, %vm5131_vm4  ;;  %v5043_v38 = vmul.u32 24, %v5042_v42  ;;  %v6102_v20 = vsel %vm21314_vm12, %v18044_v7, %v18099_v18  ;;  %v20325_v25 = vshrl.u32 %v18102_v32, 16 }
 0x2e1   : > { %v5517_v8 = vsel %vm5373_vm0, %v4508_v43, 0.0  ;;  %v5323_v47 = vsel %vm5227_vm15, %v5275_v26, %v5011_v12  ;;  %12911 = vmatmul.mubr.bf16.gmra.mxu1 %v6102_v20  ;;  %v20326_v5 = vshll.u32 %v18102_v32, 16  ;;  %v4349_v37 = vadd.f32 %v4280_v56, %v3980_v31  ;;  %vm21324_vm12 = vmmov %vm21310_vm8 }
 0x2e2   : > { %v18115_v57 = vcombine.low %v5804_v0, %v5805_v53  ;;  %vm5371_vm7 = vcmp.lt.s32.totalorder %v5323_v47, 16  ;;  %v5044_v43 = vsub.s32 %v17217_v19, %v5043_v38  ;;  %v6667_v42 = vrot.slane %v20325_v25, 3  ;;  %v3924_v47 = vpop.f32.mrf.mxu1 }
 0x2e3   : > { %v18121_v7 = vcombine.low %v5806_v11, %v18108_v17  ;;  %v18123_v6 = vsel %vm5371_vm7, %v4506_v9, 0.0  ;;  %v6670_v12 = vrot.slane %v20326_v5, 4  ;;  %v4404_v31 = vmul.f32 %v17813_v21, %v4349_v37 }
 0x2e4   : > { %21315 = vst [vmem:[#allocation80_spill] sm:$0xff] %v18115_v57  ;;  %v20330_v0 = vshrl.u32 %v18115_v57, 16  ;;  %vm5134_vm10 = vcmp.ne.s32.totalorder %v5044_v43, 0  ;;  %vm5182_vm1 = vcmp.lt.s32.totalorder %v5044_v43, 0  ;;  %v5278_v26 = vadd.s32 24, %v5044_v43 }
 0x2e5   : > { %21316 = vst [vmem:[#allocation73_spill] sm:$0xff] %v18121_v7  ;;  %v20331_v19 = vshll.u32 %v18115_v57, 16  ;;  %vm5230_vm2 = vmand %vm5182_vm1, %vm5134_vm10  ;;  %v6671_v38 = vor.u32 %v6670_v12, %v6667_v42  ;;  %v18131_v20 = vadd.f32 %v17830_v36, %v4404_v31  ;;  %v18141_v59 = vcombine.low %v5805_v53, %v5806_v11  ;;  %v21318_v31 = vld [vmem:[#allocation136_spill] sm:$0xff] }
 0x2e6   : > { %v18134_v9 = vmul.u32.u64.low 2863311531, %v18106_v1  ;;  %v18135_v56 = vmul.u32.u64.high 2863311531, %v18106_v1, %v18134_v9  ;;  %v5326_v25 = vsel %vm5230_vm2, %v5278_v26, %v5044_v43  ;;  %v6106_v37 = vrot.slane %v20330_v0, 3 }
 0x2e7   : > { %v6109_v5 = vrot.slane %v20331_v19, 4  ;;  %21317 = vst [vmem:[#allocation95_spill] sm:$0xff] %v18141_v59  ;;  %vm5374_vm9 = vcmp.lt.s32.totalorder %v5326_v25, 16  ;;  %v18145_v42 = vsel %vm21310_vm8, %v18068_v52, %v6671_v38  ;;  %v4507_v12 = vmax.f32 %v18131_v20, 0.0  ;;  %v12872_v9 = vpop.f32.mrf.mxu0  ;;  %v12809_v19 = vpop.f32.mrf.mxu1  ;;  %v21320_v20 = vld [vmem:[#allocation138_spill] sm:$0xff] }
 0x2e8   : > { %v3985_v27 = vadd.f32 %v12808_v2, %v21318_v31  ;;  %v5518_v3 = vsel %vm5374_vm9, %v4509_v24, 0.0  ;;  %12979 = vmatmul.mubr.bf16.gmra.mxu0 %v18145_v42  ;;  %v20334_v26 = vshrl.u32 %v18141_v59, 16  ;;  %v20337_v53 = vshll.u32 %v18141_v59, 16 }
 0x2e9   : > { %v18150_v43 = vor.u32 %v6109_v5, %v6106_v37  ;;  %v11511_v11 = vpack.c.bf16 %v5518_v3, %v5517_v8  ;;  %v5020_v25 = vshrl.u32 %v18135_v56, 4  ;;  %v4561_v52 = vadd.s32 368, %v21313_v29  ;;  %v4293_v31 = vpop.f32.mrf.mxu0  ;;  %v3927_v59 = vpop.f32.mrf.mxu1 }
 0x2ea   : > { %v4354_v0 = vadd.f32 %v12872_v9, %v3985_v27  ;;  %v6676_v24 = vrot.slane %v20334_v26, 3  ;;  %v6679_v5 = vrot.slane %v20337_v53, 4  ;;  %v3983_v37 = vadd.f32 %v3924_v47, %v21320_v20  ;;  %v21321_v26 = vld [vmem:[#allocation26_spill] sm:$0xff] }
 0x2eb   : > { %v6111_v2 = vsel %vm21319_vm13, %v18099_v18, %v18150_v43  ;;  %11664 = vst [vmem:[#allocation2 + $0xc0] sm:$0xff] %v11511_v11   ;;  %v5021_v3 = vmul.u32 24, %v5020_v25  ;;  %v18165_v8 = vmul.u32.u64.low 2863311531, %v4561_v52  ;;  %v18166_v56 = vmul.u32.u64.high 2863311531, %v4561_v52, %v18165_v8 }
 0x2ec   : > { %12914 = vmatprep.mubr.bf16.mxu1 %v6111_v2  ;;  %v4409_v27 = vmul.f32 %v17813_v21, %v4354_v0  ;;  %v18168_v9 = vor.u32 %v6679_v5, %v6676_v24  ;;  %v4352_v18 = vadd.f32 %v4293_v31, %v3983_v37  ;;  %v4559_v32 = vadd.s32 352, %v21313_v29 }
 0x2ed   : > { %v3986_v14 = vadd.f32 %v12809_v19, %v21321_v26  ;;  %v5022_v53 = vsub.s32 %v18106_v1, %v5021_v3  ;;  %v4562_v11 = vadd.s32 376, %v21313_v29  ;;  %v20344_v0 = vshrl.u32 %v18121_v7, 16  ;;  %v12873_v26 = vpop.f32.mrf.mxu0 }
 0x2ee   : > { %v18174_v47 = vadd.f32 %v17830_v36, %v4409_v27  ;;  %v18180_v25 = vsel %vm21322_vm11, %v6671_v38, %v18168_v9  ;;  %v4407_v2 = vmul.f32 %v17813_v21, %v4352_v18  ;;  %v5075_v20 = vshrl.u32 %v18166_v56, 4  ;;  %v5808_v27 = vld [vmem:[#allocation2 + $0x8c] sm:$0xf] }
 0x2ef   : > { %v18183_v24 = vmul.u32.u64.low 2863311531, %v4559_v32  ;;  %v18184_v5 = vmul.u32.u64.high 2863311531, %v4559_v32, %v18183_v24  ;;  %vm5132_vm3 = vcmp.ne.s32.totalorder %v5022_v53, 0  ;;  %vm5180_vm6 = vcmp.lt.s32.totalorder %v5022_v53, 0  ;;  %12982 = vmatprep.mubr.bf16.mxu0 %v18180_v25 }
 0x2f0   : > { %v5276_v19 = vadd.s32 24, %v5022_v53  ;;  %v4512_v1 = vmax.f32 %v18174_v47, 0.0  ;;  %vm5228_vm14 = vmand %vm5180_vm6, %vm5132_vm3  ;;  %v4462_v37 = vadd.f32 %v17830_v36, %v4407_v2  ;;  %v4355_v38 = vadd.f32 %v12873_v26, %v3986_v14 }
 0x2f1   : > { %v6115_v3 = vrot.slane %v20344_v0, 3  ;;  %v18192_v31 = vmul.u32.u64.low 2863311531, %v4562_v11  ;;  %v18193_v18 = vmul.u32.u64.high 2863311531, %v4562_v11, %v18192_v31  ;;  %v20349_v24 = vshll.u32 %v18121_v7, 16  ;;  %v21323_v0 = vld [vmem:[#allocation55_spill] sm:$0xff]  ;;  %vm21326_vm6 = vmmov %vm21324_vm12 }
 0x2f2   : > { %v5324_v8 = vsel %vm5228_vm14, %v5276_v19, %v5022_v53  ;;  %v5076_v47 = vmul.u32 24, %v5075_v20  ;;  %v4510_v63 = vmax.f32 %v4462_v37, 0.0  ;;  %v5053_v50 = vshrl.u32 %v18184_v5, 4  ;;  %vm21327_vm14 = vmmov %vm21326_vm6 }
 0x2f3   : > { %vm5372_vm0 = vcmp.lt.s32.totalorder %v5324_v8, 16  ;;  %v4410_v2 = vmul.f32 %v17813_v21, %v4355_v38  ;;  %v6118_v14 = vrot.slane %v20349_v24, 4  ;;  %v18201_v26 = vcombine.low %v18108_v17, %v5808_v27 }
 0x2f4   : > { %v5516_v56 = vsel %vm5372_vm0, %v4507_v12, 0.0  ;;  %v5077_v19 = vsub.s32 %v4561_v52, %v5076_v47  ;;  %v5054_v31 = vmul.u32 24, %v5053_v50  ;;  %v3984_v60 = vadd.f32 %v3927_v59, %v21323_v0 }
 0x2f5   : > { %v11506_v53 = vpack.c.bf16 %v5516_v56, %v18123_v6  ;;  %v4465_v20 = vadd.f32 %v17830_v36, %v4410_v2  ;;  %v5086_v37 = vshrl.u32 %v18193_v18, 4  ;;  %v18207_v5 = vor.u32 %v6118_v14, %v6115_v3  ;;  %v4296_v3 = vpop.f32.mrf.mxu0  ;;  %v5809_v56 = vld [vmem:[#allocation2 + $0x90] sm:$0xf] }
 0x2f6   : > { %v20351_v12 = vshrl.u32 %v18201_v26, 16  ;;  %vm5137_vm4 = vcmp.ne.s32.totalorder %v5077_v19, 0  ;;  %vm5185_vm5 = vcmp.lt.s32.totalorder %v5077_v19, 0  ;;  %v5281_v38 = vadd.s32 24, %v5077_v19 }
 0x2f7   : > { %11663 = vst [vmem:[#allocation2 + $0xb8] sm:$0xff] %v11506_v53   ;;  %v5055_v17 = vsub.s32 %v4559_v32, %v5054_v31  ;;  %vm5233_vm15 = vmand %vm5185_vm5, %vm5137_vm4  ;;  %v4513_v8 = vmax.f32 %v4465_v20, 0.0  ;;  %v5087_v6 = vmul.u32 24, %v5086_v37  ;;  %v6120_v59 = vsel %vm21324_vm12, %v18150_v43, %v18207_v5  ;;  %v5810_v31 = vld [vmem:[#allocation2 + $0x94] sm:$0xf] }
 0x2f8   : > { %v6685_v50 = vrot.slane %v20351_v12, 3  ;;  %v5329_v52 = vsel %vm5233_vm15, %v5281_v38, %v5077_v19  ;;  %12915 = vmatmul.mubr.bf16.gmra.mxu1 %v6120_v59  ;;  %v20353_v32 = vshll.u32 %v18201_v26, 16  ;;  %v4353_v47 = vadd.f32 %v4296_v3, %v3984_v60  ;;  %v5811_v37 = vld [vmem:[#allocation2 + $0x98] sm:$0xf]  ;;  %vm21328_vm5 = vmmov %vm21326_vm6 }
 0x2f9   : > { %vm5135_vm7 = vcmp.ne.s32.totalorder %v5055_v17, 0  ;;  %vm5183_vm10 = vcmp.lt.s32.totalorder %v5055_v17, 0  ;;  %v5279_v0 = vadd.s32 24, %v5055_v17  ;;  %vm5377_vm1 = vcmp.lt.s32.totalorder %v5329_v52, 16  ;;  %vm21330_vm12 = vmmov %vm21328_vm5 }
 0x2fa   : > { %vm5231_vm2 = vmand %vm5183_vm10, %vm5135_vm7  ;;  %v5088_v18 = vsub.s32 %v4562_v11, %v5087_v6  ;;  %v5521_v2 = vsel %vm5377_vm1, %v4512_v1, 0.0  ;;  %v4560_v43 = vadd.s32 360, %v21313_v29  ;;  %v18217_v53 = vcombine.low %v5808_v27, %v5809_v56  ;;  %v5812_v6 = vld [vmem:[#allocation2 + $0x9c] sm:$0xf] }
 0x2fb   : > { %v5327_v14 = vsel %vm5231_vm2, %v5279_v0, %v5055_v17  ;;  %v6688_v11 = vrot.slane %v20353_v32, 4  ;;  %v4408_v60 = vmul.f32 %v17813_v21, %v4353_v47  ;;  %v18236_v3 = vcombine.low %v5810_v31, %v5811_v37  ;;  %vm21331_vm7 = vmmov %vm21328_vm5 }
 0x2fc   : > { %21325 = vst [vmem:[#allocation85_spill] sm:$0xff] %v18217_v53  ;;  %vm5375_vm9 = vcmp.lt.s32.totalorder %v5327_v14, 16  ;;  %vm5138_vm8 = vcmp.ne.s32.totalorder %v5088_v18, 0  ;;  %vm5186_vm13 = vcmp.lt.s32.totalorder %v5088_v18, 0  ;;  %v5282_v19 = vadd.s32 24, %v5088_v18  ;;  %vm21333_vm1 = vmmov %vm21328_vm5 }
 0x2fd   : > { %v18219_v20 = vsel %vm5375_vm9, %v4510_v63, 0.0  ;;  %vm5234_vm11 = vmand %vm5186_vm13, %vm5138_vm8  ;;  %v20347_v1 = vshrl.u32 %v18217_v53, 16  ;;  %v18225_v29 = vmul.u32.u64.low 2863311531, %v4560_v43  ;;  %v18226_v27 = vmul.u32.u64.high 2863311531, %v4560_v43, %v18225_v29 }
 0x2fe   : > { %v5330_v38 = vsel %vm5234_vm11, %v5282_v19, %v5088_v18  ;;  %v20348_v17 = vshll.u32 %v18217_v53, 16  ;;  %v6689_v59 = vor.u32 %v6688_v11, %v6685_v50  ;;  %v18230_v63 = vadd.f32 %v17830_v36, %v4408_v60  ;;  %v5815_v29 = vld [vmem:[#allocation2 + $0xa8] sm:$0xf]  ;;  %vm21334_vm2 = vmmov %vm21333_vm1 }
 0x2ff   : > { %vm5378_vm3 = vcmp.lt.s32.totalorder %v5330_v38, 16  ;;  %v6124_v52 = vrot.slane %v20347_v1, 3  ;;  %v18238_v18 = vcombine.low %v5809_v56, %v5810_v31  ;;  %v18245_v36 = vcombine.low %v5811_v37, %v5812_v6  ;;  %v5813_v56 = vld [vmem:[#allocation2 + $0xa0] sm:$0xf]  ;;  %v5814_v31 = vld [vmem:[#allocation2 + $0xa4] sm:$0xf]  ;;  %vm21336_vm9 = vmmov %vm21333_vm1 }
 0x300   : > { %v5522_v0 = vsel %vm5378_vm3, %v4513_v8, 0.0  ;;  %v6127_v21 = vrot.slane %v20348_v17, 4  ;;  %v18242_v14 = vsel %vm21326_vm6, %v18168_v9, %v6689_v59  ;;  %v4511_v50 = vmax.f32 %v18230_v63, 0.0  ;;  %vm21337_vm8 = vmmov %vm21333_vm1 }
 0x301   : > { %v11521_v47 = vpack.c.bf16 %v5522_v0, %v5521_v2  ;;  %12983 = vmatmul.mubr.bf16.gmra.mxu0 %v18242_v14  ;;  %v5064_v8 = vshrl.u32 %v18226_v27, 4  ;;  %v20350_v11 = vshrl.u32 %v18238_v18, 16  ;;  %v20352_v60 = vshll.u32 %v18238_v18, 16  ;;  %vm21339_vm13 = vmmov %vm21333_vm1 }
 0x302   : > { %v6128_v19 = vor.u32 %v6127_v21, %v6124_v52  ;;  %v20354_v2 = vshrl.u32 %v18236_v3, 16  ;;  %v20355_v9 = vshll.u32 %v18236_v3, 16  ;;  %v20356_v38 = vshrl.u32 %v18245_v36, 16  ;;  %v5816_v21 = vld [vmem:[#allocation2 + $0xac] sm:$0xf]  ;;  %vm21340_vm11 = vmmov %vm21333_vm1 }
 0x303   : > { %11666 = vst [vmem:[#allocation2 + $0xd0] sm:$0xff] %v11521_v47   ;;  %v20359_v37 = vshll.u32 %v18245_v36, 16  ;;  %v5065_v63 = vmul.u32 24, %v5064_v8  ;;  %v6694_v52 = vrot.slane %v20350_v11, 3  ;;  %v6697_v0 = vrot.slane %v20352_v60, 4  ;;  %vm21342_vm3 = vmmov %vm21333_vm1 }
 0x304   : > { %v6129_v27 = vsel %vm21327_vm14, %v18207_v5, %v6128_v19  ;;  %v6133_v47 = vrot.slane %v20354_v2, 3  ;;  %v6136_v1 = vrot.slane %v20355_v9, 4  ;;  %v6703_v8 = vrot.slane %v20356_v38, 3  ;;  %vm21343_vm6 = vmmov %vm21333_vm1 }
 0x305   : > { %12918 = vmatprep.mubr.bf16.mxu1 %v6129_v27  ;;  %v6706_v5 = vrot.slane %v20359_v37, 4  ;;  %v5066_v17 = vsub.s32 %v4560_v43, %v5065_v63  ;;  %v6698_v24 = vor.u32 %v6697_v0, %v6694_v52  ;;  %v18269_v11 = vcombine.low %v5812_v6, %v5813_v56  ;;  %v5817_v52 = vld [vmem:[#allocation2 + $0xb0] sm:$0xf]  ;;  %vm21345_vm14 = vmmov %vm21333_vm1 }
 0x306   : > { %v18271_v12 = vcombine.low %v5814_v31, %v5815_v29  ;;  %v6137_v60 = vor.u32 %v6136_v1, %v6133_v47  ;;  %v18273_v32 = vcombine.low %v5813_v56, %v5814_v31  ;;  %v18275_v2 = vcombine.low %v5815_v29, %v5816_v21 }
 0x307   : > { %v6707_v27 = vor.u32 %v6706_v5, %v6703_v8  ;;  %vm5136_vm0 = vcmp.ne.s32.totalorder %v5066_v17, 0  ;;  %vm5184_vm4 = vcmp.lt.s32.totalorder %v5066_v17, 0  ;;  %v5280_v9 = vadd.s32 24, %v5066_v17 }
 0x308   : > { %v18278_v38 = vsel %vm21328_vm5, %v6689_v59, %v6698_v24  ;;  %vm5232_vm15 = vmand %vm5184_vm4, %vm5136_vm0  ;;  %v6138_v43 = vsel %vm21330_vm12, %v6128_v19, %v6137_v60  ;;  %v20357_v1 = vshrl.u32 %v18269_v11, 16  ;;  %v20358_v56 = vshll.u32 %v18269_v11, 16 }
 0x309   : > { %21329 = vst [vmem:[#allocation81_spill] sm:$0xff] %v18278_v38  ;;  %12986 = vmatprep.mubr.bf16.mxu0 %v18278_v38  ;;  %v18283_v6 = vsel %vm21331_vm7, %v6698_v24, %v6707_v27  ;;  %v5328_v31 = vsel %vm5232_vm15, %v5280_v9, %v5066_v17  ;;  %12919 = vmatmul.mubr.bf16.gmra.mxu1 %v6138_v43  ;;  %v20364_v29 = vshrl.u32 %v18273_v32, 16  ;;  %v20365_v59 = vshll.u32 %v18273_v32, 16  ;;  %v5819_v17 = vld [vmem:[#allocation2 + $0xb8] sm:$0xf]  ;;  %vm21346_vm0 = vmmov %vm21333_vm1 }
 0x30a   : > { %21332 = vst [vmem:[#allocation74_spill] sm:$0xff] %v18283_v6  ;;  %12987 = vmatmul.mubr.bf16.gmra.mxu0 %v18283_v6  ;;  %v20366_v63 = vshrl.u32 %v18271_v12, 16  ;;  %vm5376_vm10 = vcmp.lt.s32.totalorder %v5328_v31, 16  ;;  %v6142_v24 = vrot.slane %v20357_v1, 3  ;;  %v6145_v19 = vrot.slane %v20358_v56, 4  ;;  %vm21347_vm4 = vmmov %vm21346_vm0 }
 0x30b   : > { %v20367_v0 = vshll.u32 %v18271_v12, 16  ;;  %v5520_v9 = vsel %vm5376_vm10, %v4511_v50, 0.0  ;;  %v6712_v47 = vrot.slane %v20364_v29, 3  ;;  %v6715_v8 = vrot.slane %v20365_v59, 4  ;;  %v5818_v43 = vld [vmem:[#allocation2 + $0xb4] sm:$0xf]  ;;  %vm21348_vm5 = vmmov %vm21346_vm0 }
 0x30c   : > { %v6151_v5 = vrot.slane %v20366_v63, 3  ;;  %v11516_v31 = vpack.c.bf16 %v5520_v9, %v18219_v20  ;;  %v6146_v1 = vor.u32 %v6145_v19, %v6142_v24  ;;  %v20368_v37 = vshrl.u32 %v18275_v2, 16  ;;  %vm21349_vm15 = vmmov %vm21346_vm0 }
 0x30d   : > { %v6154_v56 = vrot.slane %v20367_v0, 4  ;;  %v6716_v10 = vor.u32 %v6715_v8, %v6712_v47  ;;  %v20369_v50 = vshll.u32 %v18275_v2, 16  ;;  %v18307_v46 = vcombine.low %v5816_v21, %v5817_v52  ;;  %v5820_v8 = vld [vmem:[#allocation2 + $0xbc] sm:$0xf]  ;;  %vm21353_vm12 = vmmov %vm21346_vm0 }
 0x30e   : > { %v18309_v29 = vcombine.low %v5818_v43, %v5819_v17  ;;  %11665 = vst [vmem:[#allocation2 + $0xc8] sm:$0xff] %v11516_v31   ;;  %v6147_v59 = vsel %vm21333_vm1, %v6137_v60, %v6146_v1  ;;  %v6721_v20 = vrot.slane %v20368_v37, 3  ;;  %v18314_v24 = vcombine.low %v5817_v52, %v5818_v43  ;;  %v5822_v37 = vld [vmem:[#allocation2 + $0xc4] sm:$0xf] }
 0x30f   : > { %v6155_v63 = vor.u32 %v6154_v56, %v6151_v5  ;;  %12922 = vmatprep.mubr.bf16.mxu1 %v6147_v59  ;;  %v18317_v19 = vsel %vm21334_vm2, %v6707_v27, %v6716_v10  ;;  %v6724_v9 = vrot.slane %v20369_v50, 4  ;;  %v20372_v21 = vshrl.u32 %v18307_v46, 16  ;;  %v5821_v27 = vld [vmem:[#allocation2 + $0xc0] sm:$0xf] }
 0x310   : > { %21335 = vst [vmem:[#allocation79_spill] sm:$0xff] %v18317_v19  ;;  %v20373_v47 = vshll.u32 %v18307_v46, 16  ;;  %12990 = vmatprep.mubr.bf16.mxu0 %v18317_v19  ;;  %v20374_v56 = vshrl.u32 %v18314_v24, 16  ;;  %v20377_v52 = vshll.u32 %v18314_v24, 16  ;;  %v20380_v59 = vshrl.u32 %v18309_v29, 16 }
 0x311   : > { %v6156_v60 = vsel %vm21336_vm9, %v6146_v1, %v6155_v63  ;;  %v6725_v5 = vor.u32 %v6724_v9, %v6721_v20  ;;  %v6160_v43 = vrot.slane %v20372_v21, 3  ;;  %v20381_v0 = vshll.u32 %v18309_v29, 16 }
 0x312   : > { %12923 = vmatmul.mubr.bf16.gmra.mxu1 %v6156_v60  ;;  %v6163_v31 = vrot.slane %v20373_v47, 4  ;;  %v6730_v1 = vrot.slane %v20374_v56, 3  ;;  %v6733_v50 = vrot.slane %v20377_v52, 4  ;;  %v6169_v22 = vrot.slane %v20380_v59, 3 }
 0x313   : > { %v18339_v60 = vcombine.low %v5819_v17, %v5820_v8  ;;  %v18342_v20 = vsel %vm21337_vm8, %v6716_v10, %v6725_v5  ;;  %v6172_v21 = vrot.slane %v20381_v0, 4  ;;  %v18346_v47 = vcombine.low %v5820_v8, %v5821_v27 }
 0x314   : > { %21338 = vst [vmem:[#allocation82_spill] sm:$0xff] %v18342_v20  ;;  %v6164_v9 = vor.u32 %v6163_v31, %v6160_v43  ;;  %12991 = vmatmul.mubr.bf16.gmra.mxu0 %v18342_v20  ;;  %v6734_v56 = vor.u32 %v6733_v50, %v6730_v1  ;;  %v18351_v13 = vcombine.low %v5821_v27, %v5822_v37  ;;  %v5825_v20 = vld [vmem:[#allocation2 + $0xd0] sm:$0xf]  ;;  %vm21362_vm7 = vsmask.f32 7424 }
 0x315   : > { %v20382_v40 = vshrl.u32 %v18339_v60, 16  ;;  %v20383_v52 = vshll.u32 %v18339_v60, 16  ;;  %v6173_v59 = vor.u32 %v6172_v21, %v6169_v22  ;;  %v20387_v10 = vshrl.u32 %v18346_v47, 16  ;;  %v5823_v31 = vld [vmem:[#allocation2 + $0xc8] sm:$0xf]  ;;  %vm21364_vm10 = vmmov %vm21362_vm7 }
 0x316   : > { %v6165_v17 = vsel %vm21339_vm13, %v6155_v63, %v6164_v9  ;;  %v20388_v43 = vshll.u32 %v18346_v47, 16  ;;  %v18357_v8 = vsel %vm21340_vm11, %v6725_v5, %v6734_v56  ;;  %v18363_v27 = vcombine.low %v5822_v37, %v5823_v31  ;;  %v18365_v0 = vld [vmem:[#allocation2 + $0xcc] sm:$0xf]  ;;  %vm21371_vm1 = vmmov %vm21362_vm7 }
 0x317   : > { %12926 = vmatprep.mubr.bf16.mxu1 %v6165_v17  ;;  %21341 = vst [vmem:[#allocation90_spill] sm:$0xff] %v18357_v8  ;;  %v6739_v50 = vrot.slane %v20382_v40, 3  ;;  %v6742_v1 = vrot.slane %v20383_v52, 4  ;;  %12994 = vmatprep.mubr.bf16.mxu0 %v18357_v8  ;;  %v6174_v22 = vsel %vm21342_vm3, %v6164_v9, %v6173_v59  ;;  %v6178_v63 = vrot.slane %v20387_v10, 3  ;;  %vm21378_vm2 = vmmov %vm21371_vm1 }
 0x318   : > { %v6181_v21 = vrot.slane %v20388_v43, 4  ;;  %v20389_v5 = vshrl.u32 %v18351_v13, 16  ;;  %v20395_v40 = vshll.u32 %v18351_v13, 16  ;;  %v20397_v37 = vshrl.u32 %v18363_v27, 16  ;;  %vm21382_vm9 = vmmov %vm21371_vm1 }
 0x319   : > { %v6743_v17 = vor.u32 %v6742_v1, %v6739_v50  ;;  %v20398_v52 = vshll.u32 %v18363_v27, 16  ;;  %v11058_v19 = vcombine.low %v5823_v31, %v5823_v31  ;;  %v18380_v10 = vcombine.low %v18365_v0, %v5825_v20  ;;  %vm21384_vm8 = vmmov %vm21371_vm1 }
 0x31a   : > { %12927 = vmatmul.mubr.bf16.gmra.mxu1 %v6174_v22  ;;  %v6182_v8 = vor.u32 %v6181_v21, %v6178_v63  ;;  %v6748_v9 = vrot.slane %v20389_v5, 3  ;;  %v6751_v50 = vrot.slane %v20395_v40, 4  ;;  %v6187_v1 = vrot.slane %v20397_v37, 3  ;;  %v5826_v63 = vld [vmem:[#allocation2 + $0xd4] sm:$0xf]  ;;  %vm21388_vm13 = vmmov %vm21371_vm1 }
 0x31b   : > { %v18383_v43 = vsel %vm21343_vm6, %v6734_v56, %v6743_v17  ;;  %v6190_v22 = vrot.slane %v20398_v52, 4  ;;  %v6755_v5 = vshrl.u32 %v11058_v19, 16  ;;  %v6758_v53 = vshll.u32 %v11058_v19, 16  ;;  %vm21393_vm11 = vmmov %vm21371_vm1 }
 0x31c   : > { %21344 = vst [vmem:[#allocation84_spill] sm:$0xff] %v18383_v43  ;;  %v6183_v21 = vsel %vm21345_vm14, %v6173_v59, %v6182_v8  ;;  %v20401_v7 = vshrl.u32 %v18380_v10, 16  ;;  %12995 = vmatmul.mubr.bf16.gmra.mxu0 %v18383_v43  ;;  %v18394_v56 = vor.u32 %v6751_v50, %v6748_v9  ;;  %v20402_v40 = vshll.u32 %v18380_v10, 16  ;;  %vm21398_vm3 = vmmov %vm21371_vm1 }
 0x31d   : > { %12930 = vmatprep.mubr.bf16.mxu1 %v6183_v21  ;;  %v6191_v6 = vor.u32 %v6190_v22, %v6187_v1  ;;  %v6757_v38 = vrot.slane %v6755_v5, 3  ;;  %v6760_v37 = vrot.slane %v6758_v53, 4  ;;  %v11025_v57 = vcombine.low %v5826_v63, %v5826_v63  ;;  %vm21403_vm6 = vmmov %vm21371_vm1 }
 0x31e   : > { %v6196_v52 = vrot.slane %v20401_v7, 3  ;;  %v18401_v59 = vsel %vm21346_vm0, %v6743_v17, %v18394_v56  ;;  %v6199_v21 = vrot.slane %v20402_v40, 4  ;;  %v18407_v9 = vcombine.low %v5823_v31, %v18365_v0  ;;  %v18414_v7 = vld [vmem:[#allocation2 + $0xd8] sm:$0xf]  ;;  %v18417_v31 = vld [vmem:[#allocation2 + $0xe0] sm:$0xf]  ;;  %vm21408_vm14 = vmmov %vm21371_vm1 }
 0x31f   : > { %v6192_v19 = vsel %vm21347_vm4, %v6182_v8, %v6191_v6  ;;  %12998 = vmatprep.mubr.bf16.mxu0 %v18401_v59  ;;  %v6761_v5 = vor.u32 %v6760_v37, %v6757_v38  ;;  %v6203_v53 = vshrl.u32 %v11025_v57, 16  ;;  %v6206_v50 = vshll.u32 %v11025_v57, 16  ;;  %v18419_v38 = vld [vmem:[#allocation2 + $0xdc] sm:$0xf]  ;;  %vm21410_vm0 = vmmov %vm21371_vm1 }
 0x320   : > { %v18410_v1 = vcombine.low %v5825_v20, %v5826_v63  ;;  %v6200_v22 = vor.u32 %v6199_v21, %v6196_v52  ;;  %v18422_v57 = vcombine.low %v5826_v63, %v18414_v7  ;;  %v21351_v52 = vld [vmem:[#allocation141_spill] sm:$0xff]  ;;  %v18427_v20 = vcombine.low %v18419_v38, %v18417_v31  ;;  %v21354_v21 = vld [vmem:[#allocation28_spill] sm:$0xff]  ;;  %vm21413_vm4 = vmmov %vm21410_vm0 }
 0x321   : > { %v6762_v17 = vsel %vm21348_vm5, %v18394_v56, %v6761_v5  ;;  %v6205_v40 = vrot.slane %v6203_v53, 3  ;;  %v6208_v43 = vrot.slane %v6206_v50, 4  ;;  %v13918_v63 = vld [vmem:[%s19944_s4 + $0x1f8] sm:$0xff]   ;;  %v13859_v5 = vld [vmem:[%s19944_s4 + $0x1e0] sm:$0xff]   ;;  %v13856_v53 = vld [vmem:[%s19944_s4 + $0x128] sm:$0xff]  }
 0x322   : > { %12931 = vmatmul.mubr.bf16.gmra.mxu1 %v6192_v19  ;;  %v6201_v8 = vsel %vm21349_vm15, %v6191_v6, %v6200_v22  ;;  %21350 = vst [vmem:[#allocation92_spill] sm:$0xff] %v18422_v57  ;;  %21352 = vst [vmem:[#allocation86_spill] sm:$0xff] %v18427_v20  ;;  %v13855_v19 = vld [vmem:[%s19944_s4 + $0x1f0] sm:$0xff]   ;;  %v13861_v50 = vld [vmem:[%s19944_s4 + $0x1d8] sm:$0xff]   ;;  %v21401_v20 = vshrl.u32 %v18307_v46, 16 }
 0x323   : > { %12934 = vmatprep.mubr.bf16.mxu1 %v6201_v8  ;;  %v6209_v37 = vor.u32 %v6208_v43, %v6205_v40  ;;  %v13854_v40 = vld [vmem:[%s19944_s4 + $0x130] sm:$0xff]   ;;  %v13919_v43 = vld [vmem:[%s19944_s4 + $0x138] sm:$0xff]   ;;  %v21356_v8 = vshll.u32 %v18201_v26, 16  ;;  %vm21415_vm5 = vmmov %vm21410_vm0 }
 0x324   : > { %12999 = vmatmul.mubr.bf16.gmra.mxu0 %v6762_v17  ;;  %v13860_v17 = vld [vmem:[%s19944_s4 + $0x118] sm:$0xff]   ;;  %vm21423_vm15 = vmmov %vm21410_vm0 }
 0x325   : > { %13082 = vmatprep.mubr.bf16.mxu0 %v21351_v52  ;;  %v6210_v6 = vsel %vm21353_vm12, %v6200_v22, %v6209_v37  ;;  %v13863_v22 = vld [vmem:[%s19944_s4 + $0x1d0] sm:$0xff]   ;;  %v18474_v37 = vrot.slane %v21356_v8, 1  ;;  %v21366_v8 = vshrl.u32 %v18245_v36, 16  ;;  %vm21425_vm12 = vmmov %vm21410_vm0 }
 0x327   : > { %21357 = vst [vmem:[#allocation89_spill] sm:$0xff] %v18474_v37 }
 0x32a   : > { %12935 = vmatmul.mubr.bf16.gmra.mxu1 %v6210_v6  ;;  %v21359_v6 = vshrl.u32 %v18201_v26, 16 }
 0x32b   : > { %13018 = vmatprep.mubr.bf16.mxu1 %v17586_v54  ;;  %v13857_v54 = vld [vmem:[%s19944_s4 + $0x1e8] sm:$0xff]  }
 0x32c   : > { %13083 = vmatmul.mubr.bf16.vlgmr.msra.gmra.mxu0 %v21354_v21 }
 0x32d   : > { %13086 = vmatprep.mubr.bf16.mxu0 %v17316_v33  ;;  %13195 = vmatpush3.bf16.msra.mxu0 %v13918_v63  ;;  %v21360_v63 = vshrl.u32 %v18238_v18, 16 }
 0x32e   : > { %13196 = vmatprep.subr.bf16.mxu0 %v13855_v19 }
 0x331   : > { %13197 = vmatpush3.bf16.msra.mxu0 %v13855_v19  ;;  %v9021_v19 = vor.u32 %v18474_v37, %v21359_v6  ;;  %v21367_v6 = vshll.u32 %v18273_v32, 16  ;;  %v21368_v37 = vshll.u32 %v18275_v2, 16 }
 0x332   : > { %13019 = vmatmul.mubr.bf16.vlgmr.msra.gmra.mxu1 %v17660_v62  ;;  %13198 = vmatprep.subr.bf16.mxu0 %v13857_v54  ;;  %v21355_v62 = vld [vmem:[#allocation56_spill] sm:$0xff] }
 0x333   : > { %13022 = vmatprep.mubr.bf16.mxu1 %v17719_v39  ;;  %13131 = vmatpush3.bf16.msra.mxu1 %v13919_v43  ;;  %v13858_v39 = vld [vmem:[%s19944_s4 + $0x120] sm:$0xff]   ;;  %v9031_v33 = vrot.slane %v21368_v37, 1  ;;  %v21374_v37 = vshll.u32 %v18314_v24, 16 }
 0x334   : > { %13132 = vmatprep.subr.bf16.mxu1 %v13854_v40  ;;  %13087 = vmatmul.mubr.bf16.gmra.mxu0 %v17421_v4 }
 0x335   : > { %13090 = vmatprep.mubr.bf16.mxu0 %v21355_v62  ;;  %13199 = vmatpush3.bf16.msra.mxu0 %v13857_v54  ;;  %v21361_v54 = vshll.u32 %v18245_v36, 16 }
 0x336   : > { %13200 = vmatprep.subr.bf16.mxu0 %v13859_v5 }
 0x337   : > { %13133 = vmatpush3.bf16.msra.mxu1 %v13854_v40  ;;  %v9025_v43 = vrot.slane %v21361_v54, 1 }
 0x338   : > { %13134 = vmatprep.subr.bf16.mxu1 %v13856_v53 }
 0x339   : > { %13201 = vmatpush3.bf16.msra.mxu0 %v13859_v5  ;;  %v13862_v5 = vld [vmem:[%s19944_s4 + $0x110] sm:$0xff]  }
 0x33a   : > { %13023 = vmatmul.mubr.bf16.gmra.mxu1 %v17791_v41  ;;  %13202 = vmatprep.subr.bf16.mxu0 %v13861_v50  ;;  %v21358_v41 = vshll.u32 %v18238_v18, 16 }
 0x33b   : > { %13026 = vmatprep.mubr.bf16.mxu1 %v17870_v34  ;;  %13135 = vmatpush3.bf16.msra.mxu1 %v13856_v53  ;;  %v13866_v53 = vld [vmem:[%s19944_s4 + $0x1c8] sm:$0xff]  }
 0x33c   : > { %13136 = vmatprep.subr.bf16.mxu1 %v13858_v39  ;;  %13091 = vmatmul.mubr.bf16.gmra.mxu0 %v17543_v55  ;;  %v9022_v34 = vrot.slane %v21358_v41, 1  ;;  %v9027_v41 = vor.u32 %v9025_v43, %v21366_v8 }
 0x33d   : > { %13094 = vmatprep.mubr.bf16.mxu0 %v17679_v48  ;;  %13203 = vmatpush3.bf16.msra.mxu0 %v13861_v50 }
 0x33e   : > { %13204 = vmatprep.subr.bf16.mxu0 %v13863_v22  ;;  %v9024_v40 = vor.u32 %v9022_v34, %v21360_v63  ;;  %v18494_v50 = vsel %vm21362_vm7, %v9021_v19, %v9022_v34  ;;  %v9028_v63 = vrot.slane %v21367_v6, 1  ;;  %v21369_v34 = vshll.u32 %v18236_v3, 16  ;;  %vm21427_vm7 = vmmov %vm21410_vm0 }
 0x33f   : > { %13137 = vmatpush3.bf16.msra.mxu1 %v13858_v39  ;;  %21363 = vst [vmem:[#allocation88_spill] sm:$0xff] %v18494_v50  ;;  %v9034_v6 = vrot.slane %v21374_v37, 1  ;;  %v21381_v50 = vshll.u32 %v18339_v60, 16  ;;  %v21386_v37 = vshrl.u32 %v18269_v11, 16 }
 0x340   : > { %13138 = vmatprep.subr.bf16.mxu1 %v13860_v17  ;;  %v18497_v39 = vsel %vm21364_vm10, %v9024_v40, %v9025_v43  ;;  %v18509_v19 = vrot.slane %v21369_v34, 1  ;;  %v13870_v43 = vld [vmem:[%s19944_s4 + $0x1c0] sm:$0xff]   ;;  %v21375_v34 = vshrl.u32 %v18275_v2, 16  ;;  %vm21429_vm10 = vmmov %vm21410_vm0 }
 0x341   : > { %21365 = vst [vmem:[#allocation78_spill] sm:$0xff] %v18497_v39  ;;  %13205 = vmatpush3.bf16.msra.mxu0 %v13863_v22  ;;  %v21373_v22 = vshrl.u32 %v18273_v32, 16  ;;  %v21380_v39 = vshrl.u32 %v18314_v24, 16 }
 0x342   : > { %13027 = vmatmul.mubr.bf16.gmra.mxu1 %v17916_v61  ;;  %21370 = vst [vmem:[#allocation96_spill] sm:$0xff] %v18509_v19  ;;  %v18517_v61 = vsel %vm21371_vm1, %v9027_v41, %v9028_v63  ;;  %13206 = vmatprep.subr.bf16.mxu0 %v13866_v53  ;;  %v9033_v54 = vor.u32 %v9031_v33, %v21375_v34  ;;  %v21376_v41 = vshrl.u32 %v18236_v3, 16  ;;  %v9037_v34 = vrot.slane %v21381_v50, 1 }
 0x343   : > { %13030 = vmatprep.mubr.bf16.mxu1 %v17948_v44  ;;  %13139 = vmatpush3.bf16.msra.mxu1 %v13860_v17  ;;  %21372 = vst [vmem:[#allocation94_spill] sm:$0xff] %v18517_v61  ;;  %v9030_v8 = vor.u32 %v9028_v63, %v21373_v22  ;;  %v13864_v44 = vld [vmem:[%s19944_s4 + $0x108] sm:$0xff]   ;;  %v21377_v63 = vshll.u32 %v18269_v11, 16  ;;  %v9036_v17 = vor.u32 %v9034_v6, %v21380_v39  ;;  %v21390_v50 = vshrl.u32 %v18339_v60, 16 }
 0x344   : > { %13140 = vmatprep.subr.bf16.mxu1 %v13862_v5  ;;  %v8591_v40 = vor.u32 %v18509_v19, %v21376_v41  ;;  %13095 = vmatmul.mubr.bf16.gmra.mxu0 %v17690_v15  ;;  %v18545_v41 = vsel %vm21382_vm9, %v9033_v54, %v9034_v6  ;;  %v21391_v54 = vshll.u32 %v18351_v13, 16  ;;  %vm21450_vm1 = vsmask.f32 4352 }
 0x345   : > { %v8592_v22 = vrot.slane %v21377_v63, 1  ;;  %v18537_v61 = vsel %vm21378_vm2, %v9030_v8, %v9031_v33  ;;  %13098 = vmatprep.mubr.bf16.mxu0 %v17794_v16  ;;  %13207 = vmatpush3.bf16.msra.mxu0 %v13866_v53  ;;  %21383 = vst [vmem:[#allocation106_spill] sm:$0xff] %v18545_v41  ;;  %v21387_v33 = vshll.u32 %v18271_v12, 16  ;;  %v18555_v39 = vsel %vm21388_vm13, %v9036_v17, %v9037_v34  ;;  %vm21455_vm2 = vmmov %vm21450_vm1 }
 0x346   : > { %21379 = vst [vmem:[#allocation87_spill] sm:$0xff] %v18537_v61  ;;  %13208 = vmatprep.subr.bf16.mxu0 %v13870_v43  ;;  %21389 = vst [vmem:[#allocation98_spill] sm:$0xff] %v18555_v39  ;;  %v9039_v53 = vor.u32 %v9037_v34, %v21390_v50  ;;  %v9040_v6 = vrot.slane %v21391_v54, 1  ;;  %v21397_v54 = vshll.u32 %v18309_v29, 16  ;;  %v12956_v39 = vpop.f32.mrf.mxu0  ;;  %v21400_v61 = vshrl.u32 %v18351_v13, 16 }
 0x347   : > { %v18548_v63 = vsel %vm21384_vm8, %v8591_v40, %v8592_v22  ;;  %v8594_v19 = vor.u32 %v8592_v22, %v21386_v37  ;;  %v8595_v8 = vrot.slane %v21387_v33, 1  ;;  %13141 = vmatpush3.bf16.msra.mxu1 %v13862_v5  ;;  %v21392_v40 = vshll.u32 %v18307_v46, 16  ;;  %v13869_v22 = vld [vmem:[%s19944_s4 + $0x100] sm:$0xff]   ;;  %v18569_v5 = vld [vmem:[%s19944_s4 + $0x178] sm:$0xff]   ;;  %vm21456_vm9 = vmmov %vm21450_vm1 }
 0x348   : > { %21385 = vst [vmem:[#allocation105_spill] sm:$0xff] %v18548_v63  ;;  %13142 = vmatprep.subr.bf16.mxu1 %v13864_v44  ;;  %v21395_v37 = vshrl.u32 %v18271_v12, 16  ;;  %v21396_v33 = vshll.u32 %v18407_v9, 16  ;;  %v18581_v41 = vsel %vm21398_vm3, %v9039_v53, %v9040_v6  ;;  %v9042_v21 = vor.u32 %v9040_v6, %v21400_v61  ;;  %vm21458_vm8 = vmmov %vm21450_vm1 }
 0x349   : > { %v8598_v63 = vrot.slane %v21392_v40, 1  ;;  %v18572_v17 = vsel %vm21393_vm11, %v8594_v19, %v8595_v8  ;;  %v8601_v40 = vrot.slane %v21397_v54, 1  ;;  %21399 = vst [vmem:[#allocation8_spill] sm:$0xff] %v18581_v41  ;;  %13209 = vmatpush3.bf16.msra.mxu0 %v13870_v43  ;;  %v21406_v53 = vshrl.u32 %v18309_v29, 16  ;;  %vm21496_vm13 = vmmov %vm21410_vm0 }
 0x34a   : > { %21394 = vst [vmem:[#allocation91_spill] sm:$0xff] %v18572_v17  ;;  %v8597_v34 = vor.u32 %v8595_v8, %v21395_v37  ;;  %v9043_v50 = vrot.slane %v21396_v33, 1  ;;  %v21402_v17 = vshll.u32 %v18410_v1, 16  ;;  %13031 = vmatmul.mubr.bf16.gmra.mxu1 %v17980_v35  ;;  %v21405_v37 = vshrl.u32 %v18407_v9, 16  ;;  %13322 = vmatprep.subr.bf16.mxu0 %v18569_v5  ;;  %vm21502_vm11 = vmmov %vm21410_vm0 }
 0x34b   : > { %v8600_v19 = vor.u32 %v8598_v63, %v21401_v20  ;;  %v8603_v54 = vor.u32 %v8601_v40, %v21406_v53  ;;  %v21407_v61 = vshll.u32 %v18346_v47, 16  ;;  %13034 = vmatprep.mubr.bf16.mxu1 %v18038_v45  ;;  %13143 = vmatpush3.bf16.msra.mxu1 %v13864_v44  ;;  %v6869_v20 = vpop.f32.mrf.mxu0  ;;  %v11211_v43 = vcombine.low %v18414_v7, %v18414_v7  ;;  %vm21507_vm3 = vmmov %vm21410_vm0 }
 0x34c   : > { %v9046_v57 = vrot.slane %v21402_v17, 1  ;;  %v18591_v8 = vsel %vm21403_vm6, %v8597_v34, %v8598_v63  ;;  %v9045_v33 = vor.u32 %v9043_v50, %v21405_v37  ;;  %v18601_v17 = vsel %vm21408_vm14, %v9042_v21, %v9043_v50  ;;  %13144 = vmatprep.subr.bf16.mxu1 %v13869_v22  ;;  %v18613_v37 = vld [vmem:[%s19944_s4 + $0xb8] sm:$0xff]   ;;  %13099 = vmatmul.mubr.bf16.gmra.mxu0 %v17825_v23  ;;  %vm21509_vm6 = vmmov %vm21410_vm0 }
 0x34d   : > { %21404 = vst [vmem:[#allocation7_spill] sm:$0xff] %v18591_v8  ;;  %v8604_v6 = vrot.slane %v21407_v61, 1  ;;  %21409 = vst [vmem:[#allocation100_spill] sm:$0xff] %v18601_v17  ;;  %v18604_v35 = vsel %vm21410_vm0, %v8600_v19, %v8601_v40  ;;  %v21412_v63 = vshll.u32 %v18363_v27, 16  ;;  %v21417_v44 = vshrl.u32 %v18410_v1, 16  ;;  %13102 = vmatprep.mubr.bf16.mxu0 %v17902_v51 }
 0x34e   : > { %21411 = vst [vmem:[#allocation93_spill] sm:$0xff] %v18604_v35  ;;  %v18617_v45 = vsel %vm21413_vm4, %v9045_v33, %v9046_v57  ;;  %v21418_v40 = vshll.u32 %v18380_v10, 16  ;;  %v9050_v53 = vshll.u32 %v11211_v43, 16  ;;  %v21419_v61 = vshrl.u32 %v18346_v47, 16  ;;  %vm21514_vm14 = vmmov %vm21410_vm0 }
 0x34f   : > { %v8607_v34 = vrot.slane %v21412_v63, 1  ;;  %21414 = vst [vmem:[#allocation13_spill] sm:$0xff] %v18617_v45  ;;  %v18620_v21 = vsel %vm21415_vm5, %v8603_v54, %v8604_v6  ;;  %v9048_v50 = vor.u32 %v9046_v57, %v21417_v44  ;;  %v11186_v17 = vcombine.low %v18365_v0, %v18365_v0  ;;  %13145 = vmatpush3.bf16.msra.mxu1 %v13869_v22  ;;  %v12957_v44 = vpop.f32.mrf.mxu0  ;;  %v12892_v0 = vpop.f32.mrf.mxu1  ;;  %vm21518_vm4 = vmmov %vm21410_vm0 }
 0x350   : > { %21416 = vst [vmem:[#allocation33_spill] sm:$0xff] %v18620_v21  ;;  %v9419_v19 = vrot.slane %v21418_v40, 1  ;;  %v8606_v63 = vor.u32 %v8604_v6, %v21419_v61  ;;  %v21420_v33 = vshrl.u32 %v18363_v27, 16  ;;  %v21421_v54 = vshrl.u32 %v18380_v10, 16  ;;  %13258 = vmatprep.subr.bf16.mxu1 %v18613_v37  ;;  %vm21521_vm5 = vmmov %vm21410_vm0 }
 0x351   : > { %v9052_v40 = vrot.slane %v9050_v53, 1  ;;  %v8611_v21 = vshll.u32 %v11186_v17, 16  ;;  %v18652_v22 = vpop.f32.mrf.mxu0  ;;  %v21444_v35 = vshll.u32 %v18407_v9, 16  ;;  %v11085_v8 = vcombine.low %v18414_v7, %v18419_v38 }
 0x352   : > { %v8609_v45 = vor.u32 %v8607_v34, %v21420_v33  ;;  %v18636_v57 = vor.u32 %v9419_v19, %v21421_v54  ;;  %v18639_v43 = vsel %vm21423_vm15, %v8606_v63, %v8607_v34  ;;  %13035 = vmatmul.mubr.bf16.gmra.mxu1 %v18077_v49  ;;  %v18649_v54 = vadd.f32 %v12956_v39, %v12892_v0  ;;  %v6317_v34 = vpop.f32.mrf.mxu1  ;;  %v21432_v0 = vld [vmem:[#allocation81_spill] sm:$0xff]  ;;  %vm21525_vm15 = vmmov %vm21410_vm0 }
 0x353   : > { %21424 = vst [vmem:[#allocation97_spill] sm:$0xff] %v18639_v43  ;;  %v18646_v61 = vsel %vm21427_vm7, %v9048_v50, %v9052_v40  ;;  %v8613_v33 = vrot.slane %v8611_v21, 1  ;;  %13038 = vmatprep.mubr.bf16.mxu1 %v18145_v42  ;;  %v12960_v49 = vpop.f32.mrf.mxu0  ;;  %v21449_v7 = vshrl.u32 %v18410_v1, 16  ;;  %vm21530_vm7 = vmmov %vm21410_vm0 }
 0x354   : > { %21422 = vst [vmem:[#allocation103_spill] sm:$0xff] %v18636_v57  ;;  %v18642_v6 = vsel %vm21425_vm12, %v8609_v45, %v9419_v19  ;;  %21428 = vst [vmem:[#allocation111_spill] sm:$0xff] %v18646_v61  ;;  %v18657_v19 = vadd.f32 %v6869_v20, %v6317_v34  ;;  %13103 = vmatmul.mubr.bf16.gmra.mxu0 %v17942_v30  ;;  %v12893_v53 = vpop.f32.mrf.mxu1  ;;  %v21437_v57 = vld [vmem:[#allocation85_spill] sm:$0xff]  ;;  %v21442_v61 = vld [vmem:[#allocation90_spill] sm:$0xff] }
 0x355   : > { %21426 = vst [vmem:[#allocation57_spill] sm:$0xff] %v18642_v6  ;;  %v18655_v17 = vsel %vm21429_vm10, %v8609_v45, %v8613_v33  ;;  %13106 = vmatprep.mubr.bf16.mxu0 %v18006_v28  ;;  %v18661_v21 = vadd.f32 %v12957_v44, %v12893_v53  ;;  %v6885_v42 = vpop.f32.mrf.mxu0  ;;  %v21431_v45 = vld [vmem:[#allocation80_spill] sm:$0xff]  ;;  %v21433_v33 = vld [vmem:[#allocation74_spill] sm:$0xff]  ;;  %v21436_v53 = vld [vmem:[#allocation73_spill] sm:$0xff]  ;;  %v7099_v38 = vrot.slane %v21449_v7, 3 }
 0x356   : > { %21430 = vst [vmem:[#allocation107_spill] sm:$0xff] %v18655_v17  ;;  %v18665_v39 = vpop.f32.mrf.mxu1  ;;  %v21438_v17 = vld [vmem:[#allocation79_spill] sm:$0xff]  ;;  %vm21528_vm12 = vmmov %vm21410_vm0 }
 0x357   : > { %v12961_v20 = vpop.f32.mrf.mxu0  ;;  %vm21533_vm10 = vmmov %vm21410_vm0 }
 0x359   : > { %v12896_v50 = vpop.f32.mrf.mxu1 }
 0x35a   : > { %13039 = vmatmul.mubr.bf16.gmra.mxu1 %v18180_v25  ;;  %v18669_v63 = vadd.f32 %v12960_v49, %v12896_v50  ;;  %v18675_v25 = vpop.f32.mrf.mxu0  ;;  %v21439_v50 = vld [vmem:[#allocation82_spill] sm:$0xff] }
 0x35b   : > { %13042 = vmatprep.mubr.bf16.mxu1 %v18242_v14  ;;  %v6333_v40 = vpop.f32.mrf.mxu1  ;;  %21434 = vst [vmem:[#allocation110_spill] sm:$0xff] %v18675_v25 }
 0x35c   : > { %13107 = vmatmul.mubr.bf16.gmra.mxu0 %v18034_v58  ;;  %v18672_v44 = vadd.f32 %v6885_v42, %v6333_v40 }
 0x35d   : > { %13110 = vmatprep.mubr.bf16.mxu0 %v21431_v45  ;;  %v12897_v14 = vpop.f32.mrf.mxu1  ;;  %v12964_v6 = vpop.f32.mrf.mxu0 }
 0x35e   : > { %v18677_v34 = vadd.f32 %v12961_v20, %v12897_v14 }
 0x35f   : > { %v18682_v49 = vpop.f32.mrf.mxu1  ;;  %v6901_v42 = vpop.f32.mrf.mxu0 }
 0x360   : > { %21435 = vst [vmem:[#allocation117_spill] sm:$0xff] %v18677_v34  ;;  %v21445_v34 = vld [vmem:[#allocation84_spill] sm:$0xff] }
 0x362   : > { %13043 = vmatmul.mubr.bf16.gmra.mxu1 %v21432_v0  ;;  %v12965_v0 = vpop.f32.mrf.mxu0 }
 0x363   : > { %13046 = vmatprep.mubr.bf16.mxu1 %v21433_v33 }
 0x364   : > { %13111 = vmatmul.mubr.bf16.gmra.mxu0 %v21436_v53  ;;  %v18699_v25 = vpop.f32.mrf.mxu0 }
 0x365   : > { %13114 = vmatprep.mubr.bf16.mxu0 %v21437_v57  ;;  %21446 = vst [vmem:[#allocation99_spill] sm:$0xff] %v18699_v25 }
 0x36a   : > { %13047 = vmatmul.mubr.bf16.gmra.mxu1 %v21438_v17  ;;  %v21443_v17 = vshrl.u32 %v18407_v9, 16 }
 0x36b   : > { %13050 = vmatprep.mubr.bf16.mxu1 %v21439_v50  ;;  %v12900_v40 = vpop.f32.mrf.mxu1  ;;  %v7093_v50 = vrot.slane %v21444_v35, 4  ;;  %v11086_v35 = vcombine.low %v18417_v31, %v18417_v31 }
 0x36c   : > { %13115 = vmatmul.mubr.bf16.gmra.mxu0 %v18236_v3  ;;  %v18687_v20 = vadd.f32 %v12964_v6, %v12900_v40  ;;  %v7090_v43 = vrot.slane %v21443_v17, 3  ;;  %v7109_v40 = vshll.u32 %v11085_v8, 16 }
 0x36d   : > { %13118 = vmatprep.mubr.bf16.mxu0 %v18269_v11  ;;  %v6349_v33 = vpop.f32.mrf.mxu1 }
 0x36e   : > { %21440 = vst [vmem:[#allocation60_spill] sm:$0xff] %v18687_v20  ;;  %v18689_v14 = vadd.f32 %v6901_v42, %v6349_v33  ;;  %v7106_v42 = vshrl.u32 %v11085_v8, 16  ;;  %v12968_v33 = vpop.f32.mrf.mxu0  ;;  %v7115_v8 = vshrl.u32 %v11086_v35, 16 }
 0x36f   : > { %v12901_v41 = vpop.f32.mrf.mxu1 }
 0x370   : > { %21441 = vst [vmem:[#allocation113_spill] sm:$0xff] %v18689_v14  ;;  %v18701_v6 = vadd.f32 %v12965_v0, %v12901_v41  ;;  %v6917_v31 = vpop.f32.mrf.mxu0  ;;  %v7117_v20 = vrot.slane %v7115_v8, 3 }
 0x371   : > { %v18707_v17 = vpop.f32.mrf.mxu1 }
 0x372   : > { %13051 = vmatmul.mubr.bf16.gmra.mxu1 %v21442_v61  ;;  %21447 = vst [vmem:[#allocation102_spill] sm:$0xff] %v18701_v6  ;;  %v7094_v61 = vor.u32 %v7093_v50, %v7090_v43  ;;  %21448 = vst [vmem:[#allocation101_spill] sm:$0xff] %v18707_v17  ;;  %v7108_v43 = vrot.slane %v7106_v42, 3  ;;  %v7111_v50 = vrot.slane %v7109_v40, 4  ;;  %v7118_v6 = vshll.u32 %v11086_v35, 16  ;;  %v12969_v42 = vpop.f32.mrf.mxu0 }
 0x373   : > { %13054 = vmatprep.mubr.bf16.mxu1 %v21445_v34  ;;  %v21451_v34 = vshll.u32 %v18410_v1, 16 }
 0x374   : > { %13119 = vmatmul.mubr.bf16.gmra.mxu0 %v18271_v12  ;;  %v7095_v41 = vsel %vm21450_vm1, %v18394_v56, %v7094_v61  ;;  %v7112_v17 = vor.u32 %v7111_v50, %v7108_v43  ;;  %v21460_v43 = vld [vmem:[#allocation64_spill] sm:$0xff]  ;;  %vm21539_vm1 = vmmov %vm21410_vm0 }
 0x375   : > { %13122 = vmatprep.mubr.bf16.mxu0 %v18307_v46  ;;  %v7102_v0 = vrot.slane %v21451_v34, 4  ;;  %v7120_v34 = vrot.slane %v7118_v6, 4 }
 0x37a   : > { %13055 = vmatmul.mubr.bf16.gmra.mxu1 %v18401_v59  ;;  %v12904_v25 = vpop.f32.mrf.mxu1  ;;  %v7103_v59 = vor.u32 %v7102_v0, %v7099_v38 }
 0x37b   : > { %13058 = vmatprep.mubr.bf16.mxu1 %v7095_v41  ;;  %v18716_v14 = vadd.f32 %v12968_v33, %v12904_v25  ;;  %v7121_v33 = vor.u32 %v7120_v34, %v7117_v20 }
 0x37c   : > { %13123 = vmatmul.mubr.bf16.gmra.mxu0 %v18309_v29  ;;  %v6365_v7 = vpop.f32.mrf.mxu1  ;;  %v7104_v35 = vsel %vm21455_vm2, %v7094_v61, %v7103_v59  ;;  %v7113_v25 = vsel %vm21456_vm9, %v7103_v59, %v7112_v17  ;;  %v13875_v61 = vld [vmem:[%s19944_s4 + $0x170] sm:$0xff]   ;;  %v13877_v59 = vld [vmem:[%s19944_s4 + $0x168] sm:$0xff]   ;;  %vm21542_vm2 = vmmov %vm21410_vm0 }
 0x37d   : > { %21452 = vst [vmem:[#allocation20_spill] sm:$0xff] %v18716_v14  ;;  %13126 = vmatprep.mubr.bf16.mxu0 %v18346_v47  ;;  %v18720_v56 = vadd.f32 %v6917_v31, %v6365_v7  ;;  %v18726_v14 = vpop.f32.mrf.mxu0  ;;  %v7122_v38 = vsel %vm21458_vm8, %v7112_v17, %v7121_v33  ;;  %v13874_v7 = vld [vmem:[%s19944_s4 + $0xb0] sm:$0xff]   ;;  %vm21545_vm9 = vmmov %vm21410_vm0 }
 0x37e   : > { %v12905_v40 = vpop.f32.mrf.mxu1  ;;  %21457 = vst [vmem:[#allocation120_spill] sm:$0xff] %v18726_v14  ;;  %vm21548_vm8 = vmmov %vm21410_vm0 }
 0x37f   : > { %21453 = vst [vmem:[#allocation59_spill] sm:$0xff] %v18720_v56  ;;  %v18722_v41 = vadd.f32 %v12969_v42, %v12905_v40  ;;  %v12972_v6 = vpop.f32.mrf.mxu0  ;;  %v21463_v40 = vld [vmem:[#allocation23_spill] sm:$0xff] }
 0x380   : > { %v18731_v0 = vpop.f32.mrf.mxu1 }
 0x381   : > { %21454 = vst [vmem:[#allocation104_spill] sm:$0xff] %v18722_v41  ;;  %21459 = vst [vmem:[#allocation35_spill] sm:$0xff] %v18731_v0  ;;  %v6933_v50 = vpop.f32.mrf.mxu0  ;;  %v13888_v41 = vld [vmem:[%s19944_s4 + $0x80] sm:$0xff]  }
 0x382   : > { %13059 = vmatmul.mubr.bf16.gmra.mxu1 %v7104_v35  ;;  %v21465_v35 = vld [vmem:[#allocation19_spill] sm:$0xff] }
 0x383   : > { %13062 = vmatprep.mubr.bf16.mxu1 %v7113_v25  ;;  %v12973_v17 = vpop.f32.mrf.mxu0 }
 0x384   : > { %13127 = vmatmul.mubr.bf16.gmra.mxu0 %v18363_v27 }
 0x385   : > { %13210 = vmatprep.mubr.bf16.mxu0 %v17421_v4  ;;  %v6936_v25 = vpop.f32.mrf.mxu0 }
 0x38a   : > { %13063 = vmatmul.mubr.bf16.gmra.mxu1 %v7122_v38  ;;  %v13879_v38 = vld [vmem:[%s19944_s4 + $0x160] sm:$0xff]  }
 0x38b   : > { %13146 = vmatprep.mubr.bf16.mxu1 %v21460_v43 }
 0x38c   : > { %13211 = vmatmul.mubr.bf16.vlgmr.msra.gmra.mxu0 %v21355_v62  ;;  %v12908_v20 = vpop.f32.mrf.mxu1 }
 0x38d   : > { %13214 = vmatprep.mubr.bf16.mxu0 %v17543_v55  ;;  %13323 = vmatpush3.bf16.msra.mxu0 %v18569_v5  ;;  %v18740_v8 = vadd.f32 %v12972_v6, %v12908_v20  ;;  %v13876_v6 = vld [vmem:[%s19944_s4 + $0xa8] sm:$0xff]   ;;  %v21467_v20 = vld [vmem:[#allocation67_spill] sm:$0xff] }
 0x38e   : > { %13324 = vmatprep.subr.bf16.mxu0 %v13875_v61  ;;  %v6381_v31 = vpop.f32.mrf.mxu1 }
 0x38f   : > { %21461 = vst [vmem:[#allocation116_spill] sm:$0xff] %v18740_v8  ;;  %v18748_v34 = vadd.f32 %v6933_v50, %v6381_v31  ;;  %v13883_v31 = vld [vmem:[%s19944_s4 + $0x150] sm:$0xff]   ;;  %v13884_v8 = vld [vmem:[%s19944_s4 + $0x88] sm:$0xff]  }
 0x390   : > { %v12909_v42 = vpop.f32.mrf.mxu1 }
 0x391   : > { %21462 = vst [vmem:[#allocation112_spill] sm:$0xff] %v18748_v34  ;;  %13325 = vmatpush3.bf16.msra.mxu0 %v13875_v61  ;;  %v18751_v5 = vadd.f32 %v12973_v17, %v12909_v42  ;;  %v13881_v61 = vld [vmem:[%s19944_s4 + $0x158] sm:$0xff]   ;;  %v21468_v17 = vld [vmem:[#allocation65_spill] sm:$0xff] }
 0x392   : > { %13147 = vmatmul.mubr.bf16.vlgmr.msra.gmra.mxu1 %v21463_v40  ;;  %v6384_v33 = vpop.f32.mrf.mxu1  ;;  %13326 = vmatprep.subr.bf16.mxu0 %v13877_v59 }
 0x393   : > { %21464 = vst [vmem:[#allocation108_spill] sm:$0xff] %v18751_v5  ;;  %13150 = vmatprep.mubr.bf16.mxu1 %v21465_v35  ;;  %13259 = vmatpush3.bf16.msra.mxu1 %v18613_v37  ;;  %v18761_v50 = vadd.f32 %v6936_v25, %v6384_v33  ;;  %v13878_v37 = vld [vmem:[%s19944_s4 + $0xa0] sm:$0xff]   ;;  %v13882_v25 = vld [vmem:[%s19944_s4 + $0x90] sm:$0xff]   ;;  %v13886_v33 = vld [vmem:[%s19944_s4 + $0x148] sm:$0xff]  }
 0x394   : > { %13260 = vmatprep.subr.bf16.mxu1 %v13874_v7  ;;  %13215 = vmatmul.mubr.bf16.gmra.mxu0 %v17679_v48 }
 0x395   : > { %21466 = vst [vmem:[#allocation22_spill] sm:$0xff] %v18761_v50  ;;  %13218 = vmatprep.mubr.bf16.mxu0 %v17690_v15  ;;  %13327 = vmatpush3.bf16.msra.mxu0 %v13877_v59  ;;  %v13880_v59 = vld [vmem:[%s19944_s4 + $0x98] sm:$0xff]   ;;  %v21470_v50 = vld [vmem:[#allocation58_spill] sm:$0xff] }
 0x396   : > { %13328 = vmatprep.subr.bf16.mxu0 %v13879_v38 }
 0x397   : > { %13261 = vmatpush3.bf16.msra.mxu1 %v13874_v7  ;;  %v12976_v7 = vpop.f32.mrf.mxu0 }
 0x398   : > { %13262 = vmatprep.subr.bf16.mxu1 %v13876_v6 }
 0x399   : > { %13329 = vmatpush3.bf16.msra.mxu0 %v13879_v38  ;;  %v6949_v42 = vpop.f32.mrf.mxu0  ;;  %v21469_v38 = vld [vmem:[#allocation63_spill] sm:$0xff] }
 0x39a   : > { %13151 = vmatmul.mubr.bf16.gmra.mxu1 %v21467_v20  ;;  %13330 = vmatprep.subr.bf16.mxu0 %v13881_v61 }
 0x39b   : > { %13154 = vmatprep.mubr.bf16.mxu1 %v21468_v17  ;;  %13263 = vmatpush3.bf16.msra.mxu1 %v13876_v6 }
 0x39c   : > { %13264 = vmatprep.subr.bf16.mxu1 %v13878_v37  ;;  %13219 = vmatmul.mubr.bf16.gmra.mxu0 %v17794_v16 }
 0x39d   : > { %13222 = vmatprep.mubr.bf16.mxu0 %v17825_v23  ;;  %13331 = vmatpush3.bf16.msra.mxu0 %v13881_v61  ;;  %v12977_v61 = vpop.f32.mrf.mxu0 }
 0x39e   : > { %13332 = vmatprep.subr.bf16.mxu0 %v13883_v31 }
 0x39f   : > { %13265 = vmatpush3.bf16.msra.mxu1 %v13878_v37  ;;  %v13889_v37 = vld [vmem:[%s19944_s4 + $0x140] sm:$0xff]  }
 0x3a0   : > { %13266 = vmatprep.subr.bf16.mxu1 %v13880_v59 }
 0x3a1   : > { %v12912_v6 = vpop.f32.mrf.mxu1  ;;  %13333 = vmatpush3.bf16.msra.mxu0 %v13883_v31 }
 0x3a2   : > { %13155 = vmatmul.mubr.bf16.gmra.mxu1 %v21469_v38  ;;  %v18789_v5 = vadd.f32 %v12976_v7, %v12912_v6  ;;  %13334 = vmatprep.subr.bf16.mxu0 %v13886_v33  ;;  %v6952_v6 = vpop.f32.mrf.mxu0 }
 0x3a3   : > { %13158 = vmatprep.mubr.bf16.mxu1 %v21470_v50  ;;  %13267 = vmatpush3.bf16.msra.mxu1 %v13880_v59  ;;  %v6397_v34 = vpop.f32.mrf.mxu1 }
 0x3a4   : > { %21471 = vst [vmem:[#allocation31_spill] sm:$0xff] %v18789_v5  ;;  %13268 = vmatprep.subr.bf16.mxu1 %v13882_v25  ;;  %13223 = vmatmul.mubr.bf16.gmra.mxu0 %v17902_v51  ;;  %v18798_v31 = vadd.f32 %v6949_v42, %v6397_v34  ;;  %v18809_v34 = vld [vmem:[%s19947_s7 + $0x38] sm:$0xff]   ;;  %v21483_v51 = vld [vmem:[#allocation95_spill] sm:$0xff] }
 0x3a5   : > { %13226 = vmatprep.mubr.bf16.mxu0 %v17942_v30  ;;  %v12913_v7 = vpop.f32.mrf.mxu1  ;;  %13335 = vmatpush3.bf16.msra.mxu0 %v13886_v33  ;;  %v21476_v33 = vld [vmem:[#allocation69_spill] sm:$0xff] }
 0x3a6   : > { %21472 = vst [vmem:[#allocation121_spill] sm:$0xff] %v18798_v31  ;;  %v18801_v59 = vadd.f32 %v12977_v61, %v12913_v7  ;;  %13336 = vmatprep.subr.bf16.mxu0 %v13889_v37  ;;  %v21475_v31 = vld [vmem:[#allocation68_spill] sm:$0xff]  ;;  %v21478_v61 = vld [vmem:[#allocation71_spill] sm:$0xff] }
 0x3a7   : > { %13269 = vmatpush3.bf16.msra.mxu1 %v13882_v25  ;;  %v6400_v5 = vpop.f32.mrf.mxu1  ;;  %v18818_v25 = vld [vmem:[%s19944_s4 + $0x238] sm:$0xff]  }
 0x3a8   : > { %21473 = vst [vmem:[#allocation125_spill] sm:$0xff] %v18801_v59  ;;  %13270 = vmatprep.subr.bf16.mxu1 %v13884_v8  ;;  %v18811_v42 = vadd.f32 %v6952_v6, %v6400_v5  ;;  %v21477_v5 = vld [vmem:[#allocation76_spill] sm:$0xff]  ;;  %v21479_v6 = vld [vmem:[#allocation77_spill] sm:$0xff] }
 0x3a9   : > { %13337 = vmatpush3.bf16.msra.mxu0 %v13889_v37  ;;  %v12980_v37 = vpop.f32.mrf.mxu0 }
 0x3aa   : > { %21474 = vst [vmem:[#allocation34_spill] sm:$0xff] %v18811_v42  ;;  %13159 = vmatmul.mubr.bf16.gmra.mxu1 %v21475_v31  ;;  %13450 = vmatprep.subr.bf16.mxu0 %v18809_v34 }
 0x3ab   : > { %13162 = vmatprep.mubr.bf16.mxu1 %v21476_v33  ;;  %13271 = vmatpush3.bf16.msra.mxu1 %v13884_v8  ;;  %v6965_v8 = vpop.f32.mrf.mxu0 }
 0x3ac   : > { %13272 = vmatprep.subr.bf16.mxu1 %v13888_v41  ;;  %13227 = vmatmul.mubr.bf16.gmra.mxu0 %v18006_v28 }
 0x3ad   : > { %13230 = vmatprep.mubr.bf16.mxu0 %v18034_v58  ;;  %v12981_v42 = vpop.f32.mrf.mxu0  ;;  %v21480_v58 = vld [vmem:[#allocation83_spill] sm:$0xff] }
 0x3af   : > { %13273 = vmatpush3.bf16.msra.mxu1 %v13888_v41 }
 0x3b0   : > { %13386 = vmatprep.subr.bf16.mxu1 %v18818_v25 }
 0x3b2   : > { %13163 = vmatmul.mubr.bf16.gmra.mxu1 %v21477_v5 }
 0x3b3   : > { %13166 = vmatprep.mubr.bf16.mxu1 %v21478_v61 }
 0x3b4   : > { %13231 = vmatmul.mubr.bf16.gmra.mxu0 %v21431_v45  ;;  %v6968_v45 = vpop.f32.mrf.mxu0 }
 0x3b5   : > { %13234 = vmatprep.mubr.bf16.mxu0 %v21436_v53 }
 0x3b8   : > { %v12916_v7 = vpop.f32.mrf.mxu1 }
 0x3b9   : > { %v18829_v59 = vadd.f32 %v12980_v37, %v12916_v7 }
 0x3ba   : > { %13167 = vmatmul.mubr.bf16.gmra.mxu1 %v21479_v6  ;;  %v6413_v41 = vpop.f32.mrf.mxu1 }
 0x3bb   : > { %13170 = vmatprep.mubr.bf16.mxu1 %v21480_v58  ;;  %v18832_v28 = vadd.f32 %v6965_v8, %v6413_v41 }
 0x3bc   : > { %13235 = vmatmul.mubr.bf16.gmra.mxu0 %v21437_v57  ;;  %v12917_v14 = vpop.f32.mrf.mxu1 }
 0x3bd   : > { %13238 = vmatprep.mubr.bf16.mxu0 %v18236_v3  ;;  %v18836_v0 = vadd.f32 %v12981_v42, %v12917_v14 }
 0x3be   : > { %v6416_v53 = vpop.f32.mrf.mxu1 }
 0x3bf   : > { %21481 = vst [vmem:[#allocation109_spill] sm:$0xff] %v18836_v0  ;;  %v18838_v30 = vadd.f32 %v6968_v45, %v6416_v53 }
 0x3c1   : > { %21482 = vst [vmem:[#allocation129_spill] sm:$0xff] %v18838_v30  ;;  %v12984_v56 = vpop.f32.mrf.mxu0 }
 0x3c2   : > { %13171 = vmatmul.mubr.bf16.gmra.mxu1 %v21483_v51 }
 0x3c3   : > { %13174 = vmatprep.mubr.bf16.mxu1 %v18201_v26  ;;  %v6981_v37 = vpop.f32.mrf.mxu0 }
 0x3c4   : > { %13239 = vmatmul.mubr.bf16.gmra.mxu0 %v18269_v11 }
 0x3c5   : > { %13242 = vmatprep.mubr.bf16.mxu0 %v18271_v12  ;;  %v12985_v8 = vpop.f32.mrf.mxu0 }
 0x3c7   : > { %v6984_v7 = vpop.f32.mrf.mxu0 }
 0x3c9   : > { %v12920_v41 = vpop.f32.mrf.mxu1 }
 0x3ca   : > { %v12988_v3 = vpop.f32.mrf.mxu0  ;;  %13175 = vmatmul.mubr.bf16.gmra.mxu1 %v18238_v18  ;;  %v18845_v14 = vadd.f32 %v12984_v56, %v12920_v41 }
 0x3cb   : > { %13178 = vmatprep.mubr.bf16.mxu1 %v18245_v36  ;;  %v6429_v45 = vpop.f32.mrf.mxu1 }
 0x3cc   : > { %v6997_v53 = vpop.f32.mrf.mxu0  ;;  %13243 = vmatmul.mubr.bf16.gmra.mxu0 %v18307_v46  ;;  %v18849_v26 = vadd.f32 %v6981_v37, %v6429_v45 }
 0x3cd   : > { %13246 = vmatprep.mubr.bf16.mxu0 %v18309_v29  ;;  %v12921_v11 = vpop.f32.mrf.mxu1 }
 0x3ce   : > { %v12989_v12 = vpop.f32.mrf.mxu0  ;;  %v18852_v42 = vadd.f32 %v12985_v8, %v12921_v11 }
 0x3cf   : > { %v6432_v30 = vpop.f32.mrf.mxu1 }
 0x3d0   : > { %v18854_v0 = vadd.f32 %v6984_v7, %v6432_v30  ;;  %v7000_v18 = vpop.f32.mrf.mxu0 }
 0x3d2   : > { %v12924_v56 = vpop.f32.mrf.mxu1  ;;  %13179 = vmatmul.mubr.bf16.gmra.mxu1 %v18273_v32 }
 0x3d3   : > { %v18857_v36 = vadd.f32 %v12988_v3, %v12924_v56  ;;  %13182 = vmatprep.mubr.bf16.mxu1 %v18275_v2 }
 0x3d4   : > { %v6445_v46 = vpop.f32.mrf.mxu1  ;;  %v12992_v37 = vpop.f32.mrf.mxu0  ;;  %13247 = vmatmul.mubr.bf16.gmra.mxu0 %v18346_v47 }
 0x3d5   : > { %v18861_v29 = vadd.f32 %v6997_v53, %v6445_v46  ;;  %13250 = vmatprep.mubr.bf16.mxu0 %v18363_v27  ;;  %v21489_v46 = vld [vmem:[#allocation92_spill] sm:$0xff] }
 0x3d6   : > { %v12925_v8 = vpop.f32.mrf.mxu1  ;;  %v7013_v41 = vpop.f32.mrf.mxu0 }
 0x3d7   : > { %v18864_v30 = vadd.f32 %v12989_v12, %v12925_v8  ;;  %v21488_v12 = vshll.u32 %v21460_v43, 16 }
 0x3d8   : > { %v6448_v7 = vpop.f32.mrf.mxu1  ;;  %v12993_v45 = vpop.f32.mrf.mxu0 }
 0x3d9   : > { %21484 = vst [vmem:[#allocation128_spill] sm:$0xff] %v18864_v30  ;;  %v18866_v11 = vadd.f32 %v7000_v18, %v6448_v7  ;;  %v8978_v56 = vrot.slane %v21488_v12, 1  ;;  %v8537_v18 = vshll.u32 %v21351_v52, 16 }
 0x3da   : > { %v12928_v32 = vpop.f32.mrf.mxu1  ;;  %13183 = vmatmul.mubr.bf16.gmra.mxu1 %v18314_v24  ;;  %v7016_v2 = vpop.f32.mrf.mxu0 }
 0x3db   : > { %21485 = vst [vmem:[#allocation61_spill] sm:$0xff] %v18866_v11  ;;  %v18869_v3 = vadd.f32 %v12992_v37, %v12928_v32  ;;  %13186 = vmatprep.mubr.bf16.mxu1 %v18339_v60  ;;  %v8539_v12 = vrot.slane %v8537_v18, 1  ;;  %v21498_v18 = vld [vmem:[#allocation28_spill] sm:$0xff] }
 0x3dc   : > { %v6461_v47 = vpop.f32.mrf.mxu1  ;;  %v12996_v53 = vpop.f32.mrf.mxu0  ;;  %13251 = vmatmul.mubr.bf16.gmra.mxu0 %v18380_v10 }
 0x3dd   : > { %21486 = vst [vmem:[#allocation6_spill] sm:$0xff] %v18869_v3  ;;  %v18873_v27 = vadd.f32 %v7013_v41, %v6461_v47  ;;  %13254 = vmatprep.mubr.bf16.mxu0 %v21489_v46  ;;  %v21492_v3 = vshrl.u32 %v21460_v43, 16  ;;  %v8535_v47 = vshrl.u32 %v21351_v52, 16 }
 0x3de   : > { %v12929_v8 = vpop.f32.mrf.mxu1  ;;  %v7029_v24 = vpop.f32.mrf.mxu0 }
 0x3df   : > { %21487 = vst [vmem:[#allocation36_spill] sm:$0xff] %v18873_v27  ;;  %v18879_v7 = vadd.f32 %v12993_v45, %v12929_v8  ;;  %v8979_v10 = vor.u32 %v8978_v56, %v21492_v3  ;;  %v21494_v45 = vshll.u32 %v21463_v40, 16 }
 0x3e0   : > { %v6464_v37 = vpop.f32.mrf.mxu1  ;;  %v12997_v32 = vpop.f32.mrf.mxu0 }
 0x3e1   : > { %21490 = vst [vmem:[#allocation130_spill] sm:$0xff] %v18879_v7  ;;  %v18881_v60 = vadd.f32 %v7016_v2, %v6464_v37  ;;  %v8980_v8 = vrot.slane %v21494_v45, 1  ;;  %v21495_v37 = vld [vmem:[#allocation86_spill] sm:$0xff] }
 0x3e2   : > { %v12932_v41 = vpop.f32.mrf.mxu1  ;;  %13187 = vmatmul.mubr.bf16.gmra.mxu1 %v18351_v13  ;;  %v7032_v27 = vpop.f32.mrf.mxu0  ;;  %v21497_v13 = vshll.u32 %v21465_v35, 16 }
 0x3e3   : > { %21491 = vst [vmem:[#allocation123_spill] sm:$0xff] %v18881_v60  ;;  %v18887_v11 = vadd.f32 %v12996_v53, %v12932_v41  ;;  %13190 = vmatprep.mubr.bf16.mxu1 %v18407_v9  ;;  %v8981_v43 = vsel %vm21496_vm13, %v8979_v10, %v8980_v8  ;;  %v8540_v53 = vor.u32 %v8539_v12, %v8535_v47  ;;  %v21499_v41 = vshll.u32 %v21498_v18, 16  ;;  %vm21556_vm13 = vmmov %vm21410_vm0 }
 0x3e4   : > { %v6477_v46 = vpop.f32.mrf.mxu1  ;;  %v13000_v2 = vpop.f32.mrf.mxu0  ;;  %13255 = vmatmul.mubr.bf16.gmra.mxu0 %v21495_v37  ;;  %v8983_v52 = vrot.slane %v21497_v13, 1  ;;  %v21500_v10 = vshrl.u32 %v21465_v35, 16  ;;  %v13893_v35 = vld [vmem:[%s19947_s7 + $0x30] sm:$0xff]  }
 0x3e5   : > { %21493 = vst [vmem:[#allocation119_spill] sm:$0xff] %v18887_v11  ;;  %v18894_v3 = vadd.f32 %v7029_v24, %v6477_v46  ;;  %13338 = vmatprep.mubr.bf16.mxu0 %v8981_v43  ;;  %v8541_v9 = vrot.slane %v21499_v41, 1  ;;  %v21501_v24 = vshrl.u32 %v21463_v40, 16 }
 0x3e6   : > { %v12933_v56 = vpop.f32.mrf.mxu1  ;;  %v7045_v11 = vpop.f32.mrf.mxu0  ;;  %v8985_v46 = vor.u32 %v8983_v52, %v21500_v10 }
 0x3e7   : > { %v18900_v60 = vadd.f32 %v12997_v32, %v12933_v56  ;;  %v8982_v37 = vor.u32 %v8980_v8, %v21501_v24  ;;  %v8542_v47 = vsel %vm21502_vm11, %v8540_v53, %v8541_v9  ;;  %v21504_v32 = vshll.u32 %v21467_v20, 16  ;;  %vm21559_vm11 = vmmov %vm21410_vm0 }
 0x3e8   : > { %v6480_v45 = vpop.f32.mrf.mxu1  ;;  %v13001_v7 = vpop.f32.mrf.mxu0  ;;  %v21508_v53 = vshrl.u32 %v21498_v18, 16 }
 0x3e9   : > { %v18902_v30 = vadd.f32 %v7032_v27, %v6480_v45  ;;  %v8986_v56 = vrot.slane %v21504_v32, 1  ;;  %v21505_v27 = vld [vmem:[#allocation29_spill] sm:$0xff]  ;;  %v8984_v8 = vsel %vm21507_vm3, %v8982_v37, %v8983_v52  ;;  %vm21563_vm3 = vmmov %vm21410_vm0 }
 0x3ea   : > { %v12936_v13 = vpop.f32.mrf.mxu1  ;;  %13191 = vmatmul.mubr.bf16.gmra.mxu1 %v18410_v1  ;;  %v7048_v12 = vpop.f32.mrf.mxu0  ;;  %v21506_v41 = vshll.u32 %v21505_v27, 16 }
 0x3eb   : > { %v18910_v43 = vadd.f32 %v13000_v2, %v12936_v13  ;;  %13274 = vmatprep.mubr.bf16.mxu1 %v8542_v47  ;;  %v8543_v2 = vor.u32 %v8541_v9, %v21508_v53  ;;  %v8987_v10 = vsel %vm21509_vm6, %v8985_v46, %v8986_v56  ;;  %v21510_v13 = vshll.u32 %v21468_v17, 16  ;;  %vm21567_vm6 = vmmov %vm21410_vm0 }
 0x3ec   : > { %v8544_v40 = vrot.slane %v21506_v41, 1  ;;  %v6493_v45 = vpop.f32.mrf.mxu1  ;;  %v13084_v1 = vpop.f32.mrf.mxu0  ;;  %13339 = vmatmul.mubr.bf16.vlgmr.msra.gmra.mxu0 %v8984_v8  ;;  %v21513_v9 = vshrl.u32 %v21505_v27, 16  ;;  %v13895_v8 = vld [vmem:[%s19947_s7 + $0x28] sm:$0xff]   ;;  %v21516_v27 = vshrl.u32 %v21467_v20, 16 }
 0x3ed   : > { %21503 = vst [vmem:[#allocation114_spill] sm:$0xff] %v18910_v43  ;;  %v18923_v24 = vadd.f32 %v7045_v11, %v6493_v45  ;;  %v8989_v47 = vrot.slane %v21510_v13, 1  ;;  %13342 = vmatprep.mubr.bf16.mxu0 %v8987_v10  ;;  %v21511_v43 = vshll.u32 %v17421_v4, 16  ;;  %13451 = vmatpush3.bf16.msra.mxu0 %v18809_v34  ;;  %v13892_v11 = vld [vmem:[%s19944_s4 + $0x230] sm:$0xff]  }
 0x3ee   : > { %v12937_v32 = vpop.f32.mrf.mxu1  ;;  %v7572_v37 = vpop.f32.mrf.mxu0  ;;  %13452 = vmatprep.subr.bf16.mxu0 %v13893_v35  ;;  %v8546_v46 = vor.u32 %v8544_v40, %v21513_v9  ;;  %v8545_v34 = vsel %vm21514_vm14, %v8543_v2, %v8544_v40  ;;  %v8988_v13 = vor.u32 %v8986_v56, %v21516_v27  ;;  %v21519_v56 = vshrl.u32 %v17421_v4, 16  ;;  %vm21577_vm14 = vmmov %vm21410_vm0 }
 0x3ef   : > { %v8547_v41 = vrot.slane %v21511_v43, 1  ;;  %v18930_v52 = vadd.f32 %v13001_v7, %v12937_v32  ;;  %v21515_v7 = vshrl.u32 %v21468_v17, 16  ;;  %v13897_v17 = vld [vmem:[%s19947_s7 + $0x20] sm:$0xff]   ;;  %v21523_v27 = vshll.u32 %v17543_v55, 16 }
 0x3f0   : > { %v6496_v18 = vpop.f32.mrf.mxu1  ;;  %v13085_v45 = vpop.f32.mrf.mxu0  ;;  %v8990_v40 = vsel %vm21518_vm4, %v8988_v13, %v8989_v47  ;;  %vm21584_vm4 = vmmov %vm21410_vm0 }
 0x3f1   : > { %21512 = vst [vmem:[#allocation11_spill] sm:$0xff] %v18930_v52  ;;  %v18940_v43 = vadd.f32 %v7048_v12, %v6496_v18  ;;  %v8991_v53 = vor.u32 %v8989_v47, %v21515_v7  ;;  %v8548_v32 = vsel %vm21410_vm0, %v8546_v46, %v8547_v41  ;;  %13453 = vmatpush3.bf16.msra.mxu0 %v13893_v35  ;;  %v21517_v12 = vshll.u32 %v21469_v38, 16 }
 0x3f2   : > { %v13020_v10 = vpop.f32.mrf.mxu1  ;;  %13275 = vmatmul.mubr.bf16.vlgmr.msra.gmra.mxu1 %v8545_v34  ;;  %v7575_v9 = vpop.f32.mrf.mxu0  ;;  %v8549_v2 = vor.u32 %v8547_v41, %v21519_v56  ;;  %v21520_v35 = vshll.u32 %v21355_v62, 16  ;;  %13454 = vmatprep.subr.bf16.mxu0 %v13895_v8  ;;  %v21522_v47 = vshll.u32 %v21470_v50, 16  ;;  %v8553_v13 = vrot.slane %v21523_v27, 1 }
 0x3f3   : > { %v7402_v52 = vadd.f32 %v13020_v10, %v18649_v54  ;;  %13278 = vmatprep.mubr.bf16.mxu1 %v8548_v32  ;;  %v8992_v18 = vrot.slane %v21517_v12, 1  ;;  %13387 = vmatpush3.bf16.msra.mxu1 %v18818_v25  ;;  %v13894_v54 = vld [vmem:[%s19944_s4 + $0x228] sm:$0xff]   ;;  %v6873_v32 = vadd.f32 %v18652_v22, %v18665_v39  ;;  %v13899_v22 = vld [vmem:[%s19947_s7 + $0x18] sm:$0xff]  }
 0x3f4   : > { %v7209_v20 = vpop.f32.mrf.mxu1  ;;  %v8550_v46 = vrot.slane %v21520_v35, 1  ;;  %13388 = vmatprep.subr.bf16.mxu1 %v13892_v11  ;;  %v13088_v25 = vpop.f32.mrf.mxu0  ;;  %13343 = vmatmul.mubr.bf16.gmra.mxu0 %v8990_v40  ;;  %v8995_v10 = vrot.slane %v21522_v47, 1  ;;  %v21527_v35 = vshrl.u32 %v21469_v38, 16 }
 0x3f5   : > { %v8993_v34 = vsel %vm21521_vm5, %v8991_v53, %v8992_v18  ;;  %v7400_v7 = vadd.f32 %v7209_v20, %v18657_v19  ;;  %v18967_v4 = vadd.f32 %v13084_v1, %v7402_v52  ;;  %13455 = vmatpush3.bf16.msra.mxu0 %v13895_v8  ;;  %v21524_v1 = vshrl.u32 %v21355_v62, 16  ;;  %v13896_v20 = vld [vmem:[%s19944_s4 + $0x220] sm:$0xff]   ;;  %vm21587_vm5 = vmmov %vm21410_vm0 }
 0x3f6   : > { %13346 = vmatprep.mubr.bf16.mxu0 %v8993_v34  ;;  %v13021_v41 = vpop.f32.mrf.mxu1  ;;  %v7588_v12 = vpop.f32.mrf.mxu0  ;;  %13456 = vmatprep.subr.bf16.mxu0 %v13897_v17  ;;  %v8994_v34 = vor.u32 %v8992_v18, %v21527_v35 }
 0x3f7   : > { %v7403_v40 = vadd.f32 %v13021_v41, %v18661_v21  ;;  %13389 = vmatpush3.bf16.msra.mxu1 %v13892_v11  ;;  %v18974_v19 = vadd.f32 %v7572_v37, %v7400_v7  ;;  %v8552_v52 = vor.u32 %v8550_v46, %v21524_v1  ;;  %v18985_v21 = vsel %vm21525_vm15, %v8549_v2, %v8550_v46  ;;  %vm21596_vm15 = vmmov %vm21410_vm0 }
 0x3f8   : > { %v7212_v53 = vpop.f32.mrf.mxu1  ;;  %13390 = vmatprep.subr.bf16.mxu1 %v13894_v54  ;;  %v13089_v39 = vpop.f32.mrf.mxu0  ;;  %v21526_v37 = vshrl.u32 %v21470_v50, 16  ;;  %v21529_v50 = vshll.u32 %v21475_v31, 16  ;;  %v8996_v38 = vsel %vm21530_vm7, %v8994_v34, %v8995_v10  ;;  %v21537_v34 = vld [vmem:[#allocation117_spill] sm:$0xff]  ;;  %vm21603_vm7 = vmmov %vm21410_vm0 }
 0x3f9   : > { %v7401_v8 = vadd.f32 %v7212_v53, %v6873_v32  ;;  %v18989_v56 = vadd.f32 %v13085_v45, %v7403_v40  ;;  %v18995_v7 = vsel %vm21528_vm12, %v8552_v52, %v8553_v13  ;;  %13457 = vmatpush3.bf16.msra.mxu0 %v13897_v17  ;;  %v13901_v45 = vld [vmem:[%s19947_s7 + $0x10] sm:$0xff]   ;;  %v21531_v17 = vshrl.u32 %v17543_v55, 16  ;;  %vm21599_vm12 = vmmov %vm21410_vm0 }
 0x3fa   : > { %v8997_v11 = vor.u32 %v8995_v10, %v21526_v37  ;;  %v13024_v62 = vpop.f32.mrf.mxu1  ;;  %13279 = vmatmul.mubr.bf16.gmra.mxu1 %v18985_v21  ;;  %v7591_v47 = vpop.f32.mrf.mxu0  ;;  %v8998_v2 = vrot.slane %v21529_v50, 1  ;;  %13458 = vmatprep.subr.bf16.mxu0 %v13899_v22  ;;  %v21534_v10 = vshll.u32 %v21476_v33, 16  ;;  %v21535_v52 = vshll.u32 %v17690_v15, 16  ;;  %v21536_v37 = vld [vmem:[#allocation110_spill] sm:$0xff] }
 0x3fb   : > { %v7406_v41 = vadd.f32 %v13024_v62, %v18669_v63  ;;  %13282 = vmatprep.mubr.bf16.mxu1 %v18995_v7  ;;  %13391 = vmatpush3.bf16.msra.mxu1 %v13894_v54  ;;  %v19004_v46 = vadd.f32 %v7575_v9, %v7401_v8  ;;  %v8555_v27 = vor.u32 %v8553_v13, %v21531_v17  ;;  %v21532_v63 = vshll.u32 %v17679_v48, 16  ;;  %v13898_v54 = vld [vmem:[%s19944_s4 + $0x218] sm:$0xff]  }
 0x3fc   : > { %v7225_v18 = vpop.f32.mrf.mxu1  ;;  %13392 = vmatprep.subr.bf16.mxu1 %v13896_v20  ;;  %v13092_v40 = vpop.f32.mrf.mxu0  ;;  %13347 = vmatmul.mubr.bf16.gmra.mxu0 %v8996_v38  ;;  %v8999_v9 = vsel %vm21533_vm10, %v8997_v11, %v8998_v2  ;;  %v9001_v1 = vrot.slane %v21534_v10, 1  ;;  %v8559_v8 = vrot.slane %v21535_v52, 1  ;;  %v6889_v62 = vadd.f32 %v21536_v37, %v18682_v49  ;;  %v13900_v38 = vld [vmem:[%s19944_s4 + $0x210] sm:$0xff]   ;;  %v13903_v49 = vld [vmem:[%s19947_s7 + $0x8] sm:$0xff]   ;;  %v21543_v52 = vld [vmem:[#allocation60_spill] sm:$0xff] }
 0x3fd   : > { %v8556_v32 = vrot.slane %v21532_v63, 1  ;;  %v7404_v53 = vadd.f32 %v7225_v18, %v18672_v44  ;;  %v19018_v55 = vadd.f32 %v13088_v25, %v7406_v41  ;;  %13350 = vmatprep.mubr.bf16.mxu0 %v8999_v9  ;;  %13459 = vmatpush3.bf16.msra.mxu0 %v13899_v22  ;;  %v21538_v25 = vshrl.u32 %v17679_v48, 16  ;;  %vm21615_vm10 = vmmov %vm21410_vm0 }
 0x3fe   : > { %v13025_v13 = vpop.f32.mrf.mxu1  ;;  %v7604_v35 = vpop.f32.mrf.mxu0  ;;  %13460 = vmatprep.subr.bf16.mxu0 %v13901_v45  ;;  %v21541_v9 = vshrl.u32 %v21475_v31, 16 }
 0x3ff   : > { %v7407_v50 = vadd.f32 %v13025_v13, %v21537_v34  ;;  %13393 = vmatpush3.bf16.msra.mxu1 %v13896_v20  ;;  %v19025_v44 = vadd.f32 %v7588_v12, %v7404_v53  ;;  %v8558_v41 = vor.u32 %v8556_v32, %v21538_v25  ;;  %v19036_v20 = vsel %vm21539_vm1, %v8555_v27, %v8556_v32  ;;  %v21549_v25 = vld [vmem:[#allocation113_spill] sm:$0xff]  ;;  %vm21617_vm1 = vmmov %vm21410_vm0 }
 0x400   : > { %v7228_v11 = vpop.f32.mrf.mxu1  ;;  %13394 = vmatprep.subr.bf16.mxu1 %v13898_v54  ;;  %v13093_v22 = vpop.f32.mrf.mxu0  ;;  %v21540_v12 = vshrl.u32 %v21476_v33, 16  ;;  %v9000_v53 = vor.u32 %v8998_v2, %v21541_v9  ;;  %v21544_v33 = vshll.u32 %v21477_v5, 16  ;;  %v21547_v34 = vshll.u32 %v17794_v16, 16  ;;  %v21552_v9 = vld [vmem:[#allocation101_spill] sm:$0xff] }
 0x401   : > { %v7405_v18 = vadd.f32 %v7228_v11, %v6889_v62  ;;  %v19040_v63 = vadd.f32 %v13089_v39, %v7407_v50  ;;  %v19046_v10 = vsel %vm21542_vm2, %v8558_v41, %v8559_v8  ;;  %13461 = vmatpush3.bf16.msra.mxu0 %v13901_v45  ;;  %v13906_v39 = vld [vmem:[%s19947_s7] sm:$0xff]   ;;  %v21546_v45 = vshrl.u32 %v17690_v15, 16  ;;  %vm21626_vm2 = vmmov %vm21410_vm0 }
 0x402   : > { %v9003_v17 = vor.u32 %v9001_v1, %v21540_v12  ;;  %v13028_v48 = vpop.f32.mrf.mxu1  ;;  %13283 = vmatmul.mubr.bf16.gmra.mxu1 %v19036_v20  ;;  %v7607_v13 = vpop.f32.mrf.mxu0  ;;  %v9004_v27 = vrot.slane %v21544_v33, 1  ;;  %v9002_v31 = vsel %vm21545_vm9, %v9000_v53, %v9001_v1  ;;  %v8562_v50 = vrot.slane %v21547_v34, 1  ;;  %13462 = vmatprep.subr.bf16.mxu0 %v13903_v49  ;;  %v21553_v53 = vld [vmem:[#allocation99_spill] sm:$0xff]  ;;  %v13905_v34 = vld [vmem:[%s19944_s4 + $0x200] sm:$0xff]   ;;  %vm21628_vm9 = vmmov %vm21410_vm0 }
 0x403   : > { %v7410_v37 = vadd.f32 %v13028_v48, %v21543_v52  ;;  %13286 = vmatprep.mubr.bf16.mxu1 %v19046_v10  ;;  %13395 = vmatpush3.bf16.msra.mxu1 %v13898_v54  ;;  %v19055_v32 = vadd.f32 %v7591_v47, %v7405_v18  ;;  %v8561_v62 = vor.u32 %v8559_v8, %v21546_v45  ;;  %v13902_v54 = vld [vmem:[%s19944_s4 + $0x208] sm:$0xff]   ;;  %v21550_v1 = vshll.u32 %v21478_v61, 16 }
 0x404   : > { %v7241_v2 = vpop.f32.mrf.mxu1  ;;  %13396 = vmatprep.subr.bf16.mxu1 %v13900_v38  ;;  %v13096_v11 = vpop.f32.mrf.mxu0  ;;  %13351 = vmatmul.mubr.bf16.gmra.mxu0 %v9002_v31  ;;  %v9005_v47 = vsel %vm21548_vm8, %v9003_v17, %v9004_v27  ;;  %v21551_v12 = vshll.u32 %v17825_v23, 16  ;;  %v6905_v52 = vadd.f32 %v21553_v53, %v21552_v9  ;;  %v21554_v31 = vld [vmem:[#allocation102_spill] sm:$0xff]  ;;  %v21560_v53 = vld [vmem:[#allocation20_spill] sm:$0xff]  ;;  %vm21718_vm8 = vmmov %vm21410_vm0 }
 0x405   : > { %v7408_v41 = vadd.f32 %v7241_v2, %v21549_v25  ;;  %v9007_v18 = vrot.slane %v21550_v1, 1  ;;  %v19069_v15 = vadd.f32 %v13092_v40, %v7410_v37  ;;  %13354 = vmatprep.mubr.bf16.mxu0 %v9005_v47  ;;  %13463 = vmatpush3.bf16.msra.mxu0 %v13903_v49  ;;  %v21555_v40 = vshrl.u32 %v17794_v16, 16 }
 0x406   : > { %v13029_v8 = vpop.f32.mrf.mxu1  ;;  %v8565_v48 = vrot.slane %v21551_v12, 1  ;;  %v7620_v33 = vpop.f32.mrf.mxu0  ;;  %13464 = vmatprep.subr.bf16.mxu0 %v13906_v39  ;;  %v19084_v25 = vsel %vm21556_vm13, %v8561_v62, %v8562_v50  ;;  %v21557_v1 = vshrl.u32 %v21478_v61, 16  ;;  %v21558_v16 = vshrl.u32 %v21477_v5, 16  ;;  %vm21719_vm13 = vmmov %vm21410_vm0 }
 0x407   : > { %v7411_v45 = vadd.f32 %v13029_v8, %v21554_v31  ;;  %13397 = vmatpush3.bf16.msra.mxu1 %v13900_v38  ;;  %v19076_v17 = vadd.f32 %v7604_v35, %v7408_v41  ;;  %v8564_v37 = vor.u32 %v8562_v50, %v21555_v40  ;;  %v21561_v61 = vshll.u32 %v21479_v6, 16 }
 0x408   : > { %v7244_v2 = vpop.f32.mrf.mxu1  ;;  %13398 = vmatprep.subr.bf16.mxu1 %v13902_v54  ;;  %v13097_v49 = vpop.f32.mrf.mxu0  ;;  %v9009_v38 = vor.u32 %v9007_v18, %v21557_v1  ;;  %v9006_v41 = vor.u32 %v9004_v27, %v21558_v16  ;;  %v21564_v5 = vshrl.u32 %v17825_v23, 16  ;;  %v21568_v1 = vld [vmem:[#allocation59_spill] sm:$0xff]  ;;  %v21571_v16 = vld [vmem:[#allocation66_spill] sm:$0xff] }
 0x409   : > { %v7409_v47 = vadd.f32 %v7244_v2, %v6905_v52  ;;  %v19088_v8 = vadd.f32 %v13093_v22, %v7411_v45  ;;  %v19094_v12 = vsel %vm21559_vm11, %v8564_v37, %v8565_v48  ;;  %13465 = vmatpush3.bf16.msra.mxu0 %v13906_v39  ;;  %v9010_v62 = vrot.slane %v21561_v61, 1  ;;  %v21565_v45 = vld [vmem:[#allocation70_spill] sm:$0xff]  ;;  %vm21722_vm11 = vmmov %vm21410_vm0 }
 0x40a   : > { %v13032_v35 = vpop.f32.mrf.mxu1  ;;  %13287 = vmatmul.mubr.bf16.gmra.mxu1 %v19084_v25  ;;  %v7623_v9 = vpop.f32.mrf.mxu0  ;;  %v9008_v50 = vsel %vm21563_vm3, %v9006_v41, %v9007_v18  ;;  %v8567_v27 = vor.u32 %v8565_v48, %v21564_v5  ;;  %v21566_v2 = vshll.u32 %v21565_v45, 16  ;;  %v21572_v23 = vshll.u32 %v21571_v16, 16  ;;  %v21573_v41 = vld [vmem:[#allocation35_spill] sm:$0xff] }
 0x40b   : > { %v7414_v52 = vadd.f32 %v13032_v35, %v21560_v53  ;;  %13290 = vmatprep.mubr.bf16.mxu1 %v19094_v12  ;;  %13399 = vmatpush3.bf16.msra.mxu1 %v13902_v54  ;;  %v19100_v22 = vadd.f32 %v7607_v13, %v7409_v47  ;;  %v9011_v37 = vsel %vm21567_vm6, %v9009_v38, %v9010_v62  ;;  %v21569_v54 = vshll.u32 %v21480_v58, 16  ;;  %v21574_v53 = vld [vmem:[#allocation120_spill] sm:$0xff] }
 0x40c   : > { %v7257_v31 = vpop.f32.mrf.mxu1  ;;  %v8568_v39 = vrot.slane %v21566_v2, 1  ;;  %13400 = vmatprep.subr.bf16.mxu1 %v13905_v34  ;;  %v13100_v40 = vpop.f32.mrf.mxu0  ;;  %13355 = vmatmul.mubr.bf16.gmra.mxu0 %v9008_v50  ;;  %v8571_v48 = vrot.slane %v21572_v23, 1  ;;  %v6921_v61 = vadd.f32 %v21574_v53, %v21573_v41  ;;  %v21575_v2 = vld [vmem:[#allocation104_spill] sm:$0xff]  ;;  %v21578_v23 = vshrl.u32 %v21480_v58, 16 }
 0x40d   : > { %21562 = vst [vmem:[#allocation21_spill] sm:$0xff] %v19100_v22  ;;  %v7412_v35 = vadd.f32 %v7257_v31, %v21568_v1  ;;  %v9013_v13 = vrot.slane %v21569_v54, 1  ;;  %v19111_v47 = vadd.f32 %v13096_v11, %v7414_v52  ;;  %13358 = vmatprep.mubr.bf16.mxu0 %v9011_v37  ;;  %v21576_v1 = vshrl.u32 %v21565_v45, 16 }
 0x40e   : > { %v13033_v18 = vpop.f32.mrf.mxu1  ;;  %v7636_v5 = vpop.f32.mrf.mxu0  ;;  %v19123_v37 = vsel %vm21577_vm14, %v8567_v27, %v8568_v39  ;;  %v21582_v27 = vshll.u32 %v21483_v51, 16 }
 0x40f   : > { %21570 = vst [vmem:[#allocation132_spill] sm:$0xff] %v19111_v47  ;;  %v7415_v50 = vadd.f32 %v13033_v18, %v21575_v2  ;;  %13401 = vmatpush3.bf16.msra.mxu1 %v13905_v34  ;;  %v19118_v38 = vadd.f32 %v7620_v33, %v7412_v35  ;;  %v8570_v54 = vor.u32 %v8568_v39, %v21576_v1  ;;  %v21580_v33 = vshrl.u32 %v21479_v6, 16  ;;  %v21581_v18 = vld [vmem:[#allocation116_spill] sm:$0xff]  ;;  %v21585_v2 = vld [vmem:[#allocation75_spill] sm:$0xff] }
 0x410   : > { %v7260_v31 = vpop.f32.mrf.mxu1  ;;  %v13101_v11 = vpop.f32.mrf.mxu0  ;;  %v9015_v47 = vor.u32 %v9013_v13, %v21578_v23  ;;  %v9016_v58 = vrot.slane %v21582_v27, 1  ;;  %v21588_v1 = vld [vmem:[#allocation112_spill] sm:$0xff]  ;;  %v21589_v23 = vshrl.u32 %v21571_v16, 16 }
 0x411   : > { %v7413_v52 = vadd.f32 %v7260_v31, %v6921_v61  ;;  %v19127_v22 = vadd.f32 %v13097_v49, %v7415_v50  ;;  %v9012_v34 = vor.u32 %v9010_v62, %v21580_v33  ;;  %v19133_v35 = vsel %vm21410_vm0, %v8570_v54, %v8571_v48  ;;  %v21592_v27 = vld [vmem:[#allocation108_spill] sm:$0xff] }
 0x412   : > { %v13036_v41 = vpop.f32.mrf.mxu1  ;;  %13291 = vmatmul.mubr.bf16.gmra.mxu1 %v19123_v37  ;;  %v7639_v45 = vpop.f32.mrf.mxu0  ;;  %v21586_v50 = vshll.u32 %v21585_v2, 16  ;;  %v9017_v31 = vsel %vm21587_vm5, %v9015_v47, %v9016_v58  ;;  %v21594_v47 = vshrl.u32 %v21585_v2, 16  ;;  %v21600_v2 = vld [vmem:[#allocation31_spill] sm:$0xff] }
 0x413   : > { %21579 = vst [vmem:[#allocation139_spill] sm:$0xff] %v19127_v22  ;;  %v7418_v53 = vadd.f32 %v13036_v41, %v21581_v18  ;;  %13294 = vmatprep.mubr.bf16.mxu1 %v19133_v35  ;;  %v19139_v39 = vadd.f32 %v7623_v9, %v7413_v52  ;;  %v9014_v49 = vsel %vm21584_vm4, %v9012_v34, %v9013_v13  ;;  %v21590_v52 = vld [vmem:[#allocation72_spill] sm:$0xff] }
 0x414   : > { %v7273_v61 = vpop.f32.mrf.mxu1  ;;  %v8574_v6 = vrot.slane %v21586_v50, 1  ;;  %v13104_v62 = vpop.f32.mrf.mxu0  ;;  %13359 = vmatmul.mubr.bf16.gmra.mxu0 %v9014_v49  ;;  %v8573_v41 = vor.u32 %v8571_v48, %v21589_v23  ;;  %v21591_v18 = vshll.u32 %v21590_v52, 16 }
 0x415   : > { %21583 = vst [vmem:[#allocation135_spill] sm:$0xff] %v19139_v39  ;;  %v7416_v54 = vadd.f32 %v7273_v61, %v21588_v1  ;;  %v19148_v33 = vadd.f32 %v13100_v40, %v7418_v53  ;;  %13362 = vmatprep.mubr.bf16.mxu0 %v9017_v31  ;;  %v21595_v1 = vld [vmem:[#allocation22_spill] sm:$0xff]  ;;  %v21598_v31 = vshrl.u32 %v21483_v51, 16  ;;  %v21606_v51 = vld [vmem:[#allocation121_spill] sm:$0xff] }
 0x416   : > { %v13037_v9 = vpop.f32.mrf.mxu1  ;;  %v8577_v13 = vrot.slane %v21591_v18, 1  ;;  %v7652_v34 = vpop.f32.mrf.mxu0  ;;  %v8576_v22 = vor.u32 %v8574_v6, %v21594_v47  ;;  %v19159_v40 = vsel %vm21596_vm15, %v8573_v41, %v8574_v6  ;;  %v21602_v6 = vld [vmem:[#allocation89_spill] sm:$0xff]  ;;  %v21604_v41 = vld [vmem:[#allocation80_spill] sm:$0xff] }
 0x417   : > { %v7419_v39 = vadd.f32 %v13037_v9, %v21592_v27  ;;  %v19153_v50 = vadd.f32 %v7636_v5, %v7416_v54  ;;  %v9018_v23 = vor.u32 %v9016_v58, %v21598_v31  ;;  %v21605_v27 = vshll.u32 %v21604_v41, 16 }
 0x418   : > { %v7276_v49 = vpop.f32.mrf.mxu1  ;;  %v13105_v61 = vpop.f32.mrf.mxu0  ;;  %v19167_v5 = vsel %vm21599_vm12, %v8576_v22, %v8577_v13  ;;  %v21607_v22 = vshrl.u32 %v21590_v52, 16  ;;  %v21614_v52 = vld [vmem:[#allocation34_spill] sm:$0xff] }
 0x419   : > { %21593 = vst [vmem:[#allocation115_spill] sm:$0xff] %v19153_v50  ;;  %v7417_v16 = vadd.f32 %v7276_v49, %v21595_v1  ;;  %v19161_v48 = vadd.f32 %v13101_v11, %v7419_v39  ;;  %v9020_v11 = vsel %vm21603_vm7, %v9018_v23, %v21602_v6  ;;  %v8580_v49 = vrot.slane %v21605_v27, 1  ;;  %v21611_v6 = vld [vmem:[#allocation125_spill] sm:$0xff] }
 0x41a   : > { %v13040_v53 = vpop.f32.mrf.mxu1  ;;  %13295 = vmatmul.mubr.bf16.gmra.mxu1 %v19159_v40  ;;  %v7655_v54 = vpop.f32.mrf.mxu0  ;;  %v8579_v1 = vor.u32 %v8577_v13, %v21607_v22 }
 0x41b   : > { %21597 = vst [vmem:[#allocation15_spill] sm:$0xff] %v19161_v48  ;;  %v7422_v9 = vadd.f32 %v13040_v53, %v21600_v2  ;;  %13298 = vmatprep.mubr.bf16.mxu1 %v19167_v5  ;;  %v19171_v18 = vadd.f32 %v7639_v45, %v7417_v16  ;;  %v21608_v53 = vld [vmem:[#allocation88_spill] sm:$0xff]  ;;  %v21609_v16 = vld [vmem:[#allocation73_spill] sm:$0xff] }
 0x41c   : > { %v7289_v39 = vpop.f32.mrf.mxu1  ;;  %v13108_v47 = vpop.f32.mrf.mxu0  ;;  %13363 = vmatmul.mubr.bf16.gmra.mxu0 %v9020_v11  ;;  %v21610_v2 = vshll.u32 %v21609_v16, 16  ;;  %v21613_v11 = vshrl.u32 %v21604_v41, 16 }
 0x41d   : > { %21601 = vst [vmem:[#allocation5_spill] sm:$0xff] %v19171_v18  ;;  %v7420_v58 = vadd.f32 %v7289_v39, %v21606_v51  ;;  %v19180_v31 = vadd.f32 %v13104_v62, %v7422_v9  ;;  %13366 = vmatprep.mubr.bf16.mxu0 %v21608_v53  ;;  %v19192_v62 = vsel %vm21615_vm10, %v8579_v1, %v8580_v49 }
 0x41e   : > { %v13041_v45 = vpop.f32.mrf.mxu1  ;;  %v8583_v18 = vrot.slane %v21610_v2, 1  ;;  %v7668_v23 = vpop.f32.mrf.mxu0  ;;  %v8582_v39 = vor.u32 %v8580_v49, %v21613_v11  ;;  %v21619_v2 = vshll.u32 %v21437_v57, 16 }
 0x41f   : > { %v7423_v48 = vadd.f32 %v13041_v45, %v21611_v6  ;;  %v19186_v50 = vadd.f32 %v7652_v34, %v7420_v58  ;;  %v21621_v6 = vshrl.u32 %v21609_v16, 16 }
 0x420   : > { %v7292_v27 = vpop.f32.mrf.mxu1  ;;  %v13109_v51 = vpop.f32.mrf.mxu0  ;;  %v19198_v53 = vsel %vm21617_vm1, %v8582_v39, %v8583_v18  ;;  %v8586_v49 = vrot.slane %v21619_v2, 1  ;;  %v21622_v39 = vld [vmem:[#allocation94_spill] sm:$0xff]  ;;  %v21624_v2 = vshrl.u32 %v21437_v57, 16 }
 0x421   : > { %21612 = vst [vmem:[#allocation140_spill] sm:$0xff] %v19186_v50  ;;  %v7421_v13 = vadd.f32 %v7292_v27, %v21614_v52  ;;  %v19194_v9 = vadd.f32 %v13105_v61, %v7423_v48  ;;  %v21620_v61 = vld [vmem:[#allocation78_spill] sm:$0xff]  ;;  %v8585_v27 = vor.u32 %v8583_v18, %v21621_v6  ;;  %v21625_v50 = vld [vmem:[#allocation129_spill] sm:$0xff] }
 0x422   : > { %v13044_v22 = vpop.f32.mrf.mxu1  ;;  %13299 = vmatmul.mubr.bf16.gmra.mxu1 %v19192_v62  ;;  %v7671_v34 = vpop.f32.mrf.mxu0 }
 0x423   : > { %21616 = vst [vmem:[#allocation137_spill] sm:$0xff] %v19194_v9  ;;  %v7426_v58 = vadd.f32 %v13044_v22, %v18829_v59  ;;  %13302 = vmatprep.mubr.bf16.mxu1 %v19198_v53  ;;  %v19202_v41 = vadd.f32 %v7655_v54, %v7421_v13  ;;  %v21623_v54 = vld [vmem:[#allocation109_spill] sm:$0xff]  ;;  %v8588_v9 = vor.u32 %v8586_v49, %v21624_v2 }
 0x424   : > { %v7305_v45 = vpop.f32.mrf.mxu1  ;;  %v13112_v1 = vpop.f32.mrf.mxu0  ;;  %13367 = vmatmul.mubr.bf16.gmra.mxu0 %v21620_v61  ;;  %v19220_v16 = vsel %vm21626_vm2, %v8585_v27, %v8586_v49  ;;  %v21629_v49 = vld [vmem:[#allocation87_spill] sm:$0xff]  ;;  %v21630_v27 = vld [vmem:[#allocation106_spill] sm:$0xff] }
 0x425   : > { %21618 = vst [vmem:[#allocation126_spill] sm:$0xff] %v19202_v41  ;;  %v7424_v48 = vadd.f32 %v7305_v45, %v18832_v28  ;;  %v19210_v11 = vadd.f32 %v13108_v47, %v7426_v58  ;;  %13370 = vmatprep.mubr.bf16.mxu0 %v21622_v39  ;;  %v21627_v58 = vld [vmem:[#allocation96_spill] sm:$0xff] }
 0x426   : > { %v13045_v59 = vpop.f32.mrf.mxu1  ;;  %v7684_v52 = vpop.f32.mrf.mxu0  ;;  %v19227_v45 = vsel %vm21628_vm9, %v8588_v9, %v21627_v58  ;;  %v21634_v58 = vld [vmem:[#allocation91_spill] sm:$0xff] }
 0x427   : > { %v7427_v13 = vadd.f32 %v13045_v59, %v21623_v54  ;;  %v19214_v22 = vadd.f32 %v7668_v23, %v7424_v48 }
 0x428   : > { %v7308_v41 = vpop.f32.mrf.mxu1  ;;  %v13113_v61 = vpop.f32.mrf.mxu0 }
 0x429   : > { %v7425_v28 = vadd.f32 %v7308_v41, %v21625_v50  ;;  %v19222_v18 = vadd.f32 %v13109_v51, %v7427_v13 }
 0x42a   : > { %v13048_v47 = vpop.f32.mrf.mxu1  ;;  %13303 = vmatmul.mubr.bf16.gmra.mxu1 %v19220_v16  ;;  %v7687_v23 = vpop.f32.mrf.mxu0 }
 0x42b   : > { %v7430_v48 = vadd.f32 %v13048_v47, %v18845_v14  ;;  %13306 = vmatprep.mubr.bf16.mxu1 %v19227_v45  ;;  %v19231_v57 = vadd.f32 %v7671_v34, %v7425_v28  ;;  %v21633_v47 = vld [vmem:[#allocation105_spill] sm:$0xff] }
 0x42c   : > { %v7321_v50 = vpop.f32.mrf.mxu1  ;;  %v13116_v41 = vpop.f32.mrf.mxu0  ;;  %13371 = vmatmul.mubr.bf16.gmra.mxu0 %v21629_v49 }
 0x42d   : > { %v7428_v51 = vadd.f32 %v7321_v50, %v18849_v26  ;;  %v19235_v6 = vadd.f32 %v13112_v1, %v7430_v48  ;;  %13374 = vmatprep.mubr.bf16.mxu0 %v21630_v27 }
 0x42e   : > { %v13049_v39 = vpop.f32.mrf.mxu1  ;;  %v7700_v9 = vpop.f32.mrf.mxu0 }
 0x42f   : > { %v7431_v59 = vadd.f32 %v13049_v39, %v18852_v42  ;;  %v19239_v54 = vadd.f32 %v7684_v52, %v7428_v51  ;;  %v21636_v52 = vld [vmem:[#allocation98_spill] sm:$0xff]  ;;  %v21639_v39 = vld [vmem:[#allocation128_spill] sm:$0xff] }
 0x430   : > { %v7324_v14 = vpop.f32.mrf.mxu1  ;;  %v13117_v13 = vpop.f32.mrf.mxu0 }
 0x431   : > { %21631 = vst [vmem:[#allocation118_spill] sm:$0xff] %v19239_v54  ;;  %v7429_v34 = vadd.f32 %v7324_v14, %v18854_v0  ;;  %v19242_v2 = vadd.f32 %v13113_v61, %v7431_v59  ;;  %v21638_v0 = vld [vmem:[#allocation8_spill] sm:$0xff] }
 0x432   : > { %v13052_v28 = vpop.f32.mrf.mxu1  ;;  %13307 = vmatmul.mubr.bf16.gmra.mxu1 %v21633_v47  ;;  %v7703_v26 = vpop.f32.mrf.mxu0 }
 0x433   : > { %21632 = vst [vmem:[#allocation25_spill] sm:$0xff] %v19242_v2  ;;  %v7434_v1 = vadd.f32 %v13052_v28, %v18857_v36  ;;  %13310 = vmatprep.mubr.bf16.mxu1 %v21634_v58  ;;  %v19247_v48 = vadd.f32 %v7687_v23, %v7429_v34  ;;  %v21641_v23 = vld [vmem:[#allocation61_spill] sm:$0xff] }
 0x434   : > { %v7337_v50 = vpop.f32.mrf.mxu1  ;;  %v13120_v42 = vpop.f32.mrf.mxu0  ;;  %13375 = vmatmul.mubr.bf16.gmra.mxu0 %v21636_v52  ;;  %v21643_v52 = vld [vmem:[#allocation7_spill] sm:$0xff] }
 0x435   : > { %21635 = vst [vmem:[#allocation32_spill] sm:$0xff] %v19247_v48  ;;  %v7432_v49 = vadd.f32 %v7337_v50, %v18861_v29  ;;  %v19251_v51 = vadd.f32 %v13116_v41, %v7434_v1  ;;  %13378 = vmatprep.mubr.bf16.mxu0 %v21638_v0  ;;  %v21644_v41 = vld [vmem:[#allocation6_spill] sm:$0xff]  ;;  %v21645_v50 = vld [vmem:[#allocation93_spill] sm:$0xff] }
 0x436   : > { %v13053_v61 = vpop.f32.mrf.mxu1  ;;  %v7716_v27 = vpop.f32.mrf.mxu0 }
 0x437   : > { %21637 = vst [vmem:[#allocation122_spill] sm:$0xff] %v19251_v51  ;;  %v7435_v59 = vadd.f32 %v13053_v61, %v21639_v39  ;;  %v19255_v14 = vadd.f32 %v7700_v9, %v7432_v49  ;;  %v21647_v9 = vld [vmem:[#allocation100_spill] sm:$0xff] }
 0x438   : > { %v7340_v36 = vpop.f32.mrf.mxu1  ;;  %v13121_v28 = vpop.f32.mrf.mxu0  ;;  %v21648_v49 = vld [vmem:[#allocation36_spill] sm:$0xff] }
 0x439   : > { %21640 = vst [vmem:[#allocation131_spill] sm:$0xff] %v19255_v14  ;;  %v7433_v34 = vadd.f32 %v7340_v36, %v21641_v23  ;;  %v19258_v48 = vadd.f32 %v13117_v13, %v7435_v59  ;;  %v21650_v13 = vld [vmem:[#allocation13_spill] sm:$0xff]  ;;  %v21651_v23 = vld [vmem:[#allocation130_spill] sm:$0xff] }
 0x43a   : > { %v13056_v2 = vpop.f32.mrf.mxu1  ;;  %13311 = vmatmul.mubr.bf16.gmra.mxu1 %v21643_v52  ;;  %v7719_v29 = vpop.f32.mrf.mxu0 }
 0x43b   : > { %21642 = vst [vmem:[#allocation17_spill] sm:$0xff] %v19258_v48  ;;  %v7438_v1 = vadd.f32 %v13056_v2, %v21644_v41  ;;  %13314 = vmatprep.mubr.bf16.mxu1 %v21645_v50  ;;  %v19263_v0 = vadd.f32 %v7703_v26, %v7433_v34  ;;  %v21652_v26 = vld [vmem:[#allocation123_spill] sm:$0xff] }
 0x43c   : > { %v7353_v51 = vpop.f32.mrf.mxu1  ;;  %v13124_v61 = vpop.f32.mrf.mxu0  ;;  %13379 = vmatmul.mubr.bf16.gmra.mxu0 %v21647_v9  ;;  %v21654_v9 = vld [vmem:[#allocation33_spill] sm:$0xff] }
 0x43d   : > { %21646 = vst [vmem:[#allocation124_spill] sm:$0xff] %v19263_v0  ;;  %v7436_v39 = vadd.f32 %v7353_v51, %v21648_v49  ;;  %v19267_v14 = vadd.f32 %v13120_v42, %v7438_v1  ;;  %13382 = vmatprep.mubr.bf16.mxu0 %v21650_v13  ;;  %v21655_v42 = vld [vmem:[#allocation119_spill] sm:$0xff]  ;;  %v21656_v49 = vld [vmem:[#allocation97_spill] sm:$0xff] }
 0x43e   : > { %v13057_v59 = vpop.f32.mrf.mxu1  ;;  %v7732_v36 = vpop.f32.mrf.mxu0 }
 0x43f   : > { %21649 = vst [vmem:[#allocation127_spill] sm:$0xff] %v19267_v14  ;;  %v7439_v48 = vadd.f32 %v13057_v59, %v21651_v23  ;;  %v19271_v54 = vadd.f32 %v7716_v27, %v7436_v39  ;;  %v21658_v27 = vld [vmem:[#allocation111_spill] sm:$0xff] }
 0x440   : > { %v7356_v2 = vpop.f32.mrf.mxu1  ;;  %v13125_v41 = vpop.f32.mrf.mxu0 }
 0x441   : > { %v7437_v34 = vadd.f32 %v7356_v2, %v21652_v26  ;;  %v19274_v0 = vadd.f32 %v13121_v28, %v7439_v48  ;;  %v21659_v28 = vld [vmem:[#allocation40_spill] sm:$0xff] }
 0x442   : > { %v13060_v50 = vpop.f32.mrf.mxu1  ;;  %13315 = vmatmul.mubr.bf16.gmra.mxu1 %v21654_v9  ;;  %v7735_v51 = vpop.f32.mrf.mxu0 }
 0x443   : > { %21653 = vst [vmem:[#allocation3_spill] sm:$0xff] %v19274_v0  ;;  %v7442_v1 = vadd.f32 %v13060_v50, %v21655_v42  ;;  %13318 = vmatprep.mubr.bf16.mxu1 %v21656_v49  ;;  %v19279_v13 = vadd.f32 %v7719_v29, %v7437_v34 }
 0x444   : > { %v7369_v14 = vpop.f32.mrf.mxu1  ;;  %v13128_v59 = vpop.f32.mrf.mxu0  ;;  %13383 = vmatmul.mubr.bf16.gmra.mxu0 %v21658_v27  ;;  %v21661_v27 = vld [vmem:[#allocation107_spill] sm:$0xff] }
 0x445   : > { %21657 = vst [vmem:[#allocation54_spill] sm:$0xff] %v19279_v13  ;;  %v7440_v39 = vadd.f32 %v7369_v14, %v18894_v3  ;;  %v19283_v23 = vadd.f32 %v13124_v61, %v7442_v1  ;;  %13466 = vmatprep.mubr.bf16.mxu0 %v21659_v28  ;;  %v21662_v14 = vld [vmem:[#allocation114_spill] sm:$0xff] }
 0x446   : > { %v13061_v48 = vpop.f32.mrf.mxu1  ;;  %v7748_v2 = vpop.f32.mrf.mxu0 }
 0x447   : > { %v7443_v26 = vadd.f32 %v13061_v48, %v18900_v60  ;;  %v19287_v0 = vadd.f32 %v7732_v36, %v7440_v39  ;;  %v21663_v39 = vld [vmem:[#allocation38_spill] sm:$0xff] }
 0x448   : > { %v7372_v50 = vpop.f32.mrf.mxu1  ;;  %v13129_v42 = vpop.f32.mrf.mxu0 }
 0x449   : > { %v7441_v29 = vadd.f32 %v7372_v50, %v18902_v30  ;;  %v19290_v34 = vadd.f32 %v13125_v41, %v7443_v26  ;;  %v21664_v41 = vld [vmem:[#allocation39_spill] sm:$0xff] }
 0x44a   : > { %v13064_v13 = vpop.f32.mrf.mxu1  ;;  %13319 = vmatmul.mubr.bf16.gmra.mxu1 %v21661_v27  ;;  %v7751_v3 = vpop.f32.mrf.mxu0  ;;  %v21665_v50 = vld [vmem:[#allocation11_spill] sm:$0xff] }
 0x44b   : > { %21660 = vst [vmem:[#allocation4_spill] sm:$0xff] %v19290_v34  ;;  %v7446_v61 = vadd.f32 %v13064_v13, %v21662_v14  ;;  %13402 = vmatprep.mubr.bf16.mxu1 %v18985_v21  ;;  %v19295_v1 = vadd.f32 %v7735_v51, %v7441_v29 }
 0x44c   : > { %v7385_v28 = vpop.f32.mrf.mxu1  ;;  %v13212_v60 = vpop.f32.mrf.mxu0  ;;  %13467 = vmatmul.mubr.bf16.vlgmr.msra.gmra.mxu0 %v21663_v39 }
 0x44d   : > { %v7444_v36 = vadd.f32 %v7385_v28, %v18923_v24  ;;  %v19299_v48 = vadd.f32 %v13128_v59, %v7446_v61  ;;  %13470 = vmatprep.mubr.bf16.mxu0 %v21664_v41 }
 0x44e   : > { %v13065_v30 = vpop.f32.mrf.mxu1  ;;  %v8277_v26 = vpop.f32.mrf.mxu0 }
 0x44f   : > { %v7447_v27 = vadd.f32 %v13065_v30, %v21665_v50  ;;  %v19303_v34 = vadd.f32 %v7748_v2, %v7444_v36  ;;  %v21666_v36 = vld [vmem:[#allocation41_spill] sm:$0xff] }
 0x450   : > { %v7388_v13 = vpop.f32.mrf.mxu1  ;;  %v13213_v21 = vpop.f32.mrf.mxu0 }
 0x451   : > { %v7445_v51 = vadd.f32 %v7388_v13, %v18940_v43  ;;  %v19306_v29 = vadd.f32 %v13129_v42, %v7447_v27  ;;  %v21667_v42 = vld [vmem:[#allocation42_spill] sm:$0xff] }
 0x452   : > { %v13148_v14 = vpop.f32.mrf.mxu1  ;;  %13403 = vmatmul.mubr.bf16.vlgmr.msra.gmra.mxu1 %v18995_v7  ;;  %v8280_v24 = vpop.f32.mrf.mxu0 }
 0x453   : > { %v8127_v59 = vadd.f32 %v13148_v14, %v18967_v4  ;;  %13406 = vmatprep.mubr.bf16.mxu1 %v19036_v20  ;;  %v19311_v61 = vadd.f32 %v7751_v3, %v7445_v51 }
 0x454   : > { %v7934_v28 = vpop.f32.mrf.mxu1  ;;  %v13216_v39 = vpop.f32.mrf.mxu0  ;;  %13471 = vmatmul.mubr.bf16.gmra.mxu0 %v21666_v36 }
 0x455   : > { %v8125_v2 = vadd.f32 %v7934_v28, %v18974_v19  ;;  %v19315_v30 = vadd.f32 %v13212_v60, %v8127_v59  ;;  %13474 = vmatprep.mubr.bf16.mxu0 %v21667_v42  ;;  %v21668_v59 = vld [vmem:[#allocation43_spill] sm:$0xff] }
 0x456   : > { %v13149_v43 = vpop.f32.mrf.mxu1  ;;  %v8293_v41 = vpop.f32.mrf.mxu0 }
 0x457   : > { %v8128_v7 = vadd.f32 %v13149_v43, %v18989_v56  ;;  %v19319_v50 = vadd.f32 %v8277_v26, %v8125_v2 }
 0x458   : > { %v7937_v4 = vpop.f32.mrf.mxu1  ;;  %v13217_v20 = vpop.f32.mrf.mxu0 }
 0x459   : > { %v8126_v3 = vadd.f32 %v7937_v4, %v19004_v46  ;;  %v19322_v27 = vadd.f32 %v13213_v21, %v8128_v7  ;;  %v21669_v21 = vld [vmem:[#allocation44_spill] sm:$0xff] }
 0x45a   : > { %v13152_v13 = vpop.f32.mrf.mxu1  ;;  %13407 = vmatmul.mubr.bf16.gmra.mxu1 %v19046_v10  ;;  %v8296_v19 = vpop.f32.mrf.mxu0 }
 0x45b   : > { %v8131_v60 = vadd.f32 %v13152_v13, %v19018_v55  ;;  %13410 = vmatprep.mubr.bf16.mxu1 %v19084_v25  ;;  %v19327_v51 = vadd.f32 %v8280_v24, %v8126_v3  ;;  %v21670_v3 = vld [vmem:[#allocation45_spill] sm:$0xff] }
 0x45c   : > { %v7950_v14 = vpop.f32.mrf.mxu1  ;;  %v13220_v56 = vpop.f32.mrf.mxu0  ;;  %13475 = vmatmul.mubr.bf16.gmra.mxu0 %v21668_v59 }
 0x45d   : > { %v8129_v26 = vadd.f32 %v7950_v14, %v19025_v44  ;;  %v19331_v28 = vadd.f32 %v13216_v39, %v8131_v60  ;;  %13478 = vmatprep.mubr.bf16.mxu0 %v21669_v21 }
 0x45e   : > { %v13153_v46 = vpop.f32.mrf.mxu1  ;;  %v8309_v2 = vpop.f32.mrf.mxu0 }
 0x45f   : > { %v8132_v10 = vadd.f32 %v13153_v46, %v19040_v63  ;;  %v19335_v36 = vadd.f32 %v8293_v41, %v8129_v26 }
 0x460   : > { %v7953_v55 = vpop.f32.mrf.mxu1  ;;  %v13221_v25 = vpop.f32.mrf.mxu0 }
 0x461   : > { %v8130_v24 = vadd.f32 %v7953_v55, %v19055_v32  ;;  %v19338_v43 = vadd.f32 %v13217_v20, %v8132_v10  ;;  %v21671_v20 = vld [vmem:[#allocation46_spill] sm:$0xff] }
 0x462   : > { %v13156_v42 = vpop.f32.mrf.mxu1  ;;  %13411 = vmatmul.mubr.bf16.gmra.mxu1 %v19094_v12  ;;  %v8312_v44 = vpop.f32.mrf.mxu0 }
 0x463   : > { %v8135_v39 = vadd.f32 %v13156_v42, %v19069_v15  ;;  %13414 = vmatprep.mubr.bf16.mxu1 %v19123_v37  ;;  %v19343_v7 = vadd.f32 %v8296_v19, %v8130_v24  ;;  %v21672_v19 = vld [vmem:[#allocation21_spill] sm:$0xff]  ;;  %v21674_v24 = vld [vmem:[#allocation47_spill] sm:$0xff] }
 0x464   : > { %v7966_v4 = vpop.f32.mrf.mxu1  ;;  %v13224_v63 = vpop.f32.mrf.mxu0  ;;  %13479 = vmatmul.mubr.bf16.gmra.mxu0 %v21670_v3 }
 0x465   : > { %v8133_v41 = vadd.f32 %v7966_v4, %v19076_v17  ;;  %v19347_v13 = vadd.f32 %v13220_v56, %v8135_v39  ;;  %13482 = vmatprep.mubr.bf16.mxu0 %v21671_v20  ;;  %v21673_v56 = vld [vmem:[#allocation132_spill] sm:$0xff]  ;;  %v21675_v39 = vld [vmem:[#allocation49_spill] sm:$0xff] }
 0x466   : > { %v13157_v32 = vpop.f32.mrf.mxu1  ;;  %v8325_v60 = vpop.f32.mrf.mxu0 }
 0x467   : > { %v8136_v12 = vadd.f32 %v13157_v32, %v19088_v8  ;;  %v19351_v14 = vadd.f32 %v8309_v2, %v8133_v41 }
 0x468   : > { %v7969_v15 = vpop.f32.mrf.mxu1  ;;  %v13225_v37 = vpop.f32.mrf.mxu0 }
 0x469   : > { %v8134_v26 = vadd.f32 %v7969_v15, %v21672_v19  ;;  %v19354_v59 = vadd.f32 %v13221_v25, %v8136_v12 }
 0x46a   : > { %v13160_v46 = vpop.f32.mrf.mxu1  ;;  %13415 = vmatmul.mubr.bf16.gmra.mxu1 %v19133_v35  ;;  %v8328_v17 = vpop.f32.mrf.mxu0  ;;  %v21676_v35 = vld [vmem:[#allocation139_spill] sm:$0xff] }
 0x46b   : > { %v8139_v21 = vadd.f32 %v13160_v46, %v21673_v56  ;;  %13418 = vmatprep.mubr.bf16.mxu1 %v19159_v40  ;;  %v19359_v10 = vadd.f32 %v8312_v44, %v8134_v26  ;;  %v21677_v44 = vld [vmem:[#allocation135_spill] sm:$0xff] }
 0x46c   : > { %v7982_v55 = vpop.f32.mrf.mxu1  ;;  %v13228_v8 = vpop.f32.mrf.mxu0  ;;  %13483 = vmatmul.mubr.bf16.gmra.mxu0 %v21674_v24 }
 0x46d   : > { %v8137_v2 = vadd.f32 %v7982_v55, %v19118_v38  ;;  %v19363_v42 = vadd.f32 %v13224_v63, %v8139_v21  ;;  %13486 = vmatprep.mubr.bf16.mxu0 %v21675_v39  ;;  %v21679_v21 = vld [vmem:[#allocation51_spill] sm:$0xff] }
 0x46e   : > { %v13161_v25 = vpop.f32.mrf.mxu1  ;;  %v8341_v4 = vpop.f32.mrf.mxu0 }
 0x46f   : > { %v8140_v41 = vadd.f32 %v13161_v25, %v21676_v35  ;;  %v19367_v3 = vadd.f32 %v8325_v60, %v8137_v2  ;;  %v21678_v60 = vld [vmem:[#allocation115_spill] sm:$0xff]  ;;  %v21680_v2 = vld [vmem:[#allocation9_spill] sm:$0xff] }
 0x470   : > { %v7985_v32 = vpop.f32.mrf.mxu1  ;;  %v13229_v40 = vpop.f32.mrf.mxu0 }
 0x471   : > { %v8138_v20 = vadd.f32 %v7985_v32, %v21677_v44  ;;  %v19370_v12 = vadd.f32 %v13225_v37, %v8140_v41 }
 0x472   : > { %v13164_v15 = vpop.f32.mrf.mxu1  ;;  %13419 = vmatmul.mubr.bf16.gmra.mxu1 %v19167_v5  ;;  %v8344_v38 = vpop.f32.mrf.mxu0  ;;  %v21681_v5 = vld [vmem:[#allocation15_spill] sm:$0xff] }
 0x473   : > { %v8143_v63 = vadd.f32 %v13164_v15, %v19148_v33  ;;  %13422 = vmatprep.mubr.bf16.mxu1 %v19192_v62  ;;  %v19375_v19 = vadd.f32 %v8328_v17, %v8138_v20  ;;  %v21682_v17 = vld [vmem:[#allocation5_spill] sm:$0xff] }
 0x474   : > { %v7998_v26 = vpop.f32.mrf.mxu1  ;;  %v13232_v46 = vpop.f32.mrf.mxu0  ;;  %13487 = vmatmul.mubr.bf16.gmra.mxu0 %v21679_v21  ;;  %v21685_v21 = vld [vmem:[#allocation12_spill] sm:$0xff] }
 0x475   : > { %v8141_v56 = vadd.f32 %v7998_v26, %v21678_v60  ;;  %v19379_v55 = vadd.f32 %v13228_v8, %v8143_v63  ;;  %13490 = vmatprep.mubr.bf16.mxu0 %v21680_v2  ;;  %v21684_v60 = vld [vmem:[#allocation10_spill] sm:$0xff] }
 0x476   : > { %v13165_v37 = vpop.f32.mrf.mxu1  ;;  %v8357_v24 = vpop.f32.mrf.mxu0 }
 0x477   : > { %v8144_v25 = vadd.f32 %v13165_v37, %v21681_v5  ;;  %v19383_v39 = vadd.f32 %v8341_v4, %v8141_v56  ;;  %v21683_v4 = vld [vmem:[#allocation140_spill] sm:$0xff] }
 0x478   : > { %v8001_v33 = vpop.f32.mrf.mxu1  ;;  %v13233_v62 = vpop.f32.mrf.mxu0 }
 0x479   : > { %v8142_v35 = vadd.f32 %v8001_v33, %v21682_v17  ;;  %v19386_v41 = vadd.f32 %v13229_v40, %v8144_v25 }
 0x47a   : > { %v13168_v32 = vpop.f32.mrf.mxu1  ;;  %13423 = vmatmul.mubr.bf16.gmra.mxu1 %v19198_v53  ;;  %v8360_v44 = vpop.f32.mrf.mxu0  ;;  %v21686_v53 = vld [vmem:[#allocation137_spill] sm:$0xff] }
 0x47b   : > { %v8147_v8 = vadd.f32 %v13168_v32, %v19180_v31  ;;  %13426 = vmatprep.mubr.bf16.mxu1 %v19220_v16  ;;  %v19391_v20 = vadd.f32 %v8344_v38, %v8142_v35  ;;  %v21687_v38 = vld [vmem:[#allocation126_spill] sm:$0xff] }
 0x47c   : > { %v8014_v15 = vpop.f32.mrf.mxu1  ;;  %v13236_v63 = vpop.f32.mrf.mxu0  ;;  %13491 = vmatmul.mubr.bf16.gmra.mxu0 %v21684_v60  ;;  %v21689_v60 = vld [vmem:[#allocation48_spill] sm:$0xff] }
 0x47d   : > { %v8145_v26 = vadd.f32 %v8014_v15, %v21683_v4  ;;  %v19395_v56 = vadd.f32 %v13232_v46, %v8147_v8  ;;  %13494 = vmatprep.mubr.bf16.mxu0 %v21685_v21  ;;  %v21688_v4 = vld [vmem:[#allocation16_spill] sm:$0xff] }
 0x47e   : > { %v13169_v40 = vpop.f32.mrf.mxu1  ;;  %v8373_v37 = vpop.f32.mrf.mxu0 }
 0x47f   : > { %v8148_v2 = vadd.f32 %v13169_v40, %v21686_v53  ;;  %v19399_v5 = vadd.f32 %v8357_v24, %v8145_v26 }
 0x480   : > { %v8017_v31 = vpop.f32.mrf.mxu1  ;;  %v13237_v16 = vpop.f32.mrf.mxu0 }
 0x481   : > { %v8146_v25 = vadd.f32 %v8017_v31, %v21687_v38  ;;  %v19402_v33 = vadd.f32 %v13233_v62, %v8148_v2 }
 0x482   : > { %v13172_v17 = vpop.f32.mrf.mxu1  ;;  %13427 = vmatmul.mubr.bf16.gmra.mxu1 %v19227_v45  ;;  %v8376_v35 = vpop.f32.mrf.mxu0 }
 0x483   : > { %v8151_v46 = vadd.f32 %v13172_v17, %v19210_v11  ;;  %13430 = vmatprep.mubr.bf16.mxu1 %v21633_v47  ;;  %v19407_v32 = vadd.f32 %v8360_v44, %v8146_v25  ;;  %v21691_v17 = vld [vmem:[#allocation50_spill] sm:$0xff] }
 0x484   : > { %v8030_v8 = vpop.f32.mrf.mxu1  ;;  %v13240_v15 = vpop.f32.mrf.mxu0  ;;  %13495 = vmatmul.mubr.bf16.gmra.mxu0 %v21688_v4 }
 0x485   : > { %v8149_v24 = vadd.f32 %v8030_v8, %v19214_v22  ;;  %v19411_v26 = vadd.f32 %v13236_v63, %v8151_v46  ;;  %13498 = vmatprep.mubr.bf16.mxu0 %v21689_v60 }
 0x486   : > { %v13173_v62 = vpop.f32.mrf.mxu1  ;;  %v8389_v40 = vpop.f32.mrf.mxu0 }
 0x487   : > { %v8152_v45 = vadd.f32 %v13173_v62, %v19222_v18  ;;  %v19415_v21 = vadd.f32 %v8373_v37, %v8149_v24  ;;  %v21690_v37 = vld [vmem:[#allocation118_spill] sm:$0xff] }
 0x488   : > { %v8033_v11 = vpop.f32.mrf.mxu1  ;;  %v13241_v47 = vpop.f32.mrf.mxu0 }
 0x489   : > { %v8150_v44 = vadd.f32 %v8033_v11, %v19231_v57  ;;  %v19418_v53 = vadd.f32 %v13237_v16, %v8152_v45  ;;  %v21692_v16 = vld [vmem:[#allocation52_spill] sm:$0xff]  ;;  %v21697_v11 = vld [vmem:[#allocation93_spill] sm:$0xff] }
 0x48a   : > { %v13176_v2 = vpop.f32.mrf.mxu1  ;;  %13431 = vmatmul.mubr.bf16.gmra.mxu1 %v21634_v58  ;;  %v8392_v22 = vpop.f32.mrf.mxu0  ;;  %v21693_v58 = vld [vmem:[#allocation25_spill] sm:$0xff] }
 0x48b   : > { %v8155_v63 = vadd.f32 %v13176_v2, %v19235_v6  ;;  %13434 = vmatprep.mubr.bf16.mxu1 %v21643_v52  ;;  %v19423_v31 = vadd.f32 %v8376_v35, %v8150_v44  ;;  %v21695_v35 = vld [vmem:[#allocation32_spill] sm:$0xff] }
 0x48c   : > { %v8046_v38 = vpop.f32.mrf.mxu1  ;;  %v13244_v18 = vpop.f32.mrf.mxu0  ;;  %13499 = vmatmul.mubr.bf16.gmra.mxu0 %v21691_v17  ;;  %v21701_v17 = vld [vmem:[#allocation53_spill] sm:$0xff] }
 0x48d   : > { %v8153_v25 = vadd.f32 %v8046_v38, %v21690_v37  ;;  %v19427_v46 = vadd.f32 %v13240_v15, %v8155_v63  ;;  %13502 = vmatprep.mubr.bf16.mxu0 %v21692_v16  ;;  %v21698_v15 = vld [vmem:[#allocation122_spill] sm:$0xff]  ;;  %v21703_v16 = vld [vmem:[#allocation24_spill] sm:$0xff] }
 0x48e   : > { %v13177_v57 = vpop.f32.mrf.mxu1  ;;  %v8405_v8 = vpop.f32.mrf.mxu0 }
 0x48f   : > { %v8156_v24 = vadd.f32 %v13177_v57, %v21693_v58  ;;  %v19431_v4 = vadd.f32 %v8389_v40, %v8153_v25  ;;  %v21700_v40 = vld [vmem:[#allocation131_spill] sm:$0xff]  ;;  %v21704_v58 = vld [vmem:[#allocation92_spill] sm:$0xff] }
 0x490   : > { %v8049_v6 = vpop.f32.mrf.mxu1  ;;  %v13245_v52 = vpop.f32.mrf.mxu0 }
 0x491   : > { %21694 = vst [vmem:[#allocation133_spill] sm:$0xff] %v19431_v4  ;;  %v8154_v62 = vadd.f32 %v8049_v6, %v21695_v35  ;;  %v19434_v60 = vadd.f32 %v13241_v47, %v8156_v24  ;;  %v9423_v24 = vshll.u32 %v21704_v58, 16  ;;  %v21705_v35 = vld [vmem:[#allocation17_spill] sm:$0xff] }
 0x492   : > { %v13180_v45 = vpop.f32.mrf.mxu1  ;;  %13435 = vmatmul.mubr.bf16.gmra.mxu1 %v21697_v11  ;;  %v8408_v44 = vpop.f32.mrf.mxu0 }
 0x493   : > { %21696 = vst [vmem:[#allocation134_spill] sm:$0xff] %v19434_v60  ;;  %v8159_v2 = vadd.f32 %v13180_v45, %v21698_v15  ;;  %13438 = vmatprep.mubr.bf16.mxu1 %v21654_v9  ;;  %v19439_v63 = vadd.f32 %v8392_v22, %v8154_v62  ;;  %v21707_v62 = vld [vmem:[#allocation124_spill] sm:$0xff]  ;;  %v21711_v60 = vld [vmem:[#allocation57_spill] sm:$0xff] }
 0x494   : > { %v8062_v38 = vpop.f32.mrf.mxu1  ;;  %v13248_v37 = vpop.f32.mrf.mxu0  ;;  %13503 = vmatmul.mubr.bf16.gmra.mxu0 %v21701_v17 }
 0x495   : > { %21699 = vst [vmem:[#allocation62_spill] sm:$0xff] %v19439_v63  ;;  %v8157_v25 = vadd.f32 %v8062_v38, %v21700_v40  ;;  %v19443_v57 = vadd.f32 %v13244_v18, %v8159_v2  ;;  %13506 = vmatprep.mubr.bf16.mxu0 %v21703_v16  ;;  %v9425_v18 = vrot.slane %v9423_v24, 1  ;;  %v21709_v2 = vld [vmem:[#allocation86_spill] sm:$0xff]  ;;  %v21710_v16 = vld [vmem:[#allocation127_spill] sm:$0xff] }
 0x496   : > { %v13181_v47 = vpop.f32.mrf.mxu1  ;;  %v8421_v6 = vpop.f32.mrf.mxu0  ;;  %v9431_v40 = vshll.u32 %v21709_v2, 16 }
 0x497   : > { %21702 = vst [vmem:[#allocation14_spill] sm:$0xff] %v19443_v57  ;;  %v8160_v45 = vadd.f32 %v13181_v47, %v21705_v35  ;;  %v19448_v11 = vadd.f32 %v8405_v8, %v8157_v25  ;;  %v13908_v47 = vld [vmem:[#allocation2 + $0xe4] ss:$0 sps:$4 sm:$0xff]   ;;  %v9427_v35 = vshrl.u32 %v21704_v58, 16 }
 0x498   : > { %v8065_v9 = vpop.f32.mrf.mxu1  ;;  %v13249_v22 = vpop.f32.mrf.mxu0 }
 0x499   : > { %21706 = vst [vmem:[#allocation142_spill] sm:$0xff] %v19448_v11  ;;  %v8158_v15 = vadd.f32 %v8065_v9, %v21707_v62  ;;  %v19451_v63 = vadd.f32 %v13245_v52, %v8160_v45  ;;  %v21713_v45 = vld [vmem:[#allocation30_spill] sm:$0xff]  ;;  %v9429_v62 = vor.u32 %v9427_v35, %v9425_v18  ;;  %v21714_v11 = vld [vmem:[#allocation37_spill] sm:$0xff] }
 0x49a   : > { %v13184_v38 = vpop.f32.mrf.mxu1  ;;  %13439 = vmatmul.mubr.bf16.gmra.mxu1 %v21656_v49  ;;  %v8424_v17 = vpop.f32.mrf.mxu0 }
 0x49b   : > { %21708 = vst [vmem:[#allocation18_spill] sm:$0xff] %v19451_v63  ;;  %v8163_v57 = vadd.f32 %v13184_v38, %v21710_v16  ;;  %13442 = vmatprep.mubr.bf16.mxu1 %v21711_v60  ;;  %v19457_v8 = vadd.f32 %v8408_v44, %v8158_v15  ;;  %v9433_v63 = vrot.slane %v9431_v40, 1  ;;  %v21715_v60 = vld [vmem:[#allocation3_spill] sm:$0xff]  ;;  %v9435_v44 = vshrl.u32 %v21709_v2, 16 }
 0x49c   : > { %v8078_v25 = vpop.f32.mrf.mxu1  ;;  %v13252_v9 = vpop.f32.mrf.mxu0  ;;  %13507 = vmatmul.mubr.bf16.gmra.mxu0 %v21713_v45  ;;  %v9439_v15 = vshll.u32 %v13908_v47, 16  ;;  %v21717_v45 = vld [vmem:[#allocation103_spill] sm:$0xff] }
 0x49d   : > { %21712 = vst [vmem:[#allocation136_spill] sm:$0xff] %v19457_v8  ;;  %v8161_v52 = vadd.f32 %v8078_v25, %v19271_v54  ;;  %v19462_v49 = vadd.f32 %v13248_v37, %v8163_v57  ;;  %13510 = vmatprep.mubr.bf16.mxu0 %v21714_v11  ;;  %v21716_v54 = vld [vmem:[#allocation54_spill] sm:$0xff]  ;;  %v9426_v37 = vsel %vm21718_vm8, %v21717_v45, %v9425_v18  ;;  %v21721_v45 = vld [vmem:[#allocation4_spill] sm:$0xff] }
 0x49e   : > { %v13185_v24 = vpop.f32.mrf.mxu1  ;;  %v8437_v38 = vpop.f32.mrf.mxu0  ;;  %v9434_v11 = vsel %vm21719_vm13, %v9429_v62, %v9433_v63  ;;  %v9437_v2 = vor.u32 %v9435_v44, %v9433_v63 }
 0x49f   : > { %v8164_v16 = vadd.f32 %v13185_v24, %v21715_v60  ;;  %v19467_v8 = vadd.f32 %v8421_v6, %v8161_v52  ;;  %v9441_v6 = vrot.slane %v9439_v15, 1 }
 0x4a0   : > { %v8081_v58 = vpop.f32.mrf.mxu1  ;;  %v13253_v4 = vpop.f32.mrf.mxu0 }
 0x4a1   : > { %v8162_v25 = vadd.f32 %v8081_v58, %v21716_v54  ;;  %v19472_v57 = vadd.f32 %v13249_v22, %v8164_v16  ;;  %v21720_v54 = vld [vmem:[#allocation27_spill] sm:$0xff] }
 0x4a2   : > { %v13188_v40 = vpop.f32.mrf.mxu1  ;;  %13443 = vmatmul.mubr.bf16.gmra.mxu1 %v9426_v37  ;;  %v8440_v35 = vpop.f32.mrf.mxu0  ;;  %v9442_v37 = vsel %vm21722_vm11, %v9437_v2, %v9441_v6 }
 0x4a3   : > { %v8167_v24 = vadd.f32 %v13188_v40, %v19283_v23  ;;  %13446 = vmatprep.mubr.bf16.mxu1 %v9434_v11  ;;  %v19476_v47 = vadd.f32 %v8424_v17, %v8162_v25 }
 0x4a4   : > { %v8094_v52 = vpop.f32.mrf.mxu1  ;;  %v13256_v60 = vpop.f32.mrf.mxu0  ;;  %13511 = vmatmul.mubr.bf16.gmra.mxu0 %v21720_v54 }
 0x4a5   : > { %v8165_v58 = vadd.f32 %v8094_v52, %v19287_v0  ;;  %v19480_v22 = vadd.f32 %v13252_v9, %v8167_v24 }
 0x4a6   : > { %v13189_v18 = vpop.f32.mrf.mxu1  ;;  %v8453_v16 = vpop.f32.mrf.mxu0 }
 0x4a7   : > { %v8168_v62 = vadd.f32 %v13189_v18, %v21721_v45  ;;  %v19484_v23 = vadd.f32 %v8437_v38, %v8165_v58 }
 0x4a8   : > { %v8097_v63 = vpop.f32.mrf.mxu1  ;;  %v13257_v44 = vpop.f32.mrf.mxu0 }
 0x4a9   : > { %v8166_v17 = vadd.f32 %v8097_v63, %v19295_v1  ;;  %v19487_v15 = vadd.f32 %v13253_v4, %v8168_v62 }
 0x4aa   : > { %v13192_v25 = vpop.f32.mrf.mxu1  ;;  %13447 = vmatmul.mubr.bf16.gmra.mxu1 %v9442_v37  ;;  %v8456_v0 = vpop.f32.mrf.mxu0 }
 0x4ab   : > { %v8171_v9 = vadd.f32 %v13192_v25, %v19299_v48  ;;  %v19490_v40 = vadd.f32 %v8440_v35, %v8166_v17 }
 0x4ac   : > { %v8110_v11 = vpop.f32.mrf.mxu1  ;;  %v13340_v24 = vpop.f32.mrf.mxu0 }
 0x4ad   : > { %v8169_v52 = vadd.f32 %v8110_v11, %v19303_v34  ;;  %v19493_v2 = vadd.f32 %v13256_v60, %v8171_v9 }
 0x4ae   : > { %v13193_v38 = vpop.f32.mrf.mxu1  ;;  %v9160_v6 = vpop.f32.mrf.mxu0 }
 0x4af   : > { %v8172_v58 = vadd.f32 %v13193_v38, %v19306_v29  ;;  %v19496_v1 = vadd.f32 %v8453_v16, %v8169_v52 }
 0x4b0   : > { %v8113_v4 = vpop.f32.mrf.mxu1  ;;  %v13341_v54 = vpop.f32.mrf.mxu0 }
 0x4b1   : > { %v8170_v18 = vadd.f32 %v8113_v4, %v19311_v61  ;;  %v19499_v45 = vadd.f32 %v13257_v44, %v8172_v58 }
 0x4b2   : > { %v13276_v48 = vpop.f32.mrf.mxu1  ;;  %v9163_v35 = vpop.f32.mrf.mxu0 }
 0x4b3   : > { %v8914_v62 = vadd.f32 %v13276_v48, %v19315_v30  ;;  %v19502_v37 = vadd.f32 %v8456_v0, %v8170_v18 }
 0x4b4   : > { %v8721_v34 = vpop.f32.mrf.mxu1  ;;  %v13344_v60 = vpop.f32.mrf.mxu0 }
 0x4b5   : > { %v8912_v63 = vadd.f32 %v8721_v34, %v19319_v50  ;;  %v19505_v17 = vadd.f32 %v13340_v24, %v8914_v62 }
 0x4b6   : > { %v13277_v29 = vpop.f32.mrf.mxu1  ;;  %v9176_v16 = vpop.f32.mrf.mxu0 }
 0x4b7   : > { %v8915_v25 = vadd.f32 %v13277_v29, %v19322_v27  ;;  %v19508_v9 = vadd.f32 %v9160_v6, %v8912_v63 }
 0x4b8   : > { %v8724_v61 = vpop.f32.mrf.mxu1  ;;  %v13345_v44 = vpop.f32.mrf.mxu0 }
 0x4b9   : > { %v8913_v11 = vadd.f32 %v8724_v61, %v19327_v51  ;;  %v19511_v52 = vadd.f32 %v13341_v54, %v8915_v25 }
 0x4ba   : > { %v13280_v30 = vpop.f32.mrf.mxu1  ;;  %v9179_v0 = vpop.f32.mrf.mxu0 }
 0x4bb   : > { %v8918_v38 = vadd.f32 %v13280_v30, %v19331_v28  ;;  %v19514_v58 = vadd.f32 %v9163_v35, %v8913_v11 }
 0x4bc   : > { %v8737_v50 = vpop.f32.mrf.mxu1  ;;  %v13348_v24 = vpop.f32.mrf.mxu0 }
 0x4bd   : > { %v8916_v4 = vadd.f32 %v8737_v50, %v19335_v36  ;;  %v19517_v18 = vadd.f32 %v13344_v60, %v8918_v38 }
 0x4be   : > { %v13281_v27 = vpop.f32.mrf.mxu1  ;;  %v9192_v6 = vpop.f32.mrf.mxu0 }
 0x4bf   : > { %v8919_v48 = vadd.f32 %v13281_v27, %v19338_v43  ;;  %v19520_v62 = vadd.f32 %v9176_v16, %v8916_v4 }
 0x4c0   : > { %v8740_v51 = vpop.f32.mrf.mxu1  ;;  %v13349_v54 = vpop.f32.mrf.mxu0 }
 0x4c1   : > { %v8917_v34 = vadd.f32 %v8740_v51, %v19343_v7  ;;  %v19523_v63 = vadd.f32 %v13345_v44, %v8919_v48 }
 0x4c2   : > { %v13284_v28 = vpop.f32.mrf.mxu1  ;;  %v9195_v35 = vpop.f32.mrf.mxu0 }
 0x4c3   : > { %v8922_v29 = vadd.f32 %v13284_v28, %v19347_v13  ;;  %v19526_v25 = vadd.f32 %v9179_v0, %v8917_v34 }
 0x4c4   : > { %v8753_v36 = vpop.f32.mrf.mxu1  ;;  %v13352_v60 = vpop.f32.mrf.mxu0 }
 0x4c5   : > { %v8920_v61 = vadd.f32 %v8753_v36, %v19351_v14  ;;  %v19529_v11 = vadd.f32 %v13348_v24, %v8922_v29 }
 0x4c6   : > { %v13285_v43 = vpop.f32.mrf.mxu1  ;;  %v9208_v16 = vpop.f32.mrf.mxu0 }
 0x4c7   : > { %v8923_v30 = vadd.f32 %v13285_v43, %v19354_v59  ;;  %v19532_v38 = vadd.f32 %v9192_v6, %v8920_v61 }
 0x4c8   : > { %v8756_v7 = vpop.f32.mrf.mxu1  ;;  %v13353_v44 = vpop.f32.mrf.mxu0 }
 0x4c9   : > { %v8921_v50 = vadd.f32 %v8756_v7, %v19359_v10  ;;  %v19535_v4 = vadd.f32 %v13349_v54, %v8923_v30 }
 0x4ca   : > { %v13288_v13 = vpop.f32.mrf.mxu1  ;;  %v9211_v0 = vpop.f32.mrf.mxu0 }
 0x4cb   : > { %v8926_v27 = vadd.f32 %v13288_v13, %v19363_v42  ;;  %v19538_v48 = vadd.f32 %v9195_v35, %v8921_v50 }
 0x4cc   : > { %v8769_v14 = vpop.f32.mrf.mxu1  ;;  %v13356_v24 = vpop.f32.mrf.mxu0 }
 0x4cd   : > { %v8924_v51 = vadd.f32 %v8769_v14, %v19367_v3  ;;  %v19541_v34 = vadd.f32 %v13352_v60, %v8926_v27 }
 0x4ce   : > { %v13289_v59 = vpop.f32.mrf.mxu1  ;;  %v9224_v6 = vpop.f32.mrf.mxu0 }
 0x4cf   : > { %v8927_v28 = vadd.f32 %v13289_v59, %v19370_v12  ;;  %v19544_v29 = vadd.f32 %v9208_v16, %v8924_v51 }
 0x4d0   : > { %v8772_v10 = vpop.f32.mrf.mxu1  ;;  %v13357_v54 = vpop.f32.mrf.mxu0 }
 0x4d1   : > { %v8925_v36 = vadd.f32 %v8772_v10, %v19375_v19  ;;  %v19547_v61 = vadd.f32 %v13353_v44, %v8927_v28 }
 0x4d2   : > { %v13292_v42 = vpop.f32.mrf.mxu1  ;;  %v9227_v35 = vpop.f32.mrf.mxu0 }
 0x4d3   : > { %v8930_v43 = vadd.f32 %v13292_v42, %v19379_v55  ;;  %v19550_v30 = vadd.f32 %v9211_v0, %v8925_v36 }
 0x4d4   : > { %v8785_v3 = vpop.f32.mrf.mxu1  ;;  %v13360_v60 = vpop.f32.mrf.mxu0 }
 0x4d5   : > { %v8928_v7 = vadd.f32 %v8785_v3, %v19383_v39  ;;  %v19553_v50 = vadd.f32 %v13356_v24, %v8930_v43 }
 0x4d6   : > { %v13293_v12 = vpop.f32.mrf.mxu1  ;;  %v9240_v16 = vpop.f32.mrf.mxu0 }
 0x4d7   : > { %v8931_v13 = vadd.f32 %v13293_v12, %v19386_v41  ;;  %v19556_v27 = vadd.f32 %v9224_v6, %v8928_v7 }
 0x4d8   : > { %v8788_v19 = vpop.f32.mrf.mxu1  ;;  %v13361_v44 = vpop.f32.mrf.mxu0 }
 0x4d9   : > { %v8929_v14 = vadd.f32 %v8788_v19, %v19391_v20  ;;  %v19559_v51 = vadd.f32 %v13357_v54, %v8931_v13 }
 0x4da   : > { %v13296_v55 = vpop.f32.mrf.mxu1  ;;  %v9243_v0 = vpop.f32.mrf.mxu0 }
 0x4db   : > { %v8934_v59 = vadd.f32 %v13296_v55, %v19395_v56  ;;  %v19562_v28 = vadd.f32 %v9227_v35, %v8929_v14 }
 0x4dc   : > { %v8801_v39 = vpop.f32.mrf.mxu1  ;;  %v13364_v24 = vpop.f32.mrf.mxu0 }
 0x4dd   : > { %v8932_v10 = vadd.f32 %v8801_v39, %v19399_v5  ;;  %v19565_v36 = vadd.f32 %v13360_v60, %v8934_v59 }
 0x4de   : > { %v13297_v41 = vpop.f32.mrf.mxu1  ;;  %v9256_v6 = vpop.f32.mrf.mxu0 }
 0x4df   : > { %v8935_v42 = vadd.f32 %v13297_v41, %v19402_v33  ;;  %v19568_v43 = vadd.f32 %v9240_v16, %v8932_v10 }
 0x4e0   : > { %v8804_v20 = vpop.f32.mrf.mxu1  ;;  %v13365_v54 = vpop.f32.mrf.mxu0 }
 0x4e1   : > { %v8933_v3 = vadd.f32 %v8804_v20, %v19407_v32  ;;  %v19571_v7 = vadd.f32 %v13361_v44, %v8935_v42  ;;  %v21724_v20 = vld [vmem:[#allocation133_spill] sm:$0xff] }
 0x4e2   : > { %v13300_v56 = vpop.f32.mrf.mxu1  ;;  %v9259_v35 = vpop.f32.mrf.mxu0 }
 0x4e3   : > { %v8938_v12 = vadd.f32 %v13300_v56, %v19411_v26  ;;  %v19574_v13 = vadd.f32 %v9243_v0, %v8933_v3 }
 0x4e4   : > { %v8817_v5 = vpop.f32.mrf.mxu1  ;;  %v13368_v60 = vpop.f32.mrf.mxu0 }
 0x4e5   : > { %v8936_v19 = vadd.f32 %v8817_v5, %v19415_v21  ;;  %v19577_v14 = vadd.f32 %v13364_v24, %v8938_v12  ;;  %v21726_v12 = vld [vmem:[#allocation134_spill] sm:$0xff] }
 0x4e6   : > { %v13301_v33 = vpop.f32.mrf.mxu1  ;;  %v9272_v16 = vpop.f32.mrf.mxu0 }
 0x4e7   : > { %v8939_v55 = vadd.f32 %v13301_v33, %v19418_v53  ;;  %v19580_v59 = vadd.f32 %v9256_v6, %v8936_v19  ;;  %v21728_v33 = vld [vmem:[#allocation62_spill] sm:$0xff] }
 0x4e8   : > { %v8820_v32 = vpop.f32.mrf.mxu1  ;;  %v13369_v44 = vpop.f32.mrf.mxu0 }
 0x4e9   : > { %v8937_v39 = vadd.f32 %v8820_v32, %v19423_v31  ;;  %v19583_v10 = vadd.f32 %v13365_v54, %v8939_v55 }
 0x4ea   : > { %v13304_v26 = vpop.f32.mrf.mxu1  ;;  %v9275_v0 = vpop.f32.mrf.mxu0 }
 0x4eb   : > { %v8942_v41 = vadd.f32 %v13304_v26, %v19427_v46  ;;  %v19586_v42 = vadd.f32 %v9259_v35, %v8937_v39  ;;  %v21730_v39 = vld [vmem:[#allocation14_spill] sm:$0xff] }
 0x4ec   : > { %v8833_v21 = vpop.f32.mrf.mxu1  ;;  %v13372_v24 = vpop.f32.mrf.mxu0 }
 0x4ed   : > { %21723 = vst [vmem:[#allocation138_spill] sm:$0xff] %v19586_v42  ;;  %v8940_v3 = vadd.f32 %v8833_v21, %v21724_v20  ;;  %v19589_v56 = vadd.f32 %v13368_v60, %v8942_v41  ;;  %v21731_v21 = vld [vmem:[#allocation142_spill] sm:$0xff] }
 0x4ee   : > { %v13305_v53 = vpop.f32.mrf.mxu1  ;;  %v9288_v6 = vpop.f32.mrf.mxu0 }
 0x4ef   : > { %21725 = vst [vmem:[#allocation26_spill] sm:$0xff] %v19589_v56  ;;  %v8943_v5 = vadd.f32 %v13305_v53, %v21726_v12  ;;  %v19592_v19 = vadd.f32 %v9272_v16, %v8940_v3  ;;  %v21732_v53 = vld [vmem:[#allocation18_spill] sm:$0xff] }
 0x4f0   : > { %v8836_v31 = vpop.f32.mrf.mxu1  ;;  %v13373_v54 = vpop.f32.mrf.mxu0 }
 0x4f1   : > { %21727 = vst [vmem:[#allocation55_spill] sm:$0xff] %v19592_v19  ;;  %v8941_v55 = vadd.f32 %v8836_v31, %v21728_v33  ;;  %v19595_v32 = vadd.f32 %v13369_v44, %v8943_v5  ;;  %v21733_v31 = vld [vmem:[#allocation136_spill] sm:$0xff] }
 0x4f2   : > { %v13308_v46 = vpop.f32.mrf.mxu1  ;;  %v9291_v35 = vpop.f32.mrf.mxu0 }
 0x4f3   : > { %21729 = vst [vmem:[#allocation141_spill] sm:$0xff] %v19595_v32  ;;  %v8946_v26 = vadd.f32 %v13308_v46, %v21730_v39  ;;  %v19598_v42 = vadd.f32 %v9275_v0, %v8941_v55 }
 0x4f4   : > { %v8849_v60 = vpop.f32.mrf.mxu1  ;;  %v13376_v41 = vpop.f32.mrf.mxu0 }
 0x4f5   : > { %v8944_v20 = vadd.f32 %v8849_v60, %v21731_v21  ;;  %v19601_v56 = vadd.f32 %v13372_v24, %v8946_v26 }
 0x4f6   : > { %v13309_v16 = vpop.f32.mrf.mxu1  ;;  %v9304_v3 = vpop.f32.mrf.mxu0 }
 0x4f7   : > { %v8947_v12 = vadd.f32 %v13309_v16, %v21732_v53  ;;  %v19604_v19 = vadd.f32 %v9288_v6, %v8944_v20 }
 0x4f8   : > { %v8852_v44 = vpop.f32.mrf.mxu1  ;;  %v13377_v5 = vpop.f32.mrf.mxu0 }
 0x4f9   : > { %v8945_v33 = vadd.f32 %v8852_v44, %v21733_v31  ;;  %v19607_v32 = vadd.f32 %v13373_v54, %v8947_v12 }
 0x4fa   : > { %v13312_v0 = vpop.f32.mrf.mxu1  ;;  %v9307_v55 = vpop.f32.mrf.mxu0 }
 0x4fb   : > { %v8950_v46 = vadd.f32 %v13312_v0, %v19462_v49  ;;  %v19610_v39 = vadd.f32 %v9291_v35, %v8945_v33 }
 0x4fc   : > { %v8865_v24 = vpop.f32.mrf.mxu1  ;;  %v13380_v26 = vpop.f32.mrf.mxu0 }
 0x4fd   : > { %v8948_v60 = vadd.f32 %v8865_v24, %v19467_v8  ;;  %v19613_v21 = vadd.f32 %v13376_v41, %v8950_v46 }
 0x4fe   : > { %v13313_v6 = vpop.f32.mrf.mxu1  ;;  %v9320_v20 = vpop.f32.mrf.mxu0 }
 0x4ff   : > { %v8951_v16 = vadd.f32 %v13313_v6, %v19472_v57  ;;  %v19616_v53 = vadd.f32 %v9304_v3, %v8948_v60 }
 0x500   : > { %v8868_v54 = vpop.f32.mrf.mxu1  ;;  %v13381_v12 = vpop.f32.mrf.mxu0 }
 0x501   : > { %v8949_v44 = vadd.f32 %v8868_v54, %v19476_v47  ;;  %v19619_v31 = vadd.f32 %v13377_v5, %v8951_v16 }
 0x502   : > { %v13316_v49 = vpop.f32.mrf.mxu1  ;;  %v9323_v35 = vpop.f32.mrf.mxu0 }
 0x503   : > { %v8954_v33 = vadd.f32 %v13316_v49, %v19480_v22  ;;  %v19622_v0 = vadd.f32 %v9307_v55, %v8949_v44 }
 0x504   : > { %v8881_v8 = vpop.f32.mrf.mxu1  ;;  %v13384_v41 = vpop.f32.mrf.mxu0 }
 0x505   : > { %v8952_v46 = vadd.f32 %v8881_v8, %v19484_v23  ;;  %v19625_v24 = vadd.f32 %v13380_v26, %v8954_v33 }
 0x506   : > { %v13317_v57 = vpop.f32.mrf.mxu1  ;;  %v9336_v3 = vpop.f32.mrf.mxu0 }
 0x507   : > { %v8955_v60 = vadd.f32 %v13317_v57, %v19487_v15  ;;  %v19628_v6 = vadd.f32 %v9320_v20, %v8952_v46 }
 0x508   : > { %v8884_v47 = vpop.f32.mrf.mxu1  ;;  %v13385_v5 = vpop.f32.mrf.mxu0 }
 0x509   : > { %v8953_v16 = vadd.f32 %v8884_v47, %v19490_v40  ;;  %v19631_v54 = vadd.f32 %v13381_v12, %v8955_v60  ;;  %v19643_v40 = vld [vmem:[%s19948_s8] ss:$0 sm:$0xff] }
 0x50a   : > { %v13320_v22 = vpop.f32.mrf.mxu1  ;;  %v9339_v55 = vpop.f32.mrf.mxu0  ;;  %v19659_v47 = vld [vmem:[%s19949_s9] ss:$0 sm:$0xff] }
 0x50b   : > { %21734 = vst [vmem:[#allocation56_spill] sm:$0xff] %v19631_v54  ;;  %v8958_v44 = vadd.f32 %v13320_v22, %v19493_v2  ;;  %v19634_v49 = vadd.f32 %v9323_v35, %v8953_v16 }
 0x50c   : > { %v8897_v23 = vpop.f32.mrf.mxu1  ;;  %v13468_v33 = vpop.f32.mrf.mxu0 }
 0x50d   : > { %21735 = vst [vmem:[#allocation81_spill] sm:$0xff] %v19634_v49  ;;  %v8956_v26 = vadd.f32 %v8897_v23, %v19496_v1  ;;  %v19637_v8 = vadd.f32 %v13384_v41, %v8958_v44  ;;  %v10176_v1 = vmul.f32 %v13468_v33, %v19643_v40 }
 0x50e   : > { %v13321_v15 = vpop.f32.mrf.mxu1  ;;  %v9976_v12 = vpop.f32.mrf.mxu0 }
 0x50f   : > { %21736 = vst [vmem:[#allocation74_spill] sm:$0xff] %v19637_v8  ;;  %v8959_v20 = vadd.f32 %v13321_v15, %v19499_v45  ;;  %v19645_v46 = vadd.f32 %v9336_v3, %v8956_v26  ;;  %v19654_v45 = vld [vmem:[%s19945_s5] ss:$0 sm:$0xff]  ;;  %v10231_v33 = vadd.f32 %v19659_v47, %v10176_v1  ;;  %v10174_v15 = vmul.f32 %v19643_v40, %v9976_v12 }
 0x510   : > { %v8900_v2 = vpop.f32.mrf.mxu1  ;;  %v13469_v57 = vpop.f32.mrf.mxu0 }
 0x511   : > { %21737 = vst [vmem:[#allocation85_spill] sm:$0xff] %v19645_v46  ;;  %v8957_v35 = vadd.f32 %v8900_v2, %v19502_v37  ;;  %v19648_v60 = vadd.f32 %v13385_v5, %v8959_v20  ;;  %v19667_v5 = vld [vmem:[%s19946_s6] ss:$0 sm:$0xff] }
 0x512   : > { %v13404_v41 = vpop.f32.mrf.mxu1  ;;  %v9979_v16 = vpop.f32.mrf.mxu0 }
 0x513   : > { %21738 = vst [vmem:[#allocation79_spill] sm:$0xff] %v19648_v60  ;;  %v9722_v3 = vadd.f32 %v13404_v41, %v19505_v17  ;;  %v19662_v37 = vadd.f32 %v9339_v55, %v8957_v35  ;;  %v10177_v55 = vmul.f32 %v13469_v57, %v19643_v40 }
 0x514   : > { %v9529_v22 = vpop.f32.mrf.mxu1  ;;  %v13472_v26 = vpop.f32.mrf.mxu0 }
 0x515   : > { %21739 = vst [vmem:[#allocation82_spill] sm:$0xff] %v19662_v37  ;;  %v9777_v44 = vmul.f32 %v19654_v45, %v9722_v3  ;;  %v9720_v23 = vadd.f32 %v9529_v22, %v19508_v9  ;;  %v10175_v3 = vmul.f32 %v19643_v40, %v9979_v16 }
 0x516   : > { %v13405_v20 = vpop.f32.mrf.mxu1  ;;  %v9992_v41 = vpop.f32.mrf.mxu0 }
 0x517   : > { %v9832_v17 = vadd.f32 %v19667_v5, %v9777_v44  ;;  %v9775_v2 = vmul.f32 %v19654_v45, %v9720_v23  ;;  %v9723_v35 = vadd.f32 %v13405_v20, %v19511_v52  ;;  %v10180_v44 = vmul.f32 %v13472_v26, %v19643_v40 }
 0x518   : > { %v9532_v37 = vpop.f32.mrf.mxu1  ;;  %v13473_v22 = vpop.f32.mrf.mxu0  ;;  %v10229_v23 = vadd.f32 %v19659_v47, %v10174_v15  ;;  %v10232_v52 = vadd.f32 %v19659_v47, %v10177_v55 }
 0x519   : > { %v9830_v9 = vadd.f32 %v19667_v5, %v9775_v2  ;;  %v9778_v1 = vmul.f32 %v19654_v45, %v9723_v35  ;;  %v9721_v12 = vadd.f32 %v9532_v37, %v19514_v58  ;;  %v10279_v60 = vadd.f32 %v10231_v33, %v9832_v17 }
 0x51a   : > { %v13408_v57 = vpop.f32.mrf.mxu1  ;;  %v9995_v46 = vpop.f32.mrf.mxu0  ;;  %v10230_v2 = vadd.f32 %v19659_v47, %v10175_v3  ;;  %v10235_v55 = vadd.f32 %v19659_v47, %v10180_v44 }
 0x51b   : > { %v9833_v20 = vadd.f32 %v19667_v5, %v9778_v1  ;;  %v9776_v16 = vmul.f32 %v19654_v45, %v9721_v12  ;;  %v9726_v35 = vadd.f32 %v13408_v57, %v19517_v18  ;;  %v10277_v37 = vadd.f32 %v10229_v23, %v9830_v9 }
 0x51c   : > { %v9545_v58 = vpop.f32.mrf.mxu1  ;;  %v13476_v15 = vpop.f32.mrf.mxu0  ;;  %v10327_v8 = vmax.f32 %v10279_v60, 0.0  ;;  %v10181_v12 = vmul.f32 %v13473_v22, %v19643_v40  ;;  %v10179_v22 = vmul.f32 %v19643_v40, %v9995_v46 }
 0x51d   : > { %v10280_v33 = vadd.f32 %v10232_v52, %v9833_v20  ;;  %v9831_v26 = vadd.f32 %v19667_v5, %v9776_v16  ;;  %v9724_v17 = vadd.f32 %v9545_v58, %v19520_v62  ;;  %v9781_v1 = vmul.f32 %v19654_v45, %v9726_v35 }
 0x51e   : > { %v13409_v49 = vpop.f32.mrf.mxu1  ;;  %v10008_v57 = vpop.f32.mrf.mxu0  ;;  %v10178_v62 = vmul.f32 %v19643_v40, %v9992_v41  ;;  %v10184_v44 = vmul.f32 %v13476_v15, %v19643_v40  ;;  %v10325_v52 = vmax.f32 %v10277_v37, 0.0  ;;  %v10236_v46 = vadd.f32 %v19659_v47, %v10181_v12 }
 0x51f   : > { %v10328_v3 = vmax.f32 %v10280_v33, 0.0  ;;  %v10278_v54 = vadd.f32 %v10230_v2, %v9831_v26  ;;  %v9779_v18 = vmul.f32 %v19654_v45, %v9724_v17  ;;  %v9727_v9 = vadd.f32 %v13409_v49, %v19523_v63 }
 0x520   : > { %v9836_v60 = vadd.f32 %v19667_v5, %v9781_v1  ;;  %v9548_v23 = vpop.f32.mrf.mxu1  ;;  %v13477_v49 = vpop.f32.mrf.mxu0  ;;  %v10234_v17 = vadd.f32 %v19659_v47, %v10179_v22  ;;  %v10239_v15 = vadd.f32 %v19659_v47, %v10184_v44 }
 0x521   : > { %v11531_v20 = vpack.c.bf16 %v10328_v3, %v10327_v8  ;;  %v10326_v16 = vmax.f32 %v10278_v54, 0.0  ;;  %v9782_v63 = vmul.f32 %v19654_v45, %v9727_v9  ;;  %v9834_v35 = vadd.f32 %v19667_v5, %v9779_v18 }
 0x522   : > { %v10283_v2 = vadd.f32 %v10235_v55, %v9836_v60  ;;  %v9725_v58 = vadd.f32 %v9548_v23, %v19526_v25  ;;  %v13412_v41 = vpop.f32.mrf.mxu1  ;;  %v10011_v8 = vpop.f32.mrf.mxu0  ;;  %v10233_v54 = vadd.f32 %v19659_v47, %v10178_v62  ;;  %v10182_v3 = vmul.f32 %v19643_v40, %v10008_v57 }
 0x523   : > { %11667 = vst [vmem:[%s19699_s15 + $0x8] sm:$0xff] %v11531_v20   ;;  %v11526_v33 = vpack.c.bf16 %v10326_v16, %v10325_v52  ;;  %v9837_v26 = vadd.f32 %v19667_v5, %v9782_v63  ;;  %v9730_v37 = vadd.f32 %v13412_v41, %v19529_v11  ;;  %v10185_v22 = vmul.f32 %v13477_v49, %v19643_v40 }
 0x524   : > { %v9780_v55 = vmul.f32 %v19654_v45, %v9725_v58  ;;  %v9561_v1 = vpop.f32.mrf.mxu1  ;;  %v13480_v9 = vpop.f32.mrf.mxu0  ;;  %v10331_v11 = vmax.f32 %v10283_v2, 0.0  ;;  %v10281_v60 = vadd.f32 %v10233_v54, %v9834_v35 }
 0x525   : > { %11527 = vst [vmem:[%s19699_s15] sm:$0xff] %v11526_v33   ;;  %v10284_v25 = vadd.f32 %v10236_v46, %v9837_v26  ;;  %v9785_v12 = vmul.f32 %v19654_v45, %v9730_v37  ;;  %v9728_v18 = vadd.f32 %v9561_v1, %v19532_v38  ;;  %v10183_v38 = vmul.f32 %v19643_v40, %v10011_v8 }
 0x526   : > { %v9835_v62 = vadd.f32 %v19667_v5, %v9780_v55  ;;  %v13413_v23 = vpop.f32.mrf.mxu1  ;;  %v10024_v16 = vpop.f32.mrf.mxu0  ;;  %v10188_v2 = vmul.f32 %v13480_v9, %v19643_v40  ;;  %v10329_v46 = vmax.f32 %v10281_v60, 0.0  ;;  %v10240_v8 = vadd.f32 %v19659_v47, %v10185_v22 }
 0x527   : > { %v10332_v44 = vmax.f32 %v10284_v25, 0.0  ;;  %v9840_v52 = vadd.f32 %v19667_v5, %v9785_v12  ;;  %v9783_v20 = vmul.f32 %v19654_v45, %v9728_v18  ;;  %v9731_v57 = vadd.f32 %v13413_v23, %v19535_v4 }
 0x528   : > { %v10282_v63 = vadd.f32 %v10234_v17, %v9835_v62  ;;  %v9564_v35 = vpop.f32.mrf.mxu1  ;;  %v13481_v33 = vpop.f32.mrf.mxu0  ;;  %v10237_v4 = vadd.f32 %v19659_v47, %v10182_v3  ;;  %v10238_v18 = vadd.f32 %v19659_v47, %v10183_v38  ;;  %v10243_v9 = vadd.f32 %v19659_v47, %v10188_v2 }
 0x529   : > { %v11541_v58 = vpack.c.bf16 %v10332_v44, %v10331_v11  ;;  %v9838_v41 = vadd.f32 %v19667_v5, %v9783_v20  ;;  %v9786_v49 = vmul.f32 %v19654_v45, %v9731_v57  ;;  %v10287_v37 = vadd.f32 %v10239_v15, %v9840_v52 }
 0x52a   : > { %v10330_v26 = vmax.f32 %v10282_v63, 0.0  ;;  %v9729_v54 = vadd.f32 %v9564_v35, %v19538_v48  ;;  %v13416_v55 = vpop.f32.mrf.mxu1  ;;  %v10027_v25 = vpop.f32.mrf.mxu0  ;;  %v10186_v44 = vmul.f32 %v19643_v40, %v10024_v16  ;;  %v10189_v52 = vmul.f32 %v13481_v33, %v19643_v40 }
 0x52b   : > { %11669 = vst [vmem:[%s19699_s15 + $0x18] sm:$0xff] %v11541_v58   ;;  %v9841_v17 = vadd.f32 %v19667_v5, %v9786_v49  ;;  %v9734_v1 = vadd.f32 %v13416_v55, %v19541_v34  ;;  %v10285_v11 = vadd.f32 %v10237_v4, %v9838_v41  ;;  %v10335_v23 = vmax.f32 %v10287_v37, 0.0 }
 0x52c   : > { %v11536_v12 = vpack.c.bf16 %v10330_v26, %v10329_v46  ;;  %v9784_v15 = vmul.f32 %v19654_v45, %v9729_v54  ;;  %v9577_v48 = vpop.f32.mrf.mxu1  ;;  %v13484_v22 = vpop.f32.mrf.mxu0  ;;  %v10187_v58 = vmul.f32 %v19643_v40, %v10027_v25 }
 0x52d   : > { %v10288_v60 = vadd.f32 %v10240_v8, %v9841_v17  ;;  %v9789_v62 = vmul.f32 %v19654_v45, %v9734_v1  ;;  %v9732_v3 = vadd.f32 %v9577_v48, %v19544_v29  ;;  %v10192_v41 = vmul.f32 %v13484_v22, %v19643_v40 }
 0x52e   : > { %11668 = vst [vmem:[%s19699_s15 + $0x10] sm:$0xff] %v11536_v12   ;;  %v9839_v34 = vadd.f32 %v19667_v5, %v9784_v15  ;;  %v13417_v20 = vpop.f32.mrf.mxu1  ;;  %v10040_v35 = vpop.f32.mrf.mxu0  ;;  %v10333_v46 = vmax.f32 %v10285_v11, 0.0  ;;  %v10244_v17 = vadd.f32 %v19659_v47, %v10189_v52  ;;  %v10242_v15 = vadd.f32 %v19659_v47, %v10187_v58 }
 0x52f   : > { %v10336_v57 = vmax.f32 %v10288_v60, 0.0  ;;  %v9844_v63 = vadd.f32 %v19667_v5, %v9789_v62  ;;  %v9787_v38 = vmul.f32 %v19654_v45, %v9732_v3  ;;  %v9735_v2 = vadd.f32 %v13417_v20, %v19547_v61 }
 0x530   : > { %v10286_v29 = vadd.f32 %v10238_v18, %v9839_v34  ;;  %v9580_v49 = vpop.f32.mrf.mxu1  ;;  %v13485_v26 = vpop.f32.mrf.mxu0  ;;  %v10241_v61 = vadd.f32 %v19659_v47, %v10186_v44  ;;  %v10190_v60 = vmul.f32 %v19643_v40, %v10040_v35 }
 0x531   : > { %v11551_v16 = vpack.c.bf16 %v10336_v57, %v10335_v23  ;;  %v9790_v33 = vmul.f32 %v19654_v45, %v9735_v2  ;;  %v10291_v54 = vadd.f32 %v10243_v9, %v9844_v63  ;;  %v9842_v55 = vadd.f32 %v19667_v5, %v9787_v38 }
 0x532   : > { %v10334_v37 = vmax.f32 %v10286_v29, 0.0  ;;  %v9733_v4 = vadd.f32 %v9580_v49, %v19550_v30  ;;  %v13420_v8 = vpop.f32.mrf.mxu1  ;;  %v10043_v12 = vpop.f32.mrf.mxu0  ;;  %v10247_v9 = vadd.f32 %v19659_v47, %v10192_v41  ;;  %v10193_v44 = vmul.f32 %v13485_v26, %v19643_v40 }
 0x533   : > { %11671 = vst [vmem:[%s19699_s15 + $0x28] sm:$0xff] %v11551_v16   ;;  %v9845_v1 = vadd.f32 %v19667_v5, %v9790_v33  ;;  %v9738_v25 = vadd.f32 %v13420_v8, %v19553_v50  ;;  %v10339_v23 = vmax.f32 %v10291_v54, 0.0  ;;  %v10289_v50 = vadd.f32 %v10241_v61, %v9842_v55 }
 0x534   : > { %v11546_v18 = vpack.c.bf16 %v10334_v37, %v10333_v46  ;;  %v9788_v48 = vmul.f32 %v19654_v45, %v9733_v4  ;;  %v9593_v30 = vpop.f32.mrf.mxu1  ;;  %v13488_v22 = vpop.f32.mrf.mxu0  ;;  %v10248_v4 = vadd.f32 %v19659_v47, %v10193_v44 }
 0x535   : > { %v10292_v11 = vadd.f32 %v10244_v17, %v9845_v1  ;;  %v9793_v62 = vmul.f32 %v19654_v45, %v9738_v25  ;;  %v9736_v3 = vadd.f32 %v9593_v30, %v19556_v27  ;;  %v10191_v27 = vmul.f32 %v19643_v40, %v10043_v12 }
 0x536   : > { %11670 = vst [vmem:[%s19699_s15 + $0x20] sm:$0xff] %v11546_v18   ;;  %v9843_v34 = vadd.f32 %v19667_v5, %v9788_v48  ;;  %v13421_v52 = vpop.f32.mrf.mxu1  ;;  %v10056_v2 = vpop.f32.mrf.mxu0  ;;  %v10196_v29 = vmul.f32 %v13488_v22, %v19643_v40  ;;  %v10337_v33 = vmax.f32 %v10289_v50, 0.0 }
 0x537   : > { %v10340_v20 = vmax.f32 %v10292_v11, 0.0  ;;  %v9848_v57 = vadd.f32 %v19667_v5, %v9793_v62  ;;  %v9791_v63 = vmul.f32 %v19654_v45, %v9736_v3  ;;  %v9739_v38 = vadd.f32 %v13421_v52, %v19559_v51 }
 0x538   : > { %v10290_v35 = vadd.f32 %v10242_v15, %v9843_v34  ;;  %v9596_v58 = vpop.f32.mrf.mxu1  ;;  %v13489_v16 = vpop.f32.mrf.mxu0  ;;  %v10245_v51 = vadd.f32 %v19659_v47, %v10190_v60  ;;  %v10246_v25 = vadd.f32 %v19659_v47, %v10191_v27  ;;  %v10251_v12 = vadd.f32 %v19659_v47, %v10196_v29 }
 0x539   : > { %v11561_v41 = vpack.c.bf16 %v10340_v20, %v10339_v23  ;;  %v9846_v49 = vadd.f32 %v19667_v5, %v9791_v63  ;;  %v9794_v46 = vmul.f32 %v19654_v45, %v9739_v38  ;;  %v10295_v37 = vadd.f32 %v10247_v9, %v9848_v57 }
 0x53a   : > { %v10338_v26 = vmax.f32 %v10290_v35, 0.0  ;;  %v9737_v54 = vadd.f32 %v9596_v58, %v19562_v28  ;;  %v13424_v55 = vpop.f32.mrf.mxu1  ;;  %v10059_v17 = vpop.f32.mrf.mxu0  ;;  %v10194_v62 = vmul.f32 %v19643_v40, %v10056_v2  ;;  %v10197_v3 = vmul.f32 %v13489_v16, %v19643_v40 }
 0x53b   : > { %11673 = vst [vmem:[%s19699_s15 + $0x38] sm:$0xff] %v11561_v41   ;;  %v9849_v8 = vadd.f32 %v19667_v5, %v9794_v46  ;;  %v9742_v61 = vadd.f32 %v13424_v55, %v19565_v36  ;;  %v10293_v15 = vadd.f32 %v10245_v51, %v9846_v49  ;;  %v10343_v60 = vmax.f32 %v10295_v37, 0.0 }
 0x53c   : > { %v11556_v1 = vpack.c.bf16 %v10338_v26, %v10337_v33  ;;  %v9792_v18 = vmul.f32 %v19654_v45, %v9737_v54  ;;  %v9609_v28 = vpop.f32.mrf.mxu1  ;;  %v13492_v11 = vpop.f32.mrf.mxu0  ;;  %v10195_v20 = vmul.f32 %v19643_v40, %v10059_v17  ;;  %v10252_v16 = vadd.f32 %v19659_v47, %v10197_v3 }
 0x53d   : > { %v10296_v9 = vadd.f32 %v10248_v4, %v9849_v8  ;;  %v9797_v48 = vmul.f32 %v19654_v45, %v9742_v61  ;;  %v9740_v30 = vadd.f32 %v9609_v28, %v19568_v43  ;;  %v10200_v57 = vmul.f32 %v13492_v11, %v19643_v40 }
 0x53e   : > { %11672 = vst [vmem:[%s19699_s15 + $0x30] sm:$0xff] %v11556_v1   ;;  %v9847_v36 = vadd.f32 %v19667_v5, %v9792_v18  ;;  %v13425_v22 = vpop.f32.mrf.mxu1  ;;  %v10072_v52 = vpop.f32.mrf.mxu0  ;;  %v10341_v38 = vmax.f32 %v10293_v15, 0.0  ;;  %v10250_v55 = vadd.f32 %v19659_v47, %v10195_v20  ;;  %v21740_v20 = vld [vmem:[#allocation138_spill] sm:$0xff] }
 0x53f   : > { %v10344_v23 = vmax.f32 %v10296_v9, 0.0  ;;  %v9852_v50 = vadd.f32 %v19667_v5, %v9797_v48  ;;  %v9795_v34 = vmul.f32 %v19654_v45, %v9740_v30  ;;  %v9743_v44 = vadd.f32 %v13425_v22, %v19571_v7 }
 0x540   : > { %v10294_v43 = vadd.f32 %v10246_v25, %v9847_v36  ;;  %v9612_v63 = vpop.f32.mrf.mxu1  ;;  %v13493_v27 = vpop.f32.mrf.mxu0  ;;  %v10249_v7 = vadd.f32 %v19659_v47, %v10194_v62  ;;  %v10255_v51 = vadd.f32 %v19659_v47, %v10200_v57  ;;  %v10198_v61 = vmul.f32 %v19643_v40, %v10072_v52 }
 0x541   : > { %v11571_v2 = vpack.c.bf16 %v10344_v23, %v10343_v60  ;;  %v9798_v35 = vmul.f32 %v19654_v45, %v9743_v44  ;;  %v10299_v58 = vadd.f32 %v10251_v12, %v9852_v50  ;;  %v9850_v41 = vadd.f32 %v19667_v5, %v9795_v34 }
 0x542   : > { %v10342_v29 = vmax.f32 %v10294_v43, 0.0  ;;  %v9741_v49 = vadd.f32 %v9612_v63, %v19574_v13  ;;  %v13428_v46 = vpop.f32.mrf.mxu1  ;;  %v10075_v37 = vpop.f32.mrf.mxu0  ;;  %v10201_v28 = vmul.f32 %v13493_v27, %v19643_v40 }
 0x543   : > { %11675 = vst [vmem:[%s19699_s15 + $0x48] sm:$0xff] %v11571_v2   ;;  %v9853_v33 = vadd.f32 %v19667_v5, %v9798_v35  ;;  %v9746_v26 = vadd.f32 %v13428_v46, %v19577_v14  ;;  %v10347_v12 = vmax.f32 %v10299_v58, 0.0  ;;  %v10297_v14 = vadd.f32 %v10249_v7, %v9850_v41  ;;  %v21741_v35 = vld [vmem:[#allocation26_spill] sm:$0xff] }
 0x544   : > { %v11566_v54 = vpack.c.bf16 %v10342_v29, %v10341_v38  ;;  %v9796_v4 = vmul.f32 %v19654_v45, %v9741_v49  ;;  %v9625_v13 = vpop.f32.mrf.mxu1  ;;  %v13496_v25 = vpop.f32.mrf.mxu0  ;;  %v10256_v38 = vadd.f32 %v19659_v47, %v10201_v28 }
 0x545   : > { %v10300_v8 = vadd.f32 %v10252_v16, %v9853_v33  ;;  %v9801_v17 = vmul.f32 %v19654_v45, %v9746_v26  ;;  %v9744_v1 = vadd.f32 %v9625_v13, %v19580_v59  ;;  %v10199_v59 = vmul.f32 %v19643_v40, %v10075_v37  ;;  %v21742_v37 = vld [vmem:[#allocation55_spill] sm:$0xff] }
 0x546   : > { %11674 = vst [vmem:[%s19699_s15 + $0x40] sm:$0xff] %v11566_v54   ;;  %v9851_v18 = vadd.f32 %v19667_v5, %v9796_v4  ;;  %v13429_v15 = vpop.f32.mrf.mxu1  ;;  %v10088_v60 = vpop.f32.mrf.mxu0  ;;  %v10204_v62 = vmul.f32 %v13496_v25, %v19643_v40  ;;  %v10345_v44 = vmax.f32 %v10297_v14, 0.0 }
 0x547   : > { %v10348_v9 = vmax.f32 %v10300_v8, 0.0  ;;  %v9856_v48 = vadd.f32 %v19667_v5, %v9801_v17  ;;  %v9799_v30 = vmul.f32 %v19654_v45, %v9744_v1  ;;  %v9747_v11 = vadd.f32 %v13429_v15, %v19583_v10 }
 0x548   : > { %v10298_v36 = vadd.f32 %v10250_v55, %v9851_v18  ;;  %v9628_v3 = vpop.f32.mrf.mxu1  ;;  %v13497_v34 = vpop.f32.mrf.mxu0  ;;  %v10253_v10 = vadd.f32 %v19659_v47, %v10198_v61  ;;  %v10254_v41 = vadd.f32 %v19659_v47, %v10199_v59  ;;  %v10259_v49 = vadd.f32 %v19659_v47, %v10204_v62 }
 0x549   : > { %v11581_v22 = vpack.c.bf16 %v10348_v9, %v10347_v12  ;;  %v9854_v23 = vadd.f32 %v19667_v5, %v9799_v30  ;;  %v9802_v50 = vmul.f32 %v19654_v45, %v9747_v11  ;;  %v10303_v43 = vadd.f32 %v10255_v51, %v9856_v48  ;;  %v21743_v12 = vld [vmem:[#allocation141_spill] sm:$0xff] }
 0x54a   : > { %v10346_v52 = vmax.f32 %v10298_v36, 0.0  ;;  %v9745_v57 = vadd.f32 %v9628_v3, %v21740_v20  ;;  %v13432_v63 = vpop.f32.mrf.mxu1  ;;  %v10091_v29 = vpop.f32.mrf.mxu0  ;;  %v10202_v13 = vmul.f32 %v19643_v40, %v10088_v60  ;;  %v10205_v8 = vmul.f32 %v13497_v34, %v19643_v40 }
 0x54b   : > { %11677 = vst [vmem:[%s19699_s15 + $0x58] sm:$0xff] %v11581_v22   ;;  %v9857_v2 = vadd.f32 %v19667_v5, %v9802_v50  ;;  %v9750_v27 = vadd.f32 %v13432_v63, %v21741_v35  ;;  %v10301_v16 = vadd.f32 %v10253_v10, %v9854_v23  ;;  %v10351_v51 = vmax.f32 %v10303_v43, 0.0 }
 0x54c   : > { %v11576_v58 = vpack.c.bf16 %v10346_v52, %v10345_v44  ;;  %v9800_v46 = vmul.f32 %v19654_v45, %v9745_v57  ;;  %v9641_v7 = vpop.f32.mrf.mxu1  ;;  %v13500_v55 = vpop.f32.mrf.mxu0  ;;  %v10203_v15 = vmul.f32 %v19643_v40, %v10091_v29  ;;  %v10257_v50 = vadd.f32 %v19659_v47, %v10202_v13 }
 0x54d   : > { %v10304_v33 = vadd.f32 %v10256_v38, %v9857_v2  ;;  %v9805_v26 = vmul.f32 %v19654_v45, %v9750_v27  ;;  %v9748_v54 = vadd.f32 %v9641_v7, %v21742_v37  ;;  %v10208_v9 = vmul.f32 %v13500_v55, %v19643_v40 }
 0x54e   : > { %11676 = vst [vmem:[%s19699_s15 + $0x50] sm:$0xff] %v11576_v58   ;;  %v9855_v4 = vadd.f32 %v19667_v5, %v9800_v46  ;;  %v13433_v61 = vpop.f32.mrf.mxu1  ;;  %v10104_v18 = vpop.f32.mrf.mxu0  ;;  %v10349_v30 = vmax.f32 %v10301_v16, 0.0  ;;  %v10260_v34 = vadd.f32 %v19659_v47, %v10205_v8  ;;  %v10258_v57 = vadd.f32 %v19659_v47, %v10203_v15 }
 0x54f   : > { %v10352_v17 = vmax.f32 %v10304_v33, 0.0  ;;  %v9860_v1 = vadd.f32 %v19667_v5, %v9805_v26  ;;  %v9803_v25 = vmul.f32 %v19654_v45, %v9748_v54  ;;  %v9751_v14 = vadd.f32 %v13433_v61, %v21743_v12 }
 0x550   : > { %v10302_v28 = vadd.f32 %v10254_v41, %v9855_v4  ;;  %v9644_v48 = vpop.f32.mrf.mxu1  ;;  %v13501_v36 = vpop.f32.mrf.mxu0  ;;  %v10263_v63 = vadd.f32 %v19659_v47, %v10208_v9  ;;  %v10206_v2 = vmul.f32 %v19643_v40, %v10104_v18 }
 0x551   : > { %v11591_v11 = vpack.c.bf16 %v10352_v17, %v10351_v51  ;;  %v9806_v60 = vmul.f32 %v19654_v45, %v9751_v14  ;;  %v10307_v62 = vadd.f32 %v10259_v49, %v9860_v1  ;;  %v9858_v3 = vadd.f32 %v19667_v5, %v9803_v25 }
 0x552   : > { %v10350_v59 = vmax.f32 %v10302_v28, 0.0  ;;  %v9749_v22 = vadd.f32 %v9644_v48, %v19598_v42  ;;  %v13436_v23 = vpop.f32.mrf.mxu1  ;;  %v10107_v43 = vpop.f32.mrf.mxu0  ;;  %v10209_v49 = vmul.f32 %v13501_v36, %v19643_v40 }
 0x553   : > { %11679 = vst [vmem:[%s19699_s15 + $0x68] sm:$0xff] %v11591_v11   ;;  %v9861_v44 = vadd.f32 %v19667_v5, %v9806_v60  ;;  %v9754_v52 = vadd.f32 %v13436_v23, %v19601_v56  ;;  %v10355_v58 = vmax.f32 %v10307_v62, 0.0  ;;  %v10305_v56 = vadd.f32 %v10257_v50, %v9858_v3 }
 0x554   : > { %v11586_v20 = vpack.c.bf16 %v10350_v59, %v10349_v30  ;;  %v9804_v10 = vmul.f32 %v19654_v45, %v9749_v22  ;;  %v9657_v42 = vpop.f32.mrf.mxu1  ;;  %v13504_v29 = vpop.f32.mrf.mxu0  ;;  %v10264_v18 = vadd.f32 %v19659_v47, %v10209_v49 }
 0x555   : > { %v10308_v38 = vadd.f32 %v10260_v34, %v9861_v44  ;;  %v9809_v35 = vmul.f32 %v19654_v45, %v9754_v52  ;;  %v9752_v27 = vadd.f32 %v9657_v42, %v19604_v19  ;;  %v10207_v19 = vmul.f32 %v19643_v40, %v10107_v43 }
 0x556   : > { %11678 = vst [vmem:[%s19699_s15 + $0x60] sm:$0xff] %v11586_v20   ;;  %v9859_v41 = vadd.f32 %v19667_v5, %v9804_v10  ;;  %v13437_v46 = vpop.f32.mrf.mxu1  ;;  %v10120_v37 = vpop.f32.mrf.mxu0  ;;  %v10212_v55 = vmul.f32 %v13504_v29, %v19643_v40  ;;  %v10353_v17 = vmax.f32 %v10305_v56, 0.0 }
 0x557   : > { %v10356_v7 = vmax.f32 %v10308_v38, 0.0  ;;  %v9864_v16 = vadd.f32 %v19667_v5, %v9809_v35  ;;  %v9807_v33 = vmul.f32 %v19654_v45, %v9752_v27  ;;  %v9755_v26 = vadd.f32 %v13437_v46, %v19607_v32 }
 0x558   : > { %v10306_v54 = vadd.f32 %v10258_v57, %v9859_v41  ;;  %v9660_v51 = vpop.f32.mrf.mxu1  ;;  %v13505_v61 = vpop.f32.mrf.mxu0  ;;  %v10261_v32 = vadd.f32 %v19659_v47, %v10206_v2  ;;  %v10262_v30 = vadd.f32 %v19659_v47, %v10207_v19  ;;  %v10267_v11 = vadd.f32 %v19659_v47, %v10212_v55 }
 0x559   : > { %v11601_v4 = vpack.c.bf16 %v10356_v7, %v10355_v58  ;;  %v9862_v13 = vadd.f32 %v19667_v5, %v9807_v33  ;;  %v9810_v8 = vmul.f32 %v19654_v45, %v9755_v26  ;;  %v10311_v25 = vadd.f32 %v10263_v63, %v9864_v16 }
 0x55a   : > { %v10354_v1 = vmax.f32 %v10306_v54, 0.0  ;;  %v9753_v12 = vadd.f32 %v9660_v51, %v19610_v39  ;;  %v13440_v14 = vpop.f32.mrf.mxu1  ;;  %v10123_v9 = vpop.f32.mrf.mxu0  ;;  %v10210_v50 = vmul.f32 %v19643_v40, %v10120_v37  ;;  %v10213_v34 = vmul.f32 %v13505_v61, %v19643_v40 }
 0x55b   : > { %11681 = vst [vmem:[%s19699_s15 + $0x78] sm:$0xff] %v11601_v4   ;;  %v9865_v28 = vadd.f32 %v19667_v5, %v9810_v8  ;;  %v9758_v15 = vadd.f32 %v13440_v14, %v19613_v21  ;;  %v10309_v36 = vadd.f32 %v10261_v32, %v9862_v13  ;;  %v10359_v23 = vmax.f32 %v10311_v25, 0.0 }
 0x55c   : > { %v11596_v48 = vpack.c.bf16 %v10354_v1, %v10353_v17  ;;  %v9808_v60 = vmul.f32 %v19654_v45, %v9753_v12  ;;  %v9673_v39 = vpop.f32.mrf.mxu1  ;;  %v13508_v22 = vpop.f32.mrf.mxu0  ;;  %v10211_v10 = vmul.f32 %v19643_v40, %v10123_v9  ;;  %v10268_v7 = vadd.f32 %v19659_v47, %v10213_v34 }
 0x55d   : > { %v10312_v59 = vadd.f32 %v10264_v18, %v9865_v28  ;;  %v9813_v62 = vmul.f32 %v19654_v45, %v9758_v15  ;;  %v9756_v3 = vadd.f32 %v9673_v39, %v19616_v53  ;;  %v10357_v38 = vmax.f32 %v10309_v36, 0.0  ;;  %v21744_v18 = vld [vmem:[#allocation56_spill] sm:$0xff] }
 0x55e   : > { %11680 = vst [vmem:[%s19699_s15 + $0x70] sm:$0xff] %v11596_v48   ;;  %v9863_v21 = vadd.f32 %v19667_v5, %v9808_v60  ;;  %v13441_v44 = vpop.f32.mrf.mxu1  ;;  %v10136_v63 = vpop.f32.mrf.mxu0  ;;  %v10216_v41 = vmul.f32 %v13508_v22, %v19643_v40  ;;  %v10266_v54 = vadd.f32 %v19659_v47, %v10211_v10  ;;  %v21745_v22 = vld [vmem:[#allocation81_spill] sm:$0xff] }
 0x55f   : > { %v10360_v52 = vmax.f32 %v10312_v59, 0.0  ;;  %v9868_v43 = vadd.f32 %v19667_v5, %v9813_v62  ;;  %v9811_v20 = vmul.f32 %v19654_v45, %v9756_v3  ;;  %v9759_v57 = vadd.f32 %v13441_v44, %v19619_v31 }
 0x560   : > { %v10310_v53 = vadd.f32 %v10262_v30, %v9863_v21  ;;  %v9676_v42 = vpop.f32.mrf.mxu1  ;;  %v13509_v29 = vpop.f32.mrf.mxu0  ;;  %v10265_v31 = vadd.f32 %v19659_v47, %v10210_v50  ;;  %v10271_v17 = vadd.f32 %v19659_v47, %v10216_v41  ;;  %v10214_v9 = vmul.f32 %v19643_v40, %v10136_v63 }
 0x561   : > { %v11611_v2 = vpack.c.bf16 %v10360_v52, %v10359_v23  ;;  %v9866_v35 = vadd.f32 %v19667_v5, %v9811_v20  ;;  %v9814_v27 = vmul.f32 %v19654_v45, %v9759_v57  ;;  %v10315_v56 = vadd.f32 %v10267_v11, %v9868_v43  ;;  %v21746_v52 = vld [vmem:[#allocation74_spill] sm:$0xff] }
 0x562   : > { %v10358_v58 = vmax.f32 %v10310_v53, 0.0  ;;  %v9757_v49 = vadd.f32 %v9676_v42, %v19622_v0  ;;  %v13444_v46 = vpop.f32.mrf.mxu1  ;;  %v10139_v26 = vpop.f32.mrf.mxu0  ;;  %v10217_v1 = vmul.f32 %v13509_v29, %v19643_v40  ;;  %v10269_v57 = vadd.f32 %v19659_v47, %v10214_v9 }
 0x563   : > { %11683 = vst [vmem:[%s19699_s15 + $0x88] sm:$0xff] %v11611_v2   ;;  %v9869_v16 = vadd.f32 %v19667_v5, %v9814_v27  ;;  %v9762_v33 = vadd.f32 %v13444_v46, %v19625_v24  ;;  %v10313_v51 = vadd.f32 %v10265_v31, %v9866_v35  ;;  %v10363_v61 = vmax.f32 %v10315_v56, 0.0  ;;  %v21747_v35 = vld [vmem:[#allocation85_spill] sm:$0xff] }
 0x564   : > { %v11606_v37 = vpack.c.bf16 %v10358_v58, %v10357_v38  ;;  %v9812_v19 = vmul.f32 %v19654_v45, %v9757_v49  ;;  %v9689_v55 = vpop.f32.mrf.mxu1  ;;  %v13512_v8 = vpop.f32.mrf.mxu0  ;;  %v10215_v48 = vmul.f32 %v19643_v40, %v10139_v26  ;;  %v10272_v34 = vadd.f32 %v19659_v47, %v10217_v1 }
 0x565   : > { %v10316_v0 = vadd.f32 %v10268_v7, %v9869_v16  ;;  %v9817_v4 = vmul.f32 %v19654_v45, %v9762_v33  ;;  %v9760_v13 = vadd.f32 %v9689_v55, %v19628_v6  ;;  %v10361_v11 = vmax.f32 %v10313_v51, 0.0  ;;  %v21748_v33 = vld [vmem:[#allocation79_spill] sm:$0xff] }
 0x566   : > { %11682 = vst [vmem:[%s19699_s15 + $0x80] sm:$0xff] %v11606_v37   ;;  %v9867_v24 = vadd.f32 %v19667_v5, %v9812_v19  ;;  %v13445_v25 = vpop.f32.mrf.mxu1  ;;  %v10152_v15 = vpop.f32.mrf.mxu0  ;;  %v10220_v36 = vmul.f32 %v13512_v8, %v19643_v40  ;;  %v10270_v63 = vadd.f32 %v19659_v47, %v10215_v48 }
 0x567   : > { %v10364_v12 = vmax.f32 %v10316_v0, 0.0  ;;  %v9872_v14 = vadd.f32 %v19667_v5, %v9817_v4  ;;  %v9815_v32 = vmul.f32 %v19654_v45, %v9760_v13  ;;  %v9763_v28 = vadd.f32 %v13445_v25, %v21744_v18 }
 0x568   : > { %v10314_v6 = vadd.f32 %v10266_v54, %v9867_v24  ;;  %v9692_v30 = vpop.f32.mrf.mxu1  ;;  %v13513_v50 = vpop.f32.mrf.mxu0  ;;  %v10275_v38 = vadd.f32 %v19659_v47, %v10220_v36  ;;  %v10218_v54 = vmul.f32 %v19643_v40, %v10152_v15 }
 0x569   : > { %v11621_v60 = vpack.c.bf16 %v10364_v12, %v10363_v61  ;;  %v9818_v39 = vmul.f32 %v19654_v45, %v9763_v28  ;;  %v10319_v62 = vadd.f32 %v10271_v17, %v9872_v14  ;;  %v9870_v3 = vadd.f32 %v19667_v5, %v9815_v32  ;;  %v21749_v61 = vld [vmem:[#allocation82_spill] sm:$0xff] }
 0x56a   : > { %v10362_v59 = vmax.f32 %v10314_v6, 0.0  ;;  %v9761_v23 = vadd.f32 %v9692_v30, %v21745_v22  ;;  %v13448_v21 = vpop.f32.mrf.mxu1  ;;  %v10221_v41 = vmul.f32 %v13513_v50, %v19643_v40  ;;  %v10155_v49 = vpop.f32.mrf.mxu0  ;;  %v10273_v14 = vadd.f32 %v19659_v47, %v10218_v54 }
 0x56b   : > { %11685 = vst [vmem:[%s19699_s15 + $0x98] sm:$0xff] %v11621_v60   ;;  %v9873_v44 = vadd.f32 %v19667_v5, %v9818_v39  ;;  %v9766_v43 = vadd.f32 %v13448_v21, %v21746_v52  ;;  %v10367_v29 = vmax.f32 %v10319_v62, 0.0  ;;  %v10317_v58 = vadd.f32 %v10269_v57, %v9870_v3 }
 0x56c   : > { %v11616_v20 = vpack.c.bf16 %v10362_v59, %v10361_v11  ;;  %v9816_v53 = vmul.f32 %v19654_v45, %v9761_v23  ;;  %v9705_v10 = vpop.f32.mrf.mxu1  ;;  %v10219_v51 = vmul.f32 %v19643_v40, %v10155_v49  ;;  %v10276_v1 = vadd.f32 %v19659_v47, %v10221_v41 }
 0x56d   : > { %v10320_v42 = vadd.f32 %v10272_v34, %v9873_v44  ;;  %v9821_v2 = vmul.f32 %v19654_v45, %v9766_v43  ;;  %v9764_v27 = vadd.f32 %v9705_v10, %v21747_v35  ;;  %v10365_v4 = vmax.f32 %v10317_v58, 0.0 }
 0x56e   : > { %11684 = vst [vmem:[%s19699_s15 + $0x90] sm:$0xff] %v11616_v20   ;;  %v9871_v56 = vadd.f32 %v19667_v5, %v9816_v53  ;;  %v13449_v46 = vpop.f32.mrf.mxu1  ;;  %v10274_v28 = vadd.f32 %v19659_v47, %v10219_v51 }
 0x56f   : > { %v10368_v31 = vmax.f32 %v10320_v42, 0.0  ;;  %v9876_v7 = vadd.f32 %v19667_v5, %v9821_v2  ;;  %v9819_v16 = vmul.f32 %v19654_v45, %v9764_v27  ;;  %v9767_v26 = vadd.f32 %v13449_v46, %v21748_v33 }
 0x570   : > { %v10318_v37 = vadd.f32 %v10270_v63, %v9871_v56  ;;  %v9708_v19 = vpop.f32.mrf.mxu1 }
 0x571   : > { %v11631_v55 = vpack.c.bf16 %v10368_v31, %v10367_v29  ;;  %v9822_v0 = vmul.f32 %v19654_v45, %v9767_v26  ;;  %v9874_v8 = vadd.f32 %v19667_v5, %v9819_v16  ;;  %v9765_v17 = vadd.f32 %v9708_v19, %v21749_v61 }
 0x572   : > { %v10366_v13 = vmax.f32 %v10318_v37, 0.0  ;;  %v10323_v24 = vadd.f32 %v10275_v38, %v9876_v7 }
 0x573   : > { %11687 = vst [vmem:[%s19699_s15 + $0xa8] sm:$0xff] %v11631_v55   ;;  %v9877_v25 = vadd.f32 %v19667_v5, %v9822_v0  ;;  %v9820_v40 = vmul.f32 %v19654_v45, %v9765_v17  ;;  %v10321_v18 = vadd.f32 %v10273_v14, %v9874_v8 }
 0x574   : > { %v11626_v12 = vpack.c.bf16 %v10366_v13, %v10365_v4  ;;  %v10371_v6 = vmax.f32 %v10323_v24, 0.0 }
 0x575   : > { %v10324_v32 = vadd.f32 %v10276_v1, %v9877_v25  ;;  %v9875_v15 = vadd.f32 %v19667_v5, %v9820_v40  ;;  %v10369_v11 = vmax.f32 %v10321_v18, 0.0 }
 0x576   : > { %11686 = vst [vmem:[%s19699_s15 + $0xa0] sm:$0xff] %v11626_v12  }
 0x577   : > { %v10372_v9 = vmax.f32 %v10324_v32, 0.0  ;;  %v10322_v48 = vadd.f32 %v10274_v28, %v9875_v15 }
 0x579   : > { %v11641_v30 = vpack.c.bf16 %v10372_v9, %v10371_v6  ;;  %v10370_v60 = vmax.f32 %v10322_v48, 0.0 }
 0x57b   : > { %11689 = vst [vmem:[%s19699_s15 + $0xb8] sm:$0xff] %v11641_v30   ;;  %v11636_v39 = vpack.c.bf16 %v10370_v60, %v10369_v11 }
 0x57d   : > { %11688 = vst [vmem:[%s19699_s15 + $0xb0] sm:$0xff] %v11636_v39  }
 0x57e PF: > { %s20_s13 = sadd.s32 1, %s13926_s13  }
 0x57f   : > { %p17_p4 = scmp.ge.s32.totalorder %s20_s13, 4  }
 0x581   :  { %19 = sbr.rel (!%p17_p4) target bundleno = 1 (0x1), region = 106 }

</bundles_post_ra>
